<compile_context>
chip_gen: v7x
topology: tpu7x:2x2x1
jax: 0.10.0
libtpu: 0.0.40
codegen_flags: <defaults>
</compile_context>

<pallas_src>
import functools

import jax
import jax.numpy as jnp
from jax.experimental import pallas as pl
from jax.experimental.pallas import tpu as pltpu


# ------------------------------ fused kernel ------------------------------

def _simple_cnn_kernel(x_ref, w1_ref, b1_ref, w2_ref, b2_ref,
                       fw1_ref, fb1_ref, fw2_ref, fb2_ref, o_ref,
                       pad1_ref, pool1_ref, pad2_ref, patch_ref, pool2_ref,
                       act2_ref, flat_ref, *, N, S):
    """Entire SimpleCNN forward for one (small) batch, fully VMEM-resident.

    x_ref:    (N, S, S, 1)  f32   input image (NHWC, Cin=1)
    w1_ref:   (9, 1, 32)    f32   conv1 weight, row k = (ky, kx) = (k//3, k%3)
    b1_ref:   (1, 32)       f32
    w2_ref:   (288, 64)     bf16  conv2 im2col weight, row = (ky*3+kx)*32 + ci
    b2_ref:   (1, 64)       f32
    fw1_ref:  (1024, 128)   bf16  fc1 weight (flatten permutation folded in)
    fb1_ref:  (1, 128)      f32
    fw2_ref:  (128, 128)    bf16  fc2 weight (output padded to 128 lanes)
    fb2_ref:  (1, 128)      f32
    o_ref:    (N, 128)      f32   padded logits (lane-dense store)
    scratch:
      pad1_ref:  (N, S+2, S+2, 1)       f32   zero-padded conv1 input
      pool1_ref: (N*S/2, S, 32)         f32   conv1 H-pooled (for W-pool reads)
      pad2_ref:  (N, S/2+2, S/2+2, 32)  f32   zero-padded conv2 input
      patch_ref: (N*(S/2)^2, 288)       bf16  conv2 im2col patch matrix
      pool2_ref: (N*S/4, S/2, 64)       f32   conv2 H-pooled
      act2_ref:  (N, S/4, S/4, 64)      f32   pooled conv2 activation
      flat_ref:  (N, (S/4)^2 * 64)      f32   flattened fc1 input
    """
    S2, S4 = S // 2, S // 4
    C1, C2 = 32, 64

    # ---------------- conv1: 3x3 same conv, Cin=1 (VPU broadcast-MACs) -----
    pad1_ref[...] = jnp.zeros_like(pad1_ref)
    pad1_ref[:, 1:S + 1, 1:S + 1, :] = x_ref[...]
    acc1 = jnp.zeros((N, S, S, C1), jnp.float32)
    for k in range(9):
        ky, kx = divmod(k, 3)
        xs = pad1_ref[:, ky:ky + S, kx:kx + S, :]          # (N, S, S, 1)
        acc1 = acc1 + xs * w1_ref[k]                        # lane-broadcast MAC

    # ------------- 2x2/2 max-pool, then bias + ReLU on pooled tensor ------
    a5 = acc1.reshape(N, S2, 2, S, C1)                      # leading-dim split
    yh = jnp.maximum(a5[:, :, 0], a5[:, :, 1])              # H-pool (N,S2,S,C1)
    pool1_ref[...] = yh.reshape(N * S2, S, C1)
    ev = pool1_ref[:, pl.ds(0, S2, stride=2), :]            # sublane-strided
    od = pool1_ref[:, pl.ds(1, S2, stride=2), :]
    h1 = jnp.maximum(jnp.maximum(ev, od) + b1_ref[...], 0.0)   # (N*S2, S2, C1)

    # -------- write pooled conv1 output into conv2's zero-padded scratch ---
    pad2_ref[...] = jnp.zeros_like(pad2_ref)
    pad2_ref[:, 1:S2 + 1, 1:S2 + 1, :] = h1.reshape(N, S2, S2, C1)

    # ---------------- conv2: ONE K=288 im2col matmul on the MXU ------------
    M = N * S2 * S2
    for k in range(9):
        ky, kx = divmod(k, 3)
        xs = pad2_ref[:, ky:ky + S2, kx:kx + S2, :]         # (N, S2, S2, C1)
        patch_ref[:, k * C1:(k + 1) * C1] = (
            xs.reshape(M, C1).astype(jnp.bfloat16))         # lane-offset store
    acc2 = jnp.dot(patch_ref[...], w2_ref[...],
                   preferred_element_type=jnp.float32)      # (M, C2) f32

    # ------------- 2x2/2 max-pool, then bias + ReLU on pooled tensor ------
    a5 = acc2.reshape(N, S4, 2, S2, C2)
    yh = jnp.maximum(a5[:, :, 0], a5[:, :, 1])              # (N, S4, S2, C2)
    pool2_ref[...] = yh.reshape(N * S4, S2, C2)
    ev = pool2_ref[:, pl.ds(0, S4, stride=2), :]
    od = pool2_ref[:, pl.ds(1, S4, stride=2), :]
    h2 = jnp.maximum(jnp.maximum(ev, od) + b2_ref[...], 0.0)   # (N*S4, S4, C2)
    act2_ref[...] = h2.reshape(N, S4, S4, C2)

    # --------------- flatten (NHWC order; fc1 rows pre-permuted) -----------
    for yy in range(S4):
        for xx in range(S4):
            p = yy * S4 + xx
            flat_ref[:, p * C2:(p + 1) * C2] = act2_ref[:, yy, xx, :]

    # --------------- fc1 (+ReLU) + fc2, bf16 MXU, f32 accumulate -----------
    hfc = jnp.dot(flat_ref[...].astype(jnp.bfloat16), fw1_ref[...],
                  preferred_element_type=jnp.float32)       # (N, 128)
    hfc = jnp.maximum(hfc + fb1_ref[...], 0.0)
    out = jnp.dot(hfc.astype(jnp.bfloat16), fw2_ref[...],
                  preferred_element_type=jnp.float32)       # (N, 128)
    o_ref[...] = out + fb2_ref[...]


# -------------------------------- wrapper ----------------------------------

def simple_cnn_forward(x, p, *, side, num_classes):
    n = x.shape[0]
    assert side % 4 == 0, "two 2x2/2 max-pools need side % 4 == 0"
    s2, s4 = side // 2, side // 4
    # PyTorch: x.view(-1, 1, S, S); with C == 1 this equals NHWC (N, S, S, 1).
    img = x.reshape(n, side, side, 1)

    kern = functools.partial(_simple_cnn_kernel, N=n, S=side)
    out = pl.pallas_call(
        kern,
        out_shape=jax.ShapeDtypeStruct((n, 128), jnp.float32),
        scratch_shapes=[
            pltpu.VMEM((n, side + 2, side + 2, 1), jnp.float32),   # pad1
            pltpu.VMEM((n * s2, side, 32), jnp.float32),           # pool1
            pltpu.VMEM((n, s2 + 2, s2 + 2, 32), jnp.float32),      # pad2
            pltpu.VMEM((n * s2 * s2, 288), jnp.bfloat16),          # im2col patch
            pltpu.VMEM((n * s4, s2, 64), jnp.float32),             # pool2
            pltpu.VMEM((n, s4, s4, 64), jnp.float32),              # act2
            pltpu.VMEM((n, s4 * s4 * 64), jnp.float32),            # flat
        ],
    )(img, p["conv1_w"], p["conv1_b"], p["conv2_w"], p["conv2_b"],
      p["fc1_w"], p["fc1_b"], p["fc2_w"], p["fc2_b"])
    return out[:, :num_classes]


# ----------------------- parameter prep (one-off) ---------------------------

def prepare_params(torch_params, side, num_classes):
    """Convert PyTorch-layout params to kernel layout once, outside jit."""
    pooled = side // 4
    c2_out = torch_params["conv2_w"].shape[0]      # 64
    c2_in = torch_params["conv2_w"].shape[1]       # 32

    # conv1: (Cout,1,3,3) -> (9, 1, Cout), rows ordered (ky, kx); stays f32 (VPU).
    w1c = (jnp.transpose(torch_params["conv1_w"], (2, 3, 1, 0))
           .reshape(9, 1, -1).astype(jnp.float32))
    b1c = torch_params["conv1_b"].reshape(1, -1).astype(jnp.float32)

    # conv2: (Cout,Cin,3,3) -> im2col weight (9*Cin, Cout) bf16,
    # row index = (ky*3 + kx)*Cin + cin to match the in-kernel patch layout.
    w2c = (jnp.transpose(torch_params["conv2_w"], (2, 3, 1, 0))
           .reshape(9 * c2_in, c2_out).astype(jnp.bfloat16))
    b2c = torch_params["conv2_b"].reshape(1, -1).astype(jnp.float32)

    # fc1: fold PyTorch's NCHW flatten permutation into the weight rows so the
    # kernel can flatten in NHWC (y, x, c) order with no runtime transpose.
    yy, xx, cc = jnp.meshgrid(jnp.arange(pooled), jnp.arange(pooled),
                              jnp.arange(c2_out), indexing="ij")
    f_torch = (cc * pooled * pooled + yy * pooled + xx).reshape(-1)
    w1f = torch_params["fc1_w"].T[f_torch, :].astype(jnp.bfloat16)   # (64*P*P,128)
    b1f = torch_params["fc1_b"].reshape(1, -1).astype(jnp.float32)

    # fc2: pad the output dim to a multiple of 128 for lane-dense stores.
    nc_pad = (-num_classes) % 128
    w2f = jnp.pad(torch_params["fc2_w"].T,
                  ((0, 0), (0, nc_pad))).astype(jnp.bfloat16)        # (128, 128)
    b2f = jnp.pad(torch_params["fc2_b"],
                  (0, nc_pad)).reshape(1, -1).astype(jnp.float32)

    return {"conv1_w": w1c, "conv1_b": b1c,
            "conv2_w": w2c, "conv2_b": b2c,
            "fc1_w": w1f, "fc1_b": b1f,
            "fc2_w": w2f, "fc2_b": b2f}


def init_params(key, input_dim, num_classes):
    side = int(input_dim ** 0.5)
    pooled = side // 2 // 2
    fc1_in = 64 * pooled * pooled
    ks = jax.random.split(key, 8)
    scale = 0.05
    return {
        "conv1_w": scale * jax.random.normal(ks[0], (32, 1, 3, 3), jnp.float32),
        "conv1_b": scale * jax.random.normal(ks[1], (32,), jnp.float32),
        "conv2_w": scale * jax.random.normal(ks[2], (64, 32, 3, 3), jnp.float32),
        "conv2_b": scale * jax.random.normal(ks[3], (64,), jnp.float32),
        "fc1_w":   scale * jax.random.normal(ks[4], (128, fc1_in), jnp.float32),
        "fc1_b":   scale * jax.random.normal(ks[5], (128,), jnp.float32),
        "fc2_w":   scale * jax.random.normal(ks[6], (num_classes, 128), jnp.float32),
        "fc2_b":   scale * jax.random.normal(ks[7], (num_classes,), jnp.float32),
    }


if __name__ == "__main__":
    input_dim = 16 * 16       # side_length = 16
    num_classes = 10
    batch = 2
    side = int(input_dim ** 0.5)

    key = jax.random.PRNGKey(0)
    k_params, k_x = jax.random.split(key)
    torch_like_params = init_params(k_params, input_dim, num_classes)
    params = prepare_params(torch_like_params, side, num_classes)   # one-off prep
    x = jax.random.normal(k_x, (batch, input_dim), jnp.float32)

    fwd = jax.jit(functools.partial(simple_cnn_forward, side=side,
                                    num_classes=num_classes))
    out = fwd(x, params)
    jax.block_until_ready(out)
    assert out.shape == (batch, num_classes), out.shape
    print("KERNEL_OK")
</pallas_src>

<mosaic_0001>
module attributes {stable_mosaic.version = 11 : i64} {
  func.func @_simple_cnn_kernel(%arg0: memref<2x16x16x1xf32, #tpu.memory_space<vmem>>, %arg1: memref<9x1x32xf32, #tpu.memory_space<vmem>>, %arg2: memref<1x32xf32, #tpu.memory_space<vmem>>, %arg3: memref<288x64xbf16, #tpu.memory_space<vmem>>, %arg4: memref<1x64xf32, #tpu.memory_space<vmem>>, %arg5: memref<1024x128xbf16, #tpu.memory_space<vmem>>, %arg6: memref<1x128xf32, #tpu.memory_space<vmem>>, %arg7: memref<128x128xbf16, #tpu.memory_space<vmem>>, %arg8: memref<1x128xf32, #tpu.memory_space<vmem>>, %arg9: memref<2x128xf32, #tpu.memory_space<vmem>>, %arg10: memref<2x18x18x1xf32, #tpu.memory_space<vmem>>, %arg11: memref<16x16x32xf32, #tpu.memory_space<vmem>>, %arg12: memref<2x10x10x32xf32, #tpu.memory_space<vmem>>, %arg13: memref<128x288xbf16, #tpu.memory_space<vmem>>, %arg14: memref<8x8x64xf32, #tpu.memory_space<vmem>>, %arg15: memref<2x4x4x64xf32, #tpu.memory_space<vmem>>, %arg16: memref<2x1024xf32, #tpu.memory_space<vmem>>) attributes {dimension_semantics = [], scalar_prefetch = 0 : i64, scratch_operands = 7 : i64, tpu.core_type = #tpu.core_type<tc>} {
    %cst = arith.constant 0.000000e+00 : f32
    %0 = vector.broadcast %cst : f32 to vector<2x18x18x1xf32>
    %c0 = arith.constant 0 : index
    %c0_0 = arith.constant 0 : index
    %c0_1 = arith.constant 0 : index
    %c0_2 = arith.constant 0 : index
    %1 = vector.load %arg10[%c0, %c0_0, %c0_1, %c0_2] : memref<2x18x18x1xf32, #tpu.memory_space<vmem>>, vector<2x18x18x1xf32>
    tpu.vector_store %arg10[%c0, %c0_0, %c0_1, %c0_2], %0 {strides = array<i32>} : memref<2x18x18x1xf32, #tpu.memory_space<vmem>>, vector<2x18x18x1xf32>,
    %c0_3 = arith.constant 0 : index
    %c0_4 = arith.constant 0 : index
    %c0_5 = arith.constant 0 : index
    %c0_6 = arith.constant 0 : index
    %2 = vector.load %arg0[%c0_3, %c0_4, %c0_5, %c0_6] : memref<2x16x16x1xf32, #tpu.memory_space<vmem>>, vector<2x16x16x1xf32>
    %c0_7 = arith.constant 0 : index
    %c1 = arith.constant 1 : index
    %c1_8 = arith.constant 1 : index
    %c0_9 = arith.constant 0 : index
    %3 = vector.load %arg10[%c0_7, %c1, %c1_8, %c0_9] : memref<2x18x18x1xf32, #tpu.memory_space<vmem>>, vector<2x16x16x1xf32>
    tpu.vector_store %arg10[%c0_7, %c1, %c1_8, %c0_9], %2 {strides = array<i32>} : memref<2x18x18x1xf32, #tpu.memory_space<vmem>>, vector<2x16x16x1xf32>,
    %cst_10 = arith.constant 0.000000e+00 : f32
    %4 = vector.broadcast %cst_10 : f32 to vector<2x16x16x32xf32>
    %c0_11 = arith.constant 0 : index
    %c0_12 = arith.constant 0 : index
    %c0_13 = arith.constant 0 : index
    %c0_14 = arith.constant 0 : index
    %5 = vector.load %arg10[%c0_11, %c0_12, %c0_13, %c0_14] : memref<2x18x18x1xf32, #tpu.memory_space<vmem>>, vector<2x16x16x1xf32>
    %c0_15 = arith.constant 0 : index
    %c0_16 = arith.constant 0 : index
    %c0_17 = arith.constant 0 : index
    %6 = vector.load %arg1[%c0_15, %c0_16, %c0_17] : memref<9x1x32xf32, #tpu.memory_space<vmem>>, vector<1x1x32xf32>
    %7 = vector.shape_cast %6 : vector<1x1x32xf32> to vector<1x32xf32>
    %8 = vector.shape_cast %7 : vector<1x32xf32> to vector<1x1x1x32xf32>
    %9 = vector.broadcast %5 : vector<2x16x16x1xf32> to vector<2x16x16x32xf32>
    %10 = vector.broadcast %8 : vector<1x1x1x32xf32> to vector<2x16x16x32xf32>
    %11 = arith.mulf %9, %10 : vector<2x16x16x32xf32>
    %12 = arith.addf %4, %11 : vector<2x16x16x32xf32>
    %c0_18 = arith.constant 0 : index
    %c0_19 = arith.constant 0 : index
    %c1_20 = arith.constant 1 : index
    %c0_21 = arith.constant 0 : index
    %13 = vector.load %arg10[%c0_18, %c0_19, %c1_20, %c0_21] : memref<2x18x18x1xf32, #tpu.memory_space<vmem>>, vector<2x16x16x1xf32>
    %c1_22 = arith.constant 1 : index
    %c0_23 = arith.constant 0 : index
    %c0_24 = arith.constant 0 : index
    %14 = vector.load %arg1[%c1_22, %c0_23, %c0_24] : memref<9x1x32xf32, #tpu.memory_space<vmem>>, vector<1x1x32xf32>
    %15 = vector.shape_cast %14 : vector<1x1x32xf32> to vector<1x32xf32>
    %16 = vector.shape_cast %15 : vector<1x32xf32> to vector<1x1x1x32xf32>
    %17 = vector.broadcast %13 : vector<2x16x16x1xf32> to vector<2x16x16x32xf32>
    %18 = vector.broadcast %16 : vector<1x1x1x32xf32> to vector<2x16x16x32xf32>
    %19 = arith.mulf %17, %18 : vector<2x16x16x32xf32>
    %20 = arith.addf %12, %19 : vector<2x16x16x32xf32>
    %c0_25 = arith.constant 0 : index
    %c0_26 = arith.constant 0 : index
    %c2 = arith.constant 2 : index
    %c0_27 = arith.constant 0 : index
    %21 = vector.load %arg10[%c0_25, %c0_26, %c2, %c0_27] : memref<2x18x18x1xf32, #tpu.memory_space<vmem>>, vector<2x16x16x1xf32>
    %c2_28 = arith.constant 2 : index
    %c0_29 = arith.constant 0 : index
    %c0_30 = arith.constant 0 : index
    %22 = vector.load %arg1[%c2_28, %c0_29, %c0_30] : memref<9x1x32xf32, #tpu.memory_space<vmem>>, vector<1x1x32xf32>
    %23 = vector.shape_cast %22 : vector<1x1x32xf32> to vector<1x32xf32>
    %24 = vector.shape_cast %23 : vector<1x32xf32> to vector<1x1x1x32xf32>
    %25 = vector.broadcast %21 : vector<2x16x16x1xf32> to vector<2x16x16x32xf32>
    %26 = vector.broadcast %24 : vector<1x1x1x32xf32> to vector<2x16x16x32xf32>
    %27 = arith.mulf %25, %26 : vector<2x16x16x32xf32>
    %28 = arith.addf %20, %27 : vector<2x16x16x32xf32>
    %c0_31 = arith.constant 0 : index
    %c1_32 = arith.constant 1 : index
    %c0_33 = arith.constant 0 : index
    %c0_34 = arith.constant 0 : index
    %29 = vector.load %arg10[%c0_31, %c1_32, %c0_33, %c0_34] : memref<2x18x18x1xf32, #tpu.memory_space<vmem>>, vector<2x16x16x1xf32>
    %c3 = arith.constant 3 : index
    %c0_35 = arith.constant 0 : index
    %c0_36 = arith.constant 0 : index
    %30 = vector.load %arg1[%c3, %c0_35, %c0_36] : memref<9x1x32xf32, #tpu.memory_space<vmem>>, vector<1x1x32xf32>
    %31 = vector.shape_cast %30 : vector<1x1x32xf32> to vector<1x32xf32>
    %32 = vector.shape_cast %31 : vector<1x32xf32> to vector<1x1x1x32xf32>
    %33 = vector.broadcast %29 : vector<2x16x16x1xf32> to vector<2x16x16x32xf32>
    %34 = vector.broadcast %32 : vector<1x1x1x32xf32> to vector<2x16x16x32xf32>
    %35 = arith.mulf %33, %34 : vector<2x16x16x32xf32>
    %36 = arith.addf %28, %35 : vector<2x16x16x32xf32>
    %c0_37 = arith.constant 0 : index
    %c1_38 = arith.constant 1 : index
    %c1_39 = arith.constant 1 : index
    %c0_40 = arith.constant 0 : index
    %37 = vector.load %arg10[%c0_37, %c1_38, %c1_39, %c0_40] : memref<2x18x18x1xf32, #tpu.memory_space<vmem>>, vector<2x16x16x1xf32>
    %c4 = arith.constant 4 : index
    %c0_41 = arith.constant 0 : index
    %c0_42 = arith.constant 0 : index
    %38 = vector.load %arg1[%c4, %c0_41, %c0_42] : memref<9x1x32xf32, #tpu.memory_space<vmem>>, vector<1x1x32xf32>
    %39 = vector.shape_cast %38 : vector<1x1x32xf32> to vector<1x32xf32>
    %40 = vector.shape_cast %39 : vector<1x32xf32> to vector<1x1x1x32xf32>
    %41 = vector.broadcast %37 : vector<2x16x16x1xf32> to vector<2x16x16x32xf32>
    %42 = vector.broadcast %40 : vector<1x1x1x32xf32> to vector<2x16x16x32xf32>
    %43 = arith.mulf %41, %42 : vector<2x16x16x32xf32>
    %44 = arith.addf %36, %43 : vector<2x16x16x32xf32>
    %c0_43 = arith.constant 0 : index
    %c1_44 = arith.constant 1 : index
    %c2_45 = arith.constant 2 : index
    %c0_46 = arith.constant 0 : index
    %45 = vector.load %arg10[%c0_43, %c1_44, %c2_45, %c0_46] : memref<2x18x18x1xf32, #tpu.memory_space<vmem>>, vector<2x16x16x1xf32>
    %c5 = arith.constant 5 : index
    %c0_47 = arith.constant 0 : index
    %c0_48 = arith.constant 0 : index
    %46 = vector.load %arg1[%c5, %c0_47, %c0_48] : memref<9x1x32xf32, #tpu.memory_space<vmem>>, vector<1x1x32xf32>
    %47 = vector.shape_cast %46 : vector<1x1x32xf32> to vector<1x32xf32>
    %48 = vector.shape_cast %47 : vector<1x32xf32> to vector<1x1x1x32xf32>
    %49 = vector.broadcast %45 : vector<2x16x16x1xf32> to vector<2x16x16x32xf32>
    %50 = vector.broadcast %48 : vector<1x1x1x32xf32> to vector<2x16x16x32xf32>
    %51 = arith.mulf %49, %50 : vector<2x16x16x32xf32>
    %52 = arith.addf %44, %51 : vector<2x16x16x32xf32>
    %c0_49 = arith.constant 0 : index
    %c2_50 = arith.constant 2 : index
    %c0_51 = arith.constant 0 : index
    %c0_52 = arith.constant 0 : index
    %53 = vector.load %arg10[%c0_49, %c2_50, %c0_51, %c0_52] : memref<2x18x18x1xf32, #tpu.memory_space<vmem>>, vector<2x16x16x1xf32>
    %c6 = arith.constant 6 : index
    %c0_53 = arith.constant 0 : index
    %c0_54 = arith.constant 0 : index
    %54 = vector.load %arg1[%c6, %c0_53, %c0_54] : memref<9x1x32xf32, #tpu.memory_space<vmem>>, vector<1x1x32xf32>
    %55 = vector.shape_cast %54 : vector<1x1x32xf32> to vector<1x32xf32>
    %56 = vector.shape_cast %55 : vector<1x32xf32> to vector<1x1x1x32xf32>
    %57 = vector.broadcast %53 : vector<2x16x16x1xf32> to vector<2x16x16x32xf32>
    %58 = vector.broadcast %56 : vector<1x1x1x32xf32> to vector<2x16x16x32xf32>
    %59 = arith.mulf %57, %58 : vector<2x16x16x32xf32>
    %60 = arith.addf %52, %59 : vector<2x16x16x32xf32>
    %c0_55 = arith.constant 0 : index
    %c2_56 = arith.constant 2 : index
    %c1_57 = arith.constant 1 : index
    %c0_58 = arith.constant 0 : index
    %61 = vector.load %arg10[%c0_55, %c2_56, %c1_57, %c0_58] : memref<2x18x18x1xf32, #tpu.memory_space<vmem>>, vector<2x16x16x1xf32>
    %c7 = arith.constant 7 : index
    %c0_59 = arith.constant 0 : index
    %c0_60 = arith.constant 0 : index
    %62 = vector.load %arg1[%c7, %c0_59, %c0_60] : memref<9x1x32xf32, #tpu.memory_space<vmem>>, vector<1x1x32xf32>
    %63 = vector.shape_cast %62 : vector<1x1x32xf32> to vector<1x32xf32>
    %64 = vector.shape_cast %63 : vector<1x32xf32> to vector<1x1x1x32xf32>
    %65 = vector.broadcast %61 : vector<2x16x16x1xf32> to vector<2x16x16x32xf32>
    %66 = vector.broadcast %64 : vector<1x1x1x32xf32> to vector<2x16x16x32xf32>
    %67 = arith.mulf %65, %66 : vector<2x16x16x32xf32>
    %68 = arith.addf %60, %67 : vector<2x16x16x32xf32>
    %c0_61 = arith.constant 0 : index
    %c2_62 = arith.constant 2 : index
    %c2_63 = arith.constant 2 : index
    %c0_64 = arith.constant 0 : index
    %69 = vector.load %arg10[%c0_61, %c2_62, %c2_63, %c0_64] : memref<2x18x18x1xf32, #tpu.memory_space<vmem>>, vector<2x16x16x1xf32>
    %c8 = arith.constant 8 : index
    %c0_65 = arith.constant 0 : index
    %c0_66 = arith.constant 0 : index
    %70 = vector.load %arg1[%c8, %c0_65, %c0_66] : memref<9x1x32xf32, #tpu.memory_space<vmem>>, vector<1x1x32xf32>
    %71 = vector.shape_cast %70 : vector<1x1x32xf32> to vector<1x32xf32>
    %72 = vector.shape_cast %71 : vector<1x32xf32> to vector<1x1x1x32xf32>
    %73 = vector.broadcast %69 : vector<2x16x16x1xf32> to vector<2x16x16x32xf32>
    %74 = vector.broadcast %72 : vector<1x1x1x32xf32> to vector<2x16x16x32xf32>
    %75 = arith.mulf %73, %74 : vector<2x16x16x32xf32>
    %76 = arith.addf %68, %75 : vector<2x16x16x32xf32>
    %77 = vector.shape_cast %76 : vector<2x16x16x32xf32> to vector<2x8x2x16x32xf32>
    %78 = vector.extract_strided_slice %77 {offsets = [0, 0, 0, 0, 0], sizes = [2, 8, 1, 16, 32], strides = [1, 1, 1, 1, 1]} : vector<2x8x2x16x32xf32> to vector<2x8x1x16x32xf32>
    %79 = vector.shape_cast %78 : vector<2x8x1x16x32xf32> to vector<2x8x16x32xf32>
    %80 = vector.extract_strided_slice %77 {offsets = [0, 0, 1, 0, 0], sizes = [2, 8, 1, 16, 32], strides = [1, 1, 1, 1, 1]} : vector<2x8x2x16x32xf32> to vector<2x8x1x16x32xf32>
    %81 = vector.shape_cast %80 : vector<2x8x1x16x32xf32> to vector<2x8x16x32xf32>
    %82 = arith.maximumf %79, %81 : vector<2x8x16x32xf32>
    %83 = vector.shape_cast %82 : vector<2x8x16x32xf32> to vector<16x16x32xf32>
    %c0_67 = arith.constant 0 : index
    %c0_68 = arith.constant 0 : index
    %c0_69 = arith.constant 0 : index
    %84 = vector.load %arg11[%c0_67, %c0_68, %c0_69] : memref<16x16x32xf32, #tpu.memory_space<vmem>>, vector<16x16x32xf32>
    tpu.vector_store %arg11[%c0_67, %c0_68, %c0_69], %83 {strides = array<i32>} : memref<16x16x32xf32, #tpu.memory_space<vmem>>, vector<16x16x32xf32>,
    %c0_70 = arith.constant 0 : index
    %c0_71 = arith.constant 0 : index
    %c0_72 = arith.constant 0 : index
    %85 = tpu.strided_load %arg11[%c0_70, %c0_71, %c0_72] {strides = array<i32: 1, 2, 1>} : memref<16x16x32xf32, #tpu.memory_space<vmem>>, vector<16x8x32xf32>
    %c0_73 = arith.constant 0 : index
    %c1_74 = arith.constant 1 : index
    %c0_75 = arith.constant 0 : index
    %86 = tpu.strided_load %arg11[%c0_73, %c1_74, %c0_75] {strides = array<i32: 1, 2, 1>} : memref<16x16x32xf32, #tpu.memory_space<vmem>>, vector<16x8x32xf32>
    %87 = arith.maximumf %85, %86 : vector<16x8x32xf32>
    %c0_76 = arith.constant 0 : index
    %c0_77 = arith.constant 0 : index
    %88 = vector.load %arg2[%c0_76, %c0_77] : memref<1x32xf32, #tpu.memory_space<vmem>>, vector<1x32xf32>
    %89 = vector.shape_cast %88 : vector<1x32xf32> to vector<1x1x32xf32>
    %90 = vector.broadcast %89 : vector<1x1x32xf32> to vector<16x8x32xf32>
    %91 = arith.addf %87, %90 : vector<16x8x32xf32>
    %cst_78 = arith.constant 0.000000e+00 : f32
    %92 = vector.broadcast %cst_78 : f32 to vector<16x8x32xf32>
    %93 = arith.maximumf %91, %92 : vector<16x8x32xf32>
    %cst_79 = arith.constant 0.000000e+00 : f32
    %94 = vector.broadcast %cst_79 : f32 to vector<2x10x10x32xf32>
    %c0_80 = arith.constant 0 : index
    %c0_81 = arith.constant 0 : index
    %c0_82 = arith.constant 0 : index
    %c0_83 = arith.constant 0 : index
    %95 = vector.load %arg12[%c0_80, %c0_81, %c0_82, %c0_83] : memref<2x10x10x32xf32, #tpu.memory_space<vmem>>, vector<2x10x10x32xf32>
    tpu.vector_store %arg12[%c0_80, %c0_81, %c0_82, %c0_83], %94 {strides = array<i32>} : memref<2x10x10x32xf32, #tpu.memory_space<vmem>>, vector<2x10x10x32xf32>,
    %96 = vector.shape_cast %93 : vector<16x8x32xf32> to vector<2x8x8x32xf32>
    %c0_84 = arith.constant 0 : index
    %c1_85 = arith.constant 1 : index
    %c1_86 = arith.constant 1 : index
    %c0_87 = arith.constant 0 : index
    %97 = vector.load %arg12[%c0_84, %c1_85, %c1_86, %c0_87] : memref<2x10x10x32xf32, #tpu.memory_space<vmem>>, vector<2x8x8x32xf32>
    tpu.vector_store %arg12[%c0_84, %c1_85, %c1_86, %c0_87], %96 {strides = array<i32>} : memref<2x10x10x32xf32, #tpu.memory_space<vmem>>, vector<2x8x8x32xf32>,
    %c0_88 = arith.constant 0 : index
    %c0_89 = arith.constant 0 : index
    %c0_90 = arith.constant 0 : index
    %c0_91 = arith.constant 0 : index
    %98 = vector.load %arg12[%c0_88, %c0_89, %c0_90, %c0_91] : memref<2x10x10x32xf32, #tpu.memory_space<vmem>>, vector<2x8x8x32xf32>
    %99 = vector.shape_cast %98 : vector<2x8x8x32xf32> to vector<128x32xf32>
    %100 = arith.truncf %99 : vector<128x32xf32> to vector<128x32xbf16>
    %c0_92 = arith.constant 0 : index
    %c0_93 = arith.constant 0 : index
    %101 = vector.load %arg13[%c0_92, %c0_93] : memref<128x288xbf16, #tpu.memory_space<vmem>>, vector<128x32xbf16>
    tpu.vector_store %arg13[%c0_92, %c0_93], %100 {strides = array<i32>} : memref<128x288xbf16, #tpu.memory_space<vmem>>, vector<128x32xbf16>,
    %c0_94 = arith.constant 0 : index
    %c0_95 = arith.constant 0 : index
    %c1_96 = arith.constant 1 : index
    %c0_97 = arith.constant 0 : index
    %102 = vector.load %arg12[%c0_94, %c0_95, %c1_96, %c0_97] : memref<2x10x10x32xf32, #tpu.memory_space<vmem>>, vector<2x8x8x32xf32>
    %103 = vector.shape_cast %102 : vector<2x8x8x32xf32> to vector<128x32xf32>
    %104 = arith.truncf %103 : vector<128x32xf32> to vector<128x32xbf16>
    %c0_98 = arith.constant 0 : index
    %c32 = arith.constant 32 : index
    %105 = vector.load %arg13[%c0_98, %c32] : memref<128x288xbf16, #tpu.memory_space<vmem>>, vector<128x32xbf16>
    tpu.vector_store %arg13[%c0_98, %c32], %104 {strides = array<i32>} : memref<128x288xbf16, #tpu.memory_space<vmem>>, vector<128x32xbf16>,
    %c0_99 = arith.constant 0 : index
    %c0_100 = arith.constant 0 : index
    %c2_101 = arith.constant 2 : index
    %c0_102 = arith.constant 0 : index
    %106 = vector.load %arg12[%c0_99, %c0_100, %c2_101, %c0_102] : memref<2x10x10x32xf32, #tpu.memory_space<vmem>>, vector<2x8x8x32xf32>
    %107 = vector.shape_cast %106 : vector<2x8x8x32xf32> to vector<128x32xf32>
    %108 = arith.truncf %107 : vector<128x32xf32> to vector<128x32xbf16>
    %c0_103 = arith.constant 0 : index
    %c64 = arith.constant 64 : index
    %109 = vector.load %arg13[%c0_103, %c64] : memref<128x288xbf16, #tpu.memory_space<vmem>>, vector<128x32xbf16>
    tpu.vector_store %arg13[%c0_103, %c64], %108 {strides = array<i32>} : memref<128x288xbf16, #tpu.memory_space<vmem>>, vector<128x32xbf16>,
    %c0_104 = arith.constant 0 : index
    %c1_105 = arith.constant 1 : index
    %c0_106 = arith.constant 0 : index
    %c0_107 = arith.constant 0 : index
    %110 = vector.load %arg12[%c0_104, %c1_105, %c0_106, %c0_107] : memref<2x10x10x32xf32, #tpu.memory_space<vmem>>, vector<2x8x8x32xf32>
    %111 = vector.shape_cast %110 : vector<2x8x8x32xf32> to vector<128x32xf32>
    %112 = arith.truncf %111 : vector<128x32xf32> to vector<128x32xbf16>
    %c0_108 = arith.constant 0 : index
    %c96 = arith.constant 96 : index
    %113 = vector.load %arg13[%c0_108, %c96] : memref<128x288xbf16, #tpu.memory_space<vmem>>, vector<128x32xbf16>
    tpu.vector_store %arg13[%c0_108, %c96], %112 {strides = array<i32>} : memref<128x288xbf16, #tpu.memory_space<vmem>>, vector<128x32xbf16>,
    %c0_109 = arith.constant 0 : index
    %c1_110 = arith.constant 1 : index
    %c1_111 = arith.constant 1 : index
    %c0_112 = arith.constant 0 : index
    %114 = vector.load %arg12[%c0_109, %c1_110, %c1_111, %c0_112] : memref<2x10x10x32xf32, #tpu.memory_space<vmem>>, vector<2x8x8x32xf32>
    %115 = vector.shape_cast %114 : vector<2x8x8x32xf32> to vector<128x32xf32>
    %116 = arith.truncf %115 : vector<128x32xf32> to vector<128x32xbf16>
    %c0_113 = arith.constant 0 : index
    %c128 = arith.constant 128 : index
    %117 = vector.load %arg13[%c0_113, %c128] : memref<128x288xbf16, #tpu.memory_space<vmem>>, vector<128x32xbf16>
    tpu.vector_store %arg13[%c0_113, %c128], %116 {strides = array<i32>} : memref<128x288xbf16, #tpu.memory_space<vmem>>, vector<128x32xbf16>,
    %c0_114 = arith.constant 0 : index
    %c1_115 = arith.constant 1 : index
    %c2_116 = arith.constant 2 : index
    %c0_117 = arith.constant 0 : index
    %118 = vector.load %arg12[%c0_114, %c1_115, %c2_116, %c0_117] : memref<2x10x10x32xf32, #tpu.memory_space<vmem>>, vector<2x8x8x32xf32>
    %119 = vector.shape_cast %118 : vector<2x8x8x32xf32> to vector<128x32xf32>
    %120 = arith.truncf %119 : vector<128x32xf32> to vector<128x32xbf16>
    %c0_118 = arith.constant 0 : index
    %c160 = arith.constant 160 : index
    %121 = vector.load %arg13[%c0_118, %c160] : memref<128x288xbf16, #tpu.memory_space<vmem>>, vector<128x32xbf16>
    tpu.vector_store %arg13[%c0_118, %c160], %120 {strides = array<i32>} : memref<128x288xbf16, #tpu.memory_space<vmem>>, vector<128x32xbf16>,
    %c0_119 = arith.constant 0 : index
    %c2_120 = arith.constant 2 : index
    %c0_121 = arith.constant 0 : index
    %c0_122 = arith.constant 0 : index
    %122 = vector.load %arg12[%c0_119, %c2_120, %c0_121, %c0_122] : memref<2x10x10x32xf32, #tpu.memory_space<vmem>>, vector<2x8x8x32xf32>
    %123 = vector.shape_cast %122 : vector<2x8x8x32xf32> to vector<128x32xf32>
    %124 = arith.truncf %123 : vector<128x32xf32> to vector<128x32xbf16>
    %c0_123 = arith.constant 0 : index
    %c192 = arith.constant 192 : index
    %125 = vector.load %arg13[%c0_123, %c192] : memref<128x288xbf16, #tpu.memory_space<vmem>>, vector<128x32xbf16>
    tpu.vector_store %arg13[%c0_123, %c192], %124 {strides = array<i32>} : memref<128x288xbf16, #tpu.memory_space<vmem>>, vector<128x32xbf16>,
    %c0_124 = arith.constant 0 : index
    %c2_125 = arith.constant 2 : index
    %c1_126 = arith.constant 1 : index
    %c0_127 = arith.constant 0 : index
    %126 = vector.load %arg12[%c0_124, %c2_125, %c1_126, %c0_127] : memref<2x10x10x32xf32, #tpu.memory_space<vmem>>, vector<2x8x8x32xf32>
    %127 = vector.shape_cast %126 : vector<2x8x8x32xf32> to vector<128x32xf32>
    %128 = arith.truncf %127 : vector<128x32xf32> to vector<128x32xbf16>
    %c0_128 = arith.constant 0 : index
    %c224 = arith.constant 224 : index
    %129 = vector.load %arg13[%c0_128, %c224] : memref<128x288xbf16, #tpu.memory_space<vmem>>, vector<128x32xbf16>
    tpu.vector_store %arg13[%c0_128, %c224], %128 {strides = array<i32>} : memref<128x288xbf16, #tpu.memory_space<vmem>>, vector<128x32xbf16>,
    %c0_129 = arith.constant 0 : index
    %c2_130 = arith.constant 2 : index
    %c2_131 = arith.constant 2 : index
    %c0_132 = arith.constant 0 : index
    %130 = vector.load %arg12[%c0_129, %c2_130, %c2_131, %c0_132] : memref<2x10x10x32xf32, #tpu.memory_space<vmem>>, vector<2x8x8x32xf32>
    %131 = vector.shape_cast %130 : vector<2x8x8x32xf32> to vector<128x32xf32>
    %132 = arith.truncf %131 : vector<128x32xf32> to vector<128x32xbf16>
    %c0_133 = arith.constant 0 : index
    %c256 = arith.constant 256 : index
    %133 = vector.load %arg13[%c0_133, %c256] : memref<128x288xbf16, #tpu.memory_space<vmem>>, vector<128x32xbf16>
    tpu.vector_store %arg13[%c0_133, %c256], %132 {strides = array<i32>} : memref<128x288xbf16, #tpu.memory_space<vmem>>, vector<128x32xbf16>,
    %c0_134 = arith.constant 0 : index
    %c0_135 = arith.constant 0 : index
    %134 = vector.load %arg13[%c0_134, %c0_135] : memref<128x288xbf16, #tpu.memory_space<vmem>>, vector<128x288xbf16>
    %c0_136 = arith.constant 0 : index
    %c0_137 = arith.constant 0 : index
    %135 = vector.load %arg3[%c0_136, %c0_137] : memref<288x64xbf16, #tpu.memory_space<vmem>>, vector<288x64xbf16>
    %cst_138 = arith.constant dense<0.000000e+00> : vector<128x64xf32>
    %136 = tpu.matmul %134, %135, %cst_138 {dimension_numbers = #tpu.dot_dimension_numbers<[1], [0], [0], [1], [0, 0, 1, 1], [], []>} : vector<128x288xbf16>, vector<288x64xbf16>, vector<128x64xf32> -> vector<128x64xf32>
    %137 = vector.shape_cast %136 : vector<128x64xf32> to vector<2x4x2x8x64xf32>
    %138 = vector.extract_strided_slice %137 {offsets = [0, 0, 0, 0, 0], sizes = [2, 4, 1, 8, 64], strides = [1, 1, 1, 1, 1]} : vector<2x4x2x8x64xf32> to vector<2x4x1x8x64xf32>
    %139 = vector.shape_cast %138 : vector<2x4x1x8x64xf32> to vector<2x4x8x64xf32>
    %140 = vector.extract_strided_slice %137 {offsets = [0, 0, 1, 0, 0], sizes = [2, 4, 1, 8, 64], strides = [1, 1, 1, 1, 1]} : vector<2x4x2x8x64xf32> to vector<2x4x1x8x64xf32>
    %141 = vector.shape_cast %140 : vector<2x4x1x8x64xf32> to vector<2x4x8x64xf32>
    %142 = arith.maximumf %139, %141 : vector<2x4x8x64xf32>
    %143 = vector.shape_cast %142 : vector<2x4x8x64xf32> to vector<8x8x64xf32>
    %c0_139 = arith.constant 0 : index
    %c0_140 = arith.constant 0 : index
    %c0_141 = arith.constant 0 : index
    %144 = vector.load %arg14[%c0_139, %c0_140, %c0_141] : memref<8x8x64xf32, #tpu.memory_space<vmem>>, vector<8x8x64xf32>
    tpu.vector_store %arg14[%c0_139, %c0_140, %c0_141], %143 {strides = array<i32>} : memref<8x8x64xf32, #tpu.memory_space<vmem>>, vector<8x8x64xf32>,
    %c0_142 = arith.constant 0 : index
    %c0_143 = arith.constant 0 : index
    %c0_144 = arith.constant 0 : index
    %145 = tpu.strided_load %arg14[%c0_142, %c0_143, %c0_144] {strides = array<i32: 1, 2, 1>} : memref<8x8x64xf32, #tpu.memory_space<vmem>>, vector<8x4x64xf32>
    %c0_145 = arith.constant 0 : index
    %c1_146 = arith.constant 1 : index
    %c0_147 = arith.constant 0 : index
    %146 = tpu.strided_load %arg14[%c0_145, %c1_146, %c0_147] {strides = array<i32: 1, 2, 1>} : memref<8x8x64xf32, #tpu.memory_space<vmem>>, vector<8x4x64xf32>
    %147 = arith.maximumf %145, %146 : vector<8x4x64xf32>
    %c0_148 = arith.constant 0 : index
    %c0_149 = arith.constant 0 : index
    %148 = vector.load %arg4[%c0_148, %c0_149] : memref<1x64xf32, #tpu.memory_space<vmem>>, vector<1x64xf32>
    %149 = vector.shape_cast %148 : vector<1x64xf32> to vector<1x1x64xf32>
    %150 = vector.broadcast %149 : vector<1x1x64xf32> to vector<8x4x64xf32>
    %151 = arith.addf %147, %150 : vector<8x4x64xf32>
    %cst_150 = arith.constant 0.000000e+00 : f32
    %152 = vector.broadcast %cst_150 : f32 to vector<8x4x64xf32>
    %153 = arith.maximumf %151, %152 : vector<8x4x64xf32>
    %154 = vector.shape_cast %153 : vector<8x4x64xf32> to vector<2x4x4x64xf32>
    %c0_151 = arith.constant 0 : index
    %c0_152 = arith.constant 0 : index
    %c0_153 = arith.constant 0 : index
    %c0_154 = arith.constant 0 : index
    %155 = vector.load %arg15[%c0_151, %c0_152, %c0_153, %c0_154] : memref<2x4x4x64xf32, #tpu.memory_space<vmem>>, vector<2x4x4x64xf32>
    tpu.vector_store %arg15[%c0_151, %c0_152, %c0_153, %c0_154], %154 {strides = array<i32>} : memref<2x4x4x64xf32, #tpu.memory_space<vmem>>, vector<2x4x4x64xf32>,
    %c0_155 = arith.constant 0 : index
    %c0_156 = arith.constant 0 : index
    %c0_157 = arith.constant 0 : index
    %c0_158 = arith.constant 0 : index
    %156 = vector.load %arg15[%c0_155, %c0_156, %c0_157, %c0_158] : memref<2x4x4x64xf32, #tpu.memory_space<vmem>>, vector<2x1x1x64xf32>
    %157 = vector.shape_cast %156 : vector<2x1x1x64xf32> to vector<2x64xf32>
    %c0_159 = arith.constant 0 : index
    %c0_160 = arith.constant 0 : index
    %158 = vector.load %arg16[%c0_159, %c0_160] : memref<2x1024xf32, #tpu.memory_space<vmem>>, vector<2x64xf32>
    tpu.vector_store %arg16[%c0_159, %c0_160], %157 {strides = array<i32>} : memref<2x1024xf32, #tpu.memory_space<vmem>>, vector<2x64xf32>,
    %c0_161 = arith.constant 0 : index
    %c0_162 = arith.constant 0 : index
    %c1_163 = arith.constant 1 : index
    %c0_164 = arith.constant 0 : index
    %159 = vector.load %arg15[%c0_161, %c0_162, %c1_163, %c0_164] : memref<2x4x4x64xf32, #tpu.memory_space<vmem>>, vector<2x1x1x64xf32>
    %160 = vector.shape_cast %159 : vector<2x1x1x64xf32> to vector<2x64xf32>
    %c0_165 = arith.constant 0 : index
    %c64_166 = arith.constant 64 : index
    %161 = vector.load %arg16[%c0_165, %c64_166] : memref<2x1024xf32, #tpu.memory_space<vmem>>, vector<2x64xf32>
    tpu.vector_store %arg16[%c0_165, %c64_166], %160 {strides = array<i32>} : memref<2x1024xf32, #tpu.memory_space<vmem>>, vector<2x64xf32>,
    %c0_167 = arith.constant 0 : index
    %c0_168 = arith.constant 0 : index
    %c2_169 = arith.constant 2 : index
    %c0_170 = arith.constant 0 : index
    %162 = vector.load %arg15[%c0_167, %c0_168, %c2_169, %c0_170] : memref<2x4x4x64xf32, #tpu.memory_space<vmem>>, vector<2x1x1x64xf32>
    %163 = vector.shape_cast %162 : vector<2x1x1x64xf32> to vector<2x64xf32>
    %c0_171 = arith.constant 0 : index
    %c128_172 = arith.constant 128 : index
    %164 = vector.load %arg16[%c0_171, %c128_172] : memref<2x1024xf32, #tpu.memory_space<vmem>>, vector<2x64xf32>
    tpu.vector_store %arg16[%c0_171, %c128_172], %163 {strides = array<i32>} : memref<2x1024xf32, #tpu.memory_space<vmem>>, vector<2x64xf32>,
    %c0_173 = arith.constant 0 : index
    %c0_174 = arith.constant 0 : index
    %c3_175 = arith.constant 3 : index
    %c0_176 = arith.constant 0 : index
    %165 = vector.load %arg15[%c0_173, %c0_174, %c3_175, %c0_176] : memref<2x4x4x64xf32, #tpu.memory_space<vmem>>, vector<2x1x1x64xf32>
    %166 = vector.shape_cast %165 : vector<2x1x1x64xf32> to vector<2x64xf32>
    %c0_177 = arith.constant 0 : index
    %c192_178 = arith.constant 192 : index
    %167 = vector.load %arg16[%c0_177, %c192_178] : memref<2x1024xf32, #tpu.memory_space<vmem>>, vector<2x64xf32>
    tpu.vector_store %arg16[%c0_177, %c192_178], %166 {strides = array<i32>} : memref<2x1024xf32, #tpu.memory_space<vmem>>, vector<2x64xf32>,
    %c0_179 = arith.constant 0 : index
    %c1_180 = arith.constant 1 : index
    %c0_181 = arith.constant 0 : index
    %c0_182 = arith.constant 0 : index
    %168 = vector.load %arg15[%c0_179, %c1_180, %c0_181, %c0_182] : memref<2x4x4x64xf32, #tpu.memory_space<vmem>>, vector<2x1x1x64xf32>
    %169 = vector.shape_cast %168 : vector<2x1x1x64xf32> to vector<2x64xf32>
    %c0_183 = arith.constant 0 : index
    %c256_184 = arith.constant 256 : index
    %170 = vector.load %arg16[%c0_183, %c256_184] : memref<2x1024xf32, #tpu.memory_space<vmem>>, vector<2x64xf32>
    tpu.vector_store %arg16[%c0_183, %c256_184], %169 {strides = array<i32>} : memref<2x1024xf32, #tpu.memory_space<vmem>>, vector<2x64xf32>,
    %c0_185 = arith.constant 0 : index
    %c1_186 = arith.constant 1 : index
    %c1_187 = arith.constant 1 : index
    %c0_188 = arith.constant 0 : index
    %171 = vector.load %arg15[%c0_185, %c1_186, %c1_187, %c0_188] : memref<2x4x4x64xf32, #tpu.memory_space<vmem>>, vector<2x1x1x64xf32>
    %172 = vector.shape_cast %171 : vector<2x1x1x64xf32> to vector<2x64xf32>
    %c0_189 = arith.constant 0 : index
    %c320 = arith.constant 320 : index
    %173 = vector.load %arg16[%c0_189, %c320] : memref<2x1024xf32, #tpu.memory_space<vmem>>, vector<2x64xf32>
    tpu.vector_store %arg16[%c0_189, %c320], %172 {strides = array<i32>} : memref<2x1024xf32, #tpu.memory_space<vmem>>, vector<2x64xf32>,
    %c0_190 = arith.constant 0 : index
    %c1_191 = arith.constant 1 : index
    %c2_192 = arith.constant 2 : index
    %c0_193 = arith.constant 0 : index
    %174 = vector.load %arg15[%c0_190, %c1_191, %c2_192, %c0_193] : memref<2x4x4x64xf32, #tpu.memory_space<vmem>>, vector<2x1x1x64xf32>
    %175 = vector.shape_cast %174 : vector<2x1x1x64xf32> to vector<2x64xf32>
    %c0_194 = arith.constant 0 : index
    %c384 = arith.constant 384 : index
    %176 = vector.load %arg16[%c0_194, %c384] : memref<2x1024xf32, #tpu.memory_space<vmem>>, vector<2x64xf32>
    tpu.vector_store %arg16[%c0_194, %c384], %175 {strides = array<i32>} : memref<2x1024xf32, #tpu.memory_space<vmem>>, vector<2x64xf32>,
    %c0_195 = arith.constant 0 : index
    %c1_196 = arith.constant 1 : index
    %c3_197 = arith.constant 3 : index
    %c0_198 = arith.constant 0 : index
    %177 = vector.load %arg15[%c0_195, %c1_196, %c3_197, %c0_198] : memref<2x4x4x64xf32, #tpu.memory_space<vmem>>, vector<2x1x1x64xf32>
    %178 = vector.shape_cast %177 : vector<2x1x1x64xf32> to vector<2x64xf32>
    %c0_199 = arith.constant 0 : index
    %c448 = arith.constant 448 : index
    %179 = vector.load %arg16[%c0_199, %c448] : memref<2x1024xf32, #tpu.memory_space<vmem>>, vector<2x64xf32>
    tpu.vector_store %arg16[%c0_199, %c448], %178 {strides = array<i32>} : memref<2x1024xf32, #tpu.memory_space<vmem>>, vector<2x64xf32>,
    %c0_200 = arith.constant 0 : index
    %c2_201 = arith.constant 2 : index
    %c0_202 = arith.constant 0 : index
    %c0_203 = arith.constant 0 : index
    %180 = vector.load %arg15[%c0_200, %c2_201, %c0_202, %c0_203] : memref<2x4x4x64xf32, #tpu.memory_space<vmem>>, vector<2x1x1x64xf32>
    %181 = vector.shape_cast %180 : vector<2x1x1x64xf32> to vector<2x64xf32>
    %c0_204 = arith.constant 0 : index
    %c512 = arith.constant 512 : index
    %182 = vector.load %arg16[%c0_204, %c512] : memref<2x1024xf32, #tpu.memory_space<vmem>>, vector<2x64xf32>
    tpu.vector_store %arg16[%c0_204, %c512], %181 {strides = array<i32>} : memref<2x1024xf32, #tpu.memory_space<vmem>>, vector<2x64xf32>,
    %c0_205 = arith.constant 0 : index
    %c2_206 = arith.constant 2 : index
    %c1_207 = arith.constant 1 : index
    %c0_208 = arith.constant 0 : index
    %183 = vector.load %arg15[%c0_205, %c2_206, %c1_207, %c0_208] : memref<2x4x4x64xf32, #tpu.memory_space<vmem>>, vector<2x1x1x64xf32>
    %184 = vector.shape_cast %183 : vector<2x1x1x64xf32> to vector<2x64xf32>
    %c0_209 = arith.constant 0 : index
    %c576 = arith.constant 576 : index
    %185 = vector.load %arg16[%c0_209, %c576] : memref<2x1024xf32, #tpu.memory_space<vmem>>, vector<2x64xf32>
    tpu.vector_store %arg16[%c0_209, %c576], %184 {strides = array<i32>} : memref<2x1024xf32, #tpu.memory_space<vmem>>, vector<2x64xf32>,
    %c0_210 = arith.constant 0 : index
    %c2_211 = arith.constant 2 : index
    %c2_212 = arith.constant 2 : index
    %c0_213 = arith.constant 0 : index
    %186 = vector.load %arg15[%c0_210, %c2_211, %c2_212, %c0_213] : memref<2x4x4x64xf32, #tpu.memory_space<vmem>>, vector<2x1x1x64xf32>
    %187 = vector.shape_cast %186 : vector<2x1x1x64xf32> to vector<2x64xf32>
    %c0_214 = arith.constant 0 : index
    %c640 = arith.constant 640 : index
    %188 = vector.load %arg16[%c0_214, %c640] : memref<2x1024xf32, #tpu.memory_space<vmem>>, vector<2x64xf32>
    tpu.vector_store %arg16[%c0_214, %c640], %187 {strides = array<i32>} : memref<2x1024xf32, #tpu.memory_space<vmem>>, vector<2x64xf32>,
    %c0_215 = arith.constant 0 : index
    %c2_216 = arith.constant 2 : index
    %c3_217 = arith.constant 3 : index
    %c0_218 = arith.constant 0 : index
    %189 = vector.load %arg15[%c0_215, %c2_216, %c3_217, %c0_218] : memref<2x4x4x64xf32, #tpu.memory_space<vmem>>, vector<2x1x1x64xf32>
    %190 = vector.shape_cast %189 : vector<2x1x1x64xf32> to vector<2x64xf32>
    %c0_219 = arith.constant 0 : index
    %c704 = arith.constant 704 : index
    %191 = vector.load %arg16[%c0_219, %c704] : memref<2x1024xf32, #tpu.memory_space<vmem>>, vector<2x64xf32>
    tpu.vector_store %arg16[%c0_219, %c704], %190 {strides = array<i32>} : memref<2x1024xf32, #tpu.memory_space<vmem>>, vector<2x64xf32>,
    %c0_220 = arith.constant 0 : index
    %c3_221 = arith.constant 3 : index
    %c0_222 = arith.constant 0 : index
    %c0_223 = arith.constant 0 : index
    %192 = vector.load %arg15[%c0_220, %c3_221, %c0_222, %c0_223] : memref<2x4x4x64xf32, #tpu.memory_space<vmem>>, vector<2x1x1x64xf32>
    %193 = vector.shape_cast %192 : vector<2x1x1x64xf32> to vector<2x64xf32>
    %c0_224 = arith.constant 0 : index
    %c768 = arith.constant 768 : index
    %194 = vector.load %arg16[%c0_224, %c768] : memref<2x1024xf32, #tpu.memory_space<vmem>>, vector<2x64xf32>
    tpu.vector_store %arg16[%c0_224, %c768], %193 {strides = array<i32>} : memref<2x1024xf32, #tpu.memory_space<vmem>>, vector<2x64xf32>,
    %c0_225 = arith.constant 0 : index
    %c3_226 = arith.constant 3 : index
    %c1_227 = arith.constant 1 : index
    %c0_228 = arith.constant 0 : index
    %195 = vector.load %arg15[%c0_225, %c3_226, %c1_227, %c0_228] : memref<2x4x4x64xf32, #tpu.memory_space<vmem>>, vector<2x1x1x64xf32>
    %196 = vector.shape_cast %195 : vector<2x1x1x64xf32> to vector<2x64xf32>
    %c0_229 = arith.constant 0 : index
    %c832 = arith.constant 832 : index
    %197 = vector.load %arg16[%c0_229, %c832] : memref<2x1024xf32, #tpu.memory_space<vmem>>, vector<2x64xf32>
    tpu.vector_store %arg16[%c0_229, %c832], %196 {strides = array<i32>} : memref<2x1024xf32, #tpu.memory_space<vmem>>, vector<2x64xf32>,
    %c0_230 = arith.constant 0 : index
    %c3_231 = arith.constant 3 : index
    %c2_232 = arith.constant 2 : index
    %c0_233 = arith.constant 0 : index
    %198 = vector.load %arg15[%c0_230, %c3_231, %c2_232, %c0_233] : memref<2x4x4x64xf32, #tpu.memory_space<vmem>>, vector<2x1x1x64xf32>
    %199 = vector.shape_cast %198 : vector<2x1x1x64xf32> to vector<2x64xf32>
    %c0_234 = arith.constant 0 : index
    %c896 = arith.constant 896 : index
    %200 = vector.load %arg16[%c0_234, %c896] : memref<2x1024xf32, #tpu.memory_space<vmem>>, vector<2x64xf32>
    tpu.vector_store %arg16[%c0_234, %c896], %199 {strides = array<i32>} : memref<2x1024xf32, #tpu.memory_space<vmem>>, vector<2x64xf32>,
    %c0_235 = arith.constant 0 : index
    %c3_236 = arith.constant 3 : index
    %c3_237 = arith.constant 3 : index
    %c0_238 = arith.constant 0 : index
    %201 = vector.load %arg15[%c0_235, %c3_236, %c3_237, %c0_238] : memref<2x4x4x64xf32, #tpu.memory_space<vmem>>, vector<2x1x1x64xf32>
    %202 = vector.shape_cast %201 : vector<2x1x1x64xf32> to vector<2x64xf32>
    %c0_239 = arith.constant 0 : index
    %c960 = arith.constant 960 : index
    %203 = vector.load %arg16[%c0_239, %c960] : memref<2x1024xf32, #tpu.memory_space<vmem>>, vector<2x64xf32>
    tpu.vector_store %arg16[%c0_239, %c960], %202 {strides = array<i32>} : memref<2x1024xf32, #tpu.memory_space<vmem>>, vector<2x64xf32>,
    %c0_240 = arith.constant 0 : index
    %c0_241 = arith.constant 0 : index
    %204 = vector.load %arg16[%c0_240, %c0_241] : memref<2x1024xf32, #tpu.memory_space<vmem>>, vector<2x1024xf32>
    %205 = arith.truncf %204 : vector<2x1024xf32> to vector<2x1024xbf16>
    %c0_242 = arith.constant 0 : index
    %c0_243 = arith.constant 0 : index
    %206 = vector.load %arg5[%c0_242, %c0_243] : memref<1024x128xbf16, #tpu.memory_space<vmem>>, vector<1024x128xbf16>
    %cst_244 = arith.constant dense<0.000000e+00> : vector<2x128xf32>
    %207 = tpu.matmul %205, %206, %cst_244 {dimension_numbers = #tpu.dot_dimension_numbers<[1], [0], [0], [1], [0, 0, 1, 1], [], []>} : vector<2x1024xbf16>, vector<1024x128xbf16>, vector<2x128xf32> -> vector<2x128xf32>
    %c0_245 = arith.constant 0 : index
    %c0_246 = arith.constant 0 : index
    %208 = vector.load %arg6[%c0_245, %c0_246] : memref<1x128xf32, #tpu.memory_space<vmem>>, vector<1x128xf32>
    %209 = vector.broadcast %208 : vector<1x128xf32> to vector<2x128xf32>
    %210 = arith.addf %207, %209 : vector<2x128xf32>
    %cst_247 = arith.constant 0.000000e+00 : f32
    %211 = vector.broadcast %cst_247 : f32 to vector<2x128xf32>
    %212 = arith.maximumf %210, %211 : vector<2x128xf32>
    %213 = arith.truncf %212 : vector<2x128xf32> to vector<2x128xbf16>
    %c0_248 = arith.constant 0 : index
    %c0_249 = arith.constant 0 : index
    %214 = vector.load %arg7[%c0_248, %c0_249] : memref<128x128xbf16, #tpu.memory_space<vmem>>, vector<128x128xbf16>
    %cst_250 = arith.constant dense<0.000000e+00> : vector<2x128xf32>
    %215 = tpu.matmul %213, %214, %cst_250 {dimension_numbers = #tpu.dot_dimension_numbers<[1], [0], [0], [1], [0, 0, 1, 1], [], []>} : vector<2x128xbf16>, vector<128x128xbf16>, vector<2x128xf32> -> vector<2x128xf32>
    %c0_251 = arith.constant 0 : index
    %c0_252 = arith.constant 0 : index
    %216 = vector.load %arg8[%c0_251, %c0_252] : memref<1x128xf32, #tpu.memory_space<vmem>>, vector<1x128xf32>
    %217 = vector.broadcast %216 : vector<1x128xf32> to vector<2x128xf32>
    %218 = arith.addf %215, %217 : vector<2x128xf32>
    %c0_253 = arith.constant 0 : index
    %c0_254 = arith.constant 0 : index
    %219 = vector.load %arg9[%c0_253, %c0_254] : memref<2x128xf32, #tpu.memory_space<vmem>>, vector<2x128xf32>
    tpu.vector_store %arg9[%c0_253, %c0_254], %218 {strides = array<i32>} : memref<2x128xf32, #tpu.memory_space<vmem>>, vector<2x128xf32>,
    return
  }
}

</mosaic_0001>

<bundles_post_ra>
// kernel: simple_cnn_forward.1
= control target key start
LH: loop header
LB: loop body
LE: loop exit
PB: predicated region body
PF: predicated region fallthrough
CT: control target
= control target key end

     0   :  { %vm34_vm0 = vcmask 7168   ;;  %vm37_vm1 = vcmask 1024   ;;  %v7993_v2 = vmov 0   ;;  %v11972_v3 = vmov 0.0   ;;  %s11962_s0 = inlined_call_operand.vmem [shape: f32[2,16,16,1], index: 0, kind: input, shape index: {}]   ;;  %s11963_s1 = inlined_call_operand.vmem [shape: f32[9,1,32], index: 1, kind: input, shape index: {}]   ;;  %s11964_s2 = inlined_call_operand.vmem [shape: f32[1,32], index: 2, kind: input, shape index: {}]   ;;  %s11965_s3 = inlined_call_operand.vmem [shape: bf16[288,64], index: 3, kind: input, shape index: {}]   ;;  %s11966_s4 = inlined_call_operand.vmem [shape: f32[1,64], index: 4, kind: input, shape index: {}]   ;;  %s11967_s5 = inlined_call_operand.vmem [shape: bf16[1024,128], index: 5, kind: input, shape index: {}]   ;;  %s11968_s6 = inlined_call_operand.vmem [shape: f32[1,128], index: 6, kind: input, shape index: {}]   ;;  %s11969_s7 = inlined_call_operand.vmem [shape: bf16[128,128], index: 7, kind: input, shape index: {}]   ;;  %s11970_s8 = inlined_call_operand.vmem [shape: f32[1,128], index: 8, kind: input, shape index: {}]   ;;  %s11971_s9 = inlined_call_operand.hbm [shape: f32[2,128], index: 9, kind: output, shape index: {}]  }
   0x1   :  { %v8054_v0 = vld [vmem:[%s11962_s0] sm:$0xff]  ;;  %v8059_v1 = vld [vmem:[%s11962_s0 + $0x8] sm:$0xff]  ;;  %7842 = vset.pattern.permute.xlu0 %v7993_v2  ;;  %7843 = vset.pattern.permute.xlu1 %v7993_v2  ;;  %35 = vst.msk [vmem:[#allocation2] sm:$0xff] %vm34_vm0, %v11972_v3  ;;  %36 = vst.msk [vmem:[#allocation2 + $0x8] sm:$0xff] %vm34_vm0, %v11972_v3 }
   0x2   :  { %39 = vst.msk [vmem:[#allocation2 + $0x18] sm:$0xff] %vm34_vm0, %v11972_v3  ;;  %40 = vst.msk [vmem:[#allocation2 + $0x20] sm:$0xff] %vm34_vm0, %v11972_v3  ;;  %v146_v4 = vld [vmem:[%s11962_s0 + $0x10] sm:$0xff]  ;;  %v147_v5 = vld [vmem:[%s11962_s0 + $0x18] sm:$0xff] }
   0x3   :  { %42 = vst.msk [vmem:[#allocation2 + $0x30] sm:$0xff] %vm34_vm0, %v11972_v3  ;;  %43 = vst.msk [vmem:[#allocation2 + $0x38] sm:$0xff] %vm34_vm0, %v11972_v3  ;;  %v148_v6 = vld [vmem:[%s11962_s0 + $0x20] sm:$0xff]  ;;  %v149_v7 = vld [vmem:[%s11962_s0 + $0x28] sm:$0xff] }
   0x4   :  { %45 = vst.msk [vmem:[#allocation2 + $0x48] sm:$0xff] %vm34_vm0, %v11972_v3  ;;  %46 = vst.msk [vmem:[#allocation2 + $0x50] sm:$0xff] %vm34_vm0, %v11972_v3  ;;  %v150_v8 = vld [vmem:[%s11962_s0 + $0x30] sm:$0xff]  ;;  %v151_v9 = vld [vmem:[%s11962_s0 + $0x38] sm:$0xff] }
   0x5   :  { %48 = vst.msk [vmem:[#allocation2 + $0x60] sm:$0xff] %vm34_vm0, %v11972_v3  ;;  %49 = vst.msk [vmem:[#allocation2 + $0x68] sm:$0xff] %vm34_vm0, %v11972_v3  ;;  %v152_v10 = vld [vmem:[%s11962_s0 + $0x40] sm:$0xff]  ;;  %v153_v11 = vld [vmem:[%s11962_s0 + $0x48] sm:$0xff] }
   0x6   :  { %51 = vst.msk [vmem:[#allocation2 + $0x78] sm:$0xff] %vm34_vm0, %v11972_v3  ;;  %52 = vst.msk [vmem:[#allocation2 + $0x80] sm:$0xff] %vm34_vm0, %v11972_v3  ;;  %v154_v12 = vld [vmem:[%s11962_s0 + $0x50] sm:$0xff]  ;;  %v155_v13 = vld [vmem:[%s11962_s0 + $0x58] sm:$0xff] }
   0x7   :  { %54 = vst.msk [vmem:[#allocation2 + $0x90] sm:$0xff] %vm34_vm0, %v11972_v3  ;;  %55 = vst.msk [vmem:[#allocation2 + $0x98] sm:$0xff] %vm34_vm0, %v11972_v3  ;;  %v156_v14 = vld [vmem:[%s11962_s0 + $0x60] sm:$0xff]  ;;  %v157_v15 = vld [vmem:[%s11962_s0 + $0x68] sm:$0xff] }
   0x8   :  { %57 = vst.msk [vmem:[#allocation2 + $0xa8] sm:$0xff] %vm34_vm0, %v11972_v3  ;;  %58 = vst.msk [vmem:[#allocation2 + $0xb0] sm:$0xff] %vm34_vm0, %v11972_v3  ;;  %v158_v16 = vld [vmem:[%s11962_s0 + $0x70] sm:$0xff]  ;;  %v159_v17 = vld [vmem:[%s11962_s0 + $0x78] sm:$0xff] }
   0x9   :  { %60 = vst.msk [vmem:[#allocation2 + $0xc0] sm:$0xff] %vm34_vm0, %v11972_v3  ;;  %61 = vst.msk [vmem:[#allocation2 + $0xc8] sm:$0xff] %vm34_vm0, %v11972_v3  ;;  %v160_v18 = vld [vmem:[%s11962_s0 + $0x80] sm:$0xff]  ;;  %v161_v19 = vld [vmem:[%s11962_s0 + $0x88] sm:$0xff] }
   0xa   :  { %63 = vst.msk [vmem:[#allocation2 + $0xd8] sm:$0xff] %vm34_vm0, %v11972_v3  ;;  %64 = vst.msk [vmem:[#allocation2 + $0xe0] sm:$0xff] %vm34_vm0, %v11972_v3  ;;  %v162_v20 = vld [vmem:[%s11962_s0 + $0x90] sm:$0xff]  ;;  %v163_v21 = vld [vmem:[%s11962_s0 + $0x98] sm:$0xff] }
   0xb   :  { %66 = vst.msk [vmem:[#allocation2 + $0xf0] sm:$0xff] %vm34_vm0, %v11972_v3  ;;  %67 = vst.msk [vmem:[#allocation2 + $0xf8] sm:$0xff] %vm34_vm0, %v11972_v3  ;;  %v164_v22 = vld [vmem:[%s11962_s0 + $0xa0] sm:$0xff]  ;;  %v165_v23 = vld [vmem:[%s11962_s0 + $0xa8] sm:$0xff] }
   0xc   :  { %69 = vst.msk [vmem:[#allocation2 + $0x108] sm:$0xff] %vm34_vm0, %v11972_v3  ;;  %70 = vst.msk [vmem:[#allocation2 + $0x110] sm:$0xff] %vm34_vm0, %v11972_v3  ;;  %v166_v24 = vld [vmem:[%s11962_s0 + $0xb0] sm:$0xff]  ;;  %v273_v25 = vld [vmem:[#allocation2] sm:$0xff] }
   0xd   :  { %72 = vst.msk [vmem:[#allocation2 + $0x120] sm:$0xff] %vm34_vm0, %v11972_v3  ;;  %73 = vst.msk [vmem:[#allocation2 + $0x128] sm:$0xff] %vm34_vm0, %v11972_v3  ;;  %v167_v26 = vld [vmem:[%s11962_s0 + $0xb8] sm:$0xff]  ;;  %340 = vperm.xlu0 %7842, %v273_v25   ;;  %v274_v28 = vld [vmem:[#allocation2 + $0x8] sm:$0xff] }
   0xe   :  { %75 = vst.msk [vmem:[#allocation2 + $0x138] sm:$0xff] %vm34_vm0, %v11972_v3  ;;  %76 = vst.msk [vmem:[#allocation2 + $0x140] sm:$0xff] %vm34_vm0, %v11972_v3  ;;  %v168_v33 = vld [vmem:[%s11962_s0 + $0xc0] sm:$0xff]  ;;  %v169_v34 = vld [vmem:[%s11962_s0 + $0xc8] sm:$0xff] }
   0xf   :  { %78 = vst.msk [vmem:[#allocation2 + $0x150] sm:$0xff] %vm34_vm0, %v11972_v3  ;;  %79 = vst.msk [vmem:[#allocation2 + $0x158] sm:$0xff] %vm34_vm0, %v11972_v3  ;;  %v170_v35 = vld [vmem:[%s11962_s0 + $0xd0] sm:$0xff]  ;;  %v171_v36 = vld [vmem:[%s11962_s0 + $0xd8] sm:$0xff] }
  0x10   :  { %81 = vst.msk [vmem:[#allocation2 + $0x168] sm:$0xff] %vm34_vm0, %v11972_v3  ;;  %82 = vst.msk [vmem:[#allocation2 + $0x170] sm:$0xff] %vm34_vm0, %v11972_v3  ;;  %v172_v37 = vld [vmem:[%s11962_s0 + $0xe0] sm:$0xff]  ;;  %v173_v38 = vld [vmem:[%s11962_s0 + $0xe8] sm:$0xff] }
  0x11   :  { %84 = vst.msk [vmem:[#allocation2 + $0x180] sm:$0xff] %vm34_vm0, %v11972_v3  ;;  %85 = vst.msk [vmem:[#allocation2 + $0x188] sm:$0xff] %vm34_vm0, %v11972_v3  ;;  %345 = vperm.xlu0 %7842, %v274_v28   ;;  %v176_v40 = vld [vmem:[%s11962_s0 + $0x100] sm:$0xff]  ;;  %v177_v42 = vld [vmem:[%s11962_s0 + $0x108] sm:$0xff] }
  0x12   :  { %87 = vst.msk [vmem:[#allocation2 + $0x198] sm:$0xff] %vm34_vm0, %v11972_v3  ;;  %88 = vst.msk [vmem:[#allocation2 + $0x1a0] sm:$0xff] %vm34_vm0, %v11972_v3  ;;  %v178_v43 = vld [vmem:[%s11962_s0 + $0x110] sm:$0xff]  ;;  %v179_v44 = vld [vmem:[%s11962_s0 + $0x118] sm:$0xff] }
  0x13   :  { %90 = vst.msk [vmem:[#allocation2 + $0x1b0] sm:$0xff] %vm34_vm0, %v11972_v3  ;;  %91 = vst.msk [vmem:[#allocation2 + $0x1b8] sm:$0xff] %vm34_vm0, %v11972_v3  ;;  %v180_v46 = vld [vmem:[%s11962_s0 + $0x120] sm:$0xff]  ;;  %v181_v47 = vld [vmem:[%s11962_s0 + $0x128] sm:$0xff] }
  0x14   :  { %93 = vst.msk [vmem:[#allocation2 + $0x1c8] sm:$0xff] %vm34_vm0, %v11972_v3  ;;  %94 = vst.msk [vmem:[#allocation2 + $0x1d0] sm:$0xff] %vm34_vm0, %v11972_v3  ;;  %v182_v48 = vld [vmem:[%s11962_s0 + $0x130] sm:$0xff]  ;;  %v183_v49 = vld [vmem:[%s11962_s0 + $0x138] sm:$0xff] }
  0x15   :  { %96 = vst.msk [vmem:[#allocation2 + $0x1e0] sm:$0xff] %vm34_vm0, %v11972_v3  ;;  %97 = vst.msk [vmem:[#allocation2 + $0x1e8] sm:$0xff] %vm34_vm0, %v11972_v3  ;;  %v184_v50 = vld [vmem:[%s11962_s0 + $0x140] sm:$0xff]  ;;  %v185_v51 = vld [vmem:[%s11962_s0 + $0x148] sm:$0xff] }
  0x16   :  { %99 = vst.msk [vmem:[#allocation2 + $0x1f8] sm:$0xff] %vm34_vm0, %v11972_v3  ;;  %100 = vst.msk [vmem:[#allocation2 + $0x200] sm:$0xff] %vm34_vm0, %v11972_v3  ;;  %v186_v52 = vld [vmem:[%s11962_s0 + $0x150] sm:$0xff]  ;;  %v187_v53 = vld [vmem:[%s11962_s0 + $0x158] sm:$0xff] }
  0x17   :  { %102 = vst.msk [vmem:[#allocation2 + $0x210] sm:$0xff] %vm34_vm0, %v11972_v3  ;;  %103 = vst.msk [vmem:[#allocation2 + $0x218] sm:$0xff] %vm34_vm0, %v11972_v3  ;;  %v188_v54 = vld [vmem:[%s11962_s0 + $0x160] sm:$0xff]  ;;  %v189_v55 = vld [vmem:[%s11962_s0 + $0x168] sm:$0xff] }
  0x18   :  { %105 = vst.msk [vmem:[#allocation2 + $0x228] sm:$0xff] %vm34_vm0, %v11972_v3  ;;  %106 = vst.msk [vmem:[#allocation2 + $0x230] sm:$0xff] %vm34_vm0, %v11972_v3  ;;  %v190_v56 = vld [vmem:[%s11962_s0 + $0x170] sm:$0xff]  ;;  %v191_v57 = vld [vmem:[%s11962_s0 + $0x178] sm:$0xff] }
  0x19   :  { %108 = vst.msk [vmem:[#allocation2 + $0x240] sm:$0xff] %vm34_vm0, %v11972_v3  ;;  %109 = vst.msk [vmem:[#allocation2 + $0x248] sm:$0xff] %vm34_vm0, %v11972_v3  ;;  %v192_v60 = vld [vmem:[%s11962_s0 + $0x180] sm:$0xff]  ;;  %v193_v61 = vld [vmem:[%s11962_s0 + $0x188] sm:$0xff] }
  0x1a   :  { %111 = vst.msk [vmem:[#allocation2 + $0x258] sm:$0xff] %vm34_vm0, %v11972_v3  ;;  %112 = vst.msk [vmem:[#allocation2 + $0x260] sm:$0xff] %vm34_vm0, %v11972_v3  ;;  %v195_v2 = vld [vmem:[%s11962_s0 + $0x198] sm:$0xff] }
  0x1b   :  { %114 = vst.msk [vmem:[#allocation2 + $0x270] sm:$0xff] %vm34_vm0, %v11972_v3  ;;  %115 = vst.msk [vmem:[#allocation2 + $0x278] sm:$0xff] %vm34_vm0, %v11972_v3 }
  0x1c   :  { %117 = vst.msk [vmem:[#allocation2 + $0x288] sm:$0xff] %vm34_vm0, %v11972_v3  ;;  %118 = vst.msk [vmem:[#allocation2 + $0x290] sm:$0xff] %vm34_vm0, %v11972_v3 }
  0x1d   :  { %120 = vst.msk [vmem:[#allocation2 + $0x2a0] sm:$0xff] %vm34_vm0, %v11972_v3  ;;  %121 = vst.msk [vmem:[#allocation2 + $0x2a8] sm:$0xff] %vm34_vm0, %v11972_v3 }
  0x1e   :  { %123 = vst.msk [vmem:[#allocation2 + $0x2b8] sm:$0xff] %vm34_vm0, %v11972_v3  ;;  %124 = vst.msk [vmem:[#allocation2 + $0x2c0] sm:$0xff] %vm34_vm0, %v11972_v3 }
  0x1f   :  { %126 = vst.msk [vmem:[#allocation2 + $0x2d0] sm:$0xff] %vm34_vm0, %v11972_v3  ;;  %127 = vst.msk [vmem:[#allocation2 + $0x2d8] sm:$0xff] %vm34_vm0, %v11972_v3 }
  0x20   :  { %129 = vst.msk [vmem:[#allocation2 + $0x2e8] sm:$0xff] %vm34_vm0, %v11972_v3  ;;  %130 = vst.msk [vmem:[#allocation2 + $0x2f0] sm:$0xff] %vm34_vm0, %v11972_v3 }
  0x21   :  { %132 = vst.msk [vmem:[#allocation2 + $0x300] sm:$0xff] %vm34_vm0, %v11972_v3  ;;  %133 = vst.msk [vmem:[#allocation2 + $0x308] sm:$0xff] %vm34_vm0, %v11972_v3 }
  0x22   :  { %135 = vst.msk [vmem:[#allocation2 + $0x318] sm:$0xff] %vm34_vm0, %v11972_v3  ;;  %136 = vst.msk [vmem:[#allocation2 + $0x320] sm:$0xff] %vm34_vm0, %v11972_v3 }
  0x23   :  { %138 = vst.msk [vmem:[#allocation2 + $0x330] sm:$0xff] %vm34_vm0, %v11972_v3  ;;  %139 = vst.msk [vmem:[#allocation2 + $0x338] sm:$0xff] %vm34_vm0, %v11972_v3 }
  0x24   :  { %141 = vst.msk [vmem:[#allocation2 + $0x348] sm:$0xff] %vm34_vm0, %v11972_v3  ;;  %142 = vst.msk [vmem:[#allocation2 + $0x350] sm:$0xff] %vm34_vm0, %v11972_v3 }
  0x25   :  { %41 = vst.msk [vmem:[#allocation2 + $0x28] sm:$0x3] %vm37_vm1, %v11972_v3  ;;  %38 = vst.msk [vmem:[#allocation2 + $0x10] sm:$0x3] %vm37_vm1, %v11972_v3 }
  0x26   :  { %44 = vst.msk [vmem:[#allocation2 + $0x40] sm:$0x3] %vm37_vm1, %v11972_v3  ;;  %47 = vst.msk [vmem:[#allocation2 + $0x58] sm:$0x3] %vm37_vm1, %v11972_v3 }
  0x27   :  { %50 = vst.msk [vmem:[#allocation2 + $0x70] sm:$0x3] %vm37_vm1, %v11972_v3  ;;  %53 = vst.msk [vmem:[#allocation2 + $0x88] sm:$0x3] %vm37_vm1, %v11972_v3 }
  0x28   :  { %56 = vst.msk [vmem:[#allocation2 + $0xa0] sm:$0x3] %vm37_vm1, %v11972_v3  ;;  %59 = vst.msk [vmem:[#allocation2 + $0xb8] sm:$0x3] %vm37_vm1, %v11972_v3 }
  0x29   :  { %62 = vst.msk [vmem:[#allocation2 + $0xd0] sm:$0x3] %vm37_vm1, %v11972_v3  ;;  %65 = vst.msk [vmem:[#allocation2 + $0xe8] sm:$0x3] %vm37_vm1, %v11972_v3 }
  0x2a   :  { %68 = vst.msk [vmem:[#allocation2 + $0x100] sm:$0x3] %vm37_vm1, %v11972_v3  ;;  %71 = vst.msk [vmem:[#allocation2 + $0x118] sm:$0x3] %vm37_vm1, %v11972_v3 }
  0x2b   :  { %74 = vst.msk [vmem:[#allocation2 + $0x130] sm:$0x3] %vm37_vm1, %v11972_v3  ;;  %77 = vst.msk [vmem:[#allocation2 + $0x148] sm:$0x3] %vm37_vm1, %v11972_v3 }
  0x2c   :  { %80 = vst.msk [vmem:[#allocation2 + $0x160] sm:$0x3] %vm37_vm1, %v11972_v3  ;;  %83 = vst.msk [vmem:[#allocation2 + $0x178] sm:$0x3] %vm37_vm1, %v11972_v3 }
  0x2d   :  { %86 = vst.msk [vmem:[#allocation2 + $0x190] sm:$0x3] %vm37_vm1, %v11972_v3  ;;  %89 = vst.msk [vmem:[#allocation2 + $0x1a8] sm:$0x3] %vm37_vm1, %v11972_v3 }
  0x2e   :  { %92 = vst.msk [vmem:[#allocation2 + $0x1c0] sm:$0x3] %vm37_vm1, %v11972_v3  ;;  %95 = vst.msk [vmem:[#allocation2 + $0x1d8] sm:$0x3] %vm37_vm1, %v11972_v3 }
  0x2f   :  { %98 = vst.msk [vmem:[#allocation2 + $0x1f0] sm:$0x3] %vm37_vm1, %v11972_v3  ;;  %101 = vst.msk [vmem:[#allocation2 + $0x208] sm:$0x3] %vm37_vm1, %v11972_v3 }
  0x30   :  { %104 = vst.msk [vmem:[#allocation2 + $0x220] sm:$0x3] %vm37_vm1, %v11972_v3  ;;  %107 = vst.msk [vmem:[#allocation2 + $0x238] sm:$0x3] %vm37_vm1, %v11972_v3 }
  0x31   :  { %110 = vst.msk [vmem:[#allocation2 + $0x250] sm:$0x3] %vm37_vm1, %v11972_v3  ;;  %113 = vst.msk [vmem:[#allocation2 + $0x268] sm:$0x3] %vm37_vm1, %v11972_v3 }
  0x32   :  { %116 = vst.msk [vmem:[#allocation2 + $0x280] sm:$0x3] %vm37_vm1, %v11972_v3  ;;  %119 = vst.msk [vmem:[#allocation2 + $0x298] sm:$0x3] %vm37_vm1, %v11972_v3 }
  0x33   :  { %122 = vst.msk [vmem:[#allocation2 + $0x2b0] sm:$0x3] %vm37_vm1, %v11972_v3  ;;  %125 = vst.msk [vmem:[#allocation2 + $0x2c8] sm:$0x3] %vm37_vm1, %v11972_v3 }
  0x34   :  { %128 = vst.msk [vmem:[#allocation2 + $0x2e0] sm:$0x3] %vm37_vm1, %v11972_v3  ;;  %131 = vst.msk [vmem:[#allocation2 + $0x2f8] sm:$0x3] %vm37_vm1, %v11972_v3 }
  0x35   :  { %134 = vst.msk [vmem:[#allocation2 + $0x310] sm:$0x3] %vm37_vm1, %v11972_v3  ;;  %137 = vst.msk [vmem:[#allocation2 + $0x328] sm:$0x3] %vm37_vm1, %v11972_v3 }
  0x36   :  { %140 = vst.msk [vmem:[#allocation2 + $0x340] sm:$0x3] %vm37_vm1, %v11972_v3  ;;  %143 = vst.msk [vmem:[#allocation2 + $0x358] sm:$0x3] %vm37_vm1, %v11972_v3 }
  0x37   :  { %209 = vst.msk [vmem:[#allocation2 + $0x19] sm:$0xff] %vm34_vm0, %v8054_v0  ;;  %210 = vst.msk [vmem:[#allocation2 + $0x21] sm:$0xff] %vm34_vm0, %v8059_v1  ;;  %v194_v1 = vld [vmem:[%s11962_s0 + $0x190] sm:$0xff] }
  0x38   :  { %211 = vst.msk [vmem:[#allocation2 + $0x31] sm:$0xff] %vm34_vm0, %v146_v4  ;;  %212 = vst.msk [vmem:[#allocation2 + $0x39] sm:$0xff] %vm34_vm0, %v147_v5  ;;  %v196_v4 = vld [vmem:[%s11962_s0 + $0x1a0] sm:$0xff]  ;;  %v197_v5 = vld [vmem:[%s11962_s0 + $0x1a8] sm:$0xff] }
  0x39   :  { %213 = vst.msk [vmem:[#allocation2 + $0x49] sm:$0xff] %vm34_vm0, %v148_v6  ;;  %214 = vst.msk [vmem:[#allocation2 + $0x51] sm:$0xff] %vm34_vm0, %v149_v7  ;;  %v198_v6 = vld [vmem:[%s11962_s0 + $0x1b0] sm:$0xff]  ;;  %v199_v7 = vld [vmem:[%s11962_s0 + $0x1b8] sm:$0xff] }
  0x3a   :  { %215 = vst.msk [vmem:[#allocation2 + $0x61] sm:$0xff] %vm34_vm0, %v150_v8  ;;  %216 = vst.msk [vmem:[#allocation2 + $0x69] sm:$0xff] %vm34_vm0, %v151_v9  ;;  %v200_v9 = vld [vmem:[%s11962_s0 + $0x1c0] sm:$0xff] }
  0x3b   :  { %217 = vst.msk [vmem:[#allocation2 + $0x79] sm:$0xff] %vm34_vm0, %v152_v10  ;;  %218 = vst.msk [vmem:[#allocation2 + $0x81] sm:$0xff] %vm34_vm0, %v153_v11  ;;  %v201_v10 = vld [vmem:[%s11962_s0 + $0x1c8] sm:$0xff]  ;;  %v202_v11 = vld [vmem:[%s11962_s0 + $0x1d0] sm:$0xff] }
  0x3c   :  { %219 = vst.msk [vmem:[#allocation2 + $0x91] sm:$0xff] %vm34_vm0, %v154_v12  ;;  %220 = vst.msk [vmem:[#allocation2 + $0x99] sm:$0xff] %vm34_vm0, %v155_v13  ;;  %v203_v12 = vld [vmem:[%s11962_s0 + $0x1d8] sm:$0xff]  ;;  %v204_v13 = vld [vmem:[%s11962_s0 + $0x1e0] sm:$0xff] }
  0x3d   :  { %221 = vst.msk [vmem:[#allocation2 + $0xa9] sm:$0xff] %vm34_vm0, %v156_v14  ;;  %222 = vst.msk [vmem:[#allocation2 + $0xb1] sm:$0xff] %vm34_vm0, %v157_v15  ;;  %v205_v14 = vld [vmem:[%s11962_s0 + $0x1e8] sm:$0xff] }
  0x3e   :  { %223 = vst.msk [vmem:[#allocation2 + $0xc1] sm:$0xff] %vm34_vm0, %v158_v16  ;;  %224 = vst.msk [vmem:[#allocation2 + $0xc9] sm:$0xff] %vm34_vm0, %v159_v17  ;;  %v275_v27 = vld [vmem:[#allocation2 + $0x18] sm:$0xff]  ;;  %v276_v29 = vld [vmem:[#allocation2 + $0x20] sm:$0xff] }
  0x3f   :  { %225 = vst.msk [vmem:[#allocation2 + $0xd9] sm:$0xff] %vm34_vm0, %v160_v18  ;;  %226 = vst.msk [vmem:[#allocation2 + $0xe1] sm:$0xff] %vm34_vm0, %v161_v19  ;;  %350 = vperm.xlu1 %7843, %v275_v27   ;;  %v277_v30 = vld [vmem:[#allocation2 + $0x30] sm:$0xff]  ;;  %v278_v31 = vld [vmem:[#allocation2 + $0x38] sm:$0xff] }
  0x40   :  { %227 = vst.msk [vmem:[#allocation2 + $0xf1] sm:$0xff] %vm34_vm0, %v162_v20  ;;  %228 = vst.msk [vmem:[#allocation2 + $0xf9] sm:$0xff] %vm34_vm0, %v163_v21  ;;  %v279_v32 = vld [vmem:[#allocation2 + $0x48] sm:$0xff]  ;;  %360 = vperm.xlu0 %7842, %v277_v30   ;;  %v280_v39 = vld [vmem:[#allocation2 + $0x50] sm:$0xff] }
  0x41   :  { %229 = vst.msk [vmem:[#allocation2 + $0x109] sm:$0xff] %vm34_vm0, %v164_v22  ;;  %230 = vst.msk [vmem:[#allocation2 + $0x111] sm:$0xff] %vm34_vm0, %v165_v23  ;;  %v281_v41 = vld [vmem:[#allocation2 + $0x60] sm:$0xff]  ;;  %v282_v45 = vld [vmem:[#allocation2 + $0x68] sm:$0xff] }
  0x42   :  { %231 = vst.msk [vmem:[#allocation2 + $0x121] sm:$0xff] %vm34_vm0, %v166_v24  ;;  %232 = vst.msk [vmem:[#allocation2 + $0x129] sm:$0xff] %vm34_vm0, %v167_v26  ;;  %v283_v58 = vld [vmem:[#allocation2 + $0x78] sm:$0xff]  ;;  %v284_v59 = vld [vmem:[#allocation2 + $0x80] sm:$0xff] }
  0x43   :  { %355 = vperm.xlu1 %7843, %v276_v29   ;;  %233 = vst.msk [vmem:[#allocation2 + $0x139] sm:$0xff] %vm34_vm0, %v168_v33  ;;  %234 = vst.msk [vmem:[#allocation2 + $0x141] sm:$0xff] %vm34_vm0, %v169_v34  ;;  %v285_v62 = vld [vmem:[#allocation2 + $0x90] sm:$0xff]  ;;  %v286_v63 = vld [vmem:[#allocation2 + $0x98] sm:$0xff] }
  0x44   :  { %235 = vst.msk [vmem:[#allocation2 + $0x151] sm:$0xff] %vm34_vm0, %v170_v35  ;;  %236 = vst.msk [vmem:[#allocation2 + $0x159] sm:$0xff] %vm34_vm0, %v171_v36  ;;  %370 = vperm.xlu0 %7842, %v279_v32   ;;  %v287_v0 = vld [vmem:[#allocation2 + $0xa8] sm:$0xff]  ;;  %v288_v8 = vld [vmem:[#allocation2 + $0xb0] sm:$0xff] }
  0x45   :  { %237 = vst.msk [vmem:[#allocation2 + $0x169] sm:$0xff] %vm34_vm0, %v172_v37  ;;  %238 = vst.msk [vmem:[#allocation2 + $0x171] sm:$0xff] %vm34_vm0, %v173_v38  ;;  %v289_v15 = vld [vmem:[#allocation2 + $0xc0] sm:$0xff]  ;;  %v290_v16 = vld [vmem:[#allocation2 + $0xc8] sm:$0xff] }
  0x46   :  { %241 = vst.msk [vmem:[#allocation2 + $0x1c9] sm:$0xff] %vm34_vm0, %v176_v40  ;;  %242 = vst.msk [vmem:[#allocation2 + $0x1d1] sm:$0xff] %vm34_vm0, %v177_v42  ;;  %v291_v17 = vld [vmem:[#allocation2 + $0xd8] sm:$0xff]  ;;  %v292_v18 = vld [vmem:[#allocation2 + $0xe0] sm:$0xff] }
  0x47   :  { %365 = vperm.xlu1 %7843, %v278_v31   ;;  %243 = vst.msk [vmem:[#allocation2 + $0x1e1] sm:$0xff] %vm34_vm0, %v178_v43  ;;  %244 = vst.msk [vmem:[#allocation2 + $0x1e9] sm:$0xff] %vm34_vm0, %v179_v44  ;;  %v293_v19 = vld [vmem:[#allocation2 + $0xf0] sm:$0xff]  ;;  %v294_v20 = vld [vmem:[#allocation2 + $0xf8] sm:$0xff] }
  0x48   :  { %245 = vst.msk [vmem:[#allocation2 + $0x1f9] sm:$0xff] %vm34_vm0, %v180_v46  ;;  %246 = vst.msk [vmem:[#allocation2 + $0x201] sm:$0xff] %vm34_vm0, %v181_v47  ;;  %380 = vperm.xlu0 %7842, %v281_v41   ;;  %v295_v21 = vld [vmem:[#allocation2 + $0x108] sm:$0xff]  ;;  %v296_v22 = vld [vmem:[#allocation2 + $0x110] sm:$0xff] }
  0x49   :  { %247 = vst.msk [vmem:[#allocation2 + $0x211] sm:$0xff] %vm34_vm0, %v182_v48  ;;  %248 = vst.msk [vmem:[#allocation2 + $0x219] sm:$0xff] %vm34_vm0, %v183_v49  ;;  %v297_v23 = vld [vmem:[#allocation2 + $0x120] sm:$0xff]  ;;  %v298_v24 = vld [vmem:[#allocation2 + $0x128] sm:$0xff] }
  0x4a   :  { %249 = vst.msk [vmem:[#allocation2 + $0x229] sm:$0xff] %vm34_vm0, %v184_v50  ;;  %250 = vst.msk [vmem:[#allocation2 + $0x231] sm:$0xff] %vm34_vm0, %v185_v51  ;;  %v299_v25 = vld [vmem:[#allocation2 + $0x138] sm:$0xff]  ;;  %v300_v26 = vld [vmem:[#allocation2 + $0x140] sm:$0xff] }
  0x4b   :  { %375 = vperm.xlu1 %7843, %v280_v39   ;;  %251 = vst.msk [vmem:[#allocation2 + $0x241] sm:$0xff] %vm34_vm0, %v186_v52  ;;  %252 = vst.msk [vmem:[#allocation2 + $0x249] sm:$0xff] %vm34_vm0, %v187_v53  ;;  %v301_v27 = vld [vmem:[#allocation2 + $0x150] sm:$0xff]  ;;  %v302_v28 = vld [vmem:[#allocation2 + $0x158] sm:$0xff] }
  0x4c   :  { %253 = vst.msk [vmem:[#allocation2 + $0x259] sm:$0xff] %vm34_vm0, %v188_v54  ;;  %254 = vst.msk [vmem:[#allocation2 + $0x261] sm:$0xff] %vm34_vm0, %v189_v55  ;;  %390 = vperm.xlu0 %7842, %v283_v58   ;;  %v303_v29 = vld [vmem:[#allocation2 + $0x168] sm:$0xff]  ;;  %v304_v30 = vld [vmem:[#allocation2 + $0x170] sm:$0xff] }
  0x4d   :  { %255 = vst.msk [vmem:[#allocation2 + $0x271] sm:$0xff] %vm34_vm0, %v190_v56  ;;  %256 = vst.msk [vmem:[#allocation2 + $0x279] sm:$0xff] %vm34_vm0, %v191_v57  ;;  %v305_v31 = vld [vmem:[#allocation2 + $0x1b0] sm:$0xff]  ;;  %v306_v32 = vld [vmem:[#allocation2 + $0x1b8] sm:$0xff] }
  0x4e   :  { %257 = vst.msk [vmem:[#allocation2 + $0x289] sm:$0xff] %vm34_vm0, %v192_v60  ;;  %258 = vst.msk [vmem:[#allocation2 + $0x291] sm:$0xff] %vm34_vm0, %v193_v61  ;;  %v307_v33 = vld [vmem:[#allocation2 + $0x1c8] sm:$0xff]  ;;  %v308_v34 = vld [vmem:[#allocation2 + $0x1d0] sm:$0xff] }
  0x4f   :  { %385 = vperm.xlu1 %7843, %v282_v45   ;;  %259 = vst.msk [vmem:[#allocation2 + $0x2a1] sm:$0xff] %vm34_vm0, %v194_v1  ;;  %260 = vst.msk [vmem:[#allocation2 + $0x2a9] sm:$0xff] %vm34_vm0, %v195_v2  ;;  %v309_v35 = vld [vmem:[#allocation2 + $0x1e0] sm:$0xff]  ;;  %v310_v36 = vld [vmem:[#allocation2 + $0x1e8] sm:$0xff] }
  0x50   :  { %400 = vperm.xlu0 %7842, %v285_v62   ;;  %261 = vst.msk [vmem:[#allocation2 + $0x2b9] sm:$0xff] %vm34_vm0, %v196_v4  ;;  %262 = vst.msk [vmem:[#allocation2 + $0x2c1] sm:$0xff] %vm34_vm0, %v197_v5  ;;  %v311_v37 = vld [vmem:[#allocation2 + $0x1f8] sm:$0xff]  ;;  %v312_v38 = vld [vmem:[#allocation2 + $0x200] sm:$0xff] }
  0x51   :  { %263 = vst.msk [vmem:[#allocation2 + $0x2d1] sm:$0xff] %vm34_vm0, %v198_v6  ;;  %264 = vst.msk [vmem:[#allocation2 + $0x2d9] sm:$0xff] %vm34_vm0, %v199_v7  ;;  %v313_v39 = vld [vmem:[#allocation2 + $0x210] sm:$0xff]  ;;  %v314_v40 = vld [vmem:[#allocation2 + $0x218] sm:$0xff] }
  0x52   :  { %265 = vst.msk [vmem:[#allocation2 + $0x2e9] sm:$0xff] %vm34_vm0, %v200_v9  ;;  %266 = vst.msk [vmem:[#allocation2 + $0x2f1] sm:$0xff] %vm34_vm0, %v201_v10  ;;  %v315_v41 = vld [vmem:[#allocation2 + $0x228] sm:$0xff]  ;;  %v316_v42 = vld [vmem:[#allocation2 + $0x230] sm:$0xff] }
  0x53   :  { %395 = vperm.xlu1 %7843, %v284_v59   ;;  %267 = vst.msk [vmem:[#allocation2 + $0x301] sm:$0xff] %vm34_vm0, %v202_v11  ;;  %268 = vst.msk [vmem:[#allocation2 + $0x309] sm:$0xff] %vm34_vm0, %v203_v12  ;;  %v317_v43 = vld [vmem:[#allocation2 + $0x240] sm:$0xff]  ;;  %v318_v44 = vld [vmem:[#allocation2 + $0x248] sm:$0xff] }
  0x54   :  { %410 = vperm.xlu0 %7842, %v287_v0   ;;  %269 = vst.msk [vmem:[#allocation2 + $0x319] sm:$0xff] %vm34_vm0, %v204_v13  ;;  %270 = vst.msk [vmem:[#allocation2 + $0x321] sm:$0xff] %vm34_vm0, %v205_v14  ;;  %v319_v45 = vld [vmem:[#allocation2 + $0x258] sm:$0xff]  ;;  %v320_v46 = vld [vmem:[#allocation2 + $0x260] sm:$0xff] }
  0x55   :  { %v321_v47 = vld [vmem:[#allocation2 + $0x270] sm:$0xff]  ;;  %v322_v48 = vld [vmem:[#allocation2 + $0x278] sm:$0xff]  ;;  %v323_v49 = vld [vmem:[#allocation2 + $0x288] sm:$0xff] }
  0x56   :  { %v324_v50 = vld [vmem:[#allocation2 + $0x290] sm:$0xff]  ;;  %v325_v51 = vld [vmem:[#allocation2 + $0x2a0] sm:$0xff]  ;;  %v326_v52 = vld [vmem:[#allocation2 + $0x2a8] sm:$0xff] }
  0x57   :  { %405 = vperm.xlu1 %7843, %v286_v63   ;;  %v327_v53 = vld [vmem:[#allocation2 + $0x2b8] sm:$0xff]  ;;  %v328_v54 = vld [vmem:[#allocation2 + $0x2c0] sm:$0xff] }
  0x58   :  { %420 = vperm.xlu0 %7842, %v289_v15   ;;  %v329_v55 = vld [vmem:[#allocation2 + $0x2d0] sm:$0xff]  ;;  %v330_v56 = vld [vmem:[#allocation2 + $0x2d8] sm:$0xff] }
  0x5b   :  { %415 = vperm.xlu1 %7843, %v288_v8  }
  0x5c   :  { %430 = vperm.xlu0 %7842, %v291_v17  }
  0x5f   :  { %425 = vperm.xlu1 %7843, %v290_v16  }
  0x60   :  { %440 = vperm.xlu0 %7842, %v293_v19  }
  0x63   :  { %435 = vperm.xlu1 %7843, %v292_v18  }
  0x64   :  { %450 = vperm.xlu0 %7842, %v295_v21  }
  0x67   :  { %445 = vperm.xlu1 %7843, %v294_v20  }
  0x68   :  { %460 = vperm.xlu0 %7842, %v297_v23  }
  0x6b   :  { %455 = vperm.xlu1 %7843, %v296_v22  }
  0x6c   :  { %470 = vperm.xlu0 %7842, %v299_v25  }
  0x6f   :  { %465 = vperm.xlu1 %7843, %v298_v24  }
  0x70   :  { %480 = vperm.xlu0 %7842, %v301_v27  }
  0x73   :  { %475 = vperm.xlu1 %7843, %v300_v26  }
  0x74   :  { %490 = vperm.xlu0 %7842, %v303_v29  }
  0x77   :  { %485 = vperm.xlu1 %7843, %v302_v28  }
  0x78   :  { %500 = vperm.xlu0 %7842, %v305_v31  }
  0x7b   :  { %495 = vperm.xlu1 %7843, %v304_v30  }
  0x7c   :  { %510 = vperm.xlu0 %7842, %v307_v33  }
  0x7f   :  { %505 = vperm.xlu1 %7843, %v306_v32  }
  0x80   :  { %520 = vperm.xlu0 %7842, %v309_v35  }
  0x83   :  { %515 = vperm.xlu1 %7843, %v308_v34  }
  0x84   :  { %530 = vperm.xlu0 %7842, %v311_v37  }
  0x87   :  { %525 = vperm.xlu1 %7843, %v310_v36  }
  0x88   :  { %540 = vperm.xlu0 %7842, %v313_v39  }
  0x8b   :  { %535 = vperm.xlu1 %7843, %v312_v38  }
  0x8c   :  { %550 = vperm.xlu0 %7842, %v315_v41  }
  0x8f   :  { %545 = vperm.xlu1 %7843, %v314_v40  }
  0x90   :  { %560 = vperm.xlu0 %7842, %v317_v43  }
  0x93   :  { %555 = vperm.xlu1 %7843, %v316_v42  }
  0x94   :  { %570 = vperm.xlu0 %7842, %v319_v45  }
  0x97   :  { %565 = vperm.xlu1 %7843, %v318_v44  }
  0x98   :  { %580 = vperm.xlu0 %7842, %v321_v47  }
  0x9b   :  { %575 = vperm.xlu1 %7843, %v320_v46  }
  0x9c   :  { %590 = vperm.xlu0 %7842, %v323_v49  }
  0x9f   :  { %585 = vperm.xlu1 %7843, %v322_v48  }
  0xa0   :  { %600 = vperm.xlu0 %7842, %v325_v51  }
  0xa3   :  { %595 = vperm.xlu1 %7843, %v324_v50  }
  0xa4   :  { %610 = vperm.xlu0 %7842, %v327_v53  }
  0xa7   :  { %605 = vperm.xlu1 %7843, %v326_v52  }
  0xa8   :  { %620 = vperm.xlu0 %7842, %v329_v55  }
  0xab   :  { %615 = vperm.xlu1 %7843, %v328_v54  }
  0xac   :  { %14 = vsyncpa [#allocation10], 0  ;;  %v331_v57 = vld [vmem:[#allocation2 + $0x2e8] sm:$0xff]  ;;  %v332_v58 = vld [vmem:[#allocation2 + $0x2f0] sm:$0xff]  ;;  %v8513_v1 = vpop.permute.xlu0 %340  ;;  %vm4985_vm2 = vcmask 261120   ;;  %vm5137_vm3 = vcmask 254976  }
  0xad   :  { %630 = vperm.xlu0 %7842, %v331_v57   ;;  %v333_v59 = vld [vmem:[#allocation2 + $0x300] sm:$0xff]  ;;  %v334_v60 = vld [vmem:[#allocation2 + $0x308] sm:$0xff]  ;;  %v335_v61 = vld [vmem:[#allocation2 + $0x318] sm:$0xff]  ;;  %s7995_s28 = smov 32   ;;  %s7996_s11 = smov 64   ;;  %vm5282_vm4 = vcmask 523520  }
  0xae   :  { %v336_v62 = vld [vmem:[#allocation2 + $0x320] sm:$0xff]  ;;  %v793_v0 = vld [vmem:[#allocation2 + $0x9] sm:$0xff]  ;;  %v796_v8 = vld [vmem:[#allocation2 + $0x31] sm:$0xff]  ;;  %s7997_s24 = smov 96   ;;  %vm5347_vm5 = vcmask 785920   ;;  %vm5412_vm6 = vcmask 1048320  }
  0xaf   :  { %625 = vperm.xlu1 %7843, %v330_v56   ;;  %v792_v63 = vld [vmem:[#allocation2 + $0x1] sm:$0xff]  ;;  %v794_v4 = vld [vmem:[#allocation2 + $0x19] sm:$0xff]  ;;  %v798_v12 = vld [vmem:[#allocation2 + $0x49] sm:$0xff]  ;;  %vm6072_vm7 = vcmask 523264   ;;  %vm6143_vm8 = vcmask 519168   ;;  %vm6175_vm9 = vcmask 1041409  }
  0xb0   :  { %v795_v5 = vld [vmem:[#allocation2 + $0x21] sm:$0xff]  ;;  %v8517_v6 = vpop.permute.xlu0 %345  ;;  %v797_v9 = vld [vmem:[#allocation2 + $0x39] sm:$0xff]  ;;  %v799_v13 = vld [vmem:[#allocation2 + $0x51] sm:$0xff]  ;;  %vm6177_vm10 = vcmask 1043459   ;;  %vm6179_vm11 = vcmask 1045509   ;;  %vm6181_vm12 = vcmask 1047559  }
  0xb1   :  { %640 = vperm.xlu0 %7842, %v333_v59   ;;  %v800_v16 = vld [vmem:[#allocation2 + $0x61] sm:$0xff]  ;;  %v801_v17 = vld [vmem:[#allocation2 + $0x69] sm:$0xff]  ;;  %v802_v20 = vld [vmem:[#allocation2 + $0x79] sm:$0xff]  ;;  %vm6184_vm13 = vcmask 517120   ;;  %vm6214_vm14 = vcmask 1041920   ;;  %vm7999_vm15 = vmmov 0  }
  0xb2   :  { %v803_v21 = vld [vmem:[#allocation2 + $0x81] sm:$0xff]  ;;  %v804_v24 = vld [vmem:[#allocation2 + $0x91] sm:$0xff]  ;;  %v805_v25 = vld [vmem:[#allocation2 + $0x99] sm:$0xff]  ;;  %s8000_s29 = smov [#allocation9]  }
  0xb3   :  { %635 = vperm.xlu1 %7843, %v332_v58   ;;  %v806_v28 = vld [vmem:[#allocation2 + $0xa9] sm:$0xff]  ;;  %v807_v29 = vld [vmem:[#allocation2 + $0xb1] sm:$0xff]  ;;  %v808_v32 = vld [vmem:[#allocation2 + $0xc1] sm:$0xff]  ;;  %s7464_s30 = sshll.u32 %s8000_s29, 4  ;;  %s7465_s30 = int_to_ptr.vmem [resolvable:$true] %s7464_s30 }
  0xb4   :  { %v809_v33 = vld [vmem:[#allocation2 + $0xc9] sm:$0xff]  ;;  %v810_v36 = vld [vmem:[#allocation2 + $0xd9] sm:$0xff]  ;;  %v811_v37 = vld [vmem:[#allocation2 + $0xe1] sm:$0xff]  ;;  %s7969_s10 = scalar_lea.vmem %s7465_s30, 32  ;;  %p7974_p1 = scmp.lt.s32.totalorder %s7465_s30, %s7465_s30 }
  0xb5   :  { %650 = vperm.xlu0 %7842, %v335_v61   ;;  %v812_v40 = vld [vmem:[#allocation2 + $0xf1] sm:$0xff]  ;;  %v813_v41 = vld [vmem:[#allocation2 + $0xf9] sm:$0xff]  ;;  %v814_v44 = vld [vmem:[#allocation2 + $0x109] sm:$0xff]  ;;  %p7970_p0 = scmp.ne.s32.totalorder %s7465_s30, %s7969_s10  ;;  %p7975_p2 = scmp.lt.s32.totalorder %s7969_s10, %s7969_s10 }
  0xb6   :  { %v815_v45 = vld [vmem:[#allocation2 + $0x111] sm:$0xff]  ;;  %v816_v48 = vld [vmem:[#allocation2 + $0x121] sm:$0xff]  ;;  %v817_v49 = vld [vmem:[#allocation2 + $0x129] sm:$0xff] }
  0xb7   :  { %645 = vperm.xlu1 %7843, %v334_v60   ;;  %v818_v52 = vld [vmem:[#allocation2 + $0x139] sm:$0xff]  ;;  %v819_v53 = vld [vmem:[#allocation2 + $0x141] sm:$0xff]  ;;  %v820_v56 = vld [vmem:[#allocation2 + $0x151] sm:$0xff]  ;;  %p7976_p3 = por %p7975_p2, %p7974_p1 }
  0xb8   :  { %v821_v57 = vld [vmem:[#allocation2 + $0x159] sm:$0xff]  ;;  %v822_v60 = vld [vmem:[#allocation2 + $0x169] sm:$0xff]  ;;  %v823_v61 = vld [vmem:[#allocation2 + $0x171] sm:$0xff] }
  0xb9   :  { %860 = vperm.xlu0 %7842, %v792_v63   ;;  %v849_v3 = vld [vmem:[#allocation2 + $0x2d9] sm:$0xff]  ;;  %p7977_p4 = pnand %p7976_p3, %p7970_p0 }
  0xbb   :  { %655 = vperm.xlu1 %7843, %v336_v62  }
  0xbd   :  { %870 = vperm.xlu0 %7842, %v794_v4   ;;  %v825_v4 = vld [vmem:[#allocation2 + $0x1b9] sm:$0xff] }
  0xbe   :  { %v8515_v2 = vpop.permute.xlu1 %350 }
  0xbf   :  { %865 = vperm.xlu1 %7843, %v793_v0   ;;  %v8521_v10 = vpop.permute.xlu0 %360  ;;  %v824_v0 = vld [vmem:[#allocation2 + $0x1b1] sm:$0xff] }
  0xc1   :  { %880 = vperm.xlu0 %7842, %v796_v8  }
  0xc2   :  { %v8519_v7 = vpop.permute.xlu1 %355 }
  0xc3   :  { %875 = vperm.xlu1 %7843, %v795_v5   ;;  %v8525_v14 = vpop.permute.xlu0 %370 }
  0xc5   :  { %890 = vperm.xlu0 %7842, %v798_v12   ;;  %v827_v12 = vld [vmem:[#allocation2 + $0x1d1] sm:$0xff] }
  0xc6   :  { %v8523_v11 = vpop.permute.xlu1 %365 }
  0xc7   :  { %885 = vperm.xlu1 %7843, %v797_v9   ;;  %v8529_v18 = vpop.permute.xlu0 %380  ;;  %v826_v9 = vld [vmem:[#allocation2 + $0x1c9] sm:$0xff] }
  0xc9   :  { %900 = vperm.xlu0 %7842, %v800_v16  }
  0xca   :  { %v8527_v15 = vpop.permute.xlu1 %375 }
  0xcb   :  { %895 = vperm.xlu1 %7843, %v799_v13   ;;  %v8533_v22 = vpop.permute.xlu0 %390 }
  0xcd   :  { %910 = vperm.xlu0 %7842, %v802_v20   ;;  %v829_v20 = vld [vmem:[#allocation2 + $0x1e9] sm:$0xff] }
  0xce   :  { %v8531_v19 = vpop.permute.xlu1 %385 }
  0xcf   :  { %905 = vperm.xlu1 %7843, %v801_v17   ;;  %v8537_v26 = vpop.permute.xlu0 %400  ;;  %v828_v17 = vld [vmem:[#allocation2 + $0x1e1] sm:$0xff] }
  0xd0   :  { %12025 = vst [vmem:[#allocation12_spill] sm:$0xff] %v8537_v26  ;;  %v2367_v26 = vld [vmem:[#allocation2 + $0xc9] sm:$0xff] }
  0xd1   :  { %920 = vperm.xlu0 %7842, %v804_v24  }
  0xd2   :  { %v8535_v23 = vpop.permute.xlu1 %395 }
  0xd3   :  { %915 = vperm.xlu1 %7843, %v803_v21   ;;  %v8541_v30 = vpop.permute.xlu0 %410 }
  0xd4   :  { %12027 = vst [vmem:[#allocation14_spill] sm:$0xff] %v8541_v30 }
  0xd5   :  { %930 = vperm.xlu0 %7842, %v806_v28   ;;  %v831_v28 = vld [vmem:[#allocation2 + $0x201] sm:$0xff] }
  0xd6   :  { %v8539_v27 = vpop.permute.xlu1 %405 }
  0xd7   :  { %12026 = vst [vmem:[#allocation13_spill] sm:$0xff] %v8539_v27  ;;  %925 = vperm.xlu1 %7843, %v805_v25   ;;  %v8545_v34 = vpop.permute.xlu0 %420  ;;  %v830_v25 = vld [vmem:[#allocation2 + $0x1f9] sm:$0xff]  ;;  %v2366_v27 = vld [vmem:[#allocation2 + $0xc1] sm:$0xff] }
  0xd8   :  { %12029 = vst [vmem:[#allocation16_spill] sm:$0xff] %v8545_v34  ;;  %v8959_v34 = vld [vmem:[#allocation2 + $0x99] sm:$0xff] }
  0xd9   :  { %940 = vperm.xlu0 %7842, %v808_v32  }
  0xda   :  { %v8543_v31 = vpop.permute.xlu1 %415 }
  0xdb   :  { %12028 = vst [vmem:[#allocation15_spill] sm:$0xff] %v8543_v31  ;;  %935 = vperm.xlu1 %7843, %v807_v29   ;;  %v8549_v38 = vpop.permute.xlu0 %430 }
  0xdc   :  { %12031 = vst [vmem:[#allocation18_spill] sm:$0xff] %v8549_v38 }
  0xdd   :  { %950 = vperm.xlu0 %7842, %v810_v36   ;;  %v833_v36 = vld [vmem:[#allocation2 + $0x219] sm:$0xff] }
  0xde   :  { %v8547_v35 = vpop.permute.xlu1 %425 }
  0xdf   :  { %12030 = vst [vmem:[#allocation17_spill] sm:$0xff] %v8547_v35  ;;  %945 = vperm.xlu1 %7843, %v809_v33   ;;  %v8553_v42 = vpop.permute.xlu0 %440  ;;  %v832_v33 = vld [vmem:[#allocation2 + $0x211] sm:$0xff] }
  0xe0   :  { %12033 = vst [vmem:[#allocation20_spill] sm:$0xff] %v8553_v42  ;;  %v1846_v42 = vld [vmem:[#allocation2 + $0xc0] sm:$0xff] }
  0xe1   :  { %960 = vperm.xlu0 %7842, %v812_v40  }
  0xe2   :  { %v8551_v39 = vpop.permute.xlu1 %435 }
  0xe3   :  { %12032 = vst [vmem:[#allocation19_spill] sm:$0xff] %v8551_v39  ;;  %955 = vperm.xlu1 %7843, %v811_v37   ;;  %v8557_v46 = vpop.permute.xlu0 %450 }
  0xe4   :  { %12035 = vst [vmem:[#allocation22_spill] sm:$0xff] %v8557_v46  ;;  %v1844_v46 = vld [vmem:[#allocation2 + $0xa8] sm:$0xff] }
  0xe5   :  { %970 = vperm.xlu0 %7842, %v814_v44   ;;  %v835_v44 = vld [vmem:[#allocation2 + $0x231] sm:$0xff] }
  0xe6   :  { %v8555_v43 = vpop.permute.xlu1 %445 }
  0xe7   :  { %12034 = vst [vmem:[#allocation21_spill] sm:$0xff] %v8555_v43  ;;  %965 = vperm.xlu1 %7843, %v813_v41   ;;  %v8561_v50 = vpop.permute.xlu0 %460  ;;  %v834_v41 = vld [vmem:[#allocation2 + $0x229] sm:$0xff] }
  0xe8   :  { %12037 = vst [vmem:[#allocation24_spill] sm:$0xff] %v8561_v50  ;;  %v1841_v50 = vld [vmem:[#allocation2 + $0x80] sm:$0xff]  ;;  %v1845_v43 = vld [vmem:[#allocation2 + $0xb0] sm:$0xff] }
  0xe9   :  { %980 = vperm.xlu0 %7842, %v816_v48  }
  0xea   :  { %v8559_v47 = vpop.permute.xlu1 %455 }
  0xeb   :  { %12036 = vst [vmem:[#allocation23_spill] sm:$0xff] %v8559_v47  ;;  %975 = vperm.xlu1 %7843, %v815_v45   ;;  %v8565_v54 = vpop.permute.xlu0 %470  ;;  %v1843_v47 = vld [vmem:[#allocation2 + $0x98] sm:$0xff] }
  0xec   :  { %12039 = vst [vmem:[#allocation26_spill] sm:$0xff] %v8565_v54  ;;  %v1839_v54 = vld [vmem:[#allocation2 + $0x68] sm:$0xff] }
  0xed   :  { %990 = vperm.xlu0 %7842, %v818_v52   ;;  %v837_v52 = vld [vmem:[#allocation2 + $0x249] sm:$0xff] }
  0xee   :  { %v8563_v51 = vpop.permute.xlu1 %465 }
  0xef   :  { %12038 = vst [vmem:[#allocation25_spill] sm:$0xff] %v8563_v51  ;;  %985 = vperm.xlu1 %7843, %v817_v49   ;;  %v8569_v58 = vpop.permute.xlu0 %480  ;;  %v836_v49 = vld [vmem:[#allocation2 + $0x241] sm:$0xff]  ;;  %v1840_v51 = vld [vmem:[#allocation2 + $0x78] sm:$0xff] }
  0xf0   :  { %12041 = vst [vmem:[#allocation28_spill] sm:$0xff] %v8569_v58 }
  0xf1   :  { %1000 = vperm.xlu0 %7842, %v820_v56  }
  0xf2   :  { %v8567_v55 = vpop.permute.xlu1 %475 }
  0xf3   :  { %12040 = vst [vmem:[#allocation27_spill] sm:$0xff] %v8567_v55  ;;  %995 = vperm.xlu1 %7843, %v819_v53   ;;  %v8573_v62 = vpop.permute.xlu0 %490  ;;  %v1838_v55 = vld [vmem:[#allocation2 + $0x60] sm:$0xff] }
  0xf4   :  { %12043 = vst [vmem:[#allocation30_spill] sm:$0xff] %v8573_v62  ;;  %v1339_v62 = vld [vmem:[#allocation2 + $0x142] sm:$0xff] }
  0xf5   :  { %1010 = vperm.xlu0 %7842, %v822_v60   ;;  %v839_v60 = vld [vmem:[#allocation2 + $0x261] sm:$0xff] }
  0xf6   :  { %v8571_v59 = vpop.permute.xlu1 %485 }
  0xf7   :  { %12042 = vst [vmem:[#allocation29_spill] sm:$0xff] %v8571_v59  ;;  %1005 = vperm.xlu1 %7843, %v821_v57   ;;  %v8577_v5 = vpop.permute.xlu0 %500  ;;  %v838_v57 = vld [vmem:[#allocation2 + $0x259] sm:$0xff] }
  0xf8   :  { %12045 = vst [vmem:[#allocation32_spill] sm:$0xff] %v8577_v5  ;;  %v1337_v5 = vld [vmem:[#allocation2 + $0x12a] sm:$0xff] }
  0xf9   :  { %1020 = vperm.xlu0 %7842, %v824_v0  }
  0xfa   :  { %v8575_v63 = vpop.permute.xlu1 %495 }
  0xfb   :  { %12044 = vst [vmem:[#allocation31_spill] sm:$0xff] %v8575_v63  ;;  %1015 = vperm.xlu1 %7843, %v823_v61   ;;  %v8581_v13 = vpop.permute.xlu0 %510  ;;  %v1338_v63 = vld [vmem:[#allocation2 + $0x13a] sm:$0xff] }
  0xfc   :  { %12047 = vst [vmem:[#allocation34_spill] sm:$0xff] %v8581_v13  ;;  %v1335_v13 = vld [vmem:[#allocation2 + $0x112] sm:$0xff] }
  0xfd   :  { %1030 = vperm.xlu0 %7842, %v826_v9   ;;  %v841_v9 = vld [vmem:[#allocation2 + $0x279] sm:$0xff] }
  0xfe   :  { %v8579_v8 = vpop.permute.xlu1 %505 }
  0xff   :  { %12046 = vst [vmem:[#allocation33_spill] sm:$0xff] %v8579_v8  ;;  %1025 = vperm.xlu1 %7843, %v825_v4   ;;  %v8585_v21 = vpop.permute.xlu0 %520  ;;  %v840_v4 = vld [vmem:[#allocation2 + $0x271] sm:$0xff]  ;;  %v1336_v8 = vld [vmem:[#allocation2 + $0x122] sm:$0xff] }
 0x100   :  { %12049 = vst [vmem:[#allocation36_spill] sm:$0xff] %v8585_v21  ;;  %v1333_v21 = vld [vmem:[#allocation2 + $0xfa] sm:$0xff] }
 0x101   :  { %1040 = vperm.xlu0 %7842, %v828_v17  }
 0x102   :  { %v8583_v16 = vpop.permute.xlu1 %515 }
 0x103   :  { %12048 = vst [vmem:[#allocation35_spill] sm:$0xff] %v8583_v16  ;;  %1035 = vperm.xlu1 %7843, %v827_v12   ;;  %v8589_v29 = vpop.permute.xlu0 %530  ;;  %v1334_v16 = vld [vmem:[#allocation2 + $0x10a] sm:$0xff] }
 0x104   :  { %12051 = vst [vmem:[#allocation38_spill] sm:$0xff] %v8589_v29  ;;  %v1331_v29 = vld [vmem:[#allocation2 + $0xe2] sm:$0xff] }
 0x105   :  { %1050 = vperm.xlu0 %7842, %v830_v25   ;;  %v843_v25 = vld [vmem:[#allocation2 + $0x291] sm:$0xff] }
 0x106   :  { %v8587_v24 = vpop.permute.xlu1 %525 }
 0x107   :  { %12050 = vst [vmem:[#allocation37_spill] sm:$0xff] %v8587_v24  ;;  %1045 = vperm.xlu1 %7843, %v829_v20   ;;  %v8593_v37 = vpop.permute.xlu0 %540  ;;  %v842_v20 = vld [vmem:[#allocation2 + $0x289] sm:$0xff]  ;;  %v1332_v24 = vld [vmem:[#allocation2 + $0xf2] sm:$0xff] }
 0x108   :  { %12053 = vst [vmem:[#allocation40_spill] sm:$0xff] %v8593_v37  ;;  %v1329_v37 = vld [vmem:[#allocation2 + $0xca] sm:$0xff] }
 0x109   :  { %1060 = vperm.xlu0 %7842, %v832_v33  }
 0x10a   :  { %v8591_v32 = vpop.permute.xlu1 %535 }
 0x10b   :  { %12052 = vst [vmem:[#allocation39_spill] sm:$0xff] %v8591_v32  ;;  %1055 = vperm.xlu1 %7843, %v831_v28   ;;  %v8597_v45 = vpop.permute.xlu0 %550  ;;  %v1330_v32 = vld [vmem:[#allocation2 + $0xda] sm:$0xff] }
 0x10c   :  { %12055 = vst [vmem:[#allocation42_spill] sm:$0xff] %v8597_v45  ;;  %v1327_v45 = vld [vmem:[#allocation2 + $0xb2] sm:$0xff] }
 0x10d   :  { %1070 = vperm.xlu0 %7842, %v834_v41   ;;  %v845_v41 = vld [vmem:[#allocation2 + $0x2a9] sm:$0xff] }
 0x10e   :  { %v8595_v40 = vpop.permute.xlu1 %545 }
 0x10f   :  { %12054 = vst [vmem:[#allocation41_spill] sm:$0xff] %v8595_v40  ;;  %1065 = vperm.xlu1 %7843, %v833_v36   ;;  %v8601_v53 = vpop.permute.xlu0 %560  ;;  %v844_v36 = vld [vmem:[#allocation2 + $0x2a1] sm:$0xff] }
 0x110   :  { %12057 = vst [vmem:[#allocation44_spill] sm:$0xff] %v8601_v53  ;;  %v1325_v53 = vld [vmem:[#allocation2 + $0x9a] sm:$0xff]  ;;  %v1328_v40 = vld [vmem:[#allocation2 + $0xc2] sm:$0xff] }
 0x111   :  { %1080 = vperm.xlu0 %7842, %v836_v49  }
 0x112   :  { %v8599_v48 = vpop.permute.xlu1 %555 }
 0x113   :  { %12056 = vst [vmem:[#allocation43_spill] sm:$0xff] %v8599_v48  ;;  %1075 = vperm.xlu1 %7843, %v835_v44   ;;  %v8605_v61 = vpop.permute.xlu0 %570  ;;  %v1326_v48 = vld [vmem:[#allocation2 + $0xaa] sm:$0xff] }
 0x114   :  { %12059 = vst [vmem:[#allocation46_spill] sm:$0xff] %v8605_v61  ;;  %v1323_v61 = vld [vmem:[#allocation2 + $0x82] sm:$0xff] }
 0x115   :  { %1090 = vperm.xlu0 %7842, %v838_v57   ;;  %v847_v57 = vld [vmem:[#allocation2 + $0x2c1] sm:$0xff] }
 0x116   :  { %v8603_v56 = vpop.permute.xlu1 %565 }
 0x117   :  { %12058 = vst [vmem:[#allocation45_spill] sm:$0xff] %v8603_v56  ;;  %1085 = vperm.xlu1 %7843, %v837_v52   ;;  %v8609_v12 = vpop.permute.xlu0 %580  ;;  %v846_v52 = vld [vmem:[#allocation2 + $0x2b9] sm:$0xff] }
 0x118   :  { %12061 = vst [vmem:[#allocation48_spill] sm:$0xff] %v8609_v12  ;;  %v1321_v12 = vld [vmem:[#allocation2 + $0x6a] sm:$0xff]  ;;  %v1324_v56 = vld [vmem:[#allocation2 + $0x92] sm:$0xff] }
 0x119   :  { %1100 = vperm.xlu0 %7842, %v840_v4  }
 0x11a   :  { %v8607_v0 = vpop.permute.xlu1 %575 }
 0x11b   :  { %12060 = vst [vmem:[#allocation47_spill] sm:$0xff] %v8607_v0  ;;  %1095 = vperm.xlu1 %7843, %v839_v60   ;;  %v8613_v28 = vpop.permute.xlu0 %590  ;;  %v1322_v0 = vld [vmem:[#allocation2 + $0x7a] sm:$0xff] }
 0x11c   :  { %12063 = vst [vmem:[#allocation50_spill] sm:$0xff] %v8613_v28  ;;  %v1319_v28 = vld [vmem:[#allocation2 + $0x52] sm:$0xff] }
 0x11d   :  { %1110 = vperm.xlu0 %7842, %v842_v20  }
 0x11e   :  { %v8611_v17 = vpop.permute.xlu1 %585 }
 0x11f   :  { %12062 = vst [vmem:[#allocation49_spill] sm:$0xff] %v8611_v17  ;;  %1105 = vperm.xlu1 %7843, %v841_v9   ;;  %v8617_v44 = vpop.permute.xlu0 %600  ;;  %v848_v9 = vld [vmem:[#allocation2 + $0x2d1] sm:$0xff]  ;;  %v1320_v17 = vld [vmem:[#allocation2 + $0x62] sm:$0xff] }
 0x120   :  { %12065 = vst [vmem:[#allocation52_spill] sm:$0xff] %v8617_v44  ;;  %v850_v44 = vld [vmem:[#allocation2 + $0x2e9] sm:$0xff] }
 0x121   :  { %1120 = vperm.xlu0 %7842, %v844_v36  }
 0x122   :  { %v8615_v33 = vpop.permute.xlu1 %595 }
 0x123   :  { %12064 = vst [vmem:[#allocation51_spill] sm:$0xff] %v8615_v33  ;;  %1115 = vperm.xlu1 %7843, %v843_v25   ;;  %v8621_v60 = vpop.permute.xlu0 %610  ;;  %v1318_v33 = vld [vmem:[#allocation2 + $0x4a] sm:$0xff] }
 0x124   :  { %12067 = vst [vmem:[#allocation54_spill] sm:$0xff] %v8621_v60  ;;  %v852_v60 = vld [vmem:[#allocation2 + $0x301] sm:$0xff] }
 0x125   :  { %1130 = vperm.xlu0 %7842, %v846_v52  }
 0x126   :  { %v8619_v49 = vpop.permute.xlu1 %605 }
 0x127   :  { %12066 = vst [vmem:[#allocation53_spill] sm:$0xff] %v8619_v49  ;;  %1125 = vperm.xlu1 %7843, %v845_v41   ;;  %v8625_v20 = vpop.permute.xlu0 %620  ;;  %v851_v49 = vld [vmem:[#allocation2 + $0x2f1] sm:$0xff] }
 0x128   :  { %12069 = vst [vmem:[#allocation56_spill] sm:$0xff] %v8625_v20  ;;  %v854_v20 = vld [vmem:[#allocation2 + $0x319] sm:$0xff] }
 0x129   :  { %1140 = vperm.xlu0 %7842, %v848_v9  }
 0x12a   :  { %v8623_v4 = vpop.permute.xlu1 %615 }
 0x12b   :  { %12068 = vst [vmem:[#allocation55_spill] sm:$0xff] %v8623_v4  ;;  %1135 = vperm.xlu1 %7843, %v847_v57   ;;  %v853_v4 = vld [vmem:[#allocation2 + $0x309] sm:$0xff] }
 0x12c   :  { %v8629_v36 = vpop.permute.xlu0 %630 }
 0x12d   :  { %12071 = vst [vmem:[#allocation58_spill] sm:$0xff] %v8629_v36  ;;  %1150 = vperm.xlu0 %7842, %v850_v44   ;;  %v1312_v36 = vld [vmem:[#allocation2 + $0x2] sm:$0xff] }
 0x12e   :  { %v8627_v25 = vpop.permute.xlu1 %625 }
 0x12f   :  { %12070 = vst [vmem:[#allocation57_spill] sm:$0xff] %v8627_v25  ;;  %1145 = vperm.xlu1 %7843, %v849_v3   ;;  %v855_v25 = vld [vmem:[#allocation2 + $0x321] sm:$0xff] }
 0x130   :  { %v8633_v52 = vpop.permute.xlu0 %640 }
 0x131   :  { %12073 = vst [vmem:[#allocation60_spill] sm:$0xff] %v8633_v52  ;;  %1160 = vperm.xlu0 %7842, %v852_v60   ;;  %v1314_v52 = vld [vmem:[#allocation2 + $0x1a] sm:$0xff] }
 0x132   :  { %v8631_v41 = vpop.permute.xlu1 %635 }
 0x133   :  { %12072 = vst [vmem:[#allocation59_spill] sm:$0xff] %v8631_v41  ;;  %1155 = vperm.xlu1 %7843, %v851_v49   ;;  %v1313_v41 = vld [vmem:[#allocation2 + $0xa] sm:$0xff] }
 0x134   :  { %v8637_v9 = vpop.permute.xlu0 %650 }
 0x135   :  { %12075 = vst [vmem:[#allocation62_spill] sm:$0xff] %v8637_v9  ;;  %1170 = vperm.xlu0 %7842, %v854_v20   ;;  %v1316_v9 = vld [vmem:[#allocation2 + $0x32] sm:$0xff] }
 0x136   :  { %v8635_v57 = vpop.permute.xlu1 %645 }
 0x137   :  { %12074 = vst [vmem:[#allocation61_spill] sm:$0xff] %v8635_v57  ;;  %1165 = vperm.xlu1 %7843, %v853_v4   ;;  %v1315_v57 = vld [vmem:[#allocation2 + $0x22] sm:$0xff] }
 0x138   :  { %v8641_v44 = vpop.permute.xlu0 %860 }
 0x139   :  { %1380 = vperm.xlu0 %7842, %v1312_v36  }
 0x13a   :  { %v8639_v3 = vpop.permute.xlu1 %655 }
 0x13b   :  { %12076 = vst [vmem:[#allocation63_spill] sm:$0xff] %v8639_v3  ;;  %1175 = vperm.xlu1 %7843, %v855_v25   ;;  %v1317_v3 = vld [vmem:[#allocation2 + $0x3a] sm:$0xff] }
 0x13c   :  { %v8645_v60 = vpop.permute.xlu0 %870 }
 0x13d   :  { %1390 = vperm.xlu0 %7842, %v1314_v52  }
 0x13e   :  { %v8643_v49 = vpop.permute.xlu1 %865 }
 0x13f   :  { %1385 = vperm.xlu1 %7843, %v1313_v41  }
 0x140   :  { %v8649_v20 = vpop.permute.xlu0 %880 }
 0x141   :  { %1400 = vperm.xlu0 %7842, %v1316_v9  }
 0x142   :  { %v8647_v4 = vpop.permute.xlu1 %875 }
 0x143   :  { %1395 = vperm.xlu1 %7843, %v1315_v57  }
 0x144   :  { %v8653_v36 = vpop.permute.xlu0 %890 }
 0x145   :  { %1410 = vperm.xlu0 %7842, %v1318_v33  }
 0x146   :  { %v8651_v25 = vpop.permute.xlu1 %885 }
 0x147   :  { %1405 = vperm.xlu1 %7843, %v1317_v3  }
 0x148   :  { %v8657_v52 = vpop.permute.xlu0 %900 }
 0x149   :  { %12077 = vst [vmem:[#allocation64_spill] sm:$0xff] %v8657_v52  ;;  %1420 = vperm.xlu0 %7842, %v1320_v17  }
 0x14a   :  { %v8655_v41 = vpop.permute.xlu1 %895 }
 0x14b   :  { %1415 = vperm.xlu1 %7843, %v1319_v28  }
 0x14c   :  { %v8661_v9 = vpop.permute.xlu0 %910 }
 0x14d   :  { %12079 = vst [vmem:[#allocation66_spill] sm:$0xff] %v8661_v9  ;;  %1430 = vperm.xlu0 %7842, %v1322_v0   ;;  %v3395_v9 = vld [vmem:[#allocation2 + $0x48] sm:$0xff] }
 0x14e   :  { %v8659_v57 = vpop.permute.xlu1 %905 }
 0x14f   :  { %12078 = vst [vmem:[#allocation65_spill] sm:$0xff] %v8659_v57  ;;  %1425 = vperm.xlu1 %7843, %v1321_v12  }
 0x150   :  { %v8665_v33 = vpop.permute.xlu0 %920 }
 0x151   :  { %12081 = vst [vmem:[#allocation68_spill] sm:$0xff] %v8665_v33  ;;  %1440 = vperm.xlu0 %7842, %v1324_v56  }
 0x152   :  { %v8663_v3 = vpop.permute.xlu1 %915 }
 0x153   :  { %12080 = vst [vmem:[#allocation67_spill] sm:$0xff] %v8663_v3  ;;  %1435 = vperm.xlu1 %7843, %v1323_v61   ;;  %v9201_v3 = vld [vmem:[#allocation2 + $0x152] sm:$0xff] }
 0x154   :  { %v8669_v17 = vpop.permute.xlu0 %930  ;;  %12291 = vst [vmem:[#allocation278_spill] sm:$0xff] %v9201_v3 }
 0x155   :  { %12083 = vst [vmem:[#allocation70_spill] sm:$0xff] %v8669_v17  ;;  %1450 = vperm.xlu0 %7842, %v1326_v48   ;;  %v8967_v17 = vld [vmem:[#allocation2 + $0xa9] sm:$0xff] }
 0x156   :  { %v8667_v28 = vpop.permute.xlu1 %925 }
 0x157   :  { %12082 = vst [vmem:[#allocation69_spill] sm:$0xff] %v8667_v28  ;;  %1445 = vperm.xlu1 %7843, %v1325_v53   ;;  %v8969_v28 = vld [vmem:[#allocation2 + $0xb1] sm:$0xff] }
 0x158   :  { %v8673_v0 = vpop.permute.xlu0 %940 }
 0x159   :  { %12085 = vst [vmem:[#allocation72_spill] sm:$0xff] %v8673_v0  ;;  %1460 = vperm.xlu0 %7842, %v1328_v40   ;;  %v8957_v0 = vld [vmem:[#allocation2 + $0x91] sm:$0xff] }
 0x15a   :  { %v8671_v12 = vpop.permute.xlu1 %935 }
 0x15b   :  { %12084 = vst [vmem:[#allocation71_spill] sm:$0xff] %v8671_v12  ;;  %1455 = vperm.xlu1 %7843, %v1327_v45  }
 0x15c   :  { %v8677_v56 = vpop.permute.xlu0 %950 }
 0x15d   :  { %12087 = vst [vmem:[#allocation74_spill] sm:$0xff] %v8677_v56  ;;  %1470 = vperm.xlu0 %7842, %v1330_v32   ;;  %v8949_v56 = vld [vmem:[#allocation2 + $0x81] sm:$0xff] }
 0x15e   :  { %v8675_v61 = vpop.permute.xlu1 %945 }
 0x15f   :  { %12086 = vst [vmem:[#allocation73_spill] sm:$0xff] %v8675_v61  ;;  %1465 = vperm.xlu1 %7843, %v1329_v37  }
 0x160   :  { %v8681_v48 = vpop.permute.xlu0 %960 }
 0x161   :  { %12089 = vst [vmem:[#allocation76_spill] sm:$0xff] %v8681_v48  ;;  %1480 = vperm.xlu0 %7842, %v1332_v24   ;;  %v1849_v48 = vld [vmem:[#allocation2 + $0xe0] sm:$0xff] }
 0x162   :  { %v8679_v53 = vpop.permute.xlu1 %955 }
 0x163   :  { %12088 = vst [vmem:[#allocation75_spill] sm:$0xff] %v8679_v53  ;;  %1475 = vperm.xlu1 %7843, %v1331_v29   ;;  %v8947_v53 = vld [vmem:[#allocation2 + $0x79] sm:$0xff] }
 0x164   :  { %v8685_v40 = vpop.permute.xlu0 %970 }
 0x165   :  { %12091 = vst [vmem:[#allocation78_spill] sm:$0xff] %v8685_v40  ;;  %1490 = vperm.xlu0 %7842, %v1334_v16   ;;  %v1847_v40 = vld [vmem:[#allocation2 + $0xc8] sm:$0xff] }
 0x166   :  { %v8683_v45 = vpop.permute.xlu1 %965 }
 0x167   :  { %12090 = vst [vmem:[#allocation77_spill] sm:$0xff] %v8683_v45  ;;  %1485 = vperm.xlu1 %7843, %v1333_v21   ;;  %v174_v21 = vld [vmem:[%s11962_s0 + $0xf0] sm:$0xff]  ;;  %v1848_v45 = vld [vmem:[#allocation2 + $0xd8] sm:$0xff] }
 0x168   :  { %v8689_v32 = vpop.permute.xlu0 %980  ;;  %239 = vst.msk [vmem:[#allocation2 + $0x181] sm:$0xff] %vm34_vm0, %v174_v21 }
 0x169   :  { %12093 = vst [vmem:[#allocation80_spill] sm:$0xff] %v8689_v32  ;;  %1500 = vperm.xlu0 %7842, %v1336_v8   ;;  %v1340_v8 = vld [vmem:[#allocation2 + $0x152] sm:$0xff] }
 0x16a   :  { %v8687_v37 = vpop.permute.xlu1 %975 }
 0x16b   :  { %12092 = vst [vmem:[#allocation79_spill] sm:$0xff] %v8687_v37  ;;  %1495 = vperm.xlu1 %7843, %v1335_v13   ;;  %v175_v13 = vld [vmem:[%s11962_s0 + $0xf8] sm:$0xff]  ;;  %v1842_v37 = vld [vmem:[#allocation2 + $0x90] sm:$0xff] }
 0x16c   :  { %v8693_v24 = vpop.permute.xlu0 %990  ;;  %240 = vst.msk [vmem:[#allocation2 + $0x189] sm:$0xff] %vm34_vm0, %v175_v13 }
 0x16d   :  { %12095 = vst [vmem:[#allocation82_spill] sm:$0xff] %v8693_v24  ;;  %1510 = vperm.xlu0 %7842, %v1338_v63   ;;  %v1342_v24 = vld [vmem:[#allocation2 + $0x16a] sm:$0xff] }
 0x16e   :  { %v8691_v29 = vpop.permute.xlu1 %985 }
 0x16f   :  { %12094 = vst [vmem:[#allocation81_spill] sm:$0xff] %v8691_v29  ;;  %1505 = vperm.xlu1 %7843, %v1337_v5   ;;  %v1341_v5 = vld [vmem:[#allocation2 + $0x15a] sm:$0xff]  ;;  %v1344_v29 = vld [vmem:[#allocation2 + $0x1b2] sm:$0xff] }
 0x170   :  { %v8705_v16 = vpop.permute.xlu0 %1000 }
 0x171   :  { %12097 = vst [vmem:[#allocation84_spill] sm:$0xff] %v8705_v16  ;;  %1520 = vperm.xlu0 %7842, %v1340_v8   ;;  %v1346_v16 = vld [vmem:[#allocation2 + $0x1ca] sm:$0xff] }
 0x172   :  { %v8698_v59 = vpop.permute.xlu1 %995 }
 0x173   :  { %12096 = vst [vmem:[#allocation83_spill] sm:$0xff] %v8698_v59  ;;  %1515 = vperm.xlu1 %7843, %v1339_v62   ;;  %v1343_v59 = vld [vmem:[#allocation2 + $0x172] sm:$0xff]  ;;  %v1345_v62 = vld [vmem:[#allocation2 + $0x1ba] sm:$0xff] }
 0x174   :  { %v8709_v63 = vpop.permute.xlu0 %1010 }
 0x175   :  { %12099 = vst [vmem:[#allocation86_spill] sm:$0xff] %v8709_v63  ;;  %1530 = vperm.xlu0 %7842, %v1342_v24   ;;  %v1348_v63 = vld [vmem:[#allocation2 + $0x1e2] sm:$0xff] }
 0x176   :  { %v8707_v58 = vpop.permute.xlu1 %1005 }
 0x177   :  { %12098 = vst [vmem:[#allocation85_spill] sm:$0xff] %v8707_v58  ;;  %1525 = vperm.xlu1 %7843, %v1341_v5   ;;  %v1347_v58 = vld [vmem:[#allocation2 + $0x1d2] sm:$0xff] }
 0x178   :  { %v8713_v32 = vpop.permute.xlu0 %1020 }
 0x179   :  { %12101 = vst [vmem:[#allocation88_spill] sm:$0xff] %v8713_v32  ;;  %1540 = vperm.xlu0 %7842, %v1344_v29   ;;  %v1350_v32 = vld [vmem:[#allocation2 + $0x1fa] sm:$0xff] }
 0x17a   :  { %v8711_v21 = vpop.permute.xlu1 %1015 }
 0x17b   :  { %12100 = vst [vmem:[#allocation87_spill] sm:$0xff] %v8711_v21  ;;  %1535 = vperm.xlu1 %7843, %v1343_v59   ;;  %v1349_v21 = vld [vmem:[#allocation2 + $0x1ea] sm:$0xff] }
 0x17c   :  { %v8717_v8 = vpop.permute.xlu0 %1030 }
 0x17d   :  { %12103 = vst [vmem:[#allocation90_spill] sm:$0xff] %v8717_v8  ;;  %1550 = vperm.xlu0 %7842, %v1346_v16   ;;  %v1352_v8 = vld [vmem:[#allocation2 + $0x212] sm:$0xff] }
 0x17e   :  { %v8715_v13 = vpop.permute.xlu1 %1025 }
 0x17f   :  { %12102 = vst [vmem:[#allocation89_spill] sm:$0xff] %v8715_v13  ;;  %1545 = vperm.xlu1 %7843, %v1345_v62   ;;  %v1351_v13 = vld [vmem:[#allocation2 + $0x202] sm:$0xff] }
 0x180   :  { %v8721_v24 = vpop.permute.xlu0 %1040 }
 0x181   :  { %12105 = vst [vmem:[#allocation92_spill] sm:$0xff] %v8721_v24  ;;  %1560 = vperm.xlu0 %7842, %v1348_v63   ;;  %v1354_v24 = vld [vmem:[#allocation2 + $0x22a] sm:$0xff] }
 0x182   :  { %v8719_v5 = vpop.permute.xlu1 %1035 }
 0x183   :  { %12104 = vst [vmem:[#allocation91_spill] sm:$0xff] %v8719_v5  ;;  %1555 = vperm.xlu1 %7843, %v1347_v58   ;;  %v1353_v5 = vld [vmem:[#allocation2 + $0x21a] sm:$0xff] }
 0x184   :  { %v8725_v29 = vpop.permute.xlu0 %1050 }
 0x185   :  { %12107 = vst [vmem:[#allocation94_spill] sm:$0xff] %v8725_v29  ;;  %1570 = vperm.xlu0 %7842, %v1350_v32   ;;  %v1356_v29 = vld [vmem:[#allocation2 + $0x242] sm:$0xff] }
 0x186   :  { %v8723_v59 = vpop.permute.xlu1 %1045 }
 0x187   :  { %12106 = vst [vmem:[#allocation93_spill] sm:$0xff] %v8723_v59  ;;  %1565 = vperm.xlu1 %7843, %v1349_v21   ;;  %v1355_v59 = vld [vmem:[#allocation2 + $0x232] sm:$0xff] }
 0x188   :  { %v8729_v16 = vpop.permute.xlu0 %1060 }
 0x189   :  { %12109 = vst [vmem:[#allocation96_spill] sm:$0xff] %v8729_v16  ;;  %1580 = vperm.xlu0 %7842, %v1352_v8   ;;  %v1358_v16 = vld [vmem:[#allocation2 + $0x25a] sm:$0xff] }
 0x18a   :  { %v8727_v62 = vpop.permute.xlu1 %1055 }
 0x18b   :  { %12108 = vst [vmem:[#allocation95_spill] sm:$0xff] %v8727_v62  ;;  %1575 = vperm.xlu1 %7843, %v1351_v13   ;;  %v1357_v62 = vld [vmem:[#allocation2 + $0x24a] sm:$0xff] }
 0x18c   :  { %v8733_v63 = vpop.permute.xlu0 %1070 }
 0x18d   :  { %12111 = vst [vmem:[#allocation98_spill] sm:$0xff] %v8733_v63  ;;  %1590 = vperm.xlu0 %7842, %v1354_v24   ;;  %v1360_v63 = vld [vmem:[#allocation2 + $0x272] sm:$0xff] }
 0x18e   :  { %v8731_v58 = vpop.permute.xlu1 %1065 }
 0x18f   :  { %12110 = vst [vmem:[#allocation97_spill] sm:$0xff] %v8731_v58  ;;  %1585 = vperm.xlu1 %7843, %v1353_v5   ;;  %v1359_v58 = vld [vmem:[#allocation2 + $0x262] sm:$0xff] }
 0x190   :  { %v8737_v32 = vpop.permute.xlu0 %1080 }
 0x191   :  { %12113 = vst [vmem:[#allocation100_spill] sm:$0xff] %v8737_v32  ;;  %1600 = vperm.xlu0 %7842, %v1356_v29   ;;  %v1362_v32 = vld [vmem:[#allocation2 + $0x28a] sm:$0xff] }
 0x192   :  { %v8735_v21 = vpop.permute.xlu1 %1075 }
 0x193   :  { %12112 = vst [vmem:[#allocation99_spill] sm:$0xff] %v8735_v21  ;;  %1595 = vperm.xlu1 %7843, %v1355_v59   ;;  %v1361_v21 = vld [vmem:[#allocation2 + $0x27a] sm:$0xff] }
 0x194   :  { %v8741_v8 = vpop.permute.xlu0 %1090 }
 0x195   :  { %12115 = vst [vmem:[#allocation102_spill] sm:$0xff] %v8741_v8  ;;  %1610 = vperm.xlu0 %7842, %v1358_v16   ;;  %v1364_v8 = vld [vmem:[#allocation2 + $0x2a2] sm:$0xff] }
 0x196   :  { %v8739_v13 = vpop.permute.xlu1 %1085 }
 0x197   :  { %12114 = vst [vmem:[#allocation101_spill] sm:$0xff] %v8739_v13  ;;  %1605 = vperm.xlu1 %7843, %v1357_v62   ;;  %v1363_v13 = vld [vmem:[#allocation2 + $0x292] sm:$0xff] }
 0x198   :  { %v8745_v24 = vpop.permute.xlu0 %1100 }
 0x199   :  { %12117 = vst [vmem:[#allocation104_spill] sm:$0xff] %v8745_v24  ;;  %1620 = vperm.xlu0 %7842, %v1360_v63   ;;  %v1366_v24 = vld [vmem:[#allocation2 + $0x2ba] sm:$0xff] }
 0x19a   :  { %v8743_v5 = vpop.permute.xlu1 %1095 }
 0x19b   :  { %12116 = vst [vmem:[#allocation103_spill] sm:$0xff] %v8743_v5  ;;  %1615 = vperm.xlu1 %7843, %v1359_v58   ;;  %v1365_v5 = vld [vmem:[#allocation2 + $0x2aa] sm:$0xff] }
 0x19c   :  { %v8749_v29 = vpop.permute.xlu0 %1110 }
 0x19d   :  { %12119 = vst [vmem:[#allocation106_spill] sm:$0xff] %v8749_v29  ;;  %1630 = vperm.xlu0 %7842, %v1362_v32   ;;  %v1368_v29 = vld [vmem:[#allocation2 + $0x2d2] sm:$0xff] }
 0x19e   :  { %v8747_v59 = vpop.permute.xlu1 %1105 }
 0x19f   :  { %12118 = vst [vmem:[#allocation105_spill] sm:$0xff] %v8747_v59  ;;  %1625 = vperm.xlu1 %7843, %v1361_v21   ;;  %v1367_v59 = vld [vmem:[#allocation2 + $0x2c2] sm:$0xff] }
 0x1a0   :  { %v8753_v16 = vpop.permute.xlu0 %1120 }
 0x1a1   :  { %12121 = vst [vmem:[#allocation108_spill] sm:$0xff] %v8753_v16  ;;  %1640 = vperm.xlu0 %7842, %v1364_v8   ;;  %v1370_v16 = vld [vmem:[#allocation2 + $0x2ea] sm:$0xff] }
 0x1a2   :  { %v8751_v62 = vpop.permute.xlu1 %1115 }
 0x1a3   :  { %12120 = vst [vmem:[#allocation107_spill] sm:$0xff] %v8751_v62  ;;  %1635 = vperm.xlu1 %7843, %v1363_v13   ;;  %v1369_v62 = vld [vmem:[#allocation2 + $0x2da] sm:$0xff] }
 0x1a4   :  { %v8757_v63 = vpop.permute.xlu0 %1130 }
 0x1a5   :  { %12123 = vst [vmem:[#allocation110_spill] sm:$0xff] %v8757_v63  ;;  %1650 = vperm.xlu0 %7842, %v1366_v24   ;;  %v207_v24 = vld [vmem:[%s11962_s0 + $0x1f8] sm:$0xff] }
 0x1a6   :  { %v8755_v58 = vpop.permute.xlu1 %1125  ;;  %272 = vst.msk [vmem:[#allocation2 + $0x339] sm:$0xff] %vm34_vm0, %v207_v24 }
 0x1a7   :  { %12122 = vst [vmem:[#allocation109_spill] sm:$0xff] %v8755_v58  ;;  %1645 = vperm.xlu1 %7843, %v1365_v5   ;;  %v1371_v58 = vld [vmem:[#allocation2 + $0x2f2] sm:$0xff] }
 0x1a8   :  { %v8761_v32 = vpop.permute.xlu0 %1140  ;;  %v206_v5 = vld [vmem:[%s11962_s0 + $0x1f0] sm:$0xff] }
 0x1a9   :  { %12125 = vst [vmem:[#allocation112_spill] sm:$0xff] %v8761_v32  ;;  %1660 = vperm.xlu0 %7842, %v1368_v29   ;;  %271 = vst.msk [vmem:[#allocation2 + $0x331] sm:$0xff] %vm34_vm0, %v206_v5  ;;  %v1373_v29 = vld [vmem:[#allocation2 + $0x30a] sm:$0xff]  ;;  %v1832_v32 = vld [vmem:[#allocation2 + $0x18] sm:$0xff] }
 0x1aa   :  { %v8759_v21 = vpop.permute.xlu1 %1135 }
 0x1ab   :  { %12124 = vst [vmem:[#allocation111_spill] sm:$0xff] %v8759_v21  ;;  %1655 = vperm.xlu1 %7843, %v1367_v59   ;;  %v1372_v59 = vld [vmem:[#allocation2 + $0x302] sm:$0xff] }
 0x1ac   :  { %v8765_v8 = vpop.permute.xlu0 %1150 }
 0x1ad   :  { %12127 = vst [vmem:[#allocation114_spill] sm:$0xff] %v8765_v8  ;;  %1670 = vperm.xlu0 %7842, %v1370_v16  }
 0x1ae   :  { %v8763_v13 = vpop.permute.xlu1 %1145 }
 0x1af   :  { %12126 = vst [vmem:[#allocation113_spill] sm:$0xff] %v8763_v13  ;;  %1665 = vperm.xlu1 %7843, %v1369_v62   ;;  %v1374_v13 = vld [vmem:[#allocation2 + $0x31a] sm:$0xff] }
 0x1b0   :  { %v8777_v62 = vpop.permute.xlu0 %1160 }
 0x1b1   :  { %12129 = vst [vmem:[#allocation116_spill] sm:$0xff] %v8777_v62  ;;  %1680 = vperm.xlu0 %7842, %v1372_v59   ;;  %v1834_v62 = vld [vmem:[#allocation2 + $0x30] sm:$0xff] }
 0x1b2   :  { %v8770_v63 = vpop.permute.xlu1 %1155 }
 0x1b3   :  { %12128 = vst [vmem:[#allocation115_spill] sm:$0xff] %v8770_v63  ;;  %1675 = vperm.xlu1 %7843, %v1371_v58   ;;  %v1375_v63 = vld [vmem:[#allocation2 + $0x322] sm:$0xff] }
 0x1b4   :  { %v8781_v16 = vpop.permute.xlu0 %1170  ;;  %v1833_v58 = vld [vmem:[#allocation2 + $0x20] sm:$0xff] }
 0x1b5   :  { %12131 = vst [vmem:[#allocation118_spill] sm:$0xff] %v8781_v16  ;;  %1690 = vperm.xlu0 %7842, %v1374_v13   ;;  %v1836_v16 = vld [vmem:[#allocation2 + $0x48] sm:$0xff] }
 0x1b6   :  { %v8779_v8 = vpop.permute.xlu1 %1165 }
 0x1b7   :  { %12130 = vst [vmem:[#allocation117_spill] sm:$0xff] %v8779_v8  ;;  %1685 = vperm.xlu1 %7843, %v1373_v29   ;;  %v1835_v8 = vld [vmem:[#allocation2 + $0x38] sm:$0xff] }
 0x1b8   :  { %v8785_v21 = vpop.permute.xlu0 %1380 }
 0x1b9   :  { %12133 = vst [vmem:[#allocation120_spill] sm:$0xff] %v8785_v21  ;;  %1900 = vperm.xlu0 %7842, %v1832_v32  }
 0x1ba   :  { %v8783_v5 = vpop.permute.xlu1 %1175 }
 0x1bb   :  { %12132 = vst [vmem:[#allocation119_spill] sm:$0xff] %v8783_v5  ;;  %1695 = vperm.xlu1 %7843, %v1375_v63   ;;  %v1837_v5 = vld [vmem:[#allocation2 + $0x50] sm:$0xff] }
 0x1bc   :  { %v8789_v59 = vpop.permute.xlu0 %1390 }
 0x1bd   :  { %12135 = vst [vmem:[#allocation122_spill] sm:$0xff] %v8789_v59  ;;  %1910 = vperm.xlu0 %7842, %v1834_v62  }
 0x1be   :  { %v8787_v24 = vpop.permute.xlu1 %1385 }
 0x1bf   :  { %12134 = vst [vmem:[#allocation121_spill] sm:$0xff] %v8787_v24  ;;  %1905 = vperm.xlu1 %7843, %v1833_v58   ;;  %v9191_v24 = vld [vmem:[#allocation2 + $0x13a] sm:$0xff] }
 0x1c0   :  { %v8793_v13 = vpop.permute.xlu0 %1400  ;;  %12287 = vst [vmem:[#allocation274_spill] sm:$0xff] %v9191_v24 }
 0x1c1   :  { %12137 = vst [vmem:[#allocation124_spill] sm:$0xff] %v8793_v13  ;;  %1920 = vperm.xlu0 %7842, %v1836_v16  }
 0x1c2   :  { %v8791_v29 = vpop.permute.xlu1 %1395 }
 0x1c3   :  { %12136 = vst [vmem:[#allocation123_spill] sm:$0xff] %v8791_v29  ;;  %1915 = vperm.xlu1 %7843, %v1835_v8   ;;  %v9181_v29 = vld [vmem:[#allocation2 + $0x122] sm:$0xff] }
 0x1c4   :  { %v8797_v32 = vpop.permute.xlu0 %1410  ;;  %12283 = vst [vmem:[#allocation270_spill] sm:$0xff] %v9181_v29 }
 0x1c5   :  { %12139 = vst [vmem:[#allocation126_spill] sm:$0xff] %v8797_v32  ;;  %1930 = vperm.xlu0 %7842, %v1838_v55  }
 0x1c6   :  { %v8795_v63 = vpop.permute.xlu1 %1405 }
 0x1c7   :  { %12138 = vst [vmem:[#allocation125_spill] sm:$0xff] %v8795_v63  ;;  %1925 = vperm.xlu1 %7843, %v1837_v5   ;;  %v9171_v63 = vld [vmem:[#allocation2 + $0x10a] sm:$0xff] }
 0x1c8   :  { %v8801_v62 = vpop.permute.xlu0 %1420 }
 0x1c9   :  { %12141 = vst [vmem:[#allocation128_spill] sm:$0xff] %v8801_v62  ;;  %1940 = vperm.xlu0 %7842, %v1840_v51  }
 0x1ca   :  { %v8799_v58 = vpop.permute.xlu1 %1415 }
 0x1cb   :  { %12140 = vst [vmem:[#allocation127_spill] sm:$0xff] %v8799_v58  ;;  %1935 = vperm.xlu1 %7843, %v1839_v54   ;;  %v9161_v58 = vld [vmem:[#allocation2 + $0xf2] sm:$0xff] }
 0x1cc   :  { %v8805_v16 = vpop.permute.xlu0 %1430 }
 0x1cd   :  { %12143 = vst [vmem:[#allocation130_spill] sm:$0xff] %v8805_v16  ;;  %1950 = vperm.xlu0 %7842, %v1842_v37  }
 0x1ce   :  { %v8803_v8 = vpop.permute.xlu1 %1425 }
 0x1cf   :  { %12142 = vst [vmem:[#allocation129_spill] sm:$0xff] %v8803_v8  ;;  %1945 = vperm.xlu1 %7843, %v1841_v50   ;;  %v9151_v8 = vld [vmem:[#allocation2 + $0xda] sm:$0xff] }
 0x1d0   :  { %v8809_v55 = vpop.permute.xlu0 %1440 }
 0x1d1   :  { %12145 = vst [vmem:[#allocation132_spill] sm:$0xff] %v8809_v55  ;;  %1960 = vperm.xlu0 %7842, %v1844_v46   ;;  %v1850_v55 = vld [vmem:[#allocation2 + $0xf0] sm:$0xff] }
 0x1d2   :  { %v8807_v5 = vpop.permute.xlu1 %1435 }
 0x1d3   :  { %12144 = vst [vmem:[#allocation131_spill] sm:$0xff] %v8807_v5  ;;  %1955 = vperm.xlu1 %7843, %v1843_v47   ;;  %v9141_v5 = vld [vmem:[#allocation2 + $0xc2] sm:$0xff] }
 0x1d4   :  { %v8813_v51 = vpop.permute.xlu0 %1450 }
 0x1d5   :  { %12147 = vst [vmem:[#allocation134_spill] sm:$0xff] %v8813_v51  ;;  %1970 = vperm.xlu0 %7842, %v1846_v42   ;;  %v1852_v51 = vld [vmem:[#allocation2 + $0x108] sm:$0xff] }
 0x1d6   :  { %v8811_v54 = vpop.permute.xlu1 %1445 }
 0x1d7   :  { %12146 = vst [vmem:[#allocation133_spill] sm:$0xff] %v8811_v54  ;;  %1965 = vperm.xlu1 %7843, %v1845_v43   ;;  %v1851_v54 = vld [vmem:[#allocation2 + $0xf8] sm:$0xff] }
 0x1d8   :  { %v8817_v37 = vpop.permute.xlu0 %1460 }
 0x1d9   :  { %12149 = vst [vmem:[#allocation136_spill] sm:$0xff] %v8817_v37  ;;  %1980 = vperm.xlu0 %7842, %v1848_v45   ;;  %v1854_v37 = vld [vmem:[#allocation2 + $0x120] sm:$0xff] }
 0x1da   :  { %v8815_v50 = vpop.permute.xlu1 %1455 }
 0x1db   :  { %12148 = vst [vmem:[#allocation135_spill] sm:$0xff] %v8815_v50  ;;  %1975 = vperm.xlu1 %7843, %v1847_v40   ;;  %v1853_v50 = vld [vmem:[#allocation2 + $0x110] sm:$0xff] }
 0x1dc   :  { %v8821_v46 = vpop.permute.xlu0 %1470 }
 0x1dd   :  { %12151 = vst [vmem:[#allocation138_spill] sm:$0xff] %v8821_v46  ;;  %1990 = vperm.xlu0 %7842, %v1850_v55   ;;  %v1856_v46 = vld [vmem:[#allocation2 + $0x138] sm:$0xff] }
 0x1de   :  { %v8819_v47 = vpop.permute.xlu1 %1465 }
 0x1df   :  { %12150 = vst [vmem:[#allocation137_spill] sm:$0xff] %v8819_v47  ;;  %1985 = vperm.xlu1 %7843, %v1849_v48   ;;  %v1855_v47 = vld [vmem:[#allocation2 + $0x128] sm:$0xff] }
 0x1e0   :  { %v8825_v42 = vpop.permute.xlu0 %1480 }
 0x1e1   :  { %12153 = vst [vmem:[#allocation140_spill] sm:$0xff] %v8825_v42  ;;  %2000 = vperm.xlu0 %7842, %v1852_v51   ;;  %v1858_v42 = vld [vmem:[#allocation2 + $0x150] sm:$0xff] }
 0x1e2   :  { %v8823_v43 = vpop.permute.xlu1 %1475 }
 0x1e3   :  { %12152 = vst [vmem:[#allocation139_spill] sm:$0xff] %v8823_v43  ;;  %1995 = vperm.xlu1 %7843, %v1851_v54   ;;  %v1857_v43 = vld [vmem:[#allocation2 + $0x140] sm:$0xff] }
 0x1e4   :  { %v8829_v45 = vpop.permute.xlu0 %1490 }
 0x1e5   :  { %12155 = vst [vmem:[#allocation142_spill] sm:$0xff] %v8829_v45  ;;  %2010 = vperm.xlu0 %7842, %v1854_v37   ;;  %v1860_v45 = vld [vmem:[#allocation2 + $0x168] sm:$0xff] }
 0x1e6   :  { %v8827_v40 = vpop.permute.xlu1 %1485 }
 0x1e7   :  { %12154 = vst [vmem:[#allocation141_spill] sm:$0xff] %v8827_v40  ;;  %2005 = vperm.xlu1 %7843, %v1853_v50   ;;  %v1859_v40 = vld [vmem:[#allocation2 + $0x158] sm:$0xff] }
 0x1e8   :  { %v8833_v55 = vpop.permute.xlu0 %1500 }
 0x1e9   :  { %12157 = vst [vmem:[#allocation144_spill] sm:$0xff] %v8833_v55  ;;  %2020 = vperm.xlu0 %7842, %v1856_v46   ;;  %v1862_v55 = vld [vmem:[#allocation2 + $0x180] sm:$0xff] }
 0x1ea   :  { %v8831_v48 = vpop.permute.xlu1 %1495 }
 0x1eb   :  { %12156 = vst [vmem:[#allocation143_spill] sm:$0xff] %v8831_v48  ;;  %2015 = vperm.xlu1 %7843, %v1855_v47   ;;  %v1861_v48 = vld [vmem:[#allocation2 + $0x170] sm:$0xff] }
 0x1ec   :  { %v8837_v51 = vpop.permute.xlu0 %1510 }
 0x1ed   :  { %12159 = vst [vmem:[#allocation146_spill] sm:$0xff] %v8837_v51  ;;  %2030 = vperm.xlu0 %7842, %v1858_v42   ;;  %v1864_v51 = vld [vmem:[#allocation2 + $0x1c8] sm:$0xff] }
 0x1ee   :  { %v8835_v54 = vpop.permute.xlu1 %1505 }
 0x1ef   :  { %12158 = vst [vmem:[#allocation145_spill] sm:$0xff] %v8835_v54  ;;  %2025 = vperm.xlu1 %7843, %v1857_v43   ;;  %v1863_v54 = vld [vmem:[#allocation2 + $0x188] sm:$0xff] }
 0x1f0   :  { %v8841_v37 = vpop.permute.xlu0 %1520 }
 0x1f1   :  { %12161 = vst [vmem:[#allocation148_spill] sm:$0xff] %v8841_v37  ;;  %2040 = vperm.xlu0 %7842, %v1860_v45   ;;  %v1866_v37 = vld [vmem:[#allocation2 + $0x1e0] sm:$0xff] }
 0x1f2   :  { %v8839_v50 = vpop.permute.xlu1 %1515 }
 0x1f3   :  { %12160 = vst [vmem:[#allocation147_spill] sm:$0xff] %v8839_v50  ;;  %2035 = vperm.xlu1 %7843, %v1859_v40   ;;  %v1865_v50 = vld [vmem:[#allocation2 + $0x1d0] sm:$0xff] }
 0x1f4   :  { %v8845_v46 = vpop.permute.xlu0 %1530 }
 0x1f5   :  { %12163 = vst [vmem:[#allocation150_spill] sm:$0xff] %v8845_v46  ;;  %2050 = vperm.xlu0 %7842, %v1862_v55   ;;  %v1868_v46 = vld [vmem:[#allocation2 + $0x1f8] sm:$0xff] }
 0x1f6   :  { %v8843_v47 = vpop.permute.xlu1 %1525 }
 0x1f7   :  { %12162 = vst [vmem:[#allocation149_spill] sm:$0xff] %v8843_v47  ;;  %2045 = vperm.xlu1 %7843, %v1861_v48   ;;  %v1867_v47 = vld [vmem:[#allocation2 + $0x1e8] sm:$0xff] }
 0x1f8   :  { %v8849_v42 = vpop.permute.xlu0 %1540 }
 0x1f9   :  { %12165 = vst [vmem:[#allocation152_spill] sm:$0xff] %v8849_v42  ;;  %2060 = vperm.xlu0 %7842, %v1864_v51   ;;  %v1870_v42 = vld [vmem:[#allocation2 + $0x210] sm:$0xff] }
 0x1fa   :  { %v8847_v43 = vpop.permute.xlu1 %1535 }
 0x1fb   :  { %12164 = vst [vmem:[#allocation151_spill] sm:$0xff] %v8847_v43  ;;  %2055 = vperm.xlu1 %7843, %v1863_v54   ;;  %v1869_v43 = vld [vmem:[#allocation2 + $0x200] sm:$0xff] }
 0x1fc   :  { %v8853_v45 = vpop.permute.xlu0 %1550 }
 0x1fd   :  { %12167 = vst [vmem:[#allocation154_spill] sm:$0xff] %v8853_v45  ;;  %2070 = vperm.xlu0 %7842, %v1866_v37   ;;  %v1872_v45 = vld [vmem:[#allocation2 + $0x228] sm:$0xff] }
 0x1fe   :  { %v8851_v40 = vpop.permute.xlu1 %1545 }
 0x1ff   :  { %12166 = vst [vmem:[#allocation153_spill] sm:$0xff] %v8851_v40  ;;  %2065 = vperm.xlu1 %7843, %v1865_v50   ;;  %v1871_v40 = vld [vmem:[#allocation2 + $0x218] sm:$0xff] }
 0x200   :  { %v8857_v55 = vpop.permute.xlu0 %1560 }
 0x201   :  { %12169 = vst [vmem:[#allocation156_spill] sm:$0xff] %v8857_v55  ;;  %2080 = vperm.xlu0 %7842, %v1868_v46   ;;  %v1874_v55 = vld [vmem:[#allocation2 + $0x240] sm:$0xff] }
 0x202   :  { %v8855_v48 = vpop.permute.xlu1 %1555 }
 0x203   :  { %12168 = vst [vmem:[#allocation155_spill] sm:$0xff] %v8855_v48  ;;  %2075 = vperm.xlu1 %7843, %v1867_v47   ;;  %v1873_v48 = vld [vmem:[#allocation2 + $0x230] sm:$0xff] }
 0x204   :  { %v8861_v51 = vpop.permute.xlu0 %1570 }
 0x205   :  { %12171 = vst [vmem:[#allocation158_spill] sm:$0xff] %v8861_v51  ;;  %2090 = vperm.xlu0 %7842, %v1870_v42   ;;  %v1876_v51 = vld [vmem:[#allocation2 + $0x258] sm:$0xff] }
 0x206   :  { %v8859_v54 = vpop.permute.xlu1 %1565 }
 0x207   :  { %12170 = vst [vmem:[#allocation157_spill] sm:$0xff] %v8859_v54  ;;  %2085 = vperm.xlu1 %7843, %v1869_v43   ;;  %v1875_v54 = vld [vmem:[#allocation2 + $0x248] sm:$0xff] }
 0x208   :  { %v8865_v37 = vpop.permute.xlu0 %1580 }
 0x209   :  { %12173 = vst [vmem:[#allocation160_spill] sm:$0xff] %v8865_v37  ;;  %2100 = vperm.xlu0 %7842, %v1872_v45   ;;  %v1878_v37 = vld [vmem:[#allocation2 + $0x270] sm:$0xff] }
 0x20a   :  { %v8863_v50 = vpop.permute.xlu1 %1575 }
 0x20b   :  { %12172 = vst [vmem:[#allocation159_spill] sm:$0xff] %v8863_v50  ;;  %2095 = vperm.xlu1 %7843, %v1871_v40   ;;  %v1877_v50 = vld [vmem:[#allocation2 + $0x260] sm:$0xff] }
 0x20c   :  { %v8869_v46 = vpop.permute.xlu0 %1590 }
 0x20d   :  { %12175 = vst [vmem:[#allocation162_spill] sm:$0xff] %v8869_v46  ;;  %2110 = vperm.xlu0 %7842, %v1874_v55   ;;  %v1880_v46 = vld [vmem:[#allocation2 + $0x288] sm:$0xff] }
 0x20e   :  { %v8867_v47 = vpop.permute.xlu1 %1585 }
 0x20f   :  { %12174 = vst [vmem:[#allocation161_spill] sm:$0xff] %v8867_v47  ;;  %2105 = vperm.xlu1 %7843, %v1873_v48   ;;  %v1879_v47 = vld [vmem:[#allocation2 + $0x278] sm:$0xff] }
 0x210   :  { %v8873_v42 = vpop.permute.xlu0 %1600 }
 0x211   :  { %12177 = vst [vmem:[#allocation164_spill] sm:$0xff] %v8873_v42  ;;  %2120 = vperm.xlu0 %7842, %v1876_v51   ;;  %v1882_v42 = vld [vmem:[#allocation2 + $0x2a0] sm:$0xff] }
 0x212   :  { %v8871_v43 = vpop.permute.xlu1 %1595 }
 0x213   :  { %12176 = vst [vmem:[#allocation163_spill] sm:$0xff] %v8871_v43  ;;  %2115 = vperm.xlu1 %7843, %v1875_v54   ;;  %v1881_v43 = vld [vmem:[#allocation2 + $0x290] sm:$0xff] }
 0x214   :  { %v8877_v45 = vpop.permute.xlu0 %1610 }
 0x215   :  { %12179 = vst [vmem:[#allocation166_spill] sm:$0xff] %v8877_v45  ;;  %2130 = vperm.xlu0 %7842, %v1878_v37   ;;  %v1884_v45 = vld [vmem:[#allocation2 + $0x2b8] sm:$0xff] }
 0x216   :  { %v8875_v40 = vpop.permute.xlu1 %1605 }
 0x217   :  { %12178 = vst [vmem:[#allocation165_spill] sm:$0xff] %v8875_v40  ;;  %2125 = vperm.xlu1 %7843, %v1877_v50   ;;  %v1883_v40 = vld [vmem:[#allocation2 + $0x2a8] sm:$0xff] }
 0x218   :  { %v8881_v55 = vpop.permute.xlu0 %1620 }
 0x219   :  { %12181 = vst [vmem:[#allocation168_spill] sm:$0xff] %v8881_v55  ;;  %2140 = vperm.xlu0 %7842, %v1880_v46   ;;  %v1886_v55 = vld [vmem:[#allocation2 + $0x2d0] sm:$0xff] }
 0x21a   :  { %v8879_v48 = vpop.permute.xlu1 %1615 }
 0x21b   :  { %12180 = vst [vmem:[#allocation167_spill] sm:$0xff] %v8879_v48  ;;  %2135 = vperm.xlu1 %7843, %v1879_v47   ;;  %v1885_v48 = vld [vmem:[#allocation2 + $0x2c0] sm:$0xff] }
 0x21c   :  { %v8885_v51 = vpop.permute.xlu0 %1630 }
 0x21d   :  { %12183 = vst [vmem:[#allocation170_spill] sm:$0xff] %v8885_v51  ;;  %2150 = vperm.xlu0 %7842, %v1882_v42   ;;  %v1888_v51 = vld [vmem:[#allocation2 + $0x2e8] sm:$0xff] }
 0x21e   :  { %v8883_v54 = vpop.permute.xlu1 %1625 }
 0x21f   :  { %12182 = vst [vmem:[#allocation169_spill] sm:$0xff] %v8883_v54  ;;  %2145 = vperm.xlu1 %7843, %v1881_v43   ;;  %v1887_v54 = vld [vmem:[#allocation2 + $0x2d8] sm:$0xff] }
 0x220   :  { %v8889_v37 = vpop.permute.xlu0 %1640 }
 0x221   :  { %12185 = vst [vmem:[#allocation172_spill] sm:$0xff] %v8889_v37  ;;  %2160 = vperm.xlu0 %7842, %v1884_v45   ;;  %v1890_v37 = vld [vmem:[#allocation2 + $0x300] sm:$0xff] }
 0x222   :  { %v8887_v50 = vpop.permute.xlu1 %1635 }
 0x223   :  { %12184 = vst [vmem:[#allocation171_spill] sm:$0xff] %v8887_v50  ;;  %2155 = vperm.xlu1 %7843, %v1883_v40   ;;  %v1889_v50 = vld [vmem:[#allocation2 + $0x2f0] sm:$0xff] }
 0x224   :  { %v8893_v46 = vpop.permute.xlu0 %1650 }
 0x225   :  { %12187 = vst [vmem:[#allocation174_spill] sm:$0xff] %v8893_v46  ;;  %2170 = vperm.xlu0 %7842, %v1886_v55   ;;  %v1892_v46 = vld [vmem:[#allocation2 + $0x318] sm:$0xff] }
 0x226   :  { %v8891_v47 = vpop.permute.xlu1 %1645 }
 0x227   :  { %12186 = vst [vmem:[#allocation173_spill] sm:$0xff] %v8891_v47  ;;  %2165 = vperm.xlu1 %7843, %v1885_v48   ;;  %v1891_v47 = vld [vmem:[#allocation2 + $0x308] sm:$0xff] }
 0x228   :  { %v8897_v42 = vpop.permute.xlu0 %1660 }
 0x229   :  { %12189 = vst [vmem:[#allocation176_spill] sm:$0xff] %v8897_v42  ;;  %2180 = vperm.xlu0 %7842, %v1888_v51   ;;  %v1894_v42 = vld [vmem:[#allocation2 + $0x330] sm:$0xff] }
 0x22a   :  { %v8895_v43 = vpop.permute.xlu1 %1655 }
 0x22b   :  { %12188 = vst [vmem:[#allocation175_spill] sm:$0xff] %v8895_v43  ;;  %2175 = vperm.xlu1 %7843, %v1887_v54   ;;  %v1893_v43 = vld [vmem:[#allocation2 + $0x320] sm:$0xff] }
 0x22c   :  { %v8901_v45 = vpop.permute.xlu0 %1670 }
 0x22d   :  { %12191 = vst [vmem:[#allocation178_spill] sm:$0xff] %v8901_v45  ;;  %2190 = vperm.xlu0 %7842, %v1890_v37   ;;  %v2352_v45 = vld [vmem:[#allocation2 + $0x19] sm:$0xff] }
 0x22e   :  { %v8899_v40 = vpop.permute.xlu1 %1665 }
 0x22f   :  { %12190 = vst [vmem:[#allocation177_spill] sm:$0xff] %v8899_v40  ;;  %2185 = vperm.xlu1 %7843, %v1889_v50   ;;  %v1895_v40 = vld [vmem:[#allocation2 + $0x338] sm:$0xff] }
 0x230   :  { %v8905_v55 = vpop.permute.xlu0 %1680 }
 0x231   :  { %12193 = vst [vmem:[#allocation180_spill] sm:$0xff] %v8905_v55  ;;  %2200 = vperm.xlu0 %7842, %v1892_v46   ;;  %v8917_v55 = vld [vmem:[#allocation2 + $0x31] sm:$0xff]  ;;  %v8919_v46 = vld [vmem:[#allocation2 + $0x39] sm:$0xff] }
 0x232   :  { %v8903_v48 = vpop.permute.xlu1 %1675 }
 0x233   :  { %12192 = vst [vmem:[#allocation179_spill] sm:$0xff] %v8903_v48  ;;  %2195 = vperm.xlu1 %7843, %v1891_v47   ;;  %v2353_v48 = vld [vmem:[#allocation2 + $0x21] sm:$0xff] }
 0x234   :  { %v8909_v51 = vpop.permute.xlu0 %1690 }
 0x235   :  { %12195 = vst [vmem:[#allocation182_spill] sm:$0xff] %v8909_v51  ;;  %2210 = vperm.xlu0 %7842, %v1894_v42   ;;  %v8927_v42 = vld [vmem:[#allocation2 + $0x49] sm:$0xff] }
 0x236   :  { %v8907_v54 = vpop.permute.xlu1 %1685  ;;  %v8939_v51 = vld [vmem:[#allocation2 + $0x69] sm:$0xff] }
 0x237   :  { %12194 = vst [vmem:[#allocation181_spill] sm:$0xff] %v8907_v54  ;;  %2205 = vperm.xlu1 %7843, %v1893_v43  }
 0x238   :  { %v8913_v37 = vpop.permute.xlu0 %1900 }
 0x239   :  { %12197 = vst [vmem:[#allocation184_spill] sm:$0xff] %v8913_v37  ;;  %2420 = vperm.xlu0 %7842, %v2352_v45  }
 0x23a   :  { %v8911_v50 = vpop.permute.xlu1 %1695 }
 0x23b   :  { %12196 = vst [vmem:[#allocation183_spill] sm:$0xff] %v8911_v50  ;;  %2215 = vperm.xlu1 %7843, %v1895_v40   ;;  %v8929_v40 = vld [vmem:[#allocation2 + $0x51] sm:$0xff] }
 0x23c   :  { %v8921_v43 = vpop.permute.xlu0 %1910 }
 0x23d   :  { %12199 = vst [vmem:[#allocation186_spill] sm:$0xff] %v8921_v43  ;;  %2430 = vperm.xlu0 %7842, %v8917_v55  }
 0x23e   :  { %v8915_v47 = vpop.permute.xlu1 %1905 }
 0x23f   :  { %12198 = vst [vmem:[#allocation185_spill] sm:$0xff] %v8915_v47  ;;  %2425 = vperm.xlu1 %7843, %v2353_v48   ;;  %v8937_v48 = vld [vmem:[#allocation2 + $0x61] sm:$0xff]  ;;  %v9131_v47 = vld [vmem:[#allocation2 + $0xaa] sm:$0xff] }
 0x240   :  { %v8931_v50 = vpop.permute.xlu0 %1920 }
 0x241   :  { %12201 = vst [vmem:[#allocation188_spill] sm:$0xff] %v8931_v50  ;;  %2440 = vperm.xlu0 %7842, %v8927_v42  }
 0x242   :  { %v8923_v54 = vpop.permute.xlu1 %1915 }
 0x243   :  { %12200 = vst [vmem:[#allocation187_spill] sm:$0xff] %v8923_v54  ;;  %2435 = vperm.xlu1 %7843, %v8919_v46   ;;  %v9121_v54 = vld [vmem:[#allocation2 + $0x92] sm:$0xff] }
 0x244   :  { %v8941_v39 = vpop.permute.xlu0 %1930 }
 0x245   :  { %12203 = vst [vmem:[#allocation190_spill] sm:$0xff] %v8941_v39  ;;  %2450 = vperm.xlu0 %7842, %v8937_v48  }
 0x246   :  { %v8933_v45 = vpop.permute.xlu1 %1925 }
 0x247   :  { %12202 = vst [vmem:[#allocation189_spill] sm:$0xff] %v8933_v45  ;;  %2445 = vperm.xlu1 %7843, %v8929_v40  }
 0x248   :  { %v8951_v61 = vpop.permute.xlu0 %1940 }
 0x249   :  { %12205 = vst [vmem:[#allocation192_spill] sm:$0xff] %v8951_v61  ;;  %2460 = vperm.xlu0 %7842, %v8947_v53   ;;  %v2369_v61 = vld [vmem:[#allocation2 + $0xe1] sm:$0xff] }
 0x24a   :  { %v8943_v38 = vpop.permute.xlu1 %1935 }
 0x24b   :  { %12204 = vst [vmem:[#allocation191_spill] sm:$0xff] %v8943_v38  ;;  %2455 = vperm.xlu1 %7843, %v8939_v51  }
 0x24c   :  { %v8961_v31 = vpop.permute.xlu0 %1950 }
 0x24d   :  { %12207 = vst [vmem:[#allocation194_spill] sm:$0xff] %v8961_v31  ;;  %2470 = vperm.xlu0 %7842, %v8957_v0  }
 0x24e   :  { %v8953_v35 = vpop.permute.xlu1 %1945 }
 0x24f   :  { %12206 = vst [vmem:[#allocation193_spill] sm:$0xff] %v8953_v35  ;;  %2465 = vperm.xlu1 %7843, %v8949_v56   ;;  %v2368_v35 = vld [vmem:[#allocation2 + $0xd9] sm:$0xff] }
 0x250   :  { %v8971_v33 = vpop.permute.xlu0 %1960 }
 0x251   :  { %12209 = vst [vmem:[#allocation196_spill] sm:$0xff] %v8971_v33  ;;  %2480 = vperm.xlu0 %7842, %v8967_v17   ;;  %v2371_v33 = vld [vmem:[#allocation2 + $0xf9] sm:$0xff] }
 0x252   :  { %v8963_v12 = vpop.permute.xlu1 %1955 }
 0x253   :  { %12208 = vst [vmem:[#allocation195_spill] sm:$0xff] %v8963_v12  ;;  %2475 = vperm.xlu1 %7843, %v8959_v34  }
 0x254   :  { %v8977_v31 = vpop.permute.xlu0 %1970 }
 0x255   :  { %12211 = vst [vmem:[#allocation198_spill] sm:$0xff] %v8977_v31  ;;  %2490 = vperm.xlu0 %7842, %v2366_v27   ;;  %v2372_v31 = vld [vmem:[#allocation2 + $0x109] sm:$0xff] }
 0x256   :  { %v8973_v30 = vpop.permute.xlu1 %1965 }
 0x257   :  { %12210 = vst [vmem:[#allocation197_spill] sm:$0xff] %v8973_v30  ;;  %2485 = vperm.xlu1 %7843, %v8969_v28   ;;  %v2370_v30 = vld [vmem:[#allocation2 + $0xf1] sm:$0xff] }
 0x258   :  { %v8981_v38 = vpop.permute.xlu0 %1980 }
 0x259   :  { %12213 = vst [vmem:[#allocation200_spill] sm:$0xff] %v8981_v38  ;;  %2500 = vperm.xlu0 %7842, %v2368_v35   ;;  %v2374_v38 = vld [vmem:[#allocation2 + $0x121] sm:$0xff] }
 0x25a   :  { %v8979_v12 = vpop.permute.xlu1 %1975 }
 0x25b   :  { %12212 = vst [vmem:[#allocation199_spill] sm:$0xff] %v8979_v12  ;;  %2495 = vperm.xlu1 %7843, %v2367_v26   ;;  %v2373_v12 = vld [vmem:[#allocation2 + $0x111] sm:$0xff] }
 0x25c   :  { %v8985_v45 = vpop.permute.xlu0 %1990 }
 0x25d   :  { %12215 = vst [vmem:[#allocation202_spill] sm:$0xff] %v8985_v45  ;;  %2510 = vperm.xlu0 %7842, %v2370_v30   ;;  %v2376_v45 = vld [vmem:[#allocation2 + $0x139] sm:$0xff] }
 0x25e   :  { %v8983_v39 = vpop.permute.xlu1 %1985 }
 0x25f   :  { %12214 = vst [vmem:[#allocation201_spill] sm:$0xff] %v8983_v39  ;;  %2505 = vperm.xlu1 %7843, %v2369_v61   ;;  %v2375_v39 = vld [vmem:[#allocation2 + $0x129] sm:$0xff] }
 0x260   :  { %v8989_v27 = vpop.permute.xlu0 %2000 }
 0x261   :  { %12217 = vst [vmem:[#allocation204_spill] sm:$0xff] %v8989_v27  ;;  %2520 = vperm.xlu0 %7842, %v2372_v31   ;;  %v2378_v27 = vld [vmem:[#allocation2 + $0x151] sm:$0xff] }
 0x262   :  { %v8987_v50 = vpop.permute.xlu1 %1995 }
 0x263   :  { %12216 = vst [vmem:[#allocation203_spill] sm:$0xff] %v8987_v50  ;;  %2515 = vperm.xlu1 %7843, %v2371_v33   ;;  %v2377_v50 = vld [vmem:[#allocation2 + $0x141] sm:$0xff] }
 0x264   :  { %v8993_v35 = vpop.permute.xlu0 %2010 }
 0x265   :  { %12219 = vst [vmem:[#allocation206_spill] sm:$0xff] %v8993_v35  ;;  %2530 = vperm.xlu0 %7842, %v2374_v38   ;;  %v2380_v35 = vld [vmem:[#allocation2 + $0x169] sm:$0xff] }
 0x266   :  { %v8991_v26 = vpop.permute.xlu1 %2005 }
 0x267   :  { %12218 = vst [vmem:[#allocation205_spill] sm:$0xff] %v8991_v26  ;;  %2525 = vperm.xlu1 %7843, %v2373_v12   ;;  %v2379_v26 = vld [vmem:[#allocation2 + $0x159] sm:$0xff] }
 0x268   :  { %v8997_v30 = vpop.permute.xlu0 %2020 }
 0x269   :  { %12221 = vst [vmem:[#allocation208_spill] sm:$0xff] %v8997_v30  ;;  %2540 = vperm.xlu0 %7842, %v2376_v45   ;;  %v2382_v30 = vld [vmem:[#allocation2 + $0x181] sm:$0xff] }
 0x26a   :  { %v8995_v61 = vpop.permute.xlu1 %2015 }
 0x26b   :  { %12220 = vst [vmem:[#allocation207_spill] sm:$0xff] %v8995_v61  ;;  %2535 = vperm.xlu1 %7843, %v2375_v39   ;;  %v2381_v61 = vld [vmem:[#allocation2 + $0x171] sm:$0xff] }
 0x26c   :  { %v9001_v31 = vpop.permute.xlu0 %2030 }
 0x26d   :  { %12223 = vst [vmem:[#allocation210_spill] sm:$0xff] %v9001_v31  ;;  %2550 = vperm.xlu0 %7842, %v2378_v27   ;;  %v2384_v31 = vld [vmem:[#allocation2 + $0x1c9] sm:$0xff] }
 0x26e   :  { %v8999_v33 = vpop.permute.xlu1 %2025 }
 0x26f   :  { %12222 = vst [vmem:[#allocation209_spill] sm:$0xff] %v8999_v33  ;;  %2545 = vperm.xlu1 %7843, %v2377_v50   ;;  %v2383_v33 = vld [vmem:[#allocation2 + $0x189] sm:$0xff] }
 0x270   :  { %v9005_v38 = vpop.permute.xlu0 %2040 }
 0x271   :  { %12225 = vst [vmem:[#allocation212_spill] sm:$0xff] %v9005_v38  ;;  %2560 = vperm.xlu0 %7842, %v2380_v35   ;;  %v2386_v38 = vld [vmem:[#allocation2 + $0x1e1] sm:$0xff] }
 0x272   :  { %v9003_v12 = vpop.permute.xlu1 %2035 }
 0x273   :  { %12224 = vst [vmem:[#allocation211_spill] sm:$0xff] %v9003_v12  ;;  %2555 = vperm.xlu1 %7843, %v2379_v26   ;;  %v2385_v12 = vld [vmem:[#allocation2 + $0x1d1] sm:$0xff] }
 0x274   :  { %v9009_v45 = vpop.permute.xlu0 %2050 }
 0x275   :  { %12227 = vst [vmem:[#allocation214_spill] sm:$0xff] %v9009_v45  ;;  %2570 = vperm.xlu0 %7842, %v2382_v30   ;;  %v2388_v45 = vld [vmem:[#allocation2 + $0x1f9] sm:$0xff] }
 0x276   :  { %v9007_v39 = vpop.permute.xlu1 %2045 }
 0x277   :  { %12226 = vst [vmem:[#allocation213_spill] sm:$0xff] %v9007_v39  ;;  %2565 = vperm.xlu1 %7843, %v2381_v61   ;;  %v2387_v39 = vld [vmem:[#allocation2 + $0x1e9] sm:$0xff] }
 0x278   :  { %v9013_v27 = vpop.permute.xlu0 %2060 }
 0x279   :  { %12229 = vst [vmem:[#allocation216_spill] sm:$0xff] %v9013_v27  ;;  %2580 = vperm.xlu0 %7842, %v2384_v31   ;;  %v2390_v27 = vld [vmem:[#allocation2 + $0x211] sm:$0xff] }
 0x27a   :  { %v9011_v50 = vpop.permute.xlu1 %2055 }
 0x27b   :  { %12228 = vst [vmem:[#allocation215_spill] sm:$0xff] %v9011_v50  ;;  %2575 = vperm.xlu1 %7843, %v2383_v33   ;;  %v2389_v50 = vld [vmem:[#allocation2 + $0x201] sm:$0xff] }
 0x27c   :  { %v9017_v35 = vpop.permute.xlu0 %2070 }
 0x27d   :  { %12231 = vst [vmem:[#allocation218_spill] sm:$0xff] %v9017_v35  ;;  %2590 = vperm.xlu0 %7842, %v2386_v38   ;;  %v2392_v35 = vld [vmem:[#allocation2 + $0x229] sm:$0xff] }
 0x27e   :  { %v9015_v26 = vpop.permute.xlu1 %2065 }
 0x27f   :  { %12230 = vst [vmem:[#allocation217_spill] sm:$0xff] %v9015_v26  ;;  %2585 = vperm.xlu1 %7843, %v2385_v12   ;;  %v2391_v26 = vld [vmem:[#allocation2 + $0x219] sm:$0xff] }
 0x280   :  { %v9021_v30 = vpop.permute.xlu0 %2080 }
 0x281   :  { %12233 = vst [vmem:[#allocation220_spill] sm:$0xff] %v9021_v30  ;;  %2600 = vperm.xlu0 %7842, %v2388_v45   ;;  %v2394_v30 = vld [vmem:[#allocation2 + $0x241] sm:$0xff] }
 0x282   :  { %v9019_v61 = vpop.permute.xlu1 %2075 }
 0x283   :  { %12232 = vst [vmem:[#allocation219_spill] sm:$0xff] %v9019_v61  ;;  %2595 = vperm.xlu1 %7843, %v2387_v39   ;;  %v2393_v61 = vld [vmem:[#allocation2 + $0x231] sm:$0xff] }
 0x284   :  { %v9025_v31 = vpop.permute.xlu0 %2090 }
 0x285   :  { %12235 = vst [vmem:[#allocation222_spill] sm:$0xff] %v9025_v31  ;;  %2610 = vperm.xlu0 %7842, %v2390_v27   ;;  %v2396_v31 = vld [vmem:[#allocation2 + $0x259] sm:$0xff] }
 0x286   :  { %v9023_v33 = vpop.permute.xlu1 %2085 }
 0x287   :  { %12234 = vst [vmem:[#allocation221_spill] sm:$0xff] %v9023_v33  ;;  %2605 = vperm.xlu1 %7843, %v2389_v50   ;;  %v2395_v33 = vld [vmem:[#allocation2 + $0x249] sm:$0xff] }
 0x288   :  { %v9029_v38 = vpop.permute.xlu0 %2100 }
 0x289   :  { %12237 = vst [vmem:[#allocation224_spill] sm:$0xff] %v9029_v38  ;;  %2620 = vperm.xlu0 %7842, %v2392_v35   ;;  %v2398_v38 = vld [vmem:[#allocation2 + $0x271] sm:$0xff] }
 0x28a   :  { %v9027_v12 = vpop.permute.xlu1 %2095 }
 0x28b   :  { %12236 = vst [vmem:[#allocation223_spill] sm:$0xff] %v9027_v12  ;;  %2615 = vperm.xlu1 %7843, %v2391_v26   ;;  %v2397_v12 = vld [vmem:[#allocation2 + $0x261] sm:$0xff] }
 0x28c   :  { %v9033_v45 = vpop.permute.xlu0 %2110 }
 0x28d   :  { %12239 = vst [vmem:[#allocation226_spill] sm:$0xff] %v9033_v45  ;;  %2630 = vperm.xlu0 %7842, %v2394_v30   ;;  %v2400_v45 = vld [vmem:[#allocation2 + $0x289] sm:$0xff] }
 0x28e   :  { %v9031_v39 = vpop.permute.xlu1 %2105 }
 0x28f   :  { %12238 = vst [vmem:[#allocation225_spill] sm:$0xff] %v9031_v39  ;;  %2625 = vperm.xlu1 %7843, %v2393_v61   ;;  %v2399_v39 = vld [vmem:[#allocation2 + $0x279] sm:$0xff] }
 0x290   :  { %v9037_v27 = vpop.permute.xlu0 %2120 }
 0x291   :  { %12241 = vst [vmem:[#allocation228_spill] sm:$0xff] %v9037_v27  ;;  %2640 = vperm.xlu0 %7842, %v2396_v31   ;;  %v2402_v27 = vld [vmem:[#allocation2 + $0x2a1] sm:$0xff] }
 0x292   :  { %v9035_v50 = vpop.permute.xlu1 %2115 }
 0x293   :  { %12240 = vst [vmem:[#allocation227_spill] sm:$0xff] %v9035_v50  ;;  %2635 = vperm.xlu1 %7843, %v2395_v33   ;;  %v2401_v50 = vld [vmem:[#allocation2 + $0x291] sm:$0xff] }
 0x294   :  { %v9041_v35 = vpop.permute.xlu0 %2130 }
 0x295   :  { %12243 = vst [vmem:[#allocation230_spill] sm:$0xff] %v9041_v35  ;;  %2650 = vperm.xlu0 %7842, %v2398_v38   ;;  %v2404_v35 = vld [vmem:[#allocation2 + $0x2b9] sm:$0xff] }
 0x296   :  { %v9039_v26 = vpop.permute.xlu1 %2125 }
 0x297   :  { %12242 = vst [vmem:[#allocation229_spill] sm:$0xff] %v9039_v26  ;;  %2645 = vperm.xlu1 %7843, %v2397_v12   ;;  %v2403_v26 = vld [vmem:[#allocation2 + $0x2a9] sm:$0xff] }
 0x298   :  { %v9045_v30 = vpop.permute.xlu0 %2140 }
 0x299   :  { %12245 = vst [vmem:[#allocation232_spill] sm:$0xff] %v9045_v30  ;;  %2660 = vperm.xlu0 %7842, %v2400_v45   ;;  %v2406_v30 = vld [vmem:[#allocation2 + $0x2d1] sm:$0xff] }
 0x29a   :  { %v9043_v61 = vpop.permute.xlu1 %2135 }
 0x29b   :  { %12244 = vst [vmem:[#allocation231_spill] sm:$0xff] %v9043_v61  ;;  %2655 = vperm.xlu1 %7843, %v2399_v39   ;;  %v2405_v61 = vld [vmem:[#allocation2 + $0x2c1] sm:$0xff] }
 0x29c   :  { %v9049_v31 = vpop.permute.xlu0 %2150 }
 0x29d   :  { %12247 = vst [vmem:[#allocation234_spill] sm:$0xff] %v9049_v31  ;;  %2670 = vperm.xlu0 %7842, %v2402_v27   ;;  %v2408_v31 = vld [vmem:[#allocation2 + $0x2e9] sm:$0xff] }
 0x29e   :  { %v9047_v33 = vpop.permute.xlu1 %2145 }
 0x29f   :  { %12246 = vst [vmem:[#allocation233_spill] sm:$0xff] %v9047_v33  ;;  %2665 = vperm.xlu1 %7843, %v2401_v50   ;;  %v2407_v33 = vld [vmem:[#allocation2 + $0x2d9] sm:$0xff] }
 0x2a0   :  { %v9053_v38 = vpop.permute.xlu0 %2160 }
 0x2a1   :  { %12249 = vst [vmem:[#allocation236_spill] sm:$0xff] %v9053_v38  ;;  %2680 = vperm.xlu0 %7842, %v2404_v35   ;;  %v2410_v38 = vld [vmem:[#allocation2 + $0x301] sm:$0xff] }
 0x2a2   :  { %v9051_v12 = vpop.permute.xlu1 %2155 }
 0x2a3   :  { %12248 = vst [vmem:[#allocation235_spill] sm:$0xff] %v9051_v12  ;;  %2675 = vperm.xlu1 %7843, %v2403_v26   ;;  %v2409_v12 = vld [vmem:[#allocation2 + $0x2f1] sm:$0xff] }
 0x2a4   :  { %v9057_v45 = vpop.permute.xlu0 %2170 }
 0x2a5   :  { %12251 = vst [vmem:[#allocation238_spill] sm:$0xff] %v9057_v45  ;;  %2690 = vperm.xlu0 %7842, %v2406_v30   ;;  %v2412_v45 = vld [vmem:[#allocation2 + $0x319] sm:$0xff] }
 0x2a6   :  { %v9055_v39 = vpop.permute.xlu1 %2165 }
 0x2a7   :  { %12250 = vst [vmem:[#allocation237_spill] sm:$0xff] %v9055_v39  ;;  %2685 = vperm.xlu1 %7843, %v2405_v61   ;;  %v2411_v39 = vld [vmem:[#allocation2 + $0x309] sm:$0xff] }
 0x2a8   :  { %v9061_v27 = vpop.permute.xlu0 %2180 }
 0x2a9   :  { %12253 = vst [vmem:[#allocation240_spill] sm:$0xff] %v9061_v27  ;;  %2700 = vperm.xlu0 %7842, %v2408_v31   ;;  %v2414_v27 = vld [vmem:[#allocation2 + $0x331] sm:$0xff] }
 0x2aa   :  { %v9059_v50 = vpop.permute.xlu1 %2175 }
 0x2ab   :  { %12252 = vst [vmem:[#allocation239_spill] sm:$0xff] %v9059_v50  ;;  %2695 = vperm.xlu1 %7843, %v2407_v33   ;;  %v2413_v50 = vld [vmem:[#allocation2 + $0x321] sm:$0xff] }
 0x2ac   :  { %v9065_v35 = vpop.permute.xlu0 %2190 }
 0x2ad   :  { %12255 = vst [vmem:[#allocation242_spill] sm:$0xff] %v9065_v35  ;;  %2710 = vperm.xlu0 %7842, %v2410_v38   ;;  %v2872_v35 = vld [vmem:[#allocation2 + $0x1a] sm:$0xff] }
 0x2ae   :  { %v9063_v26 = vpop.permute.xlu1 %2185 }
 0x2af   :  { %12254 = vst [vmem:[#allocation241_spill] sm:$0xff] %v9063_v26  ;;  %2705 = vperm.xlu1 %7843, %v2409_v12   ;;  %v2415_v26 = vld [vmem:[#allocation2 + $0x339] sm:$0xff] }
 0x2b0   :  { %v9069_v30 = vpop.permute.xlu0 %2200 }
 0x2b1   :  { %12257 = vst [vmem:[#allocation244_spill] sm:$0xff] %v9069_v30  ;;  %2720 = vperm.xlu0 %7842, %v2412_v45   ;;  %v9081_v30 = vld [vmem:[#allocation2 + $0x32] sm:$0xff]  ;;  %v9083_v45 = vld [vmem:[#allocation2 + $0x3a] sm:$0xff] }
 0x2b2   :  { %v9067_v61 = vpop.permute.xlu1 %2195 }
 0x2b3   :  { %12256 = vst [vmem:[#allocation243_spill] sm:$0xff] %v9067_v61  ;;  %2715 = vperm.xlu1 %7843, %v2411_v39   ;;  %v2873_v61 = vld [vmem:[#allocation2 + $0x22] sm:$0xff] }
 0x2b4   :  { %v9073_v31 = vpop.permute.xlu0 %2210 }
 0x2b5   :  { %12259 = vst [vmem:[#allocation246_spill] sm:$0xff] %v9073_v31  ;;  %2730 = vperm.xlu0 %7842, %v2414_v27   ;;  %v9091_v27 = vld [vmem:[#allocation2 + $0x4a] sm:$0xff] }
 0x2b6   :  { %v9071_v33 = vpop.permute.xlu1 %2205  ;;  %v9103_v31 = vld [vmem:[#allocation2 + $0x6a] sm:$0xff] }
 0x2b7   :  { %12258 = vst [vmem:[#allocation245_spill] sm:$0xff] %v9071_v33  ;;  %2725 = vperm.xlu1 %7843, %v2413_v50  }
 0x2b8   :  { %v9077_v38 = vpop.permute.xlu0 %2420 }
 0x2b9   :  { %12261 = vst [vmem:[#allocation248_spill] sm:$0xff] %v9077_v38  ;;  %2940 = vperm.xlu0 %7842, %v2872_v35  }
 0x2ba   :  { %v9075_v12 = vpop.permute.xlu1 %2215 }
 0x2bb   :  { %12260 = vst [vmem:[#allocation247_spill] sm:$0xff] %v9075_v12  ;;  %2735 = vperm.xlu1 %7843, %v2415_v26   ;;  %v9093_v26 = vld [vmem:[#allocation2 + $0x52] sm:$0xff] }
 0x2bc   :  { %v9085_v50 = vpop.permute.xlu0 %2430 }
 0x2bd   :  { %12263 = vst [vmem:[#allocation250_spill] sm:$0xff] %v9085_v50  ;;  %2950 = vperm.xlu0 %7842, %v9081_v30  }
 0x2be   :  { %v9079_v39 = vpop.permute.xlu1 %2425 }
 0x2bf   :  { %12262 = vst [vmem:[#allocation249_spill] sm:$0xff] %v9079_v39  ;;  %2945 = vperm.xlu1 %7843, %v2873_v61   ;;  %v9101_v61 = vld [vmem:[#allocation2 + $0x62] sm:$0xff]  ;;  %v9111_v39 = vld [vmem:[#allocation2 + $0x7a] sm:$0xff] }
 0x2c0   :  { %v9095_v12 = vpop.permute.xlu0 %2440 }
 0x2c1   :  { %12265 = vst [vmem:[#allocation252_spill] sm:$0xff] %v9095_v12  ;;  %2960 = vperm.xlu0 %7842, %v9091_v27   ;;  %v9113_v12 = vld [vmem:[#allocation2 + $0x82] sm:$0xff] }
 0x2c2   :  { %v9087_v33 = vpop.permute.xlu1 %2435 }
 0x2c3   :  { %12264 = vst [vmem:[#allocation251_spill] sm:$0xff] %v9087_v33  ;;  %2955 = vperm.xlu1 %7843, %v9083_v45  }
 0x2c4   :  { %v9105_v33 = vpop.permute.xlu0 %2450 }
 0x2c5   :  { %12267 = vst [vmem:[#allocation254_spill] sm:$0xff] %v9105_v33  ;;  %2970 = vperm.xlu0 %7842, %v9101_v61   ;;  %v9123_v33 = vld [vmem:[#allocation2 + $0x9a] sm:$0xff] }
 0x2c6   :  { %v9097_v35 = vpop.permute.xlu1 %2445 }
 0x2c7   :  { %12266 = vst [vmem:[#allocation253_spill] sm:$0xff] %v9097_v35  ;;  %2965 = vperm.xlu1 %7843, %v9093_v26  }
 0x2c8   :  { %v9115_v35 = vpop.permute.xlu0 %2460 }
 0x2c9   :  { %12269 = vst [vmem:[#allocation256_spill] sm:$0xff] %v9115_v35  ;;  %2980 = vperm.xlu0 %7842, %v9111_v39   ;;  %v9133_v35 = vld [vmem:[#allocation2 + $0xb2] sm:$0xff] }
 0x2ca   :  { %v9107_v50 = vpop.permute.xlu1 %2455 }
 0x2cb   :  { %12268 = vst [vmem:[#allocation255_spill] sm:$0xff] %v9107_v50  ;;  %2975 = vperm.xlu1 %7843, %v9103_v31  }
 0x2cc   :  { %v9125_v50 = vpop.permute.xlu0 %2470 }
 0x2cd   :  { %12271 = vst [vmem:[#allocation258_spill] sm:$0xff] %v9125_v50  ;;  %2990 = vperm.xlu0 %7842, %v9121_v54   ;;  %v9143_v50 = vld [vmem:[#allocation2 + $0xca] sm:$0xff] }
 0x2ce   :  { %v9117_v38 = vpop.permute.xlu1 %2465 }
 0x2cf   :  { %12270 = vst [vmem:[#allocation257_spill] sm:$0xff] %v9117_v38  ;;  %2985 = vperm.xlu1 %7843, %v9113_v12  }
 0x2d0   :  { %v9135_v38 = vpop.permute.xlu0 %2480 }
 0x2d1   :  { %12273 = vst [vmem:[#allocation260_spill] sm:$0xff] %v9135_v38  ;;  %3000 = vperm.xlu0 %7842, %v9131_v47   ;;  %v9153_v38 = vld [vmem:[#allocation2 + $0xe2] sm:$0xff] }
 0x2d2   :  { %v9127_v43 = vpop.permute.xlu1 %2475 }
 0x2d3   :  { %12272 = vst [vmem:[#allocation259_spill] sm:$0xff] %v9127_v43  ;;  %2995 = vperm.xlu1 %7843, %v9123_v33  }
 0x2d4   :  { %v9145_v43 = vpop.permute.xlu0 %2490 }
 0x2d5   :  { %12275 = vst [vmem:[#allocation262_spill] sm:$0xff] %v9145_v43  ;;  %3010 = vperm.xlu0 %7842, %v9141_v5   ;;  %v9163_v43 = vld [vmem:[#allocation2 + $0xfa] sm:$0xff] }
 0x2d6   :  { %v9137_v37 = vpop.permute.xlu1 %2485 }
 0x2d7   :  { %12274 = vst [vmem:[#allocation261_spill] sm:$0xff] %v9137_v37  ;;  %3005 = vperm.xlu1 %7843, %v9133_v35  }
 0x2d8   :  { %v9155_v37 = vpop.permute.xlu0 %2500 }
 0x2d9   :  { %12277 = vst [vmem:[#allocation264_spill] sm:$0xff] %v9155_v37  ;;  %3020 = vperm.xlu0 %7842, %v9151_v8   ;;  %v9173_v37 = vld [vmem:[#allocation2 + $0x112] sm:$0xff] }
 0x2da   :  { %v9147_v16 = vpop.permute.xlu1 %2495 }
 0x2db   :  { %12276 = vst [vmem:[#allocation263_spill] sm:$0xff] %v9147_v16  ;;  %3015 = vperm.xlu1 %7843, %v9143_v50  }
 0x2dc   :  { %v9165_v16 = vpop.permute.xlu0 %2510 }
 0x2dd   :  { %12279 = vst [vmem:[#allocation266_spill] sm:$0xff] %v9165_v16  ;;  %3030 = vperm.xlu0 %7842, %v9161_v58   ;;  %v9183_v16 = vld [vmem:[#allocation2 + $0x12a] sm:$0xff] }
 0x2de   :  { %v9157_v62 = vpop.permute.xlu1 %2505  ;;  %12284 = vst [vmem:[#allocation271_spill] sm:$0xff] %v9183_v16 }
 0x2df   :  { %12278 = vst [vmem:[#allocation265_spill] sm:$0xff] %v9157_v62  ;;  %3025 = vperm.xlu1 %7843, %v9153_v38  }
 0x2e0   :  { %v9175_v62 = vpop.permute.xlu0 %2520 }
 0x2e1   :  { %12281 = vst [vmem:[#allocation268_spill] sm:$0xff] %v9175_v62  ;;  %3040 = vperm.xlu0 %7842, %v9171_v63   ;;  %v9193_v62 = vld [vmem:[#allocation2 + $0x142] sm:$0xff] }
 0x2e2   :  { %v9167_v32 = vpop.permute.xlu1 %2515  ;;  %12288 = vst [vmem:[#allocation275_spill] sm:$0xff] %v9193_v62 }
 0x2e3   :  { %12280 = vst [vmem:[#allocation267_spill] sm:$0xff] %v9167_v32  ;;  %3035 = vperm.xlu1 %7843, %v9163_v43  }
 0x2e4   :  { %v9185_v32 = vpop.permute.xlu0 %2530 }
 0x2e5   :  { %12285 = vst [vmem:[#allocation272_spill] sm:$0xff] %v9185_v32  ;;  %3050 = vperm.xlu0 %7842, %v9181_v29   ;;  %v3393_v32 = vld [vmem:[#allocation2 + $0x30] sm:$0xff] }
 0x2e6   :  { %v9177_v13 = vpop.permute.xlu1 %2525 }
 0x2e7   :  { %12282 = vst [vmem:[#allocation269_spill] sm:$0xff] %v9177_v13  ;;  %3045 = vperm.xlu1 %7843, %v9173_v37  }
 0x2e8   :  { %v9195_v13 = vpop.permute.xlu0 %2540 }
 0x2e9   :  { %12289 = vst [vmem:[#allocation276_spill] sm:$0xff] %v9195_v13  ;;  %3060 = vperm.xlu0 %7842, %v9191_v24  }
 0x2ea   :  { %v9187_v59 = vpop.permute.xlu1 %2535 }
 0x2eb   :  { %12286 = vst [vmem:[#allocation273_spill] sm:$0xff] %v9187_v59  ;;  %3055 = vperm.xlu1 %7843, %v9183_v16   ;;  %v3394_v16 = vld [vmem:[#allocation2 + $0x38] sm:$0xff] }
 0x2ec   :  { %v9203_v59 = vpop.permute.xlu0 %2550 }
 0x2ed   :  { %12292 = vst [vmem:[#allocation279_spill] sm:$0xff] %v9203_v59  ;;  %3070 = vperm.xlu0 %7842, %v9201_v3   ;;  %v3399_v59 = vld [vmem:[#allocation2 + $0x78] sm:$0xff] }
 0x2ee   :  { %v9197_v21 = vpop.permute.xlu1 %2545 }
 0x2ef   :  { %12290 = vst [vmem:[#allocation277_spill] sm:$0xff] %v9197_v21  ;;  %3065 = vperm.xlu1 %7843, %v9193_v62   ;;  %v3396_v21 = vld [vmem:[#allocation2 + $0x50] sm:$0xff]  ;;  %v3397_v62 = vld [vmem:[#allocation2 + $0x60] sm:$0xff] }
 0x2f0   :  { %v9208_v57 = vpop.permute.xlu0 %2560 }
 0x2f1   :  { %12294 = vst [vmem:[#allocation281_spill] sm:$0xff] %v9208_v57  ;;  %3466 = vperm.xlu0 %7842, %v3394_v16   ;;  %v3400_v57 = vld [vmem:[#allocation2 + $0x80] sm:$0xff] }
 0x2f2   :  { %v9205_v29 = vpop.permute.xlu1 %2555 }
 0x2f3   :  { %12293 = vst [vmem:[#allocation280_spill] sm:$0xff] %v9205_v29  ;;  %3461 = vperm.xlu1 %7843, %v3393_v32   ;;  %v3398_v29 = vld [vmem:[#allocation2 + $0x68] sm:$0xff] }
 0x2f4   :  { %v9212_v24 = vpop.permute.xlu0 %2570 }
 0x2f5   :  { %12296 = vst [vmem:[#allocation283_spill] sm:$0xff] %v9212_v24  ;;  %3476 = vperm.xlu0 %7842, %v3396_v21   ;;  %v3402_v24 = vld [vmem:[#allocation2 + $0x98] sm:$0xff] }
 0x2f6   :  { %v9210_v13 = vpop.permute.xlu1 %2565 }
 0x2f7   :  { %12295 = vst [vmem:[#allocation282_spill] sm:$0xff] %v9210_v13  ;;  %3471 = vperm.xlu1 %7843, %v3395_v9   ;;  %v3401_v13 = vld [vmem:[#allocation2 + $0x90] sm:$0xff] }
 0x2f8   :  { %v9216_v3 = vpop.permute.xlu0 %2580 }
 0x2f9   :  { %12298 = vst [vmem:[#allocation285_spill] sm:$0xff] %v9216_v3  ;;  %3486 = vperm.xlu0 %7842, %v3398_v29   ;;  %v3404_v3 = vld [vmem:[#allocation2 + $0xb0] sm:$0xff] }
 0x2fa   :  { %v9214_v52 = vpop.permute.xlu1 %2575 }
 0x2fb   :  { %12297 = vst [vmem:[#allocation284_spill] sm:$0xff] %v9214_v52  ;;  %3481 = vperm.xlu1 %7843, %v3397_v62   ;;  %v3403_v52 = vld [vmem:[#allocation2 + $0xa8] sm:$0xff] }
 0x2fc   :  { %v9220_v16 = vpop.permute.xlu0 %2590 }
 0x2fd   :  { %12300 = vst [vmem:[#allocation287_spill] sm:$0xff] %v9220_v16  ;;  %3496 = vperm.xlu0 %7842, %v3400_v57   ;;  %v9475_v16 = vld [vmem:[%s11963_s1 + $0x1] ss:$0 sm:$0xff] }
 0x2fe   :  { %v9218_v32 = vpop.permute.xlu1 %2585  ;;  %12350 = vst [vmem:[#allocation336_spill] sm:$0xff] %v9475_v16 }
 0x2ff   :  { %12299 = vst [vmem:[#allocation286_spill] sm:$0xff] %v9218_v32  ;;  %3491 = vperm.xlu1 %7843, %v3399_v59  }
 0x300   :  { %v9224_v21 = vpop.permute.xlu0 %2600 }
 0x301   :  { %12302 = vst [vmem:[#allocation289_spill] sm:$0xff] %v9224_v21  ;;  %3506 = vperm.xlu0 %7842, %v3402_v24   ;;  %v3935_v21 = vld [vmem:[#allocation2 + $0x139] sm:$0xff] }
 0x302   :  { %v9222_v9 = vpop.permute.xlu1 %2595 }
 0x303   :  { %12301 = vst [vmem:[#allocation288_spill] sm:$0xff] %v9222_v9  ;;  %3501 = vperm.xlu1 %7843, %v3401_v13   ;;  %v3936_v9 = vld [vmem:[#allocation2 + $0x141] sm:$0xff] }
 0x304   :  { %v9228_v32 = vpop.permute.xlu0 %2610 }
 0x305   :  { %12304 = vst [vmem:[#allocation291_spill] sm:$0xff] %v9228_v32  ;;  %3516 = vperm.xlu0 %7842, %v3404_v3   ;;  %v3933_v32 = vld [vmem:[#allocation2 + $0x121] sm:$0xff] }
 0x306   :  { %v9226_v62 = vpop.permute.xlu1 %2605 }
 0x307   :  { %12303 = vst [vmem:[#allocation290_spill] sm:$0xff] %v9226_v62  ;;  %3511 = vperm.xlu1 %7843, %v3403_v52   ;;  %v3934_v62 = vld [vmem:[#allocation2 + $0x129] sm:$0xff] }
 0x308   :  { %v9233_v29 = vpop.permute.xlu0 %2620 }
 0x309   :  { %12306 = vst [vmem:[#allocation293_spill] sm:$0xff] %v9233_v29  ;;  %3986 = vperm.xlu0 %7842, %v8919_v46   ;;  %v3419_v29 = vld [vmem:[#allocation2 + $0x168] sm:$0xff] }
 0x30a   :  { %v9230_v59 = vpop.permute.xlu1 %2615 }
 0x30b   :  { %12305 = vst [vmem:[#allocation292_spill] sm:$0xff] %v9230_v59  ;;  %3981 = vperm.xlu1 %7843, %v8917_v55   ;;  %v3420_v59 = vld [vmem:[#allocation2 + $0x170] sm:$0xff] }
 0x30c   :  { %v9239_v13 = vpop.permute.xlu0 %2630 }
 0x30d   :  { %12308 = vst [vmem:[#allocation295_spill] sm:$0xff] %v9239_v13  ;;  %3996 = vperm.xlu0 %7842, %v8929_v40  }
 0x30e   :  { %v9235_v57 = vpop.permute.xlu1 %2625 }
 0x30f   :  { %12307 = vst [vmem:[#allocation294_spill] sm:$0xff] %v9235_v57  ;;  %3991 = vperm.xlu1 %7843, %v8927_v42  }
 0x310   :  { %v9245_v52 = vpop.permute.xlu0 %2640 }
 0x311   :  { %12310 = vst [vmem:[#allocation297_spill] sm:$0xff] %v9245_v52  ;;  %4006 = vperm.xlu0 %7842, %v8939_v51  }
 0x312   :  { %v9241_v24 = vpop.permute.xlu1 %2635 }
 0x313   :  { %12309 = vst [vmem:[#allocation296_spill] sm:$0xff] %v9241_v24  ;;  %4001 = vperm.xlu1 %7843, %v8937_v48   ;;  %v3417_v24 = vld [vmem:[#allocation2 + $0x150] sm:$0xff] }
 0x314   :  { %v9251_v55 = vpop.permute.xlu0 %2650 }
 0x315   :  { %12312 = vst [vmem:[#allocation299_spill] sm:$0xff] %v9251_v55  ;;  %4016 = vperm.xlu0 %7842, %v8949_v56  }
 0x316   :  { %v9247_v3 = vpop.permute.xlu1 %2645 }
 0x317   :  { %12311 = vst [vmem:[#allocation298_spill] sm:$0xff] %v9247_v3  ;;  %4011 = vperm.xlu1 %7843, %v8947_v53  }
 0x318   :  { %v9257_v42 = vpop.permute.xlu0 %2660 }
 0x319   :  { %12314 = vst [vmem:[#allocation301_spill] sm:$0xff] %v9257_v42  ;;  %4026 = vperm.xlu0 %7842, %v8959_v34  }
 0x31a   :  { %v9253_v46 = vpop.permute.xlu1 %2655 }
 0x31b   :  { %12313 = vst [vmem:[#allocation300_spill] sm:$0xff] %v9253_v46  ;;  %4021 = vperm.xlu1 %7843, %v8957_v0  }
 0x31c   :  { %v9263_v48 = vpop.permute.xlu0 %2670 }
 0x31d   :  { %12316 = vst [vmem:[#allocation303_spill] sm:$0xff] %v9263_v48  ;;  %4036 = vperm.xlu0 %7842, %v8969_v28   ;;  %v3931_v48 = vld [vmem:[#allocation2 + $0x109] sm:$0xff] }
 0x31e   :  { %v9259_v40 = vpop.permute.xlu1 %2665 }
 0x31f   :  { %12315 = vst [vmem:[#allocation302_spill] sm:$0xff] %v9259_v40  ;;  %4031 = vperm.xlu1 %7843, %v8967_v17   ;;  %v12321_v17 = vmov 0.0   ;;  %v3932_v40 = vld [vmem:[#allocation2 + $0x111] sm:$0xff] }
 0x320   :  { %v9269_v53 = vpop.permute.xlu0 %2680  ;;  %5136 = vst.msk [vmem:[#allocation4] sm:$0xff] %vm4985_vm2, %v12321_v17  ;;  %5139 = vst.msk [vmem:[#allocation4 + $0x10] sm:$0xff] %vm4985_vm2, %v12321_v17 }
 0x321   :  { %12318 = vst [vmem:[#allocation305_spill] sm:$0xff] %v9269_v53  ;;  %4506 = vperm.xlu0 %7842, %v9083_v45   ;;  %5141 = vst.msk [vmem:[#allocation4 + $0x20] sm:$0xff] %vm4985_vm2, %v12321_v17  ;;  %v3929_v53 = vld [vmem:[#allocation2 + $0xf1] sm:$0xff] }
 0x322   :  { %v9265_v51 = vpop.permute.xlu1 %2675  ;;  %5143 = vst.msk [vmem:[#allocation4 + $0x30] sm:$0xff] %vm4985_vm2, %v12321_v17  ;;  %5145 = vst.msk [vmem:[#allocation4 + $0x40] sm:$0xff] %vm4985_vm2, %v12321_v17 }
 0x323   :  { %12317 = vst [vmem:[#allocation304_spill] sm:$0xff] %v9265_v51  ;;  %4501 = vperm.xlu1 %7843, %v9081_v30   ;;  %5147 = vst.msk [vmem:[#allocation4 + $0x50] sm:$0xff] %vm4985_vm2, %v12321_v17  ;;  %v3930_v51 = vld [vmem:[#allocation2 + $0xf9] sm:$0xff] }
 0x324   :  { %v9275_v34 = vpop.permute.xlu0 %2690  ;;  %5149 = vst.msk [vmem:[#allocation4 + $0x60] sm:$0xff] %vm4985_vm2, %v12321_v17  ;;  %5151 = vst.msk [vmem:[#allocation4 + $0x70] sm:$0xff] %vm4985_vm2, %v12321_v17 }
 0x325   :  { %12320 = vst [vmem:[#allocation307_spill] sm:$0xff] %v9275_v34  ;;  %5153 = vst.msk [vmem:[#allocation4 + $0x80] sm:$0xff] %vm4985_vm2, %v12321_v17  ;;  %4516 = vperm.xlu0 %7842, %v9093_v26   ;;  %v3927_v34 = vld [vmem:[#allocation2 + $0xd9] sm:$0xff] }
 0x326   :  { %v9271_v56 = vpop.permute.xlu1 %2685  ;;  %5155 = vst.msk [vmem:[#allocation4 + $0x90] sm:$0xff] %vm4985_vm2, %v12321_v17  ;;  %5157 = vst.msk [vmem:[#allocation4 + $0xa0] sm:$0xff] %vm4985_vm2, %v12321_v17 }
 0x327   :  { %12319 = vst [vmem:[#allocation306_spill] sm:$0xff] %v9271_v56  ;;  %4511 = vperm.xlu1 %7843, %v9091_v27   ;;  %5159 = vst.msk [vmem:[#allocation4 + $0xb0] sm:$0xff] %vm4985_vm2, %v12321_v17  ;;  %v3928_v56 = vld [vmem:[#allocation2 + $0xe1] sm:$0xff] }
 0x328   :  { %5161 = vst.msk [vmem:[#allocation4 + $0xc0] sm:$0xff] %vm4985_vm2, %v12321_v17  ;;  %5163 = vst.msk [vmem:[#allocation4 + $0xd0] sm:$0xff] %vm4985_vm2, %v12321_v17  ;;  %v9321_v0 = vpop.permute.xlu0 %2700 }
 0x329   :  { %5165 = vst.msk [vmem:[#allocation4 + $0xe0] sm:$0xff] %vm4985_vm2, %v12321_v17  ;;  %5167 = vst.msk [vmem:[#allocation4 + $0xf0] sm:$0xff] %vm4985_vm2, %v12321_v17  ;;  %4526 = vperm.xlu0 %7842, %v9103_v31  }
 0x32a   :  { %5169 = vst.msk [vmem:[#allocation4 + $0x100] sm:$0xff] %vm4985_vm2, %v12321_v17  ;;  %5171 = vst.msk [vmem:[#allocation4 + $0x110] sm:$0xff] %vm4985_vm2, %v12321_v17  ;;  %v9317_v28 = vpop.permute.xlu1 %2695 }
 0x32b   :  { %5173 = vst.msk [vmem:[#allocation4 + $0x120] sm:$0xff] %vm4985_vm2, %v12321_v17  ;;  %5175 = vst.msk [vmem:[#allocation4 + $0x130] sm:$0xff] %vm4985_vm2, %v12321_v17  ;;  %4521 = vperm.xlu1 %7843, %v9101_v61   ;;  %v3405_v61 = vld [vmem:[#allocation2 + $0xc0] sm:$0xff] }
 0x32c   :  { %12322 = vst [vmem:[#allocation308_spill] sm:$0xff] %v9317_v28  ;;  %12323 = vst [vmem:[#allocation309_spill] sm:$0xff] %v9321_v0  ;;  %v9327_v45 = vpop.permute.xlu0 %2710  ;;  %v3926_v0 = vld [vmem:[#allocation2 + $0xc9] sm:$0xff] }
 0x32d   :  { %12325 = vst [vmem:[#allocation311_spill] sm:$0xff] %v9327_v45  ;;  %4536 = vperm.xlu0 %7842, %v9113_v12   ;;  %v3407_v12 = vld [vmem:[#allocation2 + $0xd8] sm:$0xff]  ;;  %5142 = vst.msk [vmem:[#allocation4 + $0x28] sm:$0x3] %vm5137_vm3, %v12321_v17 }
 0x32e   :  { %v9323_v30 = vpop.permute.xlu1 %2705  ;;  %5138 = vst.msk [vmem:[#allocation4 + $0x8] sm:$0x3] %vm5137_vm3, %v12321_v17  ;;  %5140 = vst.msk [vmem:[#allocation4 + $0x18] sm:$0x3] %vm5137_vm3, %v12321_v17 }
 0x32f   :  { %12324 = vst [vmem:[#allocation310_spill] sm:$0xff] %v9323_v30  ;;  %4531 = vperm.xlu1 %7843, %v9111_v39   ;;  %5144 = vst.msk [vmem:[#allocation4 + $0x38] sm:$0x3] %vm5137_vm3, %v12321_v17  ;;  %v3925_v30 = vld [vmem:[#allocation2 + $0xc1] sm:$0xff] }
 0x330   :  { %v9333_v28 = vpop.permute.xlu0 %2720  ;;  %5146 = vst.msk [vmem:[#allocation4 + $0x48] sm:$0x3] %vm5137_vm3, %v12321_v17  ;;  %5148 = vst.msk [vmem:[#allocation4 + $0x58] sm:$0x3] %vm5137_vm3, %v12321_v17 }
 0x331   :  { %12327 = vst [vmem:[#allocation313_spill] sm:$0xff] %v9333_v28  ;;  %4546 = vperm.xlu0 %7842, %v9123_v33   ;;  %5150 = vst.msk [vmem:[#allocation4 + $0x68] sm:$0x3] %vm5137_vm3, %v12321_v17  ;;  %v3408_v33 = vld [vmem:[#allocation2 + $0xe0] sm:$0xff] }
 0x332   :  { %v9329_v27 = vpop.permute.xlu1 %2715  ;;  %5152 = vst.msk [vmem:[#allocation4 + $0x78] sm:$0x3] %vm5137_vm3, %v12321_v17  ;;  %5154 = vst.msk [vmem:[#allocation4 + $0x88] sm:$0x3] %vm5137_vm3, %v12321_v17 }
 0x333   :  { %12326 = vst [vmem:[#allocation312_spill] sm:$0xff] %v9329_v27  ;;  %4541 = vperm.xlu1 %7843, %v9121_v54   ;;  %v3406_v27 = vld [vmem:[#allocation2 + $0xc8] sm:$0xff]  ;;  %5156 = vst.msk [vmem:[#allocation4 + $0x98] sm:$0x3] %vm5137_vm3, %v12321_v17 }
 0x334   :  { %v9339_v31 = vpop.permute.xlu0 %2730  ;;  %5158 = vst.msk [vmem:[#allocation4 + $0xa8] sm:$0x3] %vm5137_vm3, %v12321_v17  ;;  %5160 = vst.msk [vmem:[#allocation4 + $0xb8] sm:$0x3] %vm5137_vm3, %v12321_v17 }
 0x335   :  { %12329 = vst [vmem:[#allocation315_spill] sm:$0xff] %v9339_v31  ;;  %4556 = vperm.xlu0 %7842, %v9133_v35   ;;  %5162 = vst.msk [vmem:[#allocation4 + $0xc8] sm:$0x3] %vm5137_vm3, %v12321_v17  ;;  %v3409_v35 = vld [vmem:[#allocation2 + $0xf0] sm:$0xff]  ;;  %v3411_v31 = vld [vmem:[#allocation2 + $0x108] sm:$0xff] }
 0x336   :  { %v9335_v26 = vpop.permute.xlu1 %2725  ;;  %5164 = vst.msk [vmem:[#allocation4 + $0xd8] sm:$0x3] %vm5137_vm3, %v12321_v17  ;;  %5166 = vst.msk [vmem:[#allocation4 + $0xe8] sm:$0x3] %vm5137_vm3, %v12321_v17 }
 0x337   :  { %12328 = vst [vmem:[#allocation314_spill] sm:$0xff] %v9335_v26  ;;  %4551 = vperm.xlu1 %7843, %v9131_v47   ;;  %5168 = vst.msk [vmem:[#allocation4 + $0xf8] sm:$0x3] %vm5137_vm3, %v12321_v17  ;;  %v3410_v26 = vld [vmem:[#allocation2 + $0xf8] sm:$0xff] }
 0x338   :  { %v9344_v54 = vpop.permute.xlu0 %2940  ;;  %5170 = vst.msk [vmem:[#allocation4 + $0x108] sm:$0x3] %vm5137_vm3, %v12321_v17  ;;  %5172 = vst.msk [vmem:[#allocation4 + $0x118] sm:$0x3] %vm5137_vm3, %v12321_v17 }
 0x339   :  { %5174 = vst.msk [vmem:[#allocation4 + $0x128] sm:$0x3] %vm5137_vm3, %v12321_v17  ;;  %5176 = vst.msk [vmem:[#allocation4 + $0x138] sm:$0x3] %vm5137_vm3, %v12321_v17  ;;  %3526 = vperm.xlu0 %7842, %v3406_v27   ;;  %v3412_v17 = vld [vmem:[#allocation2 + $0x110] sm:$0xff] }
 0x33a   :  { %v9341_v39 = vpop.permute.xlu1 %2735 }
 0x33b   :  { %12330 = vst [vmem:[#allocation316_spill] sm:$0xff] %v9341_v39  ;;  %3521 = vperm.xlu1 %7843, %v3405_v61  }
 0x33c   :  { %v9388_v61 = vpop.permute.xlu0 %2950 }
 0x33d   :  { %3536 = vperm.xlu0 %7842, %v3408_v33  }
 0x33e   :  { %v9386_v47 = vpop.permute.xlu1 %2945 }
 0x33f   :  { %3531 = vperm.xlu1 %7843, %v3407_v12  }
 0x340   :  { %v9392_v28 = vpop.permute.xlu0 %2960 }
 0x341   :  { %3546 = vperm.xlu0 %7842, %v3410_v26  }
 0x342   :  { %v9390_v39 = vpop.permute.xlu1 %2955 }
 0x343   :  { %3541 = vperm.xlu1 %7843, %v3409_v35  }
 0x344   :  { %v9396_v27 = vpop.permute.xlu0 %2970 }
 0x345   :  { %3556 = vperm.xlu0 %7842, %v3412_v17  }
 0x346   :  { %v9394_v45 = vpop.permute.xlu1 %2965 }
 0x347   :  { %3551 = vperm.xlu1 %7843, %v3411_v31  }
 0x348   :  { %v9400_v33 = vpop.permute.xlu0 %2980 }
 0x349   :  { %4046 = vperm.xlu0 %7842, %v3926_v0  }
 0x34a   :  { %v9398_v12 = vpop.permute.xlu1 %2975 }
 0x34b   :  { %4041 = vperm.xlu1 %7843, %v3925_v30  }
 0x34c   :  { %v9404_v26 = vpop.permute.xlu0 %2990 }
 0x34d   :  { %12331 = vst [vmem:[#allocation317_spill] sm:$0xff] %v9404_v26  ;;  %4056 = vperm.xlu0 %7842, %v3928_v56  }
 0x34e   :  { %v9402_v35 = vpop.permute.xlu1 %2985 }
 0x34f   :  { %4051 = vperm.xlu1 %7843, %v3927_v34  }
 0x350   :  { %v9408_v17 = vpop.permute.xlu0 %3000 }
 0x351   :  { %12333 = vst [vmem:[#allocation319_spill] sm:$0xff] %v9408_v17  ;;  %4066 = vperm.xlu0 %7842, %v3930_v51  }
 0x352   :  { %v9406_v31 = vpop.permute.xlu1 %2995 }
 0x353   :  { %12332 = vst [vmem:[#allocation318_spill] sm:$0xff] %v9406_v31  ;;  %4061 = vperm.xlu1 %7843, %v3929_v53  }
 0x354   :  { %v9412_v42 = vpop.permute.xlu0 %3010 }
 0x355   :  { %12335 = vst [vmem:[#allocation321_spill] sm:$0xff] %v9412_v42  ;;  %4076 = vperm.xlu0 %7842, %v3932_v40  }
 0x356   :  { %v9410_v30 = vpop.permute.xlu1 %3005 }
 0x357   :  { %12334 = vst [vmem:[#allocation320_spill] sm:$0xff] %v9410_v30  ;;  %4071 = vperm.xlu1 %7843, %v3931_v48   ;;  %v12358_v30 = vld [vmem:[#allocation67_spill] sm:$0xff] }
 0x358   :  { %v9417_v0 = vpop.permute.xlu0 %3020  ;;  %v1195_v42 = vmul.f32 %v9475_v16, %v12358_v30 }
 0x359   :  { %12337 = vst [vmem:[#allocation323_spill] sm:$0xff] %v9417_v0  ;;  %4566 = vperm.xlu0 %7842, %v9143_v50  }
 0x35a   :  { %v9414_v34 = vpop.permute.xlu1 %3015 }
 0x35b   :  { %12336 = vst [vmem:[#allocation322_spill] sm:$0xff] %v9414_v34  ;;  %4561 = vperm.xlu1 %7843, %v9141_v5   ;;  %v9435_v5 = vld [vmem:[#allocation2 + $0x15a] sm:$0xff]  ;;  %v12357_v34 = vld [vmem:[#allocation66_spill] sm:$0xff] }
 0x35c   :  { %v9423_v53 = vpop.permute.xlu0 %3030 }
 0x35d   :  { %12339 = vst [vmem:[#allocation325_spill] sm:$0xff] %v9423_v53  ;;  %4576 = vperm.xlu0 %7842, %v9153_v38   ;;  %v3413_v38 = vld [vmem:[#allocation2 + $0x120] sm:$0xff] }
 0x35e   :  { %v9419_v56 = vpop.permute.xlu1 %3025 }
 0x35f   :  { %12338 = vst [vmem:[#allocation324_spill] sm:$0xff] %v9419_v56  ;;  %4571 = vperm.xlu1 %7843, %v9151_v8  }
 0x360   :  { %v9429_v48 = vpop.permute.xlu0 %3040 }
 0x361   :  { %12341 = vst [vmem:[#allocation327_spill] sm:$0xff] %v9429_v48  ;;  %4586 = vperm.xlu0 %7842, %v9163_v43   ;;  %v3415_v43 = vld [vmem:[#allocation2 + $0x138] sm:$0xff] }
 0x362   :  { %v9425_v51 = vpop.permute.xlu1 %3035  ;;  %v3940_v48 = vld [vmem:[#allocation2 + $0x171] sm:$0xff] }
 0x363   :  { %12340 = vst [vmem:[#allocation326_spill] sm:$0xff] %v9425_v51  ;;  %4581 = vperm.xlu1 %7843, %v9161_v58   ;;  %v3414_v58 = vld [vmem:[#allocation2 + $0x128] sm:$0xff] }
 0x364   :  { %v9437_v50 = vpop.permute.xlu0 %3050 }
 0x365   :  { %12343 = vst [vmem:[#allocation329_spill] sm:$0xff] %v9437_v50  ;;  %4596 = vperm.xlu0 %7842, %v9173_v37   ;;  %v3418_v37 = vld [vmem:[#allocation2 + $0x158] sm:$0xff] }
 0x366   :  { %v9431_v40 = vpop.permute.xlu1 %3045 }
 0x367   :  { %12342 = vst [vmem:[#allocation328_spill] sm:$0xff] %v9431_v40  ;;  %4591 = vperm.xlu1 %7843, %v9171_v63   ;;  %v3416_v63 = vld [vmem:[#allocation2 + $0x140] sm:$0xff] }
 0x368   :  { %v9443_v46 = vpop.permute.xlu0 %3060 }
 0x369   :  { %12345 = vst [vmem:[#allocation331_spill] sm:$0xff] %v9443_v46  ;;  %3561 = vperm.xlu0 %7842, %v3413_v38  }
 0x36a   :  { %v9439_v8 = vpop.permute.xlu1 %3055 }
 0x36b   :  { %12344 = vst [vmem:[#allocation330_spill] sm:$0xff] %v9439_v8  ;;  %3075 = vperm.xlu1 %7843, %v9435_v5  }
 0x36c   :  { %v9447_v3 = vpop.permute.xlu0 %3070 }
 0x36d   :  { %12347 = vst [vmem:[#allocation333_spill] sm:$0xff] %v9447_v3  ;;  %3571 = vperm.xlu0 %7842, %v3415_v43  }
 0x36e   :  { %v9445_v55 = vpop.permute.xlu1 %3065 }
 0x36f   :  { %12346 = vst [vmem:[#allocation332_spill] sm:$0xff] %v9445_v55  ;;  %3566 = vperm.xlu1 %7843, %v3414_v58  }
 0x370   :  { %v9451_v13 = vpop.permute.xlu0 %3466 }
 0x371   :  { %3581 = vperm.xlu0 %7842, %v3417_v24  }
 0x372   :  { %v9449_v52 = vpop.permute.xlu1 %3461 }
 0x373   :  { %3576 = vperm.xlu1 %7843, %v3416_v63  }
 0x374   :  { %v9455_v38 = vpop.permute.xlu0 %3476 }
 0x375   :  { %3591 = vperm.xlu0 %7842, %v3419_v29   ;;  %v9470_v29 = vld [vmem:[%s11963_s1] ss:$0 sm:$0xff] }
 0x376   :  { %v9453_v57 = vpop.permute.xlu1 %3471  ;;  %12349 = vst [vmem:[#allocation335_spill] sm:$0xff] %v9470_v29  ;;  %v664_v3 = vmul.f32 %v9470_v29, %v8513_v1  ;;  %v665_v55 = vmul.f32 %v9470_v29, %v8517_v6  ;;  %v667_v8 = vmul.f32 %v9470_v29, %v8519_v7  ;;  %v668_v40 = vmul.f32 %v9470_v29, %v8521_v10  ;;  %v3939_v6 = vld [vmem:[#allocation2 + $0x169] sm:$0xff] }
 0x377   :  { %3586 = vperm.xlu1 %7843, %v3418_v37   ;;  %v669_v1 = vmul.f32 %v9470_v29, %v8523_v11  ;;  %v671_v50 = vmul.f32 %v9470_v29, %v8527_v15  ;;  %v1185_v7 = vmul.f32 %v9475_v16, %v8643_v49  ;;  %v1186_v10 = vmul.f32 %v9475_v16, %v8645_v60 }
 0x378   :  { %v9459_v43 = vpop.permute.xlu0 %3486  ;;  %v672_v11 = vmul.f32 %v9470_v29, %v8529_v18  ;;  %v1189_v15 = vmul.f32 %v9475_v16, %v8651_v25  ;;  %v673_v49 = vmul.f32 %v9470_v29, %v8531_v19  ;;  %v674_v60 = vmul.f32 %v9470_v29, %v8533_v22  ;;  %v7845_v19 = vld [vmem:[%s11965_s3 + $0x88] sm:$0xff]  }
 0x379   :  { %4081 = vperm.xlu0 %7842, %v3933_v32   ;;  %v3938_v32 = vld [vmem:[#allocation2 + $0x159] sm:$0xff]  ;;  %v675_v18 = vmul.f32 %v9470_v29, %v8535_v23  ;;  %v1191_v22 = vmul.f32 %v9475_v16, %v8655_v41  ;;  %v1249_v56 = vadd.f32 %v1185_v7, %v665_v55  ;;  %v12362_v7 = vld [vmem:[#allocation123_spill] sm:$0xff] }
 0x37a   :  { %v9457_v58 = vpop.permute.xlu1 %3481  ;;  %v12355_v23 = vld [vmem:[#allocation64_spill] sm:$0xff]  ;;  %v1253_v17 = vadd.f32 %v1189_v15, %v669_v1 }
 0x37b   :  { %3596 = vperm.xlu1 %7843, %v3420_v59   ;;  %v3937_v59 = vld [vmem:[#allocation2 + $0x151] sm:$0xff]  ;;  %v1192_v51 = vmul.f32 %v9475_v16, %v12355_v23 }
 0x37c   :  { %v9463_v24 = vpop.permute.xlu0 %3496  ;;  %v12359_v41 = vld [vmem:[#allocation120_spill] sm:$0xff] }
 0x37d   :  { %4091 = vperm.xlu0 %7842, %v3935_v21   ;;  %v666_v21 = vmul.f32 %v9470_v29, %v8515_v2  ;;  %v1184_v2 = vmul.f32 %v9475_v16, %v8641_v44  ;;  %v1187_v44 = vmul.f32 %v9475_v16, %v8647_v4  ;;  %v1190_v4 = vmul.f32 %v9475_v16, %v8653_v36  ;;  %v12356_v36 = vld [vmem:[#allocation65_spill] sm:$0xff] }
 0x37e   :  { %v9461_v63 = vpop.permute.xlu1 %3491  ;;  %v1193_v53 = vmul.f32 %v9475_v16, %v12356_v36  ;;  %v1256_v1 = vadd.f32 %v1192_v51, %v672_v11  ;;  %v12370_v11 = vld [vmem:[#allocation128_spill] sm:$0xff] }
 0x37f   :  { %4086 = vperm.xlu1 %7843, %v3934_v62   ;;  %v1250_v0 = vadd.f32 %v1186_v10, %v666_v21  ;;  %v12361_v21 = vld [vmem:[#allocation122_spill] sm:$0xff] }
 0x380   :  { %v9477_v62 = vpop.permute.xlu0 %3506 }
 0x381   :  { %12351 = vst [vmem:[#allocation337_spill] sm:$0xff] %v9477_v62  ;;  %4101 = vperm.xlu0 %7842, %v3937_v59   ;;  %v670_v59 = vmul.f32 %v9470_v29, %v8525_v14  ;;  %v1188_v14 = vmul.f32 %v9475_v16, %v8649_v20  ;;  %v9527_v20 = vld [vmem:[%s11963_s1 + $0x2] ss:$0 sm:$0xff] }
 0x382   :  { %v9465_v37 = vpop.permute.xlu1 %3501  ;;  %12354 = vst [vmem:[#allocation340_spill] sm:$0xff] %v9527_v20  ;;  %v1704_v29 = vmul.f32 %v9527_v20, %v12359_v41  ;;  %v1707_v30 = vmul.f32 %v9527_v20, %v12362_v7  ;;  %v12366_v41 = vld [vmem:[#allocation125_spill] sm:$0xff] }
 0x383   :  { %12348 = vst [vmem:[#allocation334_spill] sm:$0xff] %v9465_v37  ;;  %4096 = vperm.xlu1 %7843, %v3936_v9   ;;  %v7844_v9 = vld [vmem:[%s11965_s3 + $0x80] sm:$0xff]   ;;  %v1254_v36 = vadd.f32 %v1190_v4, %v670_v59  ;;  %v12365_v59 = vld [vmem:[#allocation271_spill] sm:$0xff]  ;;  %v4460_v37 = vld [vmem:[#allocation2 + $0x172] sm:$0xff] }
 0x384   :  { %7794 = vmatprep.subr.bf16.mxu1 %v7844_v9 }
 0x385   :  { %7795 = vmatpush3.bf16.msra.mxu1 %v7844_v9  ;;  %4111 = vperm.xlu0 %7842, %v3939_v6   ;;  %v1248_v9 = vadd.f32 %v1184_v2, %v664_v3  ;;  %v1194_v6 = vmul.f32 %v9475_v16, %v12357_v34  ;;  %v1251_v3 = vadd.f32 %v1187_v44, %v667_v8 }
 0x386   :  { %v9485_v46 = vpop.permute.xlu1 %3511  ;;  %7796 = vmatprep.subr.bf16.mxu1 %v7845_v19  ;;  %v1252_v2 = vadd.f32 %v1188_v14, %v668_v40  ;;  %v1706_v34 = vmul.f32 %v9527_v20, %v12361_v21  ;;  %v12363_v40 = vld [vmem:[#allocation270_spill] sm:$0xff]  ;;  %v1255_v8 = vadd.f32 %v1191_v22, %v671_v50  ;;  %v1257_v44 = vadd.f32 %v1193_v53, %v673_v49  ;;  %v12364_v14 = vld [vmem:[#allocation124_spill] sm:$0xff]  ;;  %v12369_v53 = vld [vmem:[#allocation127_spill] sm:$0xff] }
 0x387   :  { %12352 = vst [vmem:[#allocation338_spill] sm:$0xff] %v9485_v46  ;;  %4106 = vperm.xlu1 %7843, %v3938_v32   ;;  %v9514_v32 = vpop.permute.xlu0 %3516  ;;  %v1708_v15 = vmul.f32 %v9527_v20, %v12364_v14  ;;  %v1258_v4 = vadd.f32 %v1194_v6, %v674_v60  ;;  %v12367_v21 = vld [vmem:[#allocation126_spill] sm:$0xff]  ;;  %v1768_v51 = vadd.f32 %v1704_v29, %v1248_v9  ;;  %v12371_v60 = vld [vmem:[#allocation129_spill] sm:$0xff] }
 0x388   :  { %12353 = vst [vmem:[#allocation339_spill] sm:$0xff] %v9514_v32  ;;  %v1710_v7 = vmul.f32 %v9527_v20, %v12367_v21  ;;  %v1711_v50 = vmul.f32 %v9527_v20, %v12369_v53  ;;  %v1712_v49 = vmul.f32 %v9527_v20, %v12370_v11  ;;  %v1770_v6 = vadd.f32 %v1706_v34, %v1250_v0  ;;  %v12373_v29 = vld [vmem:[#allocation274_spill] sm:$0xff]  ;;  %v12374_v53 = vld [vmem:[#allocation131_spill] sm:$0xff]  ;;  %v12375_v11 = vld [vmem:[#allocation184_spill] sm:$0xff] }
 0x389   :  { %7797 = vmatpush3.bf16.msra.mxu1 %v7845_v19  ;;  %4601 = vperm.xlu0 %7842, %v12363_v40   ;;  %v1259_v19 = vadd.f32 %v1195_v42, %v675_v18  ;;  %v9567_v40 = vld [vmem:[%s11963_s1 + $0x3] ss:$0 sm:$0xff]  ;;  %v1713_v42 = vmul.f32 %v9527_v20, %v12371_v60  ;;  %v1771_v14 = vadd.f32 %v1707_v30, %v1251_v3  ;;  %v12376_v60 = vld [vmem:[#allocation185_spill] sm:$0xff]  ;;  %v12379_v30 = vld [vmem:[#allocation187_spill] sm:$0xff] }
 0x38a   :  { %v9529_v25 = vpop.permute.xlu1 %3981  ;;  %12368 = vst [vmem:[#allocation64_spill] sm:$0xff] %v9567_v40  ;;  %v1772_v9 = vadd.f32 %v1708_v15, %v1252_v2  ;;  %v1715_v16 = vmul.f32 %v9527_v20, %v12374_v53  ;;  %v2224_v32 = vmul.f32 %v9567_v40, %v12375_v11  ;;  %v2225_v62 = vmul.f32 %v9567_v40, %v12376_v60  ;;  %v12380_v53 = vld [vmem:[#allocation188_spill] sm:$0xff]  ;;  %v12382_v60 = vld [vmem:[#allocation189_spill] sm:$0xff] }
 0x38b   :  { %4116 = vperm.xlu1 %7843, %v3940_v48   ;;  %v9546_v23 = vpop.permute.xlu0 %3986  ;;  %v12360_v48 = vld [vmem:[#allocation121_spill] sm:$0xff]  ;;  %v1774_v3 = vadd.f32 %v1710_v7, %v1254_v36  ;;  %v1775_v2 = vadd.f32 %v1711_v50, %v1255_v8  ;;  %v1776_v15 = vadd.f32 %v1712_v49, %v1256_v1  ;;  %v9606_v8 = vld [vmem:[%s11963_s1 + $0x4] ss:$0 sm:$0xff] }
 0x38c   :  { %v1705_v55 = vmul.f32 %v9527_v20, %v12360_v48  ;;  %v1709_v48 = vmul.f32 %v9527_v20, %v12366_v41  ;;  %v1779_v50 = vadd.f32 %v1715_v16, %v1259_v19  ;;  %v12391_v19 = vld [vmem:[#allocation249_spill] sm:$0xff] }
 0x38d   :  { %4611 = vperm.xlu0 %7842, %v12373_v29   ;;  %v1777_v29 = vadd.f32 %v1713_v42, %v1257_v44  ;;  %v12385_v44 = vld [vmem:[#allocation278_spill] sm:$0xff]  ;;  %v12386_v42 = vld [vmem:[#allocation192_spill] sm:$0xff] }
 0x38e   :  { %v9554_v10 = vpop.permute.xlu1 %3991  ;;  %v1769_v22 = vadd.f32 %v1705_v55, %v1249_v56  ;;  %v12377_v56 = vld [vmem:[#allocation275_spill] sm:$0xff]  ;;  %v1773_v0 = vadd.f32 %v1709_v48, %v1253_v17  ;;  %v12378_v55 = vld [vmem:[#allocation186_spill] sm:$0xff] }
 0x38f   :  { %4606 = vperm.xlu1 %7843, %v12365_v59   ;;  %v9575_v18 = vpop.permute.xlu0 %3996  ;;  %v12372_v59 = vld [vmem:[#allocation130_spill] sm:$0xff]  ;;  %v2226_v34 = vmul.f32 %v9567_v40, %v12378_v55  ;;  %v12384_v48 = vld [vmem:[#allocation191_spill] sm:$0xff] }
 0x390   :  { %v1714_v41 = vmul.f32 %v9527_v20, %v12372_v59  ;;  %v2227_v59 = vmul.f32 %v9567_v40, %v12379_v30  ;;  %v2228_v20 = vmul.f32 %v9567_v40, %v12380_v53  ;;  %v12383_v17 = vld [vmem:[#allocation190_spill] sm:$0xff]  ;;  %v2231_v7 = vmul.f32 %v9567_v40, %v12384_v48  ;;  %v4459_v55 = vld [vmem:[#allocation2 + $0x16a] sm:$0xff] }
 0x391   :  { %v2230_v36 = vmul.f32 %v9567_v40, %v12383_v17  ;;  %4621 = vperm.xlu0 %7842, %v12385_v44   ;;  %v2289_v49 = vadd.f32 %v2225_v62, %v1769_v22  ;;  %v2290_v30 = vadd.f32 %v2226_v34, %v1770_v6  ;;  %v12388_v48 = vld [vmem:[#allocation194_spill] sm:$0xff]  ;;  %v12389_v44 = vld [vmem:[#allocation195_spill] sm:$0xff]  ;;  %v12390_v62 = vld [vmem:[#allocation248_spill] sm:$0xff] }
 0x392   :  { %v9579_v21 = vpop.permute.xlu1 %4001  ;;  %v1778_v31 = vadd.f32 %v1714_v41, %v1258_v4  ;;  %v2288_v4 = vadd.f32 %v2224_v32, %v1768_v51  ;;  %v2232_v41 = vmul.f32 %v9567_v40, %v12386_v42  ;;  %v2291_v53 = vadd.f32 %v2227_v59, %v1771_v14  ;;  %v12393_v34 = vld [vmem:[#allocation250_spill] sm:$0xff] }
 0x393   :  { %4616 = vperm.xlu1 %7843, %v12377_v56   ;;  %v9595_v11 = vpop.permute.xlu0 %4006  ;;  %v2229_v56 = vmul.f32 %v9567_v40, %v12382_v60  ;;  %v12387_v60 = vld [vmem:[#allocation193_spill] sm:$0xff]  ;;  %v2234_v46 = vmul.f32 %v9567_v40, %v12388_v48  ;;  %v2292_v26 = vadd.f32 %v2228_v20, %v1772_v9  ;;  %v2235_v16 = vmul.f32 %v9567_v40, %v12389_v44  ;;  %v12395_v9 = vld [vmem:[#allocation251_spill] sm:$0xff]  ;;  %v12396_v48 = vld [vmem:[#allocation252_spill] sm:$0xff] }
 0x394   :  { %12381 = vst [vmem:[#allocation65_spill] sm:$0xff] %v9595_v11  ;;  %v2233_v17 = vmul.f32 %v9567_v40, %v12387_v60  ;;  %v2744_v32 = vmul.f32 %v9606_v8, %v12390_v62  ;;  %v2294_v6 = vadd.f32 %v2230_v36, %v1774_v3  ;;  %v2295_v14 = vadd.f32 %v2231_v7, %v1775_v2  ;;  %v12397_v62 = vld [vmem:[#allocation253_spill] sm:$0xff]  ;;  %v12399_v36 = vld [vmem:[#allocation255_spill] sm:$0xff] }
 0x395   :  { %v2293_v22 = vadd.f32 %v2229_v56, %v1773_v0  ;;  %v2746_v59 = vmul.f32 %v9606_v8, %v12393_v34  ;;  %4631 = vperm.xlu0 %7842, %v4459_v55   ;;  %v2296_v20 = vadd.f32 %v2232_v41, %v1776_v15  ;;  %v2747_v60 = vmul.f32 %v9606_v8, %v12395_v9  ;;  %v9639_v0 = vld [vmem:[%s11963_s1 + $0x5] ss:$0 sm:$0xff] }
 0x396   :  { %v9608_v1 = vpop.permute.xlu1 %4011  ;;  %v2748_v44 = vmul.f32 %v9606_v8, %v12396_v48  ;;  %v2297_v3 = vadd.f32 %v2233_v17, %v1777_v29  ;;  %v2298_v2 = vadd.f32 %v2234_v46, %v1778_v31  ;;  %v12398_v56 = vld [vmem:[#allocation254_spill] sm:$0xff]  ;;  %v2751_v7 = vmul.f32 %v9606_v8, %v12399_v36  ;;  %v12400_v48 = vld [vmem:[#allocation256_spill] sm:$0xff] }
 0x397   :  { %4626 = vperm.xlu1 %7843, %v9435_v5   ;;  %v2745_v5 = vmul.f32 %v9606_v8, %v12391_v19  ;;  %v9624_v51 = vpop.permute.xlu0 %4016  ;;  %v2749_v19 = vmul.f32 %v9606_v8, %v12397_v62  ;;  %v2750_v15 = vmul.f32 %v9606_v8, %v12398_v56  ;;  %v2299_v41 = vadd.f32 %v2235_v16, %v1779_v50  ;;  %v12402_v29 = vld [vmem:[#allocation258_spill] sm:$0xff] }
 0x398   :  { %12392 = vst [vmem:[#allocation66_spill] sm:$0xff] %v9624_v51  ;;  %v2808_v34 = vadd.f32 %v2744_v32, %v2288_v4  ;;  %v2752_v62 = vmul.f32 %v9606_v8, %v12400_v48  ;;  %v12401_v51 = vld [vmem:[#allocation257_spill] sm:$0xff]  ;;  %v2754_v46 = vmul.f32 %v9606_v8, %v12402_v29  ;;  %v3264_v31 = vmul.f32 %v9639_v0, %v9344_v54  ;;  %v9658_v50 = vld [vmem:[%s11963_s1 + $0x6] ss:$0 sm:$0xff]  ;;  %v12403_v54 = vld [vmem:[#allocation259_spill] sm:$0xff] }
 0x399   :  { %v2809_v9 = vadd.f32 %v2745_v5, %v2289_v49  ;;  %v2753_v11 = vmul.f32 %v9606_v8, %v12401_v51  ;;  %3080 = vperm.xlu0 %7842, %v4459_v55   ;;  %v2811_v49 = vadd.f32 %v2747_v60, %v2291_v53  ;;  %v2812_v17 = vadd.f32 %v2748_v44, %v2292_v26  ;;  %v9664_v32 = vld [vmem:[#allocation2 + $0x182] sm:$0xff]  ;;  %v9677_v55 = vld [vmem:[#allocation2 + $0x18a] sm:$0xff] }
 0x39a   :  { %v9628_v42 = vpop.permute.xlu1 %4021  ;;  %v3266_v16 = vmul.f32 %v9639_v0, %v9388_v61  ;;  %v2814_v5 = vadd.f32 %v2750_v15, %v2294_v6  ;;  %v9666_v51 = vadd.f32 %v2751_v7, %v2295_v14  ;;  %v3265_v56 = vmul.f32 %v9639_v0, %v9386_v47  ;;  %v9675_v26 = vld [vmem:[%s11963_s1 + $0x7] ss:$0 sm:$0xff]  ;;  %v3422_v36 = vld [vmem:[#allocation2 + $0x188] sm:$0xff] }
 0x39b   :  { %12394 = vst [vmem:[#allocation67_spill] sm:$0xff] %v9628_v42  ;;  %4636 = vperm.xlu1 %7843, %v4460_v37   ;;  %v9647_v40 = vpop.permute.xlu0 %4026  ;;  %v2810_v42 = vadd.f32 %v2746_v59, %v2290_v30  ;;  %v2813_v30 = vadd.f32 %v2749_v19, %v2293_v22  ;;  %v2755_v59 = vmul.f32 %v9606_v8, %v12403_v54 }
 0x39c   :  { %v9679_v61 = vadd.f32 %v2752_v62, %v2296_v20  ;;  %v3785_v53 = vmul.f32 %v9658_v50, %v9449_v52  ;;  %v3787_v22 = vmul.f32 %v9658_v50, %v9453_v57  ;;  %v9689_v47 = vadd.f32 %v2753_v11, %v2297_v3 }
 0x39d   :  { %v9691_v14 = vadd.f32 %v2754_v46, %v2298_v2  ;;  %v3328_v60 = vadd.f32 %v3264_v31, %v2808_v34  ;;  %v3268_v20 = vmul.f32 %v9639_v0, %v9392_v28  ;;  %3090 = vperm.xlu0 %7842, %v9664_v32   ;;  %v3330_v52 = vadd.f32 %v3266_v16, %v2810_v42  ;;  %v3421_v28 = vld [vmem:[#allocation2 + $0x180] sm:$0xff] }
 0x39e   :  { %v9660_v4 = vpop.permute.xlu1 %4031  ;;  %v3269_v57 = vmul.f32 %v9639_v0, %v9394_v45  ;;  %v4305_v11 = vmul.f32 %v9675_v26, %v9529_v25  ;;  %v4307_v19 = vmul.f32 %v9675_v26, %v9554_v10  ;;  %v9708_v3 = vadd.f32 %v2755_v59, %v2299_v41 }
 0x39f   :  { %3085 = vperm.xlu1 %7843, %v4460_v37   ;;  %v3267_v37 = vmul.f32 %v9639_v0, %v9390_v39  ;;  %v9687_v6 = vpop.permute.xlu0 %4036  ;;  %v9698_v39 = vld [vmem:[%s11963_s1 + $0x8] ss:$0 sm:$0xff]  ;;  %v3329_v2 = vadd.f32 %v3265_v56, %v2809_v9  ;;  %v3786_v15 = vmul.f32 %v9658_v50, %v9451_v13  ;;  %v3788_v42 = vmul.f32 %v9658_v50, %v9455_v38 }
 0x3a0   :  { %v3849_v7 = vadd.f32 %v3785_v53, %v3328_v60  ;;  %v3851_v34 = vadd.f32 %v3787_v22, %v3330_v52  ;;  %v3332_v10 = vadd.f32 %v3268_v20, %v2812_v17  ;;  %v3270_v62 = vmul.f32 %v9639_v0, %v9396_v27 }
 0x3a1   :  { %v3331_v45 = vadd.f32 %v3267_v37, %v2811_v49  ;;  %v4306_v41 = vmul.f32 %v9675_v26, %v9546_v23  ;;  %v4308_v13 = vmul.f32 %v9675_v26, %v9575_v18  ;;  %3601 = vperm.xlu0 %7842, %v3421_v28   ;;  %v3333_v38 = vadd.f32 %v3269_v57, %v2813_v30  ;;  %v3423_v49 = vld [vmem:[#allocation2 + $0x198] sm:$0xff]  ;;  %v3424_v23 = vld [vmem:[#allocation2 + $0x1a0] sm:$0xff] }
 0x3a2   :  { %v4502_v44 = vpop.permute.xlu1 %4501  ;;  %v4369_v29 = vadd.f32 %v4305_v11, %v3849_v7  ;;  %v4371_v46 = vadd.f32 %v4307_v19, %v3851_v34  ;;  %v3271_v17 = vmul.f32 %v9639_v0, %v9398_v12  ;;  %v3850_v16 = vadd.f32 %v3786_v15, %v3329_v2  ;;  %v3941_v57 = vld [vmem:[#allocation2 + $0x181] sm:$0xff]  ;;  %v3942_v2 = vld [vmem:[#allocation2 + $0x189] sm:$0xff] }
 0x3a3   :  { %3095 = vperm.xlu1 %7843, %v9677_v55   ;;  %v4825_v25 = vmul.f32 %v9698_v39, %v4502_v44  ;;  %v4507_v48 = vpop.permute.xlu0 %4506  ;;  %v3852_v27 = vadd.f32 %v3788_v42, %v3331_v45  ;;  %v3789_v18 = vmul.f32 %v9658_v50, %v9457_v58  ;;  %v3791_v30 = vmul.f32 %v9658_v50, %v9461_v63  ;;  %v12404_v45 = vld [vmem:[#allocation65_spill] sm:$0xff]  ;;  %v12405_v7 = vld [vmem:[#allocation66_spill] sm:$0xff] }
 0x3a4   :  { %v4826_v54 = vmul.f32 %v9698_v39, %v4507_v48  ;;  %v3334_v53 = vadd.f32 %v3270_v62, %v2814_v5  ;;  %v4370_v22 = vadd.f32 %v4306_v41, %v3850_v16  ;;  %v3272_v44 = vmul.f32 %v9639_v0, %v9400_v33  ;;  %v12408_v16 = vld [vmem:[#allocation338_spill] sm:$0xff] }
 0x3a5   :  { %v4889_v59 = vadd.f32 %v4825_v25, %v4369_v29  ;;  %v4372_v60 = vadd.f32 %v4308_v13, %v3852_v27  ;;  %3611 = vperm.xlu0 %7842, %v3423_v49   ;;  %v4309_v52 = vmul.f32 %v9675_v26, %v9579_v21  ;;  %v4311_v58 = vmul.f32 %v9675_v26, %v9608_v1  ;;  %v3943_v13 = vld [vmem:[#allocation2 + $0x199] sm:$0xff]  ;;  %v12407_v49 = vld [vmem:[#allocation334_spill] sm:$0xff] }
 0x3a6   :  { %v4512_v9 = vpop.permute.xlu1 %4511  ;;  %v3790_v5 = vmul.f32 %v9658_v50, %v9459_v43  ;;  %v3792_v11 = vmul.f32 %v9658_v50, %v9463_v24  ;;  %v4890_v19 = vadd.f32 %v4826_v54, %v4370_v22  ;;  %v3335_v33 = vadd.f32 %v3271_v17, %v9666_v51  ;;  %v12406_v51 = vld [vmem:[#allocation317_spill] sm:$0xff]  ;;  %v12410_v22 = vld [vmem:[#allocation67_spill] sm:$0xff] }
 0x3a7   :  { %v4827_v31 = vmul.f32 %v9698_v39, %v4512_v9  ;;  %3606 = vperm.xlu1 %7843, %v3422_v36   ;;  %v4517_v37 = vpop.permute.xlu0 %4516  ;;  %v3853_v15 = vadd.f32 %v3789_v18, %v3332_v10  ;;  %v3855_v42 = vadd.f32 %v3791_v30, %v3334_v53  ;;  %v3273_v36 = vmul.f32 %v9639_v0, %v9402_v35  ;;  %v12409_v30 = vld [vmem:[#allocation318_spill] sm:$0xff] }
 0x3a8   :  { %v4828_v20 = vmul.f32 %v9698_v39, %v4517_v37  ;;  %v4310_v43 = vmul.f32 %v9675_v26, %v12404_v45  ;;  %v4312_v24 = vmul.f32 %v9675_v26, %v12405_v7  ;;  %v3274_v48 = vmul.f32 %v9639_v0, %v12406_v51 }
 0x3a9   :  { %v4891_v56 = vadd.f32 %v4827_v31, %v4371_v46  ;;  %4121 = vperm.xlu0 %7842, %v3941_v57   ;;  %v4373_v10 = vadd.f32 %v4309_v52, %v3853_v15  ;;  %v4375_v62 = vadd.f32 %v4311_v58, %v3855_v42  ;;  %v3336_v35 = vadd.f32 %v3272_v44, %v9679_v61  ;;  %v3944_v31 = vld [vmem:[#allocation2 + $0x1a1] sm:$0xff]  ;;  %v12412_v58 = vld [vmem:[#allocation339_spill] sm:$0xff]  ;;  %v9782_v42 = vld [vmem:[%s11964_s2] ss:$0 sm:$0xff] }
 0x3aa   :  { %v4522_v12 = vpop.permute.xlu1 %4521  ;;  %v4892_v28 = vadd.f32 %v4828_v20, %v4372_v60  ;;  %v3854_v9 = vadd.f32 %v3790_v5, %v3333_v38  ;;  %v3856_v29 = vadd.f32 %v3792_v11, %v3335_v33  ;;  %v3793_v17 = vmul.f32 %v9658_v50, %v12407_v49  ;;  %v12411_v44 = vld [vmem:[#allocation337_spill] sm:$0xff]  ;;  %v2905_v49 = vld [vmem:[#allocation2 + $0x1d2] sm:$0xff] }
 0x3ab   :  { %v4953_v63 = vmax.f32 %v4889_v59, %v4891_v56  ;;  %3616 = vperm.xlu1 %7843, %v3424_v23   ;;  %v4829_v21 = vmul.f32 %v9698_v39, %v4522_v12  ;;  %v4527_v1 = vpop.permute.xlu0 %4526  ;;  %v3795_v27 = vmul.f32 %v9658_v50, %v12408_v16  ;;  %v3275_v59 = vmul.f32 %v9639_v0, %v12409_v30 }
 0x3ac   :  { %v4954_v34 = vmax.f32 %v4890_v19, %v4892_v28  ;;  %v4830_v46 = vmul.f32 %v9698_v39, %v4527_v1  ;;  %v4374_v61 = vadd.f32 %v4310_v43, %v3854_v9  ;;  %v4376_v38 = vadd.f32 %v4312_v24, %v3856_v29  ;;  %v2904_v9 = vld [vmem:[#allocation2 + $0x1ca] sm:$0xff] }
 0x3ad   :  { %4986 = vst.msk [vmem:[#allocation3] sm:$0xff] %vm4985_vm2, %v4953_v63  ;;  %v4893_v54 = vadd.f32 %v4829_v21, %v4373_v10  ;;  %4131 = vperm.xlu0 %7842, %v3943_v13   ;;  %v3338_v53 = vadd.f32 %v3274_v48, %v9691_v14  ;;  %v4313_v60 = vmul.f32 %v9675_v26, %v12410_v22  ;;  %v9813_v22 = vld [vmem:[#allocation2 + $0x202] sm:$0xff] }
 0x3ae   :  { %v4532_v25 = vpop.permute.xlu1 %4531  ;;  %4987 = vst.msk [vmem:[#allocation3 + $0x8] sm:$0xff] %vm4985_vm2, %v4954_v34  ;;  %v4315_v20 = vmul.f32 %v9675_v26, %v9660_v4  ;;  %v3794_v52 = vmul.f32 %v9658_v50, %v12411_v44  ;;  %v3796_v63 = vmul.f32 %v9658_v50, %v12412_v58  ;;  %v4894_v57 = vadd.f32 %v4830_v46, %v4374_v61  ;;  %v12414_v44 = vld [vmem:[#allocation335_spill] sm:$0xff]  ;;  %v12415_v58 = vld [vmem:[#allocation13_spill] sm:$0xff] }
 0x3af   :  { %v4831_v41 = vmul.f32 %v9698_v39, %v4532_v25  ;;  %4126 = vperm.xlu1 %7843, %v3942_v2   ;;  %v4537_v18 = vpop.permute.xlu0 %4536  ;;  %v3337_v11 = vadd.f32 %v3273_v36, %v9689_v47  ;;  %v3857_v19 = vadd.f32 %v3793_v17, %v3336_v35  ;;  %v3859_v14 = vadd.f32 %v3795_v27, %v3338_v53  ;;  %v4464_v25 = vld [vmem:[#allocation2 + $0x1a2] sm:$0xff] }
 0x3b0   :  { %v4832_v56 = vmul.f32 %v9698_v39, %v4537_v18  ;;  %v3339_v4 = vadd.f32 %v3275_v59, %v9708_v3  ;;  %v4314_v33 = vmul.f32 %v9675_v26, %v9647_v40  ;;  %v4316_v15 = vmul.f32 %v9675_v26, %v9687_v6  ;;  %v4463_v40 = vld [vmem:[#allocation2 + $0x19a] sm:$0xff]  ;;  %v9799_v18 = vld [vmem:[#allocation2 + $0x1e2] sm:$0xff]  ;;  %v9802_v59 = vld [vmem:[#allocation2 + $0x1ea] sm:$0xff] }
 0x3b1   :  { %v4895_v23 = vadd.f32 %v4831_v41, %v4375_v62  ;;  %4641 = vperm.xlu0 %7842, %v9664_v32   ;;  %v4377_v1 = vadd.f32 %v4313_v60, %v3857_v19  ;;  %v4379_v36 = vadd.f32 %v4315_v20, %v3859_v14  ;;  %v3858_v7 = vadd.f32 %v3794_v52, %v3337_v11  ;;  %v5194_v60 = vld [vmem:[#allocation4] sm:$0xff]  ;;  %v12417_v11 = vld [vmem:[#allocation68_spill] sm:$0xff] }
 0x3b2   :  { %v4542_v37 = vpop.permute.xlu1 %4541  ;;  %v4896_v5 = vadd.f32 %v4832_v56, %v4376_v38  ;;  %v3860_v6 = vadd.f32 %v3796_v63, %v3339_v4  ;;  %v677_v63 = vmul.f32 %v12414_v44, %v12415_v58  ;;  %v12418_v19 = vld [vmem:[#allocation336_spill] sm:$0xff]  ;;  %v12419_v4 = vld [vmem:[#allocation69_spill] sm:$0xff] }
 0x3b3   :  { %v4955_v12 = vmax.f32 %v4893_v54, %v4895_v23  ;;  %4136 = vperm.xlu1 %7843, %v3944_v31   ;;  %v4833_v28 = vmul.f32 %v9698_v39, %v4542_v37  ;;  %v4547_v2 = vpop.permute.xlu0 %4546  ;;  %v4378_v10 = vadd.f32 %v4314_v33, %v3858_v7  ;;  %v9811_v37 = vld [vmem:[#allocation2 + $0x1fa] sm:$0xff]  ;;  %v1196_v14 = vmul.f32 %v12418_v19, %v12417_v11  ;;  %v12431_v58 = vld [vmem:[#allocation132_spill] sm:$0xff] }
 0x3b4   :  { %v4956_v47 = vmax.f32 %v4894_v57, %v4896_v5  ;;  %v4834_v34 = vmul.f32 %v9698_v39, %v4547_v2  ;;  %v4380_v62 = vadd.f32 %v4316_v15, %v3860_v6  ;;  %v12416_v57 = vld [vmem:[#allocation14_spill] sm:$0xff]  ;;  %v1197_v33 = vmul.f32 %v12418_v19, %v12419_v4  ;;  %v12423_v6 = vld [vmem:[#allocation16_spill] sm:$0xff]  ;;  %v12433_v4 = vld [vmem:[#allocation133_spill] sm:$0xff] }
 0x3b5   :  { %4988 = vst.msk [vmem:[#allocation3 + $0x10] sm:$0xff] %vm4985_vm2, %v4955_v12  ;;  %v5018_v45 = vld [vmem:[#allocation3] ss:$2 sm:$0xff]  ;;  %v5050_v43 = vld [vmem:[#allocation3 + $0x1] ss:$2 sm:$0xff]  ;;  %v4897_v51 = vadd.f32 %v4833_v28, %v4377_v1  ;;  %4651 = vperm.xlu0 %7842, %v4463_v40   ;;  %v12413_v12 = vld [vmem:[#allocation12_spill] sm:$0xff]  ;;  %v678_v5 = vmul.f32 %v12414_v44, %v12416_v57 }
 0x3b6   :  { %v4552_v21 = vpop.permute.xlu1 %4551  ;;  %v5081_v24 = vmax.f32 %v5018_v45, %v5050_v43  ;;  %4989 = vst.msk [vmem:[#allocation3 + $0x18] sm:$0xff] %vm4985_vm2, %v4956_v47  ;;  %v4898_v46 = vadd.f32 %v4834_v34, %v4378_v10  ;;  %v676_v52 = vmul.f32 %v12414_v44, %v12413_v12  ;;  %v12420_v15 = vld [vmem:[#allocation70_spill] sm:$0xff]  ;;  %v9836_v43 = vld [vmem:[#allocation2 + $0x212] sm:$0xff]  ;;  %v12422_v40 = vld [vmem:[#allocation15_spill] sm:$0xff] }
 0x3b7   :  { %v4835_v3 = vmul.f32 %v9698_v39, %v4552_v21  ;;  %4646 = vperm.xlu1 %7843, %v9677_v55   ;;  %v4557_v32 = vpop.permute.xlu0 %4556  ;;  %v1198_v47 = vmul.f32 %v12418_v19, %v12420_v15  ;;  %v12421_v21 = vld [vmem:[#allocation71_spill] sm:$0xff]  ;;  %v679_v7 = vmul.f32 %v12414_v44, %v12422_v40  ;;  %v12424_v34 = vld [vmem:[#allocation72_spill] sm:$0xff]  ;;  %v12437_v40 = vld [vmem:[#allocation137_spill] sm:$0xff] }
 0x3b8   :  { %v5104_v41 = vadd.f32 %v9782_v42, %v5081_v24  ;;  %v4836_v13 = vmul.f32 %v9698_v39, %v4557_v32  ;;  %v1199_v1 = vmul.f32 %v12418_v19, %v12421_v21  ;;  %v680_v24 = vmul.f32 %v12414_v44, %v12423_v6  ;;  %v12425_v32 = vld [vmem:[#allocation17_spill] sm:$0xff]  ;;  %v12432_v57 = vld [vmem:[#allocation340_spill] sm:$0xff]  ;;  %v12438_v6 = vld [vmem:[#allocation138_spill] sm:$0xff] }
 0x3b9   :  { %v4899_v48 = vadd.f32 %v4835_v3, %v4379_v36  ;;  %3100 = vperm.xlu0 %7842, %v2904_v9   ;;  %v681_v10 = vmul.f32 %v12414_v44, %v12425_v32  ;;  %v12428_v9 = vld [vmem:[#allocation75_spill] sm:$0xff]  ;;  %v1716_v11 = vmul.f32 %v12432_v57, %v12431_v58  ;;  %v9874_v21 = vld [vmem:[#allocation2 + $0x232] sm:$0xff] }
 0x3ba   :  { %v9791_v35 = vpop.permute.xlu1 %3521  ;;  %v5120_v29 = vmax.f32 %v5104_v41, 0.0  ;;  %v4900_v31 = vadd.f32 %v4836_v13, %v4380_v62  ;;  %v12426_v62 = vld [vmem:[#allocation73_spill] sm:$0xff]  ;;  %v12427_v13 = vld [vmem:[#allocation74_spill] sm:$0xff]  ;;  %v1263_v12 = vadd.f32 %v1199_v1, %v679_v7  ;;  %v1721_v7 = vmul.f32 %v12432_v57, %v12437_v40 }
 0x3bb   :  { %v4957_v55 = vmax.f32 %v4897_v51, %v4899_v48  ;;  %4656 = vperm.xlu1 %7843, %v4464_v25   ;;  %v9794_v17 = vpop.permute.xlu0 %3526  ;;  %v1200_v25 = vmul.f32 %v12418_v19, %v12424_v34  ;;  %v9844_v48 = vld [vmem:[#allocation2 + $0x21a] sm:$0xff]  ;;  %v1201_v41 = vmul.f32 %v12418_v19, %v12426_v62  ;;  %v12439_v34 = vld [vmem:[#allocation139_spill] sm:$0xff]  ;;  %v12449_v40 = vld [vmem:[#allocation202_spill] sm:$0xff] }
 0x3bc   :  { %5178 = vst.msk [vmem:[#allocation4 + $0x11] sm:$0xff] %vm4985_vm2, %v5120_v29  ;;  %v4958_v16 = vmax.f32 %v4898_v46, %v4900_v31  ;;  %v1203_v29 = vmul.f32 %v12418_v19, %v12428_v9  ;;  %v12429_v31 = vld [vmem:[#allocation18_spill] sm:$0xff]  ;;  %v12442_v9 = vld [vmem:[#allocation197_spill] sm:$0xff] }
 0x3bd   :  { %4990 = vst.msk [vmem:[#allocation3 + $0x20] sm:$0xff] %vm4985_vm2, %v4957_v55  ;;  %v5020_v54 = vld [vmem:[#allocation3 + $0x10] ss:$2 sm:$0xff]  ;;  %v5052_v23 = vld [vmem:[#allocation3 + $0x11] ss:$2 sm:$0xff]  ;;  %3110 = vperm.xlu0 %7842, %v9799_v18   ;;  %v1202_v55 = vmul.f32 %v12418_v19, %v12427_v13 }
 0x3be   :  { %v9797_v27 = vpop.permute.xlu1 %3531  ;;  %v5082_v30 = vmax.f32 %v5020_v54, %v5052_v23  ;;  %4991 = vst.msk [vmem:[#allocation3 + $0x28] sm:$0xff] %vm4985_vm2, %v4958_v16  ;;  %v12430_v16 = vld [vmem:[#allocation19_spill] sm:$0xff]  ;;  %v1260_v23 = vadd.f32 %v1196_v14, %v676_v52  ;;  %v12434_v52 = vld [vmem:[#allocation134_spill] sm:$0xff]  ;;  %v12441_v13 = vld [vmem:[#allocation64_spill] sm:$0xff] }
 0x3bf   :  { %3105 = vperm.xlu1 %7843, %v2905_v49   ;;  %v9804_v61 = vpop.permute.xlu0 %3536  ;;  %v682_v49 = vmul.f32 %v12414_v44, %v12429_v31  ;;  %v683_v54 = vmul.f32 %v12414_v44, %v12430_v16  ;;  %v9868_v19 = vld [vmem:[#allocation2 + $0x22a] sm:$0xff]  ;;  %v1717_v44 = vmul.f32 %v12432_v57, %v12433_v4  ;;  %v1718_v14 = vmul.f32 %v12432_v57, %v12434_v52  ;;  %v9897_v31 = vld [vmem:[#allocation2 + $0x242] sm:$0xff]  ;;  %v12447_v52 = vld [vmem:[#allocation200_spill] sm:$0xff] }
 0x3c0   :  { %v5105_v38 = vadd.f32 %v9782_v42, %v5082_v30  ;;  %v1780_v62 = vadd.f32 %v1716_v11, %v1260_v23  ;;  %12443 = vst [vmem:[#allocation120_spill] sm:$0xff] %v9897_v31  ;;  %v9903_v23 = vld [vmem:[#allocation2 + $0x24a] sm:$0xff] }
 0x3c1   :  { %3120 = vperm.xlu0 %7842, %v9811_v37   ;;  %12446 = vst [vmem:[#allocation121_spill] sm:$0xff] %v9903_v23 }
 0x3c2   :  { %v9807_v56 = vpop.permute.xlu1 %3541  ;;  %v5121_v53 = vmax.f32 %v5105_v38, 0.0 }
 0x3c3   :  { %3115 = vperm.xlu1 %7843, %v9802_v59   ;;  %v9815_v20 = vpop.permute.xlu0 %3546  ;;  %v5356_v2 = vld [vmem:[#allocation4 + $0x10] sm:$0xff] }
 0x3c4   :  { %5179 = vst.msk [vmem:[#allocation4 + $0x21] sm:$0xff] %vm4985_vm2, %v5121_v53  ;;  %v5210_v3 = vpack.c.bf16 %v5356_v2, %v5194_v60  ;;  %v1261_v53 = vadd.f32 %v1197_v33, %v677_v63  ;;  %v1262_v60 = vadd.f32 %v1198_v47, %v678_v5  ;;  %v1264_v2 = vadd.f32 %v1200_v25, %v680_v24  ;;  %v12435_v47 = vld [vmem:[#allocation135_spill] sm:$0xff] }
 0x3c5   :  { %v5022_v36 = vld [vmem:[#allocation3 + $0x20] ss:$2 sm:$0xff]  ;;  %v5054_v45 = vld [vmem:[#allocation3 + $0x21] ss:$2 sm:$0xff]  ;;  %3130 = vperm.xlu0 %7842, %v9836_v43   ;;  %v1265_v63 = vadd.f32 %v1201_v41, %v681_v10  ;;  %v1266_v5 = vadd.f32 %v1202_v55, %v682_v49  ;;  %v1267_v33 = vadd.f32 %v1203_v29, %v683_v54  ;;  %v1719_v1 = vmul.f32 %v12432_v57, %v12435_v47  ;;  %v5227_v32 = vld [vmem:[#allocation4 + $0x11] sm:$0xff] }
 0x3c6   :  { %v9826_v28 = vpop.permute.xlu1 %3551  ;;  %v5083_v51 = vmax.f32 %v5022_v36, %v5054_v45  ;;  %5218 = vst.msk [vmem:[#allocation5] sm:$0xff] %vm4985_vm2, %v5210_v3  ;;  %v12436_v45 = vld [vmem:[#allocation136_spill] sm:$0xff]  ;;  %v1722_v24 = vmul.f32 %v12432_v57, %v12438_v6  ;;  %v1723_v25 = vmul.f32 %v12432_v57, %v12439_v34  ;;  %v2237_v29 = vmul.f32 %v12441_v13, %v12442_v9  ;;  %v12448_v47 = vld [vmem:[#allocation201_spill] sm:$0xff] }
 0x3c7   :  { %3125 = vperm.xlu1 %7843, %v9813_v22   ;;  %v9854_v46 = vpop.permute.xlu0 %3556  ;;  %v1720_v3 = vmul.f32 %v12432_v57, %v12436_v45  ;;  %v12440_v41 = vld [vmem:[#allocation196_spill] sm:$0xff]  ;;  %v1781_v16 = vadd.f32 %v1717_v44, %v1261_v53  ;;  %v1782_v54 = vadd.f32 %v1718_v14, %v1262_v60  ;;  %v12445_v57 = vld [vmem:[#allocation199_spill] sm:$0xff]  ;;  %v1783_v11 = vadd.f32 %v1719_v1, %v1263_v12 }
 0x3c8   :  { %v5106_v30 = vadd.f32 %v9782_v42, %v5083_v51  ;;  %v2236_v55 = vmul.f32 %v12441_v13, %v12440_v41  ;;  %v2239_v4 = vmul.f32 %v12441_v13, %v12445_v57  ;;  %v2241_v45 = vmul.f32 %v12441_v13, %v12448_v47  ;;  %v12451_v9 = vld [vmem:[#allocation260_spill] sm:$0xff]  ;;  %v3425_v57 = vld [vmem:[#allocation2 + $0x1e0] sm:$0xff] }
 0x3c9   :  { %3140 = vperm.xlu0 %7842, %v9868_v19   ;;  %v2242_v6 = vmul.f32 %v12441_v13, %v12449_v40  ;;  %v1784_v60 = vadd.f32 %v1720_v3, %v1264_v2  ;;  %v1785_v44 = vadd.f32 %v1721_v7, %v1265_v63  ;;  %v1786_v14 = vadd.f32 %v1722_v24, %v1266_v5  ;;  %v12452_v63 = vld [vmem:[#allocation261_spill] sm:$0xff]  ;;  %v3426_v7 = vld [vmem:[#allocation2 + $0x1e8] sm:$0xff]  ;;  %v12455_v47 = vld [vmem:[#allocation264_spill] sm:$0xff] }
 0x3ca   :  { %v9862_v38 = vpop.permute.xlu1 %4041  ;;  %v5122_v15 = vmax.f32 %v5106_v30, 0.0  ;;  %v12444_v30 = vld [vmem:[#allocation198_spill] sm:$0xff]  ;;  %v1787_v34 = vadd.f32 %v1723_v25, %v1267_v33  ;;  %v2300_v12 = vadd.f32 %v2236_v55, %v1780_v62  ;;  %v2301_v1 = vadd.f32 %v2237_v29, %v1781_v16  ;;  %v12454_v55 = vld [vmem:[#allocation263_spill] sm:$0xff] }
 0x3cb   :  { %3135 = vperm.xlu1 %7843, %v9844_v48   ;;  %v9878_v36 = vpop.permute.xlu0 %4046  ;;  %v5582_v10 = vld [vmem:[#allocation4 + $0x21] sm:$0xff]  ;;  %v2238_v58 = vmul.f32 %v12441_v13, %v12444_v30  ;;  %v2756_v30 = vmul.f32 %v9606_v8, %v12451_v9  ;;  %v2303_v2 = vadd.f32 %v2239_v4, %v1783_v11  ;;  %v2757_v5 = vmul.f32 %v9606_v8, %v12452_v63  ;;  %v3427_v63 = vld [vmem:[#allocation2 + $0x1f8] sm:$0xff] }
 0x3cc   :  { %5180 = vst.msk [vmem:[#allocation4 + $0x31] sm:$0xff] %vm4985_vm2, %v5122_v15  ;;  %v5437_v49 = vpack.c.bf16 %v5582_v10, %v5227_v32  ;;  %v2240_v15 = vmul.f32 %v12441_v13, %v12447_v52  ;;  %v12450_v10 = vld [vmem:[#allocation203_spill] sm:$0xff]  ;;  %v12453_v33 = vld [vmem:[#allocation262_spill] sm:$0xff]  ;;  %v2305_v25 = vadd.f32 %v2241_v45, %v1785_v44  ;;  %v2306_v62 = vadd.f32 %v2242_v6, %v1786_v14  ;;  %v12459_v14 = vld [vmem:[#allocation321_spill] sm:$0xff] }
 0x3cd   :  { %3150 = vperm.xlu0 %7842, %v9897_v31   ;;  %v2243_v41 = vmul.f32 %v12441_v13, %v12450_v10  ;;  %v2758_v3 = vmul.f32 %v9606_v8, %v12453_v33  ;;  %v2759_v13 = vmul.f32 %v9606_v8, %v12454_v55  ;;  %v5646_v16 = vld [vmem:[#allocation4 + $0x22] sm:$0xff]  ;;  %v2820_v6 = vadd.f32 %v2756_v30, %v2300_v12 }
 0x3ce   :  { %v9889_v51 = vpop.permute.xlu1 %4051  ;;  %5445 = vst.msk [vmem:[#allocation5 + $0x8] sm:$0xff] %vm4985_vm2, %v5437_v49  ;;  %v2302_v49 = vadd.f32 %v2238_v58, %v1782_v54  ;;  %v2304_v24 = vadd.f32 %v2240_v15, %v1784_v60  ;;  %v2760_v54 = vmul.f32 %v9606_v8, %v12455_v47  ;;  %v12456_v58 = vld [vmem:[#allocation265_spill] sm:$0xff]  ;;  %v12457_v11 = vld [vmem:[#allocation266_spill] sm:$0xff]  ;;  %v12458_v60 = vld [vmem:[#allocation319_spill] sm:$0xff]  ;;  %v3278_v9 = vmul.f32 %v9639_v0, %v12459_v14 }
 0x3cf   :  { %3145 = vperm.xlu1 %7843, %v9874_v21   ;;  %v9911_v53 = vpop.permute.xlu0 %4056  ;;  %v2761_v4 = vmul.f32 %v9606_v8, %v12456_v58  ;;  %v2762_v40 = vmul.f32 %v9606_v8, %v12457_v11  ;;  %v2307_v45 = vadd.f32 %v2243_v41, %v1787_v34  ;;  %v3276_v44 = vmul.f32 %v9639_v0, %v12458_v60  ;;  %v5196_v33 = vld [vmem:[#allocation4 + $0x20] sm:$0xff]  ;;  %v12461_v41 = vld [vmem:[#allocation320_spill] sm:$0xff] }
 0x3d0   :  { %v2821_v47 = vadd.f32 %v2757_v5, %v2301_v1  ;;  %v2822_v58 = vadd.f32 %v2758_v3, %v2302_v49  ;;  %v3428_v31 = vld [vmem:[#allocation2 + $0x200] sm:$0xff]  ;;  %v2823_v12 = vadd.f32 %v2759_v13, %v2303_v2  ;;  %v3277_v30 = vmul.f32 %v9639_v0, %v12461_v41 }
 0x3d1   :  { %3621 = vperm.xlu0 %7842, %v3425_v57   ;;  %v3797_v57 = vmul.f32 %v9658_v50, %v9791_v35  ;;  %v2824_v1 = vadd.f32 %v2760_v54, %v2304_v24  ;;  %v9953_v49 = vadd.f32 %v2761_v4, %v2305_v25  ;;  %v3340_v2 = vadd.f32 %v3276_v44, %v2820_v6  ;;  %v3429_v24 = vld [vmem:[#allocation2 + $0x210] sm:$0xff] }
 0x3d2   :  { %v9914_v32 = vpop.permute.xlu1 %4061  ;;  %v3342_v13 = vadd.f32 %v3278_v9, %v2822_v58  ;;  %v4317_v35 = vmul.f32 %v9675_v26, %v9862_v38  ;;  %v3798_v54 = vmul.f32 %v9658_v50, %v9794_v17  ;;  %v3800_v4 = vmul.f32 %v9658_v50, %v9804_v61  ;;  %v12465_v61 = vld [vmem:[#allocation325_spill] sm:$0xff] }
 0x3d3   :  { %3155 = vperm.xlu1 %7843, %v9903_v23   ;;  %v9928_v29 = vpop.permute.xlu0 %4066  ;;  %v5647_v52 = vld [vmem:[#allocation4 + $0x32] sm:$0xff]  ;;  %v12460_v23 = vld [vmem:[#allocation267_spill] sm:$0xff]  ;;  %v3861_v6 = vadd.f32 %v3797_v57, %v3340_v2  ;;  %v4318_v14 = vmul.f32 %v9675_v26, %v9878_v36  ;;  %v4320_v17 = vmul.f32 %v9675_v26, %v9911_v53  ;;  %v3803_v57 = vmul.f32 %v9658_v50, %v9826_v28 }
 0x3d4   :  { %v5662_v15 = vpack.c.bf16 %v5647_v52, %v5646_v16  ;;  %v5197_v55 = vld [vmem:[#allocation4 + $0x30] sm:$0xff]  ;;  %v2763_v11 = vmul.f32 %v9606_v8, %v12460_v23  ;;  %v2826_v8 = vadd.f32 %v2762_v40, %v2306_v62  ;;  %v12462_v23 = vld [vmem:[#allocation322_spill] sm:$0xff]  ;;  %v3430_v40 = vld [vmem:[#allocation2 + $0x218] sm:$0xff] }
 0x3d5   :  { %v5211_v34 = vpack.c.bf16 %v5197_v55, %v5196_v33  ;;  %v3279_v5 = vmul.f32 %v9639_v0, %v12462_v23  ;;  %3631 = vperm.xlu0 %7842, %v3427_v63   ;;  %v12463_v52 = vld [vmem:[#allocation323_spill] sm:$0xff]  ;;  %v3282_v63 = vmul.f32 %v9639_v0, %v12465_v61  ;;  %v4381_v33 = vadd.f32 %v4317_v35, %v3861_v6 }
 0x3d6   :  { %v9936_v10 = vpop.permute.xlu1 %4071  ;;  %5670 = vst.msk [vmem:[#allocation5 + $0x10] sm:$0xff] %vm4985_vm2, %v5662_v15  ;;  %v2827_v25 = vadd.f32 %v2763_v11, %v2307_v45  ;;  %v3280_v62 = vmul.f32 %v9639_v0, %v12463_v52  ;;  %v3341_v15 = vadd.f32 %v3277_v30, %v2821_v47  ;;  %v3431_v11 = vld [vmem:[#allocation2 + $0x228] sm:$0xff]  ;;  %v3432_v53 = vld [vmem:[#allocation2 + $0x230] sm:$0xff]  ;;  %v3801_v30 = vmul.f32 %v9658_v50, %v9807_v56 }
 0x3d7   :  { %3626 = vperm.xlu1 %7843, %v3426_v7   ;;  %v3799_v7 = vmul.f32 %v9658_v50, %v9797_v27  ;;  %v9951_v16 = vpop.permute.xlu0 %4076  ;;  %5219 = vst.msk [vmem:[#allocation5 + $0x18] sm:$0xff] %vm4985_vm2, %v5211_v34  ;;  %v4319_v27 = vmul.f32 %v9675_v26, %v9889_v51  ;;  %v3343_v51 = vadd.f32 %v3279_v5, %v2823_v12 }
 0x3d8   :  { %v3344_v34 = vadd.f32 %v3280_v62, %v2824_v1  ;;  %v3862_v12 = vadd.f32 %v3798_v54, %v3341_v15  ;;  %v4321_v52 = vmul.f32 %v9675_v26, %v9914_v32  ;;  %v4323_v56 = vmul.f32 %v9675_v26, %v9936_v10  ;;  %v3433_v62 = vld [vmem:[#allocation2 + $0x240] sm:$0xff]  ;;  %v3434_v15 = vld [vmem:[#allocation2 + $0x248] sm:$0xff] }
 0x3d9   :  { %v3863_v60 = vadd.f32 %v3799_v7, %v3342_v13  ;;  %3641 = vperm.xlu0 %7842, %v3429_v24   ;;  %v3864_v41 = vadd.f32 %v3800_v4, %v3343_v51  ;;  %v3346_v24 = vadd.f32 %v3282_v63, %v2826_v8  ;;  %v3802_v54 = vmul.f32 %v9658_v50, %v9815_v20 }
 0x3da   :  { %v4562_v3 = vpop.permute.xlu1 %4561  ;;  %v4382_v1 = vadd.f32 %v4318_v14, %v3862_v12  ;;  %v3865_v6 = vadd.f32 %v3801_v30, %v3344_v34  ;;  %v4324_v20 = vmul.f32 %v9675_v26, %v9951_v16  ;;  %v3946_v12 = vld [vmem:[#allocation2 + $0x1e9] sm:$0xff] }
 0x3db   :  { %3636 = vperm.xlu1 %7843, %v3428_v31   ;;  %v4837_v38 = vmul.f32 %v9698_v39, %v4562_v3  ;;  %v4567_v44 = vpop.permute.xlu0 %4566  ;;  %v12464_v31 = vld [vmem:[#allocation324_spill] sm:$0xff]  ;;  %v4383_v55 = vadd.f32 %v4319_v27, %v3863_v60  ;;  %v12466_v3 = vld [vmem:[#allocation326_spill] sm:$0xff]  ;;  %v4384_v13 = vadd.f32 %v4320_v17, %v3864_v41  ;;  %v3867_v60 = vadd.f32 %v3803_v57, %v3346_v24 }
 0x3dc   :  { %v3281_v45 = vmul.f32 %v9639_v0, %v12464_v31  ;;  %v4838_v36 = vmul.f32 %v9698_v39, %v4567_v44  ;;  %v3283_v2 = vmul.f32 %v9639_v0, %v12466_v3  ;;  %v3804_v0 = vmul.f32 %v9658_v50, %v9854_v46 }
 0x3dd   :  { %v5680_v58 = vld [vmem:[#allocation5 + $0x10] sm:$0xff]  ;;  %v4901_v7 = vadd.f32 %v4837_v38, %v4381_v33  ;;  %3651 = vperm.xlu0 %7842, %v3431_v11   ;;  %v4322_v44 = vmul.f32 %v9675_v26, %v9928_v29  ;;  %v4385_v51 = vadd.f32 %v4321_v52, %v3865_v6  ;;  %v4387_v31 = vadd.f32 %v4323_v56, %v3867_v60  ;;  %v10027_v52 = vld [vmem:[%s11963_s1 + $0x1] ss:$0 sm:$0xff]  ;;  %v10038_v6 = vld [vmem:[%s11963_s1] ss:$0 sm:$0xff] }
 0x3de   :  { %v4572_v9 = vpop.permute.xlu1 %4571  ;;  %7798 = vmatprep.mubr.msk.bf16.mxu1 %vm4985_vm2, %v5680_v58  ;;  %v4902_v4 = vadd.f32 %v4838_v36, %v4382_v1  ;;  %v3345_v8 = vadd.f32 %v3281_v45, %v9953_v49  ;;  %v3347_v38 = vadd.f32 %v3283_v2, %v2827_v25  ;;  %v3435_v45 = vld [vmem:[#allocation2 + $0x258] sm:$0xff]  ;;  %v3945_v58 = vld [vmem:[#allocation2 + $0x1e1] sm:$0xff] }
 0x3df   :  { %v4839_v47 = vmul.f32 %v9698_v39, %v4572_v9  ;;  %3646 = vperm.xlu1 %7843, %v3430_v40   ;;  %v4577_v5 = vpop.permute.xlu0 %4576  ;;  %v3436_v9 = vld [vmem:[#allocation2 + $0x260] sm:$0xff]  ;;  %v3949_v1 = vld [vmem:[#allocation2 + $0x211] sm:$0xff] }
 0x3e0   :  { %v4840_v35 = vmul.f32 %v9698_v39, %v4577_v5  ;;  %v3866_v14 = vadd.f32 %v3802_v54, %v3345_v8  ;;  %v3868_v17 = vadd.f32 %v3804_v0, %v3347_v38  ;;  %v12467_v56 = vld [vmem:[#allocation76_spill] sm:$0xff]  ;;  %v12469_v0 = vld [vmem:[#allocation78_spill] sm:$0xff] }
 0x3e1   :  { %v4903_v23 = vadd.f32 %v4839_v47, %v4383_v55  ;;  %3661 = vperm.xlu0 %7842, %v3433_v62   ;;  %v12468_v62 = vld [vmem:[#allocation77_spill] sm:$0xff]  ;;  %v3951_v8 = vld [vmem:[#allocation2 + $0x229] sm:$0xff]  ;;  %v12470_v60 = vld [vmem:[#allocation20_spill] sm:$0xff] }
 0x3e2   :  { %v4582_v27 = vpop.permute.xlu1 %4581  ;;  %v4904_v40 = vadd.f32 %v4840_v35, %v4384_v13  ;;  %v4386_v26 = vadd.f32 %v4322_v44, %v3866_v14  ;;  %v4388_v16 = vadd.f32 %v4324_v20, %v3868_v17  ;;  %v3950_v35 = vld [vmem:[#allocation2 + $0x219] sm:$0xff]  ;;  %v1205_v54 = vmul.f32 %v10027_v52, %v12468_v62  ;;  %v3952_v38 = vld [vmem:[#allocation2 + $0x231] sm:$0xff] }
 0x3e3   :  { %v4959_v28 = vmax.f32 %v4901_v7, %v4903_v23  ;;  %3656 = vperm.xlu1 %7843, %v3432_v53   ;;  %v4841_v32 = vmul.f32 %v9698_v39, %v4582_v27  ;;  %v4587_v10 = vpop.permute.xlu0 %4586  ;;  %v3948_v23 = vld [vmem:[#allocation2 + $0x201] sm:$0xff]  ;;  %v12475_v17 = vld [vmem:[#allocation24_spill] sm:$0xff] }
 0x3e4   :  { %v4960_v50 = vmax.f32 %v4902_v4, %v4904_v40  ;;  %v4842_v25 = vmul.f32 %v9698_v39, %v4587_v10  ;;  %v1206_v4 = vmul.f32 %v10027_v52, %v12469_v0  ;;  %v12471_v44 = vld [vmem:[#allocation21_spill] sm:$0xff] }
 0x3e5   :  { %4992 = vst.msk [vmem:[#allocation3 + $0x30] sm:$0xff] %vm4985_vm2, %v4959_v28  ;;  %v4905_v29 = vadd.f32 %v4841_v32, %v4385_v51  ;;  %3671 = vperm.xlu0 %7842, %v3435_v45   ;;  %v1204_v28 = vmul.f32 %v10027_v52, %v12467_v56  ;;  %v684_v32 = vmul.f32 %v10038_v6, %v12470_v60  ;;  %v12473_v51 = vld [vmem:[#allocation23_spill] sm:$0xff]  ;;  %v10074_v56 = vld [vmem:[%s11963_s1 + $0x2] ss:$0 sm:$0xff] }
 0x3e6   :  { %v4592_v46 = vpop.permute.xlu1 %4591  ;;  %4993 = vst.msk [vmem:[#allocation3 + $0x38] sm:$0xff] %vm4985_vm2, %v4960_v50  ;;  %v4906_v11 = vadd.f32 %v4842_v25, %v4386_v26  ;;  %v685_v20 = vmul.f32 %v10038_v6, %v12471_v44  ;;  %v12472_v50 = vld [vmem:[#allocation22_spill] sm:$0xff]  ;;  %v688_v25 = vmul.f32 %v10038_v6, %v12475_v17 }
 0x3e7   :  { %v4843_v49 = vmul.f32 %v9698_v39, %v4592_v46  ;;  %3666 = vperm.xlu1 %7843, %v3434_v15   ;;  %v4597_v63 = vpop.permute.xlu0 %4596  ;;  %v686_v46 = vmul.f32 %v10038_v6, %v12472_v50  ;;  %v10100_v17 = vld [vmem:[%s11963_s1 + $0x3] ss:$0 sm:$0xff] }
 0x3e8   :  { %v4844_v33 = vmul.f32 %v9698_v39, %v4597_v63  ;;  %v3947_v39 = vld [vmem:[#allocation2 + $0x1f9] sm:$0xff] }
 0x3e9   :  { %v4907_v61 = vadd.f32 %v4843_v49, %v4387_v31  ;;  %4141 = vperm.xlu0 %7842, %v3945_v58   ;;  %v687_v31 = vmul.f32 %v10038_v6, %v12473_v51  ;;  %v12474_v49 = vld [vmem:[#allocation79_spill] sm:$0xff]  ;;  %v1268_v58 = vadd.f32 %v1204_v28, %v684_v32  ;;  %v12483_v28 = vld [vmem:[#allocation140_spill] sm:$0xff]  ;;  %v12489_v51 = vld [vmem:[#allocation146_spill] sm:$0xff] }
 0x3ea   :  { %v10006_v55 = vpop.permute.xlu1 %3075  ;;  %v4908_v34 = vadd.f32 %v4844_v33, %v4388_v16  ;;  %v1207_v45 = vmul.f32 %v10027_v52, %v12474_v49  ;;  %v12478_v33 = vld [vmem:[#allocation27_spill] sm:$0xff]  ;;  %v1724_v62 = vmul.f32 %v10074_v56, %v12483_v28  ;;  %v12487_v32 = vld [vmem:[#allocation144_spill] sm:$0xff] }
 0x3eb   :  { %v4961_v47 = vmax.f32 %v4905_v29, %v4907_v61  ;;  %3676 = vperm.xlu1 %7843, %v3436_v9   ;;  %v10009_v41 = vpop.permute.xlu0 %3561  ;;  %v12476_v9 = vld [vmem:[#allocation25_spill] sm:$0xff]  ;;  %v12477_v61 = vld [vmem:[#allocation26_spill] sm:$0xff]  ;;  %v12490_v49 = vld [vmem:[#allocation147_spill] sm:$0xff] }
 0x3ec   :  { %v4962_v36 = vmax.f32 %v4906_v11, %v4908_v34  ;;  %v689_v29 = vmul.f32 %v10038_v6, %v12476_v9  ;;  %v690_v63 = vmul.f32 %v10038_v6, %v12477_v61  ;;  %v1269_v11 = vadd.f32 %v1205_v54, %v685_v20  ;;  %v12484_v54 = vld [vmem:[#allocation141_spill] sm:$0xff]  ;;  %v12491_v9 = vld [vmem:[#allocation204_spill] sm:$0xff] }
 0x3ed   :  { %4994 = vst.msk [vmem:[#allocation3 + $0x40] sm:$0xff] %vm4985_vm2, %v4961_v47  ;;  %v5024_v30 = vld [vmem:[#allocation3 + $0x30] ss:$2 sm:$0xff]  ;;  %v5056_v57 = vld [vmem:[#allocation3 + $0x31] ss:$2 sm:$0xff]  ;;  %4151 = vperm.xlu0 %7842, %v3947_v39   ;;  %v691_v47 = vmul.f32 %v10038_v6, %v12478_v33  ;;  %v1270_v34 = vadd.f32 %v1206_v4, %v686_v46  ;;  %v1725_v0 = vmul.f32 %v10074_v56, %v12484_v54 }
 0x3ee   :  { %v10011_v53 = vpop.permute.xlu1 %3566  ;;  %v5084_v7 = vmax.f32 %v5024_v30, %v5056_v57  ;;  %4995 = vst.msk [vmem:[#allocation3 + $0x48] sm:$0xff] %vm4985_vm2, %v4962_v36  ;;  %v12479_v36 = vld [vmem:[#allocation80_spill] sm:$0xff]  ;;  %v12480_v57 = vld [vmem:[#allocation81_spill] sm:$0xff]  ;;  %v2244_v61 = vmul.f32 %v10100_v17, %v12491_v9  ;;  %v1788_v54 = vadd.f32 %v1724_v62, %v1268_v58 }
 0x3ef   :  { %4146 = vperm.xlu1 %7843, %v3946_v12   ;;  %v10014_v5 = vpop.permute.xlu0 %3571  ;;  %v3953_v12 = vld [vmem:[#allocation2 + $0x241] sm:$0xff]  ;;  %v1208_v30 = vmul.f32 %v10027_v52, %v12479_v36  ;;  %v1209_v39 = vmul.f32 %v10027_v52, %v12480_v57  ;;  %v5423_v46 = vld [vmem:[#allocation4 + $0x31] sm:$0xff] }
 0x3f0   :  { %v5107_v3 = vadd.f32 %v9782_v42, %v5084_v7  ;;  %v12481_v7 = vld [vmem:[#allocation82_spill] sm:$0xff]  ;;  %v12496_v62 = vld [vmem:[#allocation209_spill] sm:$0xff] }
 0x3f1   :  { %4161 = vperm.xlu0 %7842, %v3949_v1   ;;  %v1271_v1 = vadd.f32 %v1207_v45, %v687_v31  ;;  %v1730_v31 = vmul.f32 %v10074_v56, %v12489_v51  ;;  %v1731_v45 = vmul.f32 %v10074_v56, %v12490_v49  ;;  %v1273_v36 = vadd.f32 %v1209_v39, %v689_v29  ;;  %v12499_v49 = vld [vmem:[#allocation268_spill] sm:$0xff]  ;;  %v12500_v9 = vld [vmem:[#allocation269_spill] sm:$0xff] }
 0x3f2   :  { %v10017_v2 = vpop.permute.xlu1 %3576  ;;  %v5123_v13 = vmax.f32 %v5107_v3, 0.0  ;;  %v3954_v3 = vld [vmem:[#allocation2 + $0x249] sm:$0xff]  ;;  %v2308_v39 = vadd.f32 %v2244_v61, %v1788_v54 }
 0x3f3   :  { %4156 = vperm.xlu1 %7843, %v3948_v23   ;;  %v10019_v27 = vpop.permute.xlu0 %3581 }
 0x3f4   :  { %5181 = vst.msk [vmem:[#allocation4 + $0x41] sm:$0xff] %vm4985_vm2, %v5123_v13  ;;  %v12482_v13 = vld [vmem:[#allocation83_spill] sm:$0xff] }
 0x3f5   :  { %v5026_v40 = vld [vmem:[#allocation3 + $0x40] ss:$2 sm:$0xff]  ;;  %v5058_v15 = vld [vmem:[#allocation3 + $0x41] ss:$2 sm:$0xff]  ;;  %4171 = vperm.xlu0 %7842, %v3951_v8  }
 0x3f6   :  { %v10022_v24 = vpop.permute.xlu1 %3586  ;;  %v5085_v10 = vmax.f32 %v5026_v40, %v5058_v15  ;;  %v12485_v40 = vld [vmem:[#allocation142_spill] sm:$0xff]  ;;  %v12486_v8 = vld [vmem:[#allocation143_spill] sm:$0xff] }
 0x3f7   :  { %4166 = vperm.xlu1 %7843, %v3950_v35   ;;  %v10050_v14 = vpop.permute.xlu0 %3591  ;;  %v1211_v35 = vmul.f32 %v10027_v52, %v12482_v13  ;;  %v1726_v15 = vmul.f32 %v10074_v56, %v12485_v40  ;;  %v1727_v60 = vmul.f32 %v10074_v56, %v12486_v8  ;;  %v3956_v13 = vld [vmem:[#allocation2 + $0x261] sm:$0xff]  ;;  %v1789_v40 = vadd.f32 %v1725_v0, %v1269_v11 }
 0x3f8   :  { %v5108_v26 = vadd.f32 %v9782_v42, %v5085_v10  ;;  %v1210_v42 = vmul.f32 %v10027_v52, %v12481_v7  ;;  %v1728_v10 = vmul.f32 %v10074_v56, %v12487_v32  ;;  %v12492_v7 = vld [vmem:[#allocation205_spill] sm:$0xff]  ;;  %v12493_v8 = vld [vmem:[#allocation206_spill] sm:$0xff] }
 0x3f9   :  { %4181 = vperm.xlu0 %7842, %v3953_v12   ;;  %v1272_v12 = vadd.f32 %v1208_v30, %v688_v25  ;;  %v1275_v28 = vadd.f32 %v1211_v35, %v691_v47  ;;  %v2246_v32 = vmul.f32 %v10100_v17, %v12493_v8  ;;  %v1791_v51 = vadd.f32 %v1727_v60, %v1271_v1  ;;  %v12494_v47 = vld [vmem:[#allocation207_spill] sm:$0xff]  ;;  %v12497_v1 = vld [vmem:[#allocation210_spill] sm:$0xff] }
 0x3fa   :  { %v10059_v16 = vpop.permute.xlu1 %3596  ;;  %v5124_v23 = vmax.f32 %v5108_v26, 0.0  ;;  %v3955_v26 = vld [vmem:[#allocation2 + $0x259] sm:$0xff]  ;;  %v1274_v57 = vadd.f32 %v1210_v42, %v690_v63  ;;  %v2247_v58 = vmul.f32 %v10100_v17, %v12494_v47  ;;  %v2250_v0 = vmul.f32 %v10100_v17, %v12497_v1 }
 0x3fb   :  { %4176 = vperm.xlu1 %7843, %v3952_v38   ;;  %v10080_v4 = vpop.permute.xlu0 %4081  ;;  %v12488_v38 = vld [vmem:[#allocation145_spill] sm:$0xff]  ;;  %v1795_v30 = vadd.f32 %v1731_v45, %v1275_v28  ;;  %v12495_v42 = vld [vmem:[#allocation208_spill] sm:$0xff] }
 0x3fc   :  { %v1729_v44 = vmul.f32 %v10074_v56, %v12488_v38  ;;  %5182 = vst.msk [vmem:[#allocation4 + $0x51] sm:$0xff] %vm4985_vm2, %v5124_v23  ;;  %v5584_v50 = vld [vmem:[#allocation4 + $0x41] sm:$0xff]  ;;  %v2245_v23 = vmul.f32 %v10100_v17, %v12492_v7  ;;  %v1794_v63 = vadd.f32 %v1730_v31, %v1274_v57  ;;  %v2248_v35 = vmul.f32 %v10100_v17, %v12495_v42  ;;  %v12502_v57 = vld [vmem:[#allocation272_spill] sm:$0xff] }
 0x3fd   :  { %v5438_v33 = vpack.c.bf16 %v5584_v50, %v5423_v46  ;;  %v1792_v46 = vadd.f32 %v1728_v10, %v1272_v12  ;;  %4191 = vperm.xlu0 %7842, %v3955_v26   ;;  %v12498_v10 = vld [vmem:[#allocation211_spill] sm:$0xff]  ;;  %v10126_v31 = vld [vmem:[%s11963_s1 + $0x4] ss:$0 sm:$0xff]  ;;  %v12506_v42 = vld [vmem:[#allocation277_spill] sm:$0xff] }
 0x3fe   :  { %v10091_v20 = vpop.permute.xlu1 %4086  ;;  %v1793_v25 = vadd.f32 %v1729_v44, %v1273_v36  ;;  %v2309_v11 = vadd.f32 %v2245_v23, %v1789_v40  ;;  %v2251_v44 = vmul.f32 %v10100_v17, %v12498_v10  ;;  %v2764_v45 = vmul.f32 %v10126_v31, %v12499_v49  ;;  %v5520_v12 = vld [vmem:[#allocation4 + $0x40] sm:$0xff]  ;;  %v12508_v49 = vld [vmem:[#allocation279_spill] sm:$0xff] }
 0x3ff   :  { %4186 = vperm.xlu1 %7843, %v3954_v3   ;;  %v10108_v38 = vpop.permute.xlu0 %4091  ;;  %5446 = vst.msk [vmem:[#allocation5 + $0x20] sm:$0xff] %vm4985_vm2, %v5438_v33  ;;  %v1790_v3 = vadd.f32 %v1726_v15, %v1270_v34  ;;  %v2249_v34 = vmul.f32 %v10100_v17, %v12496_v62  ;;  %v5648_v15 = vld [vmem:[#allocation4 + $0x42] sm:$0xff]  ;;  %v2765_v61 = vmul.f32 %v10126_v31, %v12500_v9  ;;  %v12503_v23 = vld [vmem:[#allocation273_spill] sm:$0xff] }
 0x400   :  { %v2766_v7 = vmul.f32 %v10126_v31, %v12502_v57  ;;  %v2769_v62 = vmul.f32 %v10126_v31, %v12506_v42  ;;  %v2312_v10 = vadd.f32 %v2248_v35, %v1792_v46  ;;  %v2770_v9 = vmul.f32 %v10126_v31, %v12508_v49 }
 0x401   :  { %v2310_v60 = vadd.f32 %v2246_v32, %v1790_v3  ;;  %4661 = vperm.xlu0 %7842, %v9799_v18   ;;  %v2311_v32 = vadd.f32 %v2247_v58, %v1791_v51  ;;  %v12505_v3 = vld [vmem:[#allocation276_spill] sm:$0xff]  ;;  %v2313_v18 = vadd.f32 %v2249_v34, %v1793_v25  ;;  %v2315_v51 = vadd.f32 %v2251_v44, %v1795_v30  ;;  %v10168_v25 = vld [vmem:[%s11963_s1 + $0x5] ss:$0 sm:$0xff]  ;;  %v12511_v34 = vld [vmem:[#allocation329_spill] sm:$0xff] }
 0x402   :  { %v10111_v29 = vpop.permute.xlu1 %4096  ;;  %v2768_v47 = vmul.f32 %v10126_v31, %v12505_v3  ;;  %v2828_v58 = vadd.f32 %v2764_v45, %v2308_v39  ;;  %v3286_v30 = vmul.f32 %v10168_v25, %v12511_v34  ;;  %v12512_v44 = vld [vmem:[#allocation328_spill] sm:$0xff]  ;;  %v12513_v45 = vld [vmem:[#allocation330_spill] sm:$0xff] }
 0x403   :  { %4196 = vperm.xlu1 %7843, %v3956_v13   ;;  %v10132_v26 = vpop.permute.xlu0 %4101  ;;  %v5649_v33 = vld [vmem:[#allocation4 + $0x52] sm:$0xff]  ;;  %v2767_v13 = vmul.f32 %v10126_v31, %v12503_v23  ;;  %v12514_v23 = vld [vmem:[#allocation331_spill] sm:$0xff] }
 0x404   :  { %v10134_v36 = vld [vmem:[#allocation4 + $0x50] sm:$0xff]  ;;  %v5663_v54 = vpack.c.bf16 %v5649_v33, %v5648_v15  ;;  %v2314_v15 = vadd.f32 %v2250_v0, %v1794_v63  ;;  %v2829_v33 = vadd.f32 %v2765_v61, %v2309_v11  ;;  %v2832_v11 = vadd.f32 %v2768_v47, %v2312_v10 }
 0x405   :  { %12501 = vst [vmem:[#allocation122_spill] sm:$0xff] %v10134_v36  ;;  %v10144_v40 = vpack.c.bf16 %v10134_v36, %v5520_v12  ;;  %v10146_v8 = vld [vmem:[#allocation4 + $0x51] sm:$0xff]  ;;  %v2831_v46 = vadd.f32 %v2767_v13, %v2311_v32  ;;  %4671 = vperm.xlu0 %7842, %v9811_v37   ;;  %v2833_v0 = vadd.f32 %v2769_v62, %v2313_v18  ;;  %v12571_v36 = vld [vmem:[#allocation41_spill] sm:$0xff] }
 0x406   :  { %v10140_v28 = vpop.permute.xlu1 %4106  ;;  %v10154_v1 = vpack.c.bf16 %v10146_v8, %v5584_v50  ;;  %5671 = vst.msk [vmem:[#allocation5 + $0x28] sm:$0xff] %vm4985_vm2, %v5663_v54  ;;  %v12509_v12 = vld [vmem:[#allocation280_spill] sm:$0xff]  ;;  %v2830_v50 = vadd.f32 %v2766_v7, %v2310_v60  ;;  %v12510_v63 = vld [vmem:[#allocation327_spill] sm:$0xff]  ;;  %v3285_v60 = vmul.f32 %v10168_v25, %v12512_v44  ;;  %v3287_v61 = vmul.f32 %v10168_v25, %v12513_v45  ;;  %v10187_v54 = vld [vmem:[%s11963_s1 + $0x6] ss:$0 sm:$0xff] }
 0x407   :  { %12504 = vst [vmem:[#allocation123_spill] sm:$0xff] %v10144_v40  ;;  %4666 = vperm.xlu1 %7843, %v9802_v59   ;;  %5220 = vst.msk [vmem:[#allocation5 + $0x30] sm:$0xff] %vm4985_vm2, %v10144_v40  ;;  %v2771_v59 = vmul.f32 %v10126_v31, %v12509_v12  ;;  %v10163_v57 = vpop.permute.xlu0 %4111  ;;  %v3284_v35 = vmul.f32 %v10168_v25, %v12510_v63  ;;  %v2834_v7 = vadd.f32 %v2770_v9, %v2314_v15  ;;  %v12515_v47 = vld [vmem:[#allocation332_spill] sm:$0xff]  ;;  %v12575_v40 = vld [vmem:[#allocation43_spill] sm:$0xff] }
 0x408   :  { %12507 = vst [vmem:[#allocation270_spill] sm:$0xff] %v10154_v1  ;;  %v3288_v13 = vmul.f32 %v10168_v25, %v12514_v23  ;;  %v3805_v37 = vmul.f32 %v10187_v54, %v10009_v41  ;;  %v3807_v32 = vmul.f32 %v10187_v54, %v10014_v5  ;;  %v3289_v42 = vmul.f32 %v10168_v25, %v12515_v47  ;;  %v10202_v41 = vld [vmem:[%s11963_s1 + $0x7] ss:$0 sm:$0xff] }
 0x409   :  { %v2835_v3 = vadd.f32 %v2771_v59, %v2315_v51  ;;  %v3808_v62 = vmul.f32 %v10187_v54, %v10017_v2  ;;  %v3348_v18 = vadd.f32 %v3284_v35, %v2828_v58  ;;  %v3350_v15 = vadd.f32 %v3286_v30, %v2830_v50  ;;  %4681 = vperm.xlu0 %7842, %v9836_v43  }
 0x40a   :  { %v10174_v39 = vpop.permute.xlu1 %4116  ;;  %v4325_v5 = vmul.f32 %v10202_v41, %v10080_v4  ;;  %v4327_v49 = vmul.f32 %v10202_v41, %v10108_v38  ;;  %v3351_v51 = vadd.f32 %v3287_v61, %v2831_v46  ;;  %v4326_v2 = vmul.f32 %v10202_v41, %v10091_v20  ;;  %v10217_v38 = vld [vmem:[%s11963_s1 + $0x8] ss:$0 sm:$0xff] }
 0x40b   :  { %4676 = vperm.xlu1 %7843, %v9813_v22   ;;  %v3806_v22 = vmul.f32 %v10187_v54, %v10011_v53  ;;  %v4602_v10 = vpop.permute.xlu0 %4601  ;;  %v3349_v53 = vadd.f32 %v3285_v60, %v2829_v33  ;;  %v4328_v58 = vmul.f32 %v10202_v41, %v10111_v29  ;;  %v3352_v59 = vadd.f32 %v3288_v13, %v2832_v11 }
 0x40c   :  { %v3869_v50 = vadd.f32 %v3805_v37, %v3348_v18  ;;  %v3871_v4 = vadd.f32 %v3807_v32, %v3350_v15  ;;  %v4845_v43 = vmul.f32 %v10217_v38, %v4602_v10  ;;  %v3353_v33 = vadd.f32 %v3289_v42, %v2833_v0  ;;  %v12517_v18 = vld [vmem:[#allocation120_spill] sm:$0xff] }
 0x40d   :  { %v5683_v12 = vld [vmem:[#allocation5 + $0x28] sm:$0xff]  ;;  %v3870_v20 = vadd.f32 %v3806_v22, %v3349_v53  ;;  %v3872_v46 = vadd.f32 %v3808_v62, %v3351_v51  ;;  %4691 = vperm.xlu0 %7842, %v9868_v19   ;;  %v3291_v60 = vmul.f32 %v10168_v25, %v10006_v55  ;;  %v3809_v23 = vmul.f32 %v10187_v54, %v10019_v27 }
 0x40e   :  { %v4607_v9 = vpop.permute.xlu1 %4606  ;;  %7799 = vmatmul.mubr.msk.bf16.vlgmr.msra.gmra.mrb[0].mxu1 %vm4985_vm2, %v5683_v12  ;;  %v4389_v34 = vadd.f32 %v4325_v5, %v3869_v50  ;;  %v4391_v30 = vadd.f32 %v4327_v49, %v3871_v4  ;;  %v3811_v13 = vmul.f32 %v10187_v54, %v10050_v14  ;;  %v3810_v19 = vmul.f32 %v10187_v54, %v10022_v24  ;;  %v12518_v49 = vld [vmem:[#allocation121_spill] sm:$0xff]  ;;  %v4476_v53 = vld [vmem:[#allocation2 + $0x262] sm:$0xff] }
 0x40f   :  { %4686 = vperm.xlu1 %7843, %v9844_v48   ;;  %v4846_v29 = vmul.f32 %v10217_v38, %v4607_v9  ;;  %v4612_v63 = vpop.permute.xlu0 %4611  ;;  %v12516_v48 = vld [vmem:[#allocation333_spill] sm:$0xff]  ;;  %v4390_v45 = vadd.f32 %v4326_v2, %v3870_v20  ;;  %v4392_v0 = vadd.f32 %v4328_v58, %v3872_v46  ;;  %v3812_v55 = vmul.f32 %v10187_v54, %v10059_v16 }
 0x410   :  { %v3290_v35 = vmul.f32 %v10168_v25, %v12516_v48  ;;  %v4847_v11 = vmul.f32 %v10217_v38, %v4612_v63  ;;  %v4909_v37 = vadd.f32 %v4845_v43, %v4389_v34  ;;  %v4331_v27 = vmul.f32 %v10202_v41, %v10163_v57 }
 0x411   :  { %v4910_v47 = vadd.f32 %v4846_v29, %v4390_v45  ;;  %4701 = vperm.xlu0 %7842, %v12517_v18   ;;  %v3355_v15 = vadd.f32 %v3291_v60, %v2835_v3  ;;  %v4330_v24 = vmul.f32 %v10202_v41, %v10140_v28  ;;  %v4332_v16 = vmul.f32 %v10202_v41, %v10174_v39  ;;  %v10261_v60 = vld [vmem:[#allocation2 + $0x27a] sm:$0xff]  ;;  %v12523_v18 = vld [vmem:[#allocation87_spill] sm:$0xff] }
 0x412   :  { %v4617_v44 = vpop.permute.xlu1 %4616  ;;  %v4911_v32 = vadd.f32 %v4847_v11, %v4391_v30  ;;  %v3354_v62 = vadd.f32 %v3290_v35, %v2834_v7  ;;  %v4475_v7 = vld [vmem:[#allocation2 + $0x25a] sm:$0xff]  ;;  %v3873_v9 = vadd.f32 %v3809_v23, %v3352_v59  ;;  %v3874_v51 = vadd.f32 %v3810_v19, %v3353_v33  ;;  %v10258_v30 = vld [vmem:[#allocation2 + $0x272] sm:$0xff] }
 0x413   :  { %v4848_v61 = vmul.f32 %v10217_v38, %v4617_v44  ;;  %4696 = vperm.xlu1 %7843, %v9874_v21   ;;  %v4622_v22 = vpop.permute.xlu0 %4621  ;;  %v4329_v21 = vmul.f32 %v10202_v41, %v10132_v26  ;;  %v3876_v2 = vadd.f32 %v3812_v55, %v3355_v15  ;;  %v10272_v23 = vld [vmem:[%s11964_s2] ss:$0 sm:$0xff]  ;;  %v1215_v15 = vmul.f32 %v10027_v52, %v12523_v18 }
 0x414   :  { %v4963_v10 = vmax.f32 %v4909_v37, %v4911_v32  ;;  %v3875_v26 = vadd.f32 %v3811_v13, %v3354_v62  ;;  %v4849_v57 = vmul.f32 %v10217_v38, %v4622_v22  ;;  %v4394_v59 = vadd.f32 %v4330_v24, %v3874_v51  ;;  %12519 = vst [vmem:[#allocation124_spill] sm:$0xff] %v10272_v23  ;;  %v10276_v37 = vld [vmem:[#allocation2 + $0x28a] sm:$0xff]  ;;  %v10278_v32 = vld [vmem:[#allocation2 + $0x292] sm:$0xff]  ;;  %v10289_v62 = vld [vmem:[#allocation2 + $0x2a2] sm:$0xff] }
 0x415   :  { %v4912_v42 = vadd.f32 %v4848_v61, %v4392_v0  ;;  %v4393_v58 = vadd.f32 %v4329_v21, %v3873_v9  ;;  %4711 = vperm.xlu0 %7842, %v4475_v7   ;;  %v4396_v4 = vadd.f32 %v4332_v16, %v3876_v2  ;;  %v12521_v21 = vld [vmem:[#allocation85_spill] sm:$0xff] }
 0x416   :  { %v4627_v14 = vpop.permute.xlu1 %4626  ;;  %4996 = vst.msk [vmem:[#allocation3 + $0x50] sm:$0xff] %vm4985_vm2, %v4963_v10  ;;  %v4395_v39 = vadd.f32 %v4331_v27, %v3875_v26  ;;  %v1213_v27 = vmul.f32 %v10027_v52, %v12521_v21  ;;  %v12522_v10 = vld [vmem:[#allocation86_spill] sm:$0xff]  ;;  %v12525_v9 = vld [vmem:[#allocation29_spill] sm:$0xff] }
 0x417   :  { %v4964_v5 = vmax.f32 %v4910_v47, %v4912_v42  ;;  %4706 = vperm.xlu1 %7843, %v12518_v49   ;;  %v4850_v28 = vmul.f32 %v10217_v38, %v4627_v14  ;;  %v4632_v3 = vpop.permute.xlu0 %4631  ;;  %v4913_v20 = vadd.f32 %v4849_v57, %v4393_v58  ;;  %v12520_v42 = vld [vmem:[#allocation84_spill] sm:$0xff]  ;;  %v1214_v14 = vmul.f32 %v10027_v52, %v12522_v10  ;;  %v12528_v58 = vld [vmem:[#allocation31_spill] sm:$0xff]  ;;  %v12533_v21 = vld [vmem:[#allocation213_spill] sm:$0xff] }
 0x418   :  { %v4851_v12 = vmul.f32 %v10217_v38, %v4632_v3  ;;  %v1212_v22 = vmul.f32 %v10027_v52, %v12520_v42  ;;  %v12524_v49 = vld [vmem:[#allocation28_spill] sm:$0xff]  ;;  %v693_v26 = vmul.f32 %v10038_v6, %v12525_v9  ;;  %v2253_v10 = vmul.f32 %v10100_v17, %v12533_v21  ;;  %v12535_v9 = vld [vmem:[#allocation215_spill] sm:$0xff] }
 0x419   :  { %4997 = vst.msk [vmem:[#allocation3 + $0x58] sm:$0xff] %vm4985_vm2, %v4964_v5  ;;  %v4914_v33 = vadd.f32 %v4850_v28, %v4394_v59  ;;  %3160 = vperm.xlu0 %7842, %v4475_v7   ;;  %v10297_v5 = vld [vmem:[#allocation2 + $0x2aa] sm:$0xff]  ;;  %v692_v7 = vmul.f32 %v10038_v6, %v12524_v49  ;;  %v12526_v57 = vld [vmem:[#allocation148_spill] sm:$0xff]  ;;  %v12527_v28 = vld [vmem:[#allocation30_spill] sm:$0xff] }
 0x41a   :  { %v4637_v50 = vpop.permute.xlu1 %4636  ;;  %v4915_v46 = vadd.f32 %v4851_v12, %v4395_v39  ;;  %v694_v3 = vmul.f32 %v10038_v6, %v12527_v28  ;;  %v695_v39 = vmul.f32 %v10038_v6, %v12528_v58  ;;  %v12529_v12 = vld [vmem:[#allocation149_spill] sm:$0xff]  ;;  %v12530_v59 = vld [vmem:[#allocation150_spill] sm:$0xff] }
 0x41b   :  { %v4852_v43 = vmul.f32 %v10217_v38, %v4637_v50  ;;  %4716 = vperm.xlu1 %7843, %v4476_v53   ;;  %v10254_v63 = vpop.permute.xlu0 %3080  ;;  %v1733_v50 = vmul.f32 %v10074_v56, %v12529_v12 }
 0x41c   :  { %v4965_v48 = vmax.f32 %v4913_v20, %v4915_v46  ;;  %v1276_v20 = vadd.f32 %v1212_v22, %v692_v7  ;;  %v12531_v46 = vld [vmem:[#allocation151_spill] sm:$0xff]  ;;  %v12534_v22 = vld [vmem:[#allocation214_spill] sm:$0xff] }
 0x41d   :  { %v4916_v29 = vadd.f32 %v4852_v43, %v4396_v4  ;;  %3170 = vperm.xlu0 %7842, %v10258_v30   ;;  %v1734_v4 = vmul.f32 %v10074_v56, %v12530_v59  ;;  %v2254_v18 = vmul.f32 %v10100_v17, %v12534_v22 }
 0x41e   :  { %v10256_v35 = vpop.permute.xlu1 %3085  ;;  %4998 = vst.msk [vmem:[#allocation3 + $0x60] sm:$0xff] %vm4985_vm2, %v4965_v48  ;;  %v3437_v48 = vld [vmem:[#allocation2 + $0x270] sm:$0xff] }
 0x41f   :  { %v4966_v34 = vmax.f32 %v4914_v33, %v4916_v29  ;;  %3165 = vperm.xlu1 %7843, %v4476_v53   ;;  %v10264_v0 = vpop.permute.xlu0 %3090  ;;  %v1732_v53 = vmul.f32 %v10074_v56, %v12526_v57  ;;  %v1735_v33 = vmul.f32 %v10074_v56, %v12531_v46  ;;  %v3292_v46 = vmul.f32 %v10168_v25, %v10254_v63 }
 0x420   :  { %v5028_v11 = vld [vmem:[#allocation3 + $0x50] ss:$2 sm:$0xff]  ;;  %v5060_v44 = vld [vmem:[#allocation3 + $0x51] ss:$2 sm:$0xff] }
 0x421   :  { %v5086_v45 = vmax.f32 %v5028_v11, %v5060_v44  ;;  %4999 = vst.msk [vmem:[#allocation3 + $0x68] sm:$0xff] %vm4985_vm2, %v4966_v34  ;;  %3180 = vperm.xlu0 %7842, %v10276_v37   ;;  %v1277_v34 = vadd.f32 %v1213_v27, %v693_v26  ;;  %v1278_v11 = vadd.f32 %v1214_v14, %v694_v3  ;;  %v12536_v14 = vld [vmem:[#allocation281_spill] sm:$0xff]  ;;  %v12539_v3 = vld [vmem:[#allocation283_spill] sm:$0xff] }
 0x422   :  { %v10266_v61 = vpop.permute.xlu1 %3095  ;;  %v1279_v44 = vadd.f32 %v1215_v15, %v695_v39  ;;  %v1796_v42 = vadd.f32 %v1732_v53, %v1276_v20  ;;  %v2255_v27 = vmul.f32 %v10100_v17, %v12535_v9  ;;  %v2772_v15 = vmul.f32 %v10126_v31, %v12536_v14  ;;  %v3439_v39 = vld [vmem:[#allocation2 + $0x288] sm:$0xff] }
 0x423   :  { %v5109_v13 = vadd.f32 %v10272_v23, %v5086_v45  ;;  %3175 = vperm.xlu1 %7843, %v10261_v60   ;;  %v10280_v55 = vpop.permute.xlu0 %3601  ;;  %v12532_v45 = vld [vmem:[#allocation212_spill] sm:$0xff]  ;;  %v1797_v49 = vadd.f32 %v1733_v50, %v1277_v34  ;;  %v1798_v7 = vadd.f32 %v1734_v4, %v1278_v11  ;;  %v2774_v58 = vmul.f32 %v10126_v31, %v12539_v3  ;;  %v12567_v50 = vld [vmem:[#allocation90_spill] sm:$0xff] }
 0x424   :  { %v1799_v53 = vadd.f32 %v1735_v33, %v1279_v44  ;;  %v12540_v4 = vld [vmem:[#allocation284_spill] sm:$0xff]  ;;  %v3293_v11 = vmul.f32 %v10168_v25, %v10256_v35  ;;  %v3294_v44 = vmul.f32 %v10168_v25, %v10264_v0  ;;  %v3813_v35 = vmul.f32 %v10187_v54, %v10280_v55 }
 0x425   :  { %v5125_v19 = vmax.f32 %v5109_v13, 0.0  ;;  %3190 = vperm.xlu0 %7842, %v10289_v62   ;;  %v2252_v13 = vmul.f32 %v10100_v17, %v12532_v45  ;;  %v2775_v20 = vmul.f32 %v10126_v31, %v12540_v4  ;;  %v3440_v33 = vld [vmem:[#allocation2 + $0x290] sm:$0xff]  ;;  %v2318_v34 = vadd.f32 %v2254_v18, %v1798_v7 }
 0x426   :  { %v10282_v47 = vpop.permute.xlu1 %3606 }
 0x427   :  { %5183 = vst.msk [vmem:[#allocation4 + $0x61] sm:$0xff] %vm4985_vm2, %v5125_v19  ;;  %3185 = vperm.xlu1 %7843, %v10278_v32   ;;  %v3612_v2 = vpop.permute.xlu0 %3611  ;;  %v3438_v19 = vld [vmem:[#allocation2 + $0x278] sm:$0xff]  ;;  %v2316_v59 = vadd.f32 %v2252_v13, %v1796_v42  ;;  %v3295_v42 = vmul.f32 %v10168_v25, %v10266_v61  ;;  %v3814_v61 = vmul.f32 %v10187_v54, %v10282_v47 }
 0x428   :  { %v5030_v24 = vld [vmem:[#allocation3 + $0x60] ss:$2 sm:$0xff]  ;;  %v5062_v16 = vld [vmem:[#allocation3 + $0x61] ss:$2 sm:$0xff]  ;;  %v3815_v0 = vmul.f32 %v10187_v54, %v3612_v2 }
 0x429   :  { %v5087_v51 = vmax.f32 %v5030_v24, %v5062_v16  ;;  %3681 = vperm.xlu0 %7842, %v3437_v48   ;;  %v2317_v48 = vadd.f32 %v2253_v10, %v1797_v49  ;;  %v2836_v13 = vadd.f32 %v2772_v15, %v2316_v59  ;;  %v3441_v10 = vld [vmem:[#allocation2 + $0x2a0] sm:$0xff] }
 0x42a   :  { %v3617_v43 = vpop.permute.xlu1 %3616 }
 0x42b   :  { %v5110_v29 = vadd.f32 %v10272_v23, %v5087_v51  ;;  %3195 = vperm.xlu1 %7843, %v10297_v5   ;;  %v4122_v16 = vpop.permute.xlu0 %4121  ;;  %v12538_v51 = vld [vmem:[#allocation282_spill] sm:$0xff]  ;;  %v3356_v18 = vadd.f32 %v3292_v46, %v2836_v13  ;;  %v3816_v9 = vmul.f32 %v10187_v54, %v3617_v43  ;;  %v3443_v43 = vld [vmem:[#allocation2 + $0x2b8] sm:$0xff] }
 0x42c   :  { %v2773_v28 = vmul.f32 %v10126_v31, %v12538_v51  ;;  %v3444_v46 = vld [vmem:[#allocation2 + $0x2c0] sm:$0xff] }
 0x42d   :  { %v5126_v24 = vmax.f32 %v5110_v29, 0.0  ;;  %3691 = vperm.xlu0 %7842, %v3439_v39  }
 0x42e   :  { %v4127_v26 = vpop.permute.xlu1 %4126  ;;  %v10328_v57 = vld [vmem:[#allocation4 + $0x60] sm:$0xff]  ;;  %v2837_v63 = vadd.f32 %v2773_v28, %v2317_v48 }
 0x42f   :  { %12537 = vst [vmem:[#allocation271_spill] sm:$0xff] %v10328_v57  ;;  %5184 = vst.msk [vmem:[#allocation4 + $0x71] sm:$0xff] %vm4985_vm2, %v5126_v24  ;;  %3686 = vperm.xlu1 %7843, %v3438_v19   ;;  %v5586_v12 = vld [vmem:[#allocation4 + $0x61] sm:$0xff]  ;;  %v4132_v45 = vpop.permute.xlu0 %4131  ;;  %v2319_v19 = vadd.f32 %v2255_v27, %v1799_v53  ;;  %v4333_v53 = vmul.f32 %v10202_v41, %v4122_v16  ;;  %v4334_v51 = vmul.f32 %v10202_v41, %v4127_v26 }
 0x430   :  { %v5439_v29 = vpack.c.bf16 %v5586_v12, %v10146_v8  ;;  %v2838_v8 = vadd.f32 %v2774_v58, %v2318_v34  ;;  %v3442_v24 = vld [vmem:[#allocation2 + $0x2a8] sm:$0xff]  ;;  %v3357_v49 = vadd.f32 %v3293_v11, %v2837_v63  ;;  %v4335_v28 = vmul.f32 %v10202_v41, %v4132_v45 }
 0x431   :  { %v2839_v22 = vadd.f32 %v2775_v20, %v2319_v19  ;;  %v5650_v14 = vld [vmem:[#allocation4 + $0x62] sm:$0xff]  ;;  %3701 = vperm.xlu0 %7842, %v3441_v10   ;;  %v3877_v26 = vadd.f32 %v3813_v35, %v3356_v18  ;;  %v3958_v10 = vld [vmem:[#allocation2 + $0x279] sm:$0xff] }
 0x432   :  { %v4137_v21 = vpop.permute.xlu1 %4136  ;;  %5447 = vst.msk [vmem:[#allocation5 + $0x38] sm:$0xff] %vm4985_vm2, %v5439_v29  ;;  %v3358_v7 = vadd.f32 %v3294_v44, %v2838_v8 }
 0x433   :  { %3696 = vperm.xlu1 %7843, %v3440_v33   ;;  %v4642_v27 = vpop.permute.xlu0 %4641  ;;  %v3359_v15 = vadd.f32 %v3295_v42, %v2839_v22  ;;  %v4336_v47 = vmul.f32 %v10202_v41, %v4137_v21  ;;  %v3878_v33 = vadd.f32 %v3814_v61, %v3357_v49  ;;  %v4397_v11 = vadd.f32 %v4333_v53, %v3877_v26  ;;  %v3957_v21 = vld [vmem:[#allocation2 + $0x271] sm:$0xff]  ;;  %v3962_v53 = vld [vmem:[#allocation2 + $0x2a9] sm:$0xff] }
 0x434   :  { %v3879_v4 = vadd.f32 %v3815_v0, %v3358_v7  ;;  %v4853_v20 = vmul.f32 %v10217_v38, %v4642_v27  ;;  %v3959_v7 = vld [vmem:[#allocation2 + $0x289] sm:$0xff] }
 0x435   :  { %v3880_v29 = vadd.f32 %v3816_v9, %v3359_v15  ;;  %3711 = vperm.xlu0 %7842, %v3443_v43   ;;  %v4398_v19 = vadd.f32 %v4334_v51, %v3878_v33  ;;  %v3960_v9 = vld [vmem:[#allocation2 + $0x291] sm:$0xff]  ;;  %v3961_v15 = vld [vmem:[#allocation2 + $0x2a1] sm:$0xff] }
 0x436   :  { %v4647_v55 = vpop.permute.xlu1 %4646  ;;  %v10358_v2 = vld [vmem:[#allocation4 + $0x72] sm:$0xff]  ;;  %v4399_v44 = vadd.f32 %v4335_v28, %v3879_v4  ;;  %v4917_v63 = vadd.f32 %v4853_v20, %v4397_v11  ;;  %v3964_v43 = vld [vmem:[#allocation2 + $0x2c1] sm:$0xff] }
 0x437   :  { %12541 = vst [vmem:[#allocation125_spill] sm:$0xff] %v10358_v2  ;;  %v5523_v3 = vld [vmem:[#allocation4 + $0x70] sm:$0xff]  ;;  %3706 = vperm.xlu1 %7843, %v3442_v24   ;;  %v5664_v39 = vpack.c.bf16 %v10358_v2, %v5650_v14  ;;  %v4854_v48 = vmul.f32 %v10217_v38, %v4647_v55  ;;  %v4652_v34 = vpop.permute.xlu0 %4651  ;;  %v4400_v13 = vadd.f32 %v4336_v47, %v3880_v29  ;;  %v3963_v55 = vld [vmem:[#allocation2 + $0x2b9] sm:$0xff] }
 0x438   :  { %v10360_v58 = vld [vmem:[#allocation4 + $0x71] sm:$0xff]  ;;  %v10365_v59 = vpack.c.bf16 %v5523_v3, %v10328_v57  ;;  %v705_v57 = vmul.f32 %v10038_v6, %v12571_v36 }
 0x439   :  { %v10368_v16 = vpack.c.bf16 %v10360_v58, %v5586_v12  ;;  %5672 = vst.msk [vmem:[#allocation5 + $0x40] sm:$0xff] %vm4985_vm2, %v5664_v39  ;;  %v4855_v12 = vmul.f32 %v10217_v38, %v4652_v34  ;;  %v4918_v22 = vadd.f32 %v4854_v48, %v4398_v19  ;;  %4201 = vperm.xlu0 %7842, %v3957_v21   ;;  %v5653_v11 = vld [vmem:[#allocation4 + $0x92] sm:$0xff]  ;;  %v12568_v2 = vld [vmem:[#allocation91_spill] sm:$0xff] }
 0x43a   :  { %12542 = vst [vmem:[#allocation126_spill] sm:$0xff] %v10365_v59  ;;  %5221 = vst.msk [vmem:[#allocation5 + $0x48] sm:$0xff] %vm4985_vm2, %v10365_v59  ;;  %v4657_v45 = vpop.permute.xlu1 %4656 }
 0x43b   :  { %12543 = vst [vmem:[#allocation127_spill] sm:$0xff] %v10368_v16  ;;  %v4856_v42 = vmul.f32 %v10217_v38, %v4657_v45  ;;  %3716 = vperm.xlu1 %7843, %v3444_v46   ;;  %v4919_v8 = vadd.f32 %v4855_v12, %v4399_v44  ;;  %v10377_v35 = vpop.permute.xlu0 %3100 }
 0x43d   :  { %v4920_v18 = vadd.f32 %v4856_v42, %v4400_v13  ;;  %v4967_v0 = vmax.f32 %v4917_v63, %v4919_v8  ;;  %4211 = vperm.xlu0 %7842, %v3959_v7   ;;  %v4484_v13 = vld [vmem:[#allocation2 + $0x2c2] sm:$0xff]  ;;  %v10432_v63 = vld [vmem:[#allocation2 + $0x2d2] sm:$0xff] }
 0x43e   :  { %v10379_v24 = vpop.permute.xlu1 %3105  ;;  %12547 = vst [vmem:[#allocation274_spill] sm:$0xff] %v10432_v63 }
 0x43f   :  { %v4968_v49 = vmax.f32 %v4918_v22, %v4920_v18  ;;  %4206 = vperm.xlu1 %7843, %v3958_v10   ;;  %5000 = vst.msk [vmem:[#allocation3 + $0x70] sm:$0xff] %vm4985_vm2, %v4967_v0  ;;  %v10384_v27 = vpop.permute.xlu0 %3110  ;;  %v10443_v18 = vld [vmem:[#allocation2 + $0x2ea] sm:$0xff]  ;;  %v10445_v0 = vld [vmem:[#allocation2 + $0x2f2] sm:$0xff] }
 0x440   :  { %v5686_v61 = vld [vmem:[#allocation5 + $0x40] sm:$0xff]  ;;  %12550 = vst [vmem:[#allocation185_spill] sm:$0xff] %v10443_v18  ;;  %12551 = vst [vmem:[#allocation275_spill] sm:$0xff] %v10445_v0 }
 0x441   :  { %5001 = vst.msk [vmem:[#allocation3 + $0x78] sm:$0xff] %vm4985_vm2, %v4968_v49  ;;  %7802 = vmatprep.mubr.msk.bf16.mxu1 %vm4985_vm2, %v5686_v61  ;;  %4221 = vperm.xlu0 %7842, %v3961_v15   ;;  %v10453_v61 = vld [vmem:[#allocation2 + $0x302] sm:$0xff] }
 0x442   :  { %v10386_v14 = vpop.permute.xlu1 %3115  ;;  %12554 = vst [vmem:[#allocation188_spill] sm:$0xff] %v10453_v61 }
 0x443   :  { %4216 = vperm.xlu1 %7843, %v3960_v9   ;;  %v10388_v51 = vpop.permute.xlu0 %3120  ;;  %v12555_v9 = vld [vmem:[#allocation32_spill] sm:$0xff] }
 0x444   :  { %v696_v15 = vmul.f32 %v10038_v6, %v12555_v9 }
 0x445   :  { %4231 = vperm.xlu0 %7842, %v3963_v55  }
 0x446   :  { %v10390_v28 = vpop.permute.xlu1 %3125 }
 0x447   :  { %4226 = vperm.xlu1 %7843, %v3962_v53   ;;  %v10392_v26 = vpop.permute.xlu0 %3130  ;;  %v12556_v53 = vld [vmem:[#allocation33_spill] sm:$0xff] }
 0x448   :  { %v5032_v3 = vld [vmem:[#allocation3 + $0x70] ss:$2 sm:$0xff]  ;;  %v5064_v47 = vld [vmem:[#allocation3 + $0x71] ss:$2 sm:$0xff]  ;;  %v697_v55 = vmul.f32 %v10038_v6, %v12556_v53  ;;  %v12565_v53 = vld [vmem:[#allocation38_spill] sm:$0xff] }
 0x449   :  { %v5088_v39 = vmax.f32 %v5032_v3, %v5064_v47  ;;  %4721 = vperm.xlu0 %7842, %v10258_v30   ;;  %v12557_v3 = vld [vmem:[#allocation34_spill] sm:$0xff] }
 0x44a   :  { %v10394_v4 = vpop.permute.xlu1 %3135  ;;  %v698_v47 = vmul.f32 %v10038_v6, %v12557_v3  ;;  %v702_v3 = vmul.f32 %v10038_v6, %v12565_v53  ;;  %v12572_v53 = vld [vmem:[#allocation92_spill] sm:$0xff] }
 0x44b   :  { %v5111_v20 = vadd.f32 %v10272_v23, %v5088_v39  ;;  %4236 = vperm.xlu1 %7843, %v3964_v43   ;;  %v10397_v33 = vpop.permute.xlu0 %3140  ;;  %v12558_v43 = vld [vmem:[#allocation35_spill] sm:$0xff]  ;;  %v1220_v16 = vmul.f32 %v10027_v52, %v12572_v53  ;;  %v707_v23 = vmul.f32 %v10038_v6, %v12575_v40 }
 0x44c   :  { %v699_v39 = vmul.f32 %v10038_v6, %v12558_v43  ;;  %v12566_v43 = vld [vmem:[#allocation39_spill] sm:$0xff] }
 0x44d   :  { %v5127_v46 = vmax.f32 %v5111_v20, 0.0  ;;  %4731 = vperm.xlu0 %7842, %v10276_v37   ;;  %v10463_v20 = vld [vmem:[#allocation2 + $0x30a] sm:$0xff]  ;;  %v703_v37 = vmul.f32 %v10038_v6, %v12566_v43  ;;  %v12573_v43 = vld [vmem:[#allocation93_spill] sm:$0xff] }
 0x44e   :  { %v10399_v29 = vpop.permute.xlu1 %3145  ;;  %12559 = vst [vmem:[#allocation189_spill] sm:$0xff] %v10463_v20  ;;  %v1221_v59 = vmul.f32 %v10027_v52, %v12573_v43 }
 0x44f   :  { %5185 = vst.msk [vmem:[#allocation4 + $0x81] sm:$0xff] %vm4985_vm2, %v5127_v46  ;;  %4726 = vperm.xlu1 %7843, %v10261_v60   ;;  %v10404_v48 = vpop.permute.xlu0 %3150  ;;  %v4483_v60 = vld [vmem:[#allocation2 + $0x2ba] sm:$0xff]  ;;  %v12560_v46 = vld [vmem:[#allocation36_spill] sm:$0xff] }
 0x450   :  { %12544 = vst [vmem:[#allocation128_spill] sm:$0xff] %v10404_v48 }
 0x451   :  { %4741 = vperm.xlu0 %7842, %v10289_v62  }
 0x452   :  { %v10406_v34 = vpop.permute.xlu1 %3155 }
 0x453   :  { %12545 = vst [vmem:[#allocation129_spill] sm:$0xff] %v10406_v34  ;;  %4736 = vperm.xlu1 %7843, %v10278_v32   ;;  %v10410_v44 = vpop.permute.xlu0 %3621 }
 0x455   :  { %4751 = vperm.xlu0 %7842, %v4483_v60  }
 0x456   :  { %v10412_v12 = vpop.permute.xlu1 %3626  ;;  %v10415_v30 = vld [vmem:[#allocation4 + $0x82] sm:$0xff] }
 0x457   :  { %12546 = vst [vmem:[#allocation130_spill] sm:$0xff] %v10415_v30  ;;  %v5588_v45 = vld [vmem:[#allocation4 + $0x81] sm:$0xff]  ;;  %4746 = vperm.xlu1 %7843, %v10297_v5   ;;  %v5665_v19 = vpack.c.bf16 %v5653_v11, %v10415_v30  ;;  %v10422_v42 = vpop.permute.xlu0 %3631  ;;  %v700_v11 = vmul.f32 %v10038_v6, %v12560_v46  ;;  %v1218_v46 = vmul.f32 %v10027_v52, %v12567_v50  ;;  %v3445_v50 = vld [vmem:[#allocation2 + $0x2d0] sm:$0xff] }
 0x458   :  { %v5440_v32 = vpack.c.bf16 %v5588_v45, %v10360_v58  ;;  %v10434_v58 = vld [vmem:[#allocation2 + $0x2da] sm:$0xff] }
 0x459   :  { %5673 = vst.msk [vmem:[#allocation5 + $0x58] sm:$0xff] %vm4985_vm2, %v5665_v19  ;;  %3200 = vperm.xlu0 %7842, %v4483_v60   ;;  %12548 = vst [vmem:[#allocation131_spill] sm:$0xff] %v10434_v58  ;;  %v12561_v45 = vld [vmem:[#allocation37_spill] sm:$0xff]  ;;  %v12562_v19 = vld [vmem:[#allocation88_spill] sm:$0xff] }
 0x45a   :  { %v10425_v21 = vpop.permute.xlu1 %3636  ;;  %5448 = vst.msk [vmem:[#allocation5 + $0x50] sm:$0xff] %vm4985_vm2, %v5440_v32  ;;  %v701_v60 = vmul.f32 %v10038_v6, %v12561_v45  ;;  %v12563_v32 = vld [vmem:[#allocation89_spill] sm:$0xff]  ;;  %v1219_v45 = vmul.f32 %v10027_v52, %v12568_v2  ;;  %v12574_v2 = vld [vmem:[#allocation42_spill] sm:$0xff] }
 0x45b   :  { %4756 = vperm.xlu1 %7843, %v4484_v13   ;;  %v10428_v62 = vpop.permute.xlu0 %3641  ;;  %v706_v1 = vmul.f32 %v10038_v6, %v12574_v2  ;;  %v1282_v2 = vadd.f32 %v1218_v46, %v698_v47  ;;  %v3447_v47 = vld [vmem:[#allocation2 + $0x2e8] sm:$0xff] }
 0x45d   :  { %3210 = vperm.xlu0 %7842, %v10432_v63   ;;  %v12593_v63 = vld [vmem:[#allocation163_spill] sm:$0xff] }
 0x45e   :  { %v10430_v5 = vpop.permute.xlu1 %3646 }
 0x45f   :  { %3205 = vperm.xlu1 %7843, %v4484_v13   ;;  %v10437_v10 = vpop.permute.xlu0 %3651  ;;  %v1216_v13 = vmul.f32 %v10027_v52, %v12562_v19  ;;  %v12570_v19 = vld [vmem:[#allocation40_spill] sm:$0xff] }
 0x460   :  { %v5689_v8 = vld [vmem:[#allocation5 + $0x58] sm:$0xff] }
 0x461   :  { %7803 = vmatmul.mubr.msk.bf16.gmra.mrb[4].mxu1 %vm4985_vm2, %v5689_v8  ;;  %3220 = vperm.xlu0 %7842, %v10443_v18   ;;  %v1217_v8 = vmul.f32 %v10027_v52, %v12563_v32  ;;  %v704_v32 = vmul.f32 %v10038_v6, %v12570_v19  ;;  %v1280_v53 = vadd.f32 %v1216_v13, %v696_v15  ;;  %v12580_v6 = vld [vmem:[#allocation98_spill] sm:$0xff]  ;;  %v12582_v13 = vld [vmem:[#allocation152_spill] sm:$0xff] }
 0x462   :  { %v10439_v22 = vpop.permute.xlu1 %3656  ;;  %v1283_v18 = vadd.f32 %v1219_v45, %v699_v39  ;;  %v1226_v40 = vmul.f32 %v10027_v52, %v12580_v6  ;;  %v1284_v15 = vadd.f32 %v1220_v16, %v700_v11  ;;  %v12584_v45 = vld [vmem:[#allocation154_spill] sm:$0xff] }
 0x463   :  { %12549 = vst [vmem:[#allocation184_spill] sm:$0xff] %v10439_v22  ;;  %3215 = vperm.xlu1 %7843, %v10434_v58   ;;  %v10447_v49 = vpop.permute.xlu0 %3661  ;;  %v1738_v6 = vmul.f32 %v10074_v56, %v12584_v45  ;;  %v12585_v58 = vld [vmem:[#allocation155_spill] sm:$0xff] }
 0x464   :  { %12552 = vst [vmem:[#allocation186_spill] sm:$0xff] %v10447_v49  ;;  %v12578_v49 = vld [vmem:[#allocation96_spill] sm:$0xff]  ;;  %v3450_v22 = vld [vmem:[#allocation2 + $0x308] sm:$0xff] }
 0x465   :  { %3230 = vperm.xlu0 %7842, %v10453_v61   ;;  %v12576_v61 = vld [vmem:[#allocation94_spill] sm:$0xff]  ;;  %v1224_v43 = vmul.f32 %v10027_v52, %v12578_v49  ;;  %v1736_v49 = vmul.f32 %v10074_v56, %v12582_v13 }
 0x466   :  { %v10449_v7 = vpop.permute.xlu1 %3666  ;;  %v1222_v19 = vmul.f32 %v10027_v52, %v12576_v61  ;;  %v12581_v61 = vld [vmem:[#allocation99_spill] sm:$0xff] }
 0x467   :  { %12553 = vst [vmem:[#allocation187_spill] sm:$0xff] %v10449_v7  ;;  %3225 = vperm.xlu1 %7843, %v10445_v0   ;;  %v10473_v9 = vpop.permute.xlu0 %3671  ;;  %v3446_v7 = vld [vmem:[#allocation2 + $0x2d8] sm:$0xff]  ;;  %v1227_v48 = vmul.f32 %v10027_v52, %v12581_v61  ;;  %v3448_v61 = vld [vmem:[#allocation2 + $0x2f0] sm:$0xff] }
 0x468   :  { %12564 = vst [vmem:[#allocation190_spill] sm:$0xff] %v10473_v9  ;;  %v1281_v9 = vadd.f32 %v1217_v8, %v697_v55  ;;  %v1285_v55 = vadd.f32 %v1221_v59, %v701_v60  ;;  %v12583_v8 = vld [vmem:[#allocation153_spill] sm:$0xff]  ;;  %v1286_v39 = vadd.f32 %v1222_v19, %v702_v3  ;;  %v12586_v59 = vld [vmem:[#allocation156_spill] sm:$0xff] }
 0x469   :  { %3721 = vperm.xlu0 %7842, %v3445_v50   ;;  %v1288_v50 = vadd.f32 %v1224_v43, %v704_v32  ;;  %v1740_v11 = vmul.f32 %v10074_v56, %v12586_v59  ;;  %v12587_v60 = vld [vmem:[#allocation157_spill] sm:$0xff]  ;;  %v1291_v3 = vadd.f32 %v1227_v48, %v707_v23  ;;  %v12590_v32 = vld [vmem:[#allocation160_spill] sm:$0xff]  ;;  %v1802_v23 = vadd.f32 %v1738_v6, %v1282_v2 }
 0x46a   :  { %v10483_v30 = vpop.permute.xlu1 %3676  ;;  %v1741_v13 = vmul.f32 %v10074_v56, %v12587_v60  ;;  %v1744_v43 = vmul.f32 %v10074_v56, %v12590_v32  ;;  %v12591_v59 = vld [vmem:[#allocation161_spill] sm:$0xff] }
 0x46b   :  { %12569 = vst [vmem:[#allocation191_spill] sm:$0xff] %v10483_v30  ;;  %3235 = vperm.xlu1 %7843, %v10463_v20   ;;  %v12577_v30 = vld [vmem:[#allocation95_spill] sm:$0xff]  ;;  %v12579_v20 = vld [vmem:[#allocation97_spill] sm:$0xff]  ;;  %v10507_v34 = vpop.permute.xlu0 %4141  ;;  %v1745_v60 = vmul.f32 %v10074_v56, %v12591_v59 }
 0x46c   :  { %v1223_v36 = vmul.f32 %v10027_v52, %v12577_v30  ;;  %v1225_v0 = vmul.f32 %v10027_v52, %v12579_v20  ;;  %v1737_v20 = vmul.f32 %v10074_v56, %v12583_v8  ;;  %v1739_v52 = vmul.f32 %v10074_v56, %v12585_v58 }
 0x46d   :  { %3731 = vperm.xlu0 %7842, %v3447_v47   ;;  %v1804_v47 = vadd.f32 %v1740_v11, %v1284_v15 }
 0x46e   :  { %v10513_v30 = vpop.permute.xlu1 %4146  ;;  %v1287_v46 = vadd.f32 %v1223_v36, %v703_v37  ;;  %v1289_v16 = vadd.f32 %v1225_v0, %v705_v57  ;;  %v12588_v37 = vld [vmem:[#allocation158_spill] sm:$0xff]  ;;  %v12589_v36 = vld [vmem:[#allocation159_spill] sm:$0xff]  ;;  %v1800_v57 = vadd.f32 %v1736_v49, %v1280_v53  ;;  %v1801_v0 = vadd.f32 %v1737_v20, %v1281_v9  ;;  %v12594_v9 = vld [vmem:[#allocation216_spill] sm:$0xff] }
 0x46f   :  { %3726 = vperm.xlu1 %7843, %v3446_v7   ;;  %v10527_v8 = vpop.permute.xlu0 %4151  ;;  %v1290_v7 = vadd.f32 %v1226_v40, %v706_v1  ;;  %v1742_v19 = vmul.f32 %v10074_v56, %v12588_v37  ;;  %v1743_v45 = vmul.f32 %v10074_v56, %v12589_v36  ;;  %v3449_v1 = vld [vmem:[#allocation2 + $0x300] sm:$0xff]  ;;  %v1803_v48 = vadd.f32 %v1739_v52, %v1283_v18  ;;  %v12597_v52 = vld [vmem:[#allocation219_spill] sm:$0xff] }
 0x470   :  { %v12592_v40 = vld [vmem:[#allocation162_spill] sm:$0xff]  ;;  %v1747_v36 = vmul.f32 %v10074_v56, %v12593_v63  ;;  %v1805_v53 = vadd.f32 %v1741_v13, %v1285_v55  ;;  %v2256_v49 = vmul.f32 %v10100_v17, %v12594_v9  ;;  %v12595_v20 = vld [vmem:[#allocation217_spill] sm:$0xff]  ;;  %v1808_v63 = vadd.f32 %v1744_v43, %v1288_v50  ;;  %v12599_v55 = vld [vmem:[#allocation220_spill] sm:$0xff] }
 0x471   :  { %v1746_v37 = vmul.f32 %v10074_v56, %v12592_v40  ;;  %v2257_v32 = vmul.f32 %v10100_v17, %v12595_v20  ;;  %v1807_v2 = vadd.f32 %v1743_v45, %v1287_v46  ;;  %v12596_v18 = vld [vmem:[#allocation218_spill] sm:$0xff]  ;;  %v2259_v40 = vmul.f32 %v10100_v17, %v12597_v52  ;;  %3741 = vperm.xlu0 %7842, %v3449_v1   ;;  %v12600_v13 = vld [vmem:[#allocation221_spill] sm:$0xff] }
 0x472   :  { %v10533_v58 = vpop.permute.xlu1 %4156  ;;  %v2258_v6 = vmul.f32 %v10100_v17, %v12596_v18  ;;  %v1809_v15 = vadd.f32 %v1745_v60, %v1289_v16  ;;  %v2260_v11 = vmul.f32 %v10100_v17, %v12599_v55  ;;  %v2261_v9 = vmul.f32 %v10100_v17, %v12600_v13  ;;  %v12601_v45 = vld [vmem:[#allocation222_spill] sm:$0xff]  ;;  %v12602_v18 = vld [vmem:[#allocation223_spill] sm:$0xff]  ;;  %v12603_v16 = vld [vmem:[#allocation224_spill] sm:$0xff] }
 0x473   :  { %3736 = vperm.xlu1 %7843, %v3448_v61   ;;  %v10547_v59 = vpop.permute.xlu0 %4161  ;;  %v1806_v61 = vadd.f32 %v1742_v19, %v1286_v39  ;;  %v3451_v39 = vld [vmem:[#allocation2 + $0x318] sm:$0xff]  ;;  %v1810_v46 = vadd.f32 %v1746_v37, %v1290_v7  ;;  %v1811_v19 = vadd.f32 %v1747_v36, %v1291_v3  ;;  %v2262_v20 = vmul.f32 %v10100_v17, %v12601_v45  ;;  %v12606_v3 = vld [vmem:[#allocation226_spill] sm:$0xff]  ;;  %v12607_v36 = vld [vmem:[#allocation227_spill] sm:$0xff] }
 0x474   :  { %v2263_v52 = vmul.f32 %v10100_v17, %v12602_v18  ;;  %v2320_v1 = vadd.f32 %v2256_v49, %v1800_v57  ;;  %v2321_v50 = vadd.f32 %v2257_v32, %v1801_v0  ;;  %v2264_v43 = vmul.f32 %v10100_v17, %v12603_v16  ;;  %v12604_v60 = vld [vmem:[#allocation225_spill] sm:$0xff]  ;;  %v12609_v16 = vld [vmem:[#allocation286_spill] sm:$0xff] }
 0x475   :  { %v2265_v55 = vmul.f32 %v10100_v17, %v12604_v60  ;;  %v2323_v7 = vadd.f32 %v2259_v40, %v1803_v48  ;;  %v2266_v37 = vmul.f32 %v10100_v17, %v12606_v3  ;;  %v2267_v45 = vmul.f32 %v10100_v17, %v12607_v36  ;;  %3751 = vperm.xlu0 %7842, %v3451_v39   ;;  %v12608_v49 = vld [vmem:[#allocation285_spill] sm:$0xff]  ;;  %v12610_v40 = vld [vmem:[#allocation287_spill] sm:$0xff] }
 0x476   :  { %v10553_v56 = vpop.permute.xlu1 %4166  ;;  %v2324_v57 = vadd.f32 %v2260_v11, %v1804_v47  ;;  %v2325_v0 = vadd.f32 %v2261_v9, %v1805_v53  ;;  %v2776_v32 = vmul.f32 %v10126_v31, %v12608_v49  ;;  %v2777_v60 = vmul.f32 %v10126_v31, %v12609_v16  ;;  %v3966_v36 = vld [vmem:[#allocation2 + $0x2d9] sm:$0xff]  ;;  %v12613_v9 = vld [vmem:[#allocation290_spill] sm:$0xff] }
 0x477   :  { %12598 = vst [vmem:[#allocation278_spill] sm:$0xff] %v10553_v56  ;;  %3746 = vperm.xlu1 %7843, %v3450_v22   ;;  %v3452_v56 = vld [vmem:[#allocation2 + $0x320] sm:$0xff]  ;;  %v10567_v13 = vpop.permute.xlu0 %4171  ;;  %v2322_v22 = vadd.f32 %v2258_v6, %v1802_v23  ;;  %v3965_v23 = vld [vmem:[#allocation2 + $0x2d1] sm:$0xff]  ;;  %v2326_v48 = vadd.f32 %v2262_v20, %v1806_v61  ;;  %v2327_v6 = vadd.f32 %v2263_v52, %v1807_v2 }
 0x478   :  { %12605 = vst [vmem:[#allocation192_spill] sm:$0xff] %v10567_v13  ;;  %v2778_v3 = vmul.f32 %v10126_v31, %v12610_v40  ;;  %v12611_v13 = vld [vmem:[#allocation288_spill] sm:$0xff]  ;;  %v2328_v39 = vadd.f32 %v2264_v43, %v1808_v63  ;;  %v2329_v47 = vadd.f32 %v2265_v55, %v1809_v15  ;;  %v12612_v53 = vld [vmem:[#allocation289_spill] sm:$0xff]  ;;  %v2781_v49 = vmul.f32 %v10126_v31, %v12613_v9  ;;  %v12615_v2 = vld [vmem:[#allocation291_spill] sm:$0xff] }
 0x479   :  { %v2779_v17 = vmul.f32 %v10126_v31, %v12611_v13  ;;  %v2780_v11 = vmul.f32 %v10126_v31, %v12612_v53  ;;  %v2331_v61 = vadd.f32 %v2267_v45, %v1811_v19  ;;  %v2782_v20 = vmul.f32 %v10126_v31, %v12615_v2  ;;  %v12616_v52 = vld [vmem:[#allocation292_spill] sm:$0xff]  ;;  %4241 = vperm.xlu0 %7842, %v3965_v23   ;;  %v12618_v43 = vld [vmem:[#allocation293_spill] sm:$0xff]  ;;  %v12619_v53 = vld [vmem:[#allocation294_spill] sm:$0xff] }
 0x47a   :  { %v10573_v18 = vpop.permute.xlu1 %4176  ;;  %v2783_v40 = vmul.f32 %v10126_v31, %v12616_v52  ;;  %v2840_v63 = vadd.f32 %v2776_v32, %v2320_v1  ;;  %v2841_v15 = vadd.f32 %v2777_v60, %v2321_v50  ;;  %v2784_v55 = vmul.f32 %v10126_v31, %v12618_v43  ;;  %v12620_v45 = vld [vmem:[#allocation295_spill] sm:$0xff] }
 0x47b   :  { %3756 = vperm.xlu1 %7843, %v3452_v56   ;;  %v10587_v16 = vpop.permute.xlu0 %4181  ;;  %v2330_v56 = vadd.f32 %v2266_v37, %v1810_v46  ;;  %v2785_v9 = vmul.f32 %v10126_v31, %v12619_v53  ;;  %v3967_v46 = vld [vmem:[#allocation2 + $0x2e9] sm:$0xff]  ;;  %v2842_v19 = vadd.f32 %v2778_v3, %v2322_v22  ;;  %v2843_v37 = vadd.f32 %v2779_v17, %v2323_v7 }
 0x47c   :  { %12614 = vst [vmem:[#allocation193_spill] sm:$0xff] %v10587_v16  ;;  %v2786_v2 = vmul.f32 %v10126_v31, %v12620_v45  ;;  %v12621_v16 = vld [vmem:[#allocation296_spill] sm:$0xff]  ;;  %v2844_v23 = vadd.f32 %v2780_v11, %v2324_v57  ;;  %v2845_v1 = vadd.f32 %v2781_v49, %v2325_v0  ;;  %v3296_v50 = vmul.f32 %v10168_v25, %v10377_v35 }
 0x47d   :  { %v2787_v52 = vmul.f32 %v10126_v31, %v12621_v16  ;;  %v3297_v32 = vmul.f32 %v10168_v25, %v10379_v24  ;;  %v10611_v22 = vadd.f32 %v2783_v40, %v2327_v6  ;;  %v3298_v7 = vmul.f32 %v10168_v25, %v10384_v27  ;;  %4251 = vperm.xlu0 %7842, %v3967_v46   ;;  %v3969_v6 = vld [vmem:[#allocation2 + $0x301] sm:$0xff] }
 0x47e   :  { %v10593_v13 = vpop.permute.xlu1 %4186  ;;  %v3299_v31 = vmul.f32 %v10168_v25, %v10386_v14  ;;  %v10619_v0 = vadd.f32 %v2784_v55, %v2328_v39  ;;  %v10621_v35 = vadd.f32 %v2785_v9, %v2329_v47  ;;  %v3300_v24 = vmul.f32 %v10168_v25, %v10388_v51  ;;  %v3970_v39 = vld [vmem:[#allocation2 + $0x309] sm:$0xff] }
 0x47f   :  { %12617 = vst [vmem:[#allocation194_spill] sm:$0xff] %v10593_v13  ;;  %4246 = vperm.xlu1 %7843, %v3966_v36   ;;  %v3968_v13 = vld [vmem:[#allocation2 + $0x2f1] sm:$0xff]  ;;  %v10607_v60 = vpop.permute.xlu0 %4191  ;;  %v10609_v36 = vadd.f32 %v2782_v20, %v2326_v48  ;;  %v3301_v48 = vmul.f32 %v10168_v25, %v10390_v28  ;;  %v10627_v3 = vadd.f32 %v2786_v2, %v2330_v56  ;;  %v10659_v2 = vld [vmem:[%s11963_s1 + $0x5] ss:$0 sm:$0xff] }
 0x480   :  { %v10629_v27 = vadd.f32 %v2787_v52, %v2331_v61  ;;  %v3817_v14 = vmul.f32 %v10187_v54, %v10410_v44  ;;  %v3819_v17 = vmul.f32 %v10187_v54, %v10422_v42  ;;  %v3360_v47 = vadd.f32 %v3296_v50, %v2840_v63 }
 0x481   :  { %v3361_v11 = vadd.f32 %v3297_v32, %v2841_v15  ;;  %v3818_v51 = vmul.f32 %v10187_v54, %v10412_v12  ;;  %v3820_v28 = vmul.f32 %v10187_v54, %v10425_v21  ;;  %v3362_v16 = vadd.f32 %v3298_v7, %v2842_v19  ;;  %4261 = vperm.xlu0 %7842, %v3969_v6   ;;  %v3971_v21 = vld [vmem:[#allocation2 + $0x319] sm:$0xff] }
 0x482   :  { %v10617_v57 = vpop.permute.xlu1 %4196  ;;  %v3363_v56 = vadd.f32 %v3299_v31, %v2843_v37  ;;  %v4337_v61 = vmul.f32 %v10202_v41, %v10507_v34  ;;  %v4339_v44 = vmul.f32 %v10202_v41, %v10527_v8  ;;  %v3364_v42 = vadd.f32 %v3300_v24, %v2844_v23  ;;  %v3972_v8 = vld [vmem:[#allocation2 + $0x321] sm:$0xff]  ;;  %v12622_v31 = vld [vmem:[#allocation184_spill] sm:$0xff] }
 0x483   :  { %4256 = vperm.xlu1 %7843, %v3968_v13   ;;  %v4662_v49 = vpop.permute.xlu0 %4661  ;;  %v3365_v40 = vadd.f32 %v3301_v48, %v2845_v1  ;;  %v4338_v13 = vmul.f32 %v10202_v41, %v10513_v30  ;;  %v4340_v12 = vmul.f32 %v10202_v41, %v10533_v58  ;;  %v3302_v63 = vmul.f32 %v10168_v25, %v10392_v26 }
 0x484   :  { %v3881_v15 = vadd.f32 %v3817_v14, %v3360_v47  ;;  %v3883_v34 = vadd.f32 %v3819_v17, %v3362_v16  ;;  %v4857_v43 = vmul.f32 %v10217_v38, %v4662_v49  ;;  %v3303_v55 = vmul.f32 %v10168_v25, %v10394_v4  ;;  %v12626_v49 = vld [vmem:[#allocation131_spill] sm:$0xff] }
 0x485   :  { %v3882_v53 = vadd.f32 %v3818_v51, %v3361_v11  ;;  %v3884_v9 = vadd.f32 %v3820_v28, %v3363_v56  ;;  %v3304_v58 = vmul.f32 %v10168_v25, %v10397_v33  ;;  %4271 = vperm.xlu0 %7842, %v3971_v21   ;;  %v3305_v4 = vmul.f32 %v10659_v2, %v10399_v29  ;;  %v12624_v11 = vld [vmem:[#allocation274_spill] sm:$0xff] }
 0x486   :  { %v4667_v20 = vpop.permute.xlu1 %4666  ;;  %v4401_v19 = vadd.f32 %v4337_v61, %v3881_v15  ;;  %v4403_v37 = vadd.f32 %v4339_v44, %v3883_v34  ;;  %v3821_v25 = vmul.f32 %v10187_v54, %v10428_v62  ;;  %v3823_v33 = vmul.f32 %v10187_v54, %v10437_v10  ;;  %v12623_v62 = vld [vmem:[#allocation192_spill] sm:$0xff]  ;;  %v12625_v51 = vld [vmem:[#allocation278_spill] sm:$0xff]  ;;  %v12629_v15 = vld [vmem:[#allocation129_spill] sm:$0xff] }
 0x487   :  { %4266 = vperm.xlu1 %7843, %v3970_v39   ;;  %v4858_v30 = vmul.f32 %v10217_v38, %v4667_v20  ;;  %v4672_v46 = vpop.permute.xlu0 %4671  ;;  %v4402_v52 = vadd.f32 %v4338_v13, %v3882_v53  ;;  %v4404_v23 = vadd.f32 %v4340_v12, %v3884_v9  ;;  %v3822_v7 = vmul.f32 %v10187_v54, %v10430_v5  ;;  %v12630_v53 = vld [vmem:[#allocation275_spill] sm:$0xff]  ;;  %v10711_v9 = vld [vmem:[%s11963_s1 + $0x6] ss:$0 sm:$0xff] }
 0x488   :  { %v4859_v26 = vmul.f32 %v10217_v38, %v4672_v46  ;;  %v4921_v50 = vadd.f32 %v4857_v43, %v4401_v19  ;;  %v3824_v24 = vmul.f32 %v10187_v54, %v12622_v31  ;;  %v3366_v14 = vadd.f32 %v3302_v63, %v10609_v36  ;;  %v10682_v54 = vld [vmem:[%s11963_s1 + $0x7] ss:$0 sm:$0xff] }
 0x489   :  { %v4922_v29 = vadd.f32 %v4858_v30, %v4402_v52  ;;  %v4341_v17 = vmul.f32 %v10202_v41, %v10547_v59  ;;  %v4343_v39 = vmul.f32 %v10202_v41, %v12623_v62  ;;  %4761 = vperm.xlu0 %7842, %v12624_v11   ;;  %v3367_v5 = vadd.f32 %v3303_v55, %v10611_v22  ;;  %v12631_v30 = vld [vmem:[#allocation186_spill] sm:$0xff]  ;;  %v12634_v52 = vld [vmem:[#allocation191_spill] sm:$0xff] }
 0x48a   :  { %v4677_v45 = vpop.permute.xlu1 %4676  ;;  %v4923_v32 = vadd.f32 %v4859_v26, %v4403_v37  ;;  %v4342_v36 = vmul.f32 %v10682_v54, %v12625_v51  ;;  %v4344_v59 = vmul.f32 %v10682_v54, %v10573_v18  ;;  %v3368_v41 = vadd.f32 %v3304_v58, %v10619_v0  ;;  %v10697_v18 = vld [vmem:[%s11963_s1 + $0x8] ss:$0 sm:$0xff] }
 0x48b   :  { %v4860_v1 = vmul.f32 %v10217_v38, %v4677_v45  ;;  %4276 = vperm.xlu1 %7843, %v3972_v8   ;;  %v4682_v6 = vpop.permute.xlu0 %4681  ;;  %v3885_v16 = vadd.f32 %v3821_v25, %v3364_v42  ;;  %v3887_v56 = vadd.f32 %v3823_v33, %v3366_v14  ;;  %v3369_v61 = vadd.f32 %v3305_v4, %v10621_v35  ;;  %v12627_v42 = vld [vmem:[#allocation128_spill] sm:$0xff]  ;;  %v12632_v58 = vld [vmem:[#allocation190_spill] sm:$0xff]  ;;  %v12633_v45 = vld [vmem:[#allocation187_spill] sm:$0xff] }
 0x48c   :  { %v4969_v10 = vmax.f32 %v4921_v50, %v4923_v32  ;;  %v4861_v22 = vmul.f32 %v10217_v38, %v4682_v6  ;;  %v3886_v44 = vadd.f32 %v3822_v7, %v3365_v40  ;;  %v3888_v20 = vadd.f32 %v3824_v24, %v3367_v5  ;;  %v12628_v40 = vld [vmem:[#allocation185_spill] sm:$0xff]  ;;  %v12637_v14 = vld [vmem:[#allocation194_spill] sm:$0xff] }
 0x48d   :  { %v4924_v48 = vadd.f32 %v4860_v1, %v4404_v23  ;;  %v3306_v12 = vmul.f32 %v10659_v2, %v12627_v42  ;;  %v4405_v21 = vadd.f32 %v4341_v17, %v3885_v16  ;;  %v4407_v63 = vadd.f32 %v4343_v39, %v3887_v56  ;;  %4771 = vperm.xlu0 %7842, %v12628_v40   ;;  %v12635_v32 = vld [vmem:[#allocation193_spill] sm:$0xff] }
 0x48e   :  { %v4687_v47 = vpop.permute.xlu1 %4686  ;;  %5002 = vst.msk [vmem:[#allocation3 + $0x80] sm:$0xff] %vm4985_vm2, %v4969_v10  ;;  %v3307_v34 = vmul.f32 %v10659_v2, %v12629_v15  ;;  %v4406_v43 = vadd.f32 %v4342_v36, %v3886_v44  ;;  %v4408_v8 = vadd.f32 %v4344_v59, %v3888_v20  ;;  %v3825_v46 = vmul.f32 %v10711_v9, %v12631_v30  ;;  %v4491_v10 = vld [vmem:[#allocation2 + $0x31a] sm:$0xff]  ;;  %v4492_v36 = vld [vmem:[#allocation2 + $0x322] sm:$0xff] }
 0x48f   :  { %v4970_v28 = vmax.f32 %v4922_v29, %v4924_v48  ;;  %4766 = vperm.xlu1 %7843, %v12626_v49   ;;  %v4862_v13 = vmul.f32 %v10697_v18, %v4687_v47  ;;  %v4692_v0 = vpop.permute.xlu0 %4691  ;;  %v3827_v19 = vmul.f32 %v10711_v9, %v12632_v58  ;;  %v4925_v37 = vadd.f32 %v4861_v22, %v4405_v21  ;;  %v12636_v48 = vld [vmem:[#allocation188_spill] sm:$0xff] }
 0x490   :  { %v4863_v38 = vmul.f32 %v10697_v18, %v4692_v0  ;;  %v3826_v4 = vmul.f32 %v10711_v9, %v12633_v45  ;;  %v3828_v23 = vmul.f32 %v10711_v9, %v12634_v52  ;;  %v3370_v50 = vadd.f32 %v3306_v12, %v10627_v3  ;;  %v12638_v3 = vld [vmem:[#allocation189_spill] sm:$0xff] }
 0x491   :  { %5003 = vst.msk [vmem:[#allocation3 + $0x88] sm:$0xff] %vm4985_vm2, %v4970_v28  ;;  %v4926_v1 = vadd.f32 %v4862_v13, %v4406_v43  ;;  %v4345_v7 = vmul.f32 %v10682_v54, %v12635_v32  ;;  %v4347_v31 = vmul.f32 %v10682_v54, %v10607_v60  ;;  %4781 = vperm.xlu0 %7842, %v12636_v48   ;;  %v12639_v13 = vld [vmem:[#allocation124_spill] sm:$0xff]  ;;  %v5226_v45 = vld [vmem:[#allocation4 + $0x1] sm:$0xff]  ;;  %v10770_v52 = vld [vmem:[%s11964_s2] ss:$0 sm:$0xff] }
 0x492   :  { %v4697_v35 = vpop.permute.xlu1 %4696  ;;  %v4927_v26 = vadd.f32 %v4863_v38, %v4407_v63  ;;  %v3371_v6 = vadd.f32 %v3307_v34, %v10629_v27  ;;  %v4346_v17 = vmul.f32 %v10682_v54, %v12637_v14  ;;  %v4348_v62 = vmul.f32 %v10682_v54, %v10617_v57  ;;  %v7846_v34 = vld [vmem:[%s11965_s3 + $0x40] sm:$0xff]   ;;  %12640 = vst [vmem:[#allocation195_spill] sm:$0xff] %v10770_v52 }
 0x493   :  { %v4864_v55 = vmul.f32 %v10697_v18, %v4697_v35  ;;  %4776 = vperm.xlu1 %7843, %v12630_v53   ;;  %v4702_v33 = vpop.permute.xlu0 %4701  ;;  %v3889_v47 = vadd.f32 %v3825_v46, %v3368_v41  ;;  %v3891_v11 = vadd.f32 %v3827_v19, %v3370_v50  ;;  %v3890_v27 = vadd.f32 %v3826_v4, %v3369_v61  ;;  %v10754_v46 = vld [vmem:[#allocation2 + $0x33a] sm:$0xff]  ;;  %v7848_v4 = vld [vmem:[%s11965_s3 + $0x48] sm:$0xff]  }
 0x494   :  { %v4971_v24 = vmax.f32 %v4925_v37, %v4927_v26  ;;  %v4865_v51 = vmul.f32 %v10697_v18, %v4702_v33  ;;  %v3892_v59 = vadd.f32 %v3828_v23, %v3371_v6  ;;  %7623 = vmatprep.subr.bf16.mxu0 %v7846_v34  ;;  %v10759_v37 = vld [vmem:[#allocation4 + $0x22] sm:$0xff] }
 0x495   :  { %v4928_v25 = vadd.f32 %v4864_v55, %v4408_v8  ;;  %v4409_v16 = vadd.f32 %v4345_v7, %v3889_v47  ;;  %v4411_v56 = vadd.f32 %v4347_v31, %v3891_v11  ;;  %4791 = vperm.xlu0 %7842, %v4491_v10   ;;  %v4410_v44 = vadd.f32 %v4346_v17, %v3890_v27  ;;  %v10748_v8 = vld [vmem:[#allocation2 + $0x332] sm:$0xff]  ;;  %v7847_v55 = vld [vmem:[%s11965_s3] sm:$0xff]  }
 0x496   :  { %v4707_v29 = vpop.permute.xlu1 %4706  ;;  %5004 = vst.msk [vmem:[#allocation3 + $0x90] sm:$0xff] %vm4985_vm2, %v4971_v24  ;;  %v4412_v20 = vadd.f32 %v4348_v62, %v3892_v59  ;;  %7624 = vmatpush3.bf16.msra.mxu0 %v7847_v55  ;;  %v5202_v50 = vld [vmem:[#allocation4 + $0xa0] sm:$0xff]  ;;  %v7951_v31 = vld [vmem:[#allocation4 + $0x11] sm:$0xff] }
 0x497   :  { %v4972_v39 = vmax.f32 %v4926_v1, %v4928_v25  ;;  %4786 = vperm.xlu1 %7843, %v12638_v3   ;;  %v4866_v57 = vmul.f32 %v10697_v18, %v4707_v29  ;;  %v4712_v49 = vpop.permute.xlu0 %4711  ;;  %v4929_v61 = vadd.f32 %v4865_v51, %v4409_v16  ;;  %v10774_v1 = vld [vmem:[#allocation4 + $0x12] sm:$0xff]  ;;  %v7849_v25 = vld [vmem:[%s11965_s3 + $0x8] sm:$0xff]   ;;  %7625 = vmatprep.subr.bf16.mxu0 %v7848_v4  ;;  %v10792_v14 = vld [vmem:[#allocation4 + $0x20] sm:$0xff] }
 0x498   :  { %v5034_v5 = vld [vmem:[#allocation3 + $0x80] ss:$2 sm:$0xff]  ;;  %v5066_v60 = vld [vmem:[#allocation3 + $0x81] ss:$2 sm:$0xff]  ;;  %v4867_v41 = vmul.f32 %v10697_v18, %v4712_v49  ;;  %v5469_v33 = vpack.c.bf16 %v10759_v37, %v10774_v1  ;;  %v5242_v24 = vpack.c.bf16 %v7951_v31, %v5226_v45  ;;  %v10783_v29 = vld [vmem:[#allocation4 + $0x30] sm:$0xff] }
 0x499   :  { %v5089_v28 = vmax.f32 %v5034_v5, %v5066_v60  ;;  %5005 = vst.msk [vmem:[#allocation3 + $0x98] sm:$0xff] %vm4985_vm2, %v4972_v39  ;;  %v4930_v63 = vadd.f32 %v4866_v57, %v4410_v44  ;;  %3240 = vperm.xlu0 %7842, %v4491_v10   ;;  %v7850_v17 = vld [vmem:[%s11965_s3 + $0x50] sm:$0xff]   ;;  %v5534_v47 = vpack.c.bf16 %v10783_v29, %v10792_v14  ;;  %v3454_v59 = vld [vmem:[#allocation2 + $0x338] sm:$0xff]  ;;  %v3455_v57 = vld [vmem:[#allocation2 + $0x348] sm:$0xff] }
 0x49a   :  { %v4717_v22 = vpop.permute.xlu1 %4716  ;;  %v4931_v12 = vadd.f32 %v4867_v41, %v4411_v56  ;;  %7626 = vmatpush3.bf16.msra.mxu0 %v7849_v25  ;;  %v7851_v62 = vld [vmem:[%s11965_s3 + $0x10] sm:$0xff]   ;;  %v5291_v41 = vld [vmem:[#allocation4 + $0x2] sm:$0xff]  ;;  %v10866_v25 = vld [vmem:[%s11963_s1 + $0x1] ss:$0 sm:$0xff] }
 0x49b   :  { %v5112_v0 = vadd.f32 %v12639_v13, %v5089_v28  ;;  %v4868_v42 = vmul.f32 %v10697_v18, %v4717_v22  ;;  %4796 = vperm.xlu1 %7843, %v4492_v36   ;;  %v10740_v35 = vpop.permute.xlu0 %3160  ;;  %v3453_v11 = vld [vmem:[#allocation2 + $0x330] sm:$0xff]  ;;  %7627 = vmatprep.subr.bf16.mxu0 %v7850_v17  ;;  %v7853_v28 = vld [vmem:[%s11965_s3 + $0x18] sm:$0xff]   ;;  %v7854_v13 = vld [vmem:[%s11965_s3 + $0x60] sm:$0xff]   ;;  %12649 = vst [vmem:[#allocation256_spill] sm:$0xff] %v10866_v25 }
 0x49c   :  { %v4973_v40 = vmax.f32 %v4929_v61, %v4931_v12  ;;  %v5307_v12 = vpack.c.bf16 %v10774_v1, %v5291_v41  ;;  %v7952_v34 = vld [vmem:[#allocation4 + $0x21] sm:$0xff]  ;;  %v7859_v17 = vld [vmem:[%s11965_s3 + $0x30] sm:$0xff]  }
 0x49d   :  { %v5128_v21 = vmax.f32 %v5112_v0, 0.0  ;;  %v4932_v38 = vadd.f32 %v4868_v42, %v4412_v20  ;;  %3250 = vperm.xlu0 %7842, %v10748_v8   ;;  %v3456_v20 = vld [vmem:[#allocation2 + $0x350] sm:$0xff]  ;;  %v7855_v0 = vld [vmem:[%s11965_s3 + $0x20] sm:$0xff]  }
 0x49e   :  { %v10742_v15 = vpop.permute.xlu1 %3165  ;;  %5006 = vst.msk [vmem:[#allocation3 + $0xa0] sm:$0xff] %vm4985_vm2, %v4973_v40  ;;  %7628 = vmatpush3.bf16.msra.mxu0 %v7851_v62  ;;  %v7857_v40 = vld [vmem:[%s11965_s3 + $0x28] sm:$0xff]   ;;  %v10888_v62 = vld [vmem:[%s11963_s1] ss:$0 sm:$0xff] }
 0x49f   :  { %5186 = vst.msk [vmem:[#allocation4 + $0xb1] sm:$0xff] %vm4985_vm2, %v5128_v21  ;;  %v4974_v43 = vmax.f32 %v4930_v63, %v4932_v38  ;;  %3245 = vperm.xlu1 %7843, %v4492_v36   ;;  %v10757_v19 = vpop.permute.xlu0 %3170  ;;  %v7852_v36 = vld [vmem:[%s11965_s3 + $0x58] sm:$0xff]   ;;  %v7856_v38 = vld [vmem:[%s11965_s3 + $0x68] sm:$0xff]   ;;  %12653 = vst [vmem:[#allocation259_spill] sm:$0xff] %v10888_v62 }
 0x4a0   :  { %v5036_v53 = vld [vmem:[#allocation3 + $0x90] ss:$2 sm:$0xff]  ;;  %v5068_v30 = vld [vmem:[#allocation3 + $0x91] ss:$2 sm:$0xff]  ;;  %7629 = vmatprep.subr.bf16.mxu0 %v7852_v36 }
 0x4a1   :  { %v5090_v58 = vmax.f32 %v5036_v53, %v5068_v30  ;;  %5007 = vst.msk [vmem:[#allocation3 + $0xa8] sm:$0xff] %vm4985_vm2, %v4974_v43  ;;  %5485 = vrot.lane.b32.xlu0 %v5469_v33, %s7995_s28  ;;  %v5583_v21 = vld [vmem:[#allocation4 + $0x31] sm:$0xff]  ;;  %v3974_v36 = vld [vmem:[#allocation2 + $0x339] sm:$0xff] }
 0x4a2   :  { %v10761_v26 = vpop.permute.xlu1 %3175  ;;  %7630 = vmatpush3.bf16.msra.mxu0 %v7853_v28  ;;  %v10846_v43 = vpack.c.bf16 %v5583_v21, %v7952_v34  ;;  %v7953_v53 = vld [vmem:[#allocation4 + $0x10] sm:$0xff] }
 0x4a3   :  { %v5113_v23 = vadd.f32 %v10770_v52, %v5090_v58  ;;  %3255 = vperm.xlu1 %7843, %v10754_v46   ;;  %v10781_v7 = vpop.permute.xlu0 %3180  ;;  %7631 = vmatprep.subr.bf16.mxu0 %v7854_v13  ;;  %v5372_v30 = vpack.c.bf16 %v10792_v14, %v7953_v53  ;;  %v12650_v33 = vld [vmem:[#allocation100_spill] sm:$0xff]  ;;  %v12658_v28 = vld [vmem:[#allocation47_spill] sm:$0xff] }
 0x4a4   :  { %v7858_v14 = vld [vmem:[%s11965_s3 + $0x70] sm:$0xff]  }
 0x4a5   :  { %v5129_v32 = vmax.f32 %v5113_v23, 0.0  ;;  %5550 = vrot.lane.b32.xlu0 %v5534_v47, %s7996_s11  ;;  %v12663_v21 = vld [vmem:[#allocation51_spill] sm:$0xff] }
 0x4a6   :  { %v10785_v48 = vpop.permute.xlu1 %3185  ;;  %v10788_v6 = vld [vmem:[#allocation4 + $0xb0] sm:$0xff]  ;;  %7632 = vmatpush3.bf16.msra.mxu0 %v7855_v0 }
 0x4a7   :  { %12641 = vst [vmem:[#allocation248_spill] sm:$0xff] %v10788_v6  ;;  %5187 = vst.msk [vmem:[#allocation4 + $0xc1] sm:$0xff] %vm4985_vm2, %v5129_v32  ;;  %5258 = vrot.lane.b32.xlu1 %v5242_v24, %s7995_s28  ;;  %v5214_v39 = vpack.c.bf16 %v10788_v6, %v5202_v50  ;;  %v10803_v60 = vpop.permute.xlu0 %3190  ;;  %v10820_v22 = vld [vmem:[#allocation4 + $0xb1] sm:$0xff]  ;;  %7633 = vmatprep.subr.bf16.mxu0 %v7856_v38  ;;  %v1228_v50 = vmul.f32 %v10866_v25, %v12650_v33 }
 0x4a8   :  { %v5038_v3 = vld [vmem:[#allocation3 + $0xa0] ss:$2 sm:$0xff]  ;;  %v5070_v10 = vld [vmem:[#allocation3 + $0xa1] ss:$2 sm:$0xff]  ;;  %12642 = vst [vmem:[#allocation249_spill] sm:$0xff] %v10820_v22  ;;  %v3973_v32 = vld [vmem:[#allocation2 + $0x331] sm:$0xff]  ;;  %v715_v38 = vmul.f32 %v10888_v62, %v12663_v21 }
 0x4a9   :  { %v5091_v5 = vmax.f32 %v5038_v3, %v5070_v10  ;;  %5222 = vst.msk [vmem:[#allocation5 + $0x60] sm:$0xff] %vm4985_vm2, %v5214_v39  ;;  %3766 = vperm.xlu0 %7842, %v3454_v59   ;;  %v12654_v39 = vld [vmem:[#allocation44_spill] sm:$0xff]  ;;  %v12655_v10 = vld [vmem:[#allocation45_spill] sm:$0xff]  ;;  %v10937_v21 = vld [vmem:[%s11963_s1 + $0x2] ss:$0 sm:$0xff] }
 0x4aa   :  { %v10806_v51 = vpop.permute.xlu1 %3195  ;;  %7634 = vmatpush3.bf16.msra.mxu0 %v7857_v40  ;;  %v708_v3 = vmul.f32 %v10888_v62, %v12654_v39  ;;  %v709_v47 = vmul.f32 %v10888_v62, %v12655_v10  ;;  %v12664_v40 = vld [vmem:[#allocation102_spill] sm:$0xff]  ;;  %v12667_v10 = vld [vmem:[#allocation104_spill] sm:$0xff]  ;;  %12671 = vst [vmem:[#allocation317_spill] sm:$0xff] %v10937_v21 }
 0x4ab   :  { %v5114_v27 = vadd.f32 %v10770_v52, %v5091_v5  ;;  %3761 = vperm.xlu1 %7843, %v3453_v11   ;;  %v10816_v16 = vpop.permute.xlu0 %3681  ;;  %v12656_v11 = vld [vmem:[#allocation101_spill] sm:$0xff]  ;;  %7635 = vmatprep.subr.bf16.mxu0 %v7858_v14  ;;  %v1230_v34 = vmul.f32 %v10866_v25, %v12664_v40  ;;  %v12666_v14 = vld [vmem:[#allocation103_spill] sm:$0xff]  ;;  %v12672_v40 = vld [vmem:[#allocation164_spill] sm:$0xff] }
 0x4ac   :  { %v1229_v5 = vmul.f32 %v10866_v25, %v12656_v11  ;;  %v1292_v33 = vadd.f32 %v1228_v50, %v708_v3  ;;  %v1231_v39 = vmul.f32 %v10866_v25, %v12666_v14  ;;  %v1232_v11 = vmul.f32 %v10866_v25, %v12667_v10  ;;  %v12670_v50 = vld [vmem:[#allocation107_spill] sm:$0xff]  ;;  %v12673_v10 = vld [vmem:[#allocation165_spill] sm:$0xff]  ;;  %v12697_v52 = vld [vmem:[#allocation304_spill] sm:$0xff] }
 0x4ad   :  { %v5130_v49 = vmax.f32 %v5114_v27, 0.0  ;;  %3776 = vperm.xlu0 %7842, %v3456_v20   ;;  %v12657_v27 = vld [vmem:[#allocation46_spill] sm:$0xff]  ;;  %v12660_v20 = vld [vmem:[#allocation49_spill] sm:$0xff]  ;;  %v1235_v3 = vmul.f32 %v10866_v25, %v12670_v50  ;;  %v3976_v14 = vld [vmem:[#allocation2 + $0x351] sm:$0xff] }
 0x4ae   :  { %v10818_v56 = vpop.permute.xlu1 %3686  ;;  %v10822_v44 = vld [vmem:[#allocation4 + $0xc1] sm:$0xff]  ;;  %v710_v59 = vmul.f32 %v10888_v62, %v12657_v27  ;;  %v713_v13 = vmul.f32 %v10888_v62, %v12660_v20  ;;  %7636 = vmatpush3.bf16.msra.mxu0 %v7859_v17  ;;  %v1293_v17 = vadd.f32 %v1229_v5, %v709_v47  ;;  %v12676_v50 = vld [vmem:[#allocation168_spill] sm:$0xff] }
 0x4af   :  { %12643 = vst [vmem:[#allocation250_spill] sm:$0xff] %v10822_v44  ;;  %5188 = vst.msk [vmem:[#allocation4 + $0xd1] sm:$0xff] %vm4985_vm2, %v5130_v49  ;;  %3771 = vperm.xlu1 %7843, %v3455_v57   ;;  %v5441_v42 = vpack.c.bf16 %v10822_v44, %v10820_v22  ;;  %v10833_v61 = vpop.permute.xlu0 %3691  ;;  %v10851_v58 = vld [vmem:[#allocation4 + $0xc2] sm:$0xff]  ;;  %v711_v57 = vmul.f32 %v10888_v62, %v12658_v28  ;;  %v12659_v49 = vld [vmem:[#allocation48_spill] sm:$0xff]  ;;  %v1299_v22 = vadd.f32 %v1235_v3, %v715_v38 }
 0x4b0   :  { %12644 = vst [vmem:[#allocation251_spill] sm:$0xff] %v10851_v58  ;;  %v10859_v23 = vld [vmem:[#allocation4 + $0xc0] sm:$0xff]  ;;  %v712_v41 = vmul.f32 %v10888_v62, %v12659_v49  ;;  %v3975_v49 = vld [vmem:[#allocation2 + $0x349] sm:$0xff] }
 0x4b1   :  { %5449 = vst.msk [vmem:[#allocation5 + $0x68] sm:$0xff] %vm4985_vm2, %v5441_v42  ;;  %5614 = vrot.lane.b32.xlu0 %v10846_v43, %s7997_s24  ;;  %12647 = vst [vmem:[#allocation254_spill] sm:$0xff] %v10859_v23  ;;  %v12662_v42 = vld [vmem:[#allocation50_spill] sm:$0xff]  ;;  %v12668_v27 = vld [vmem:[#allocation105_spill] sm:$0xff] }
 0x4b2   :  { %v10837_v63 = vpop.permute.xlu1 %3696  ;;  %v1233_v28 = vmul.f32 %v10866_v25, %v12668_v27  ;;  %v12669_v20 = vld [vmem:[#allocation106_spill] sm:$0xff]  ;;  %v1749_v27 = vmul.f32 %v10937_v21, %v12673_v10  ;;  %v1295_v10 = vadd.f32 %v1231_v39, %v711_v57 }
 0x4b3   :  { %5323 = vrot.lane.b32.xlu1 %v5307_v12, %s7996_s11  ;;  %v10848_v55 = vpop.permute.xlu0 %3701  ;;  %v714_v12 = vmul.f32 %v10888_v62, %v12662_v42  ;;  %v1234_v42 = vmul.f32 %v10866_v25, %v12669_v20  ;;  %v12674_v47 = vld [vmem:[#allocation166_spill] sm:$0xff]  ;;  %v12675_v20 = vld [vmem:[#allocation167_spill] sm:$0xff]  ;;  %v1294_v62 = vadd.f32 %v1230_v34, %v710_v59 }
 0x4b4   :  { %v1750_v5 = vmul.f32 %v10937_v21, %v12674_v47  ;;  %v1296_v47 = vadd.f32 %v1232_v11, %v712_v41  ;;  %v1297_v44 = vadd.f32 %v1233_v28, %v713_v13  ;;  %v12683_v28 = vld [vmem:[#allocation230_spill] sm:$0xff] }
 0x4b5   :  { %4281 = vperm.xlu0 %7842, %v3973_v32   ;;  %v7861_v32 = vld [vmem:[%s11965_s3 + $0x38] sm:$0xff]  }
 0x4b6   :  { %v10853_v45 = vpop.permute.xlu1 %3706  ;;  %v10857_v4 = vld [vmem:[#allocation4 + $0xd2] sm:$0xff]  ;;  %v1814_v57 = vadd.f32 %v1750_v5, %v1294_v62  ;;  %v12684_v62 = vld [vmem:[#allocation231_spill] sm:$0xff] }
 0x4b7   :  { %12645 = vst [vmem:[#allocation252_spill] sm:$0xff] %v10853_v45  ;;  %12646 = vst [vmem:[#allocation253_spill] sm:$0xff] %v10857_v4  ;;  %v10861_v1 = vld [vmem:[#allocation4 + $0xd0] sm:$0xff]  ;;  %5388 = vrot.lane.b32.xlu1 %v5372_v30, %s7997_s24  ;;  %v10873_v31 = vpack.c.bf16 %v10857_v4, %v10851_v58  ;;  %v10904_v0 = vpop.permute.xlu0 %3711  ;;  %v7860_v30 = vld [vmem:[%s11965_s3 + $0x78] sm:$0xff]  }
 0x4b8   :  { %12648 = vst [vmem:[#allocation255_spill] sm:$0xff] %v10861_v1  ;;  %v10877_v24 = vpack.c.bf16 %v10861_v1, %v10859_v23  ;;  %12661 = vst [vmem:[#allocation65_spill] sm:$0xff] %v10904_v0  ;;  %7637 = vmatprep.subr.bf16.mxu0 %v7860_v30  ;;  %v1751_v1 = vmul.f32 %v10937_v21, %v12675_v20  ;;  %v12677_v4 = vld [vmem:[#allocation169_spill] sm:$0xff]  ;;  %v12678_v23 = vld [vmem:[#allocation170_spill] sm:$0xff] }
 0x4b9   :  { %12651 = vst [vmem:[#allocation257_spill] sm:$0xff] %v10873_v31  ;;  %5674 = vst.msk [vmem:[#allocation5 + $0x70] sm:$0xff] %vm4985_vm2, %v10873_v31  ;;  %v1752_v31 = vmul.f32 %v10937_v21, %v12676_v50  ;;  %v1754_v30 = vmul.f32 %v10937_v21, %v12678_v23  ;;  %4291 = vperm.xlu0 %7842, %v3975_v49   ;;  %7638 = vmatpush3.bf16.msra.mxu0 %v7861_v32  ;;  %v12679_v20 = vld [vmem:[#allocation171_spill] sm:$0xff]  ;;  %v12681_v23 = vld [vmem:[#allocation228_spill] sm:$0xff] }
 0x4ba   :  { %12652 = vst [vmem:[#allocation258_spill] sm:$0xff] %v10877_v24  ;;  %5223 = vst.msk [vmem:[#allocation5 + $0x78] sm:$0xff] %vm4985_vm2, %v10877_v24  ;;  %v10916_v53 = vpop.permute.xlu1 %3716  ;;  %v1755_v24 = vmul.f32 %v10937_v21, %v12679_v20  ;;  %v1298_v50 = vadd.f32 %v1234_v42, %v714_v12  ;;  %v1813_v32 = vadd.f32 %v1749_v27, %v1293_v17  ;;  %v4495_v27 = vld [vmem:[#allocation2 + $0x34a] sm:$0xff]  ;;  %v4496_v20 = vld [vmem:[#allocation2 + $0x352] sm:$0xff] }
 0x4bb   :  { %12665 = vst [vmem:[#allocation66_spill] sm:$0xff] %v10916_v53  ;;  %4286 = vperm.xlu1 %7843, %v3974_v36   ;;  %v1748_v36 = vmul.f32 %v10937_v21, %v12672_v40  ;;  %v10949_v25 = vpop.permute.xlu0 %4201  ;;  %v1753_v40 = vmul.f32 %v10937_v21, %v12677_v4  ;;  %v10962_v4 = vld [vmem:[%s11963_s1 + $0x3] ss:$0 sm:$0xff]  ;;  %v1815_v41 = vadd.f32 %v1751_v1, %v1295_v10  ;;  %v12688_v10 = vld [vmem:[#allocation235_spill] sm:$0xff] }
 0x4bc   :  { %12680 = vst [vmem:[#allocation334_spill] sm:$0xff] %v10962_v4  ;;  %v2268_v34 = vmul.f32 %v10962_v4, %v12681_v23  ;;  %v1816_v13 = vadd.f32 %v1752_v31, %v1296_v47  ;;  %v1818_v38 = vadd.f32 %v1754_v30, %v1298_v50  ;;  %v2270_v42 = vmul.f32 %v10962_v4, %v12683_v28  ;;  %v12685_v31 = vld [vmem:[#allocation232_spill] sm:$0xff]  ;;  %v12690_v50 = vld [vmem:[#allocation298_spill] sm:$0xff]  ;;  %v12691_v23 = vld [vmem:[#allocation299_spill] sm:$0xff] }
 0x4bd   :  { %v1812_v59 = vadd.f32 %v1748_v36, %v1292_v33  ;;  %v1817_v12 = vadd.f32 %v1753_v40, %v1297_v44  ;;  %v12682_v33 = vld [vmem:[#allocation229_spill] sm:$0xff]  ;;  %4801 = vperm.xlu0 %7842, %v10748_v8   ;;  %v1819_v17 = vadd.f32 %v1755_v24, %v1299_v22  ;;  %v2271_v1 = vmul.f32 %v10962_v4, %v12684_v62  ;;  %v12687_v40 = vld [vmem:[#allocation234_spill] sm:$0xff] }
 0x4be   :  { %v10955_v6 = vpop.permute.xlu1 %4206  ;;  %v2269_v11 = vmul.f32 %v10962_v4, %v12682_v33  ;;  %v2272_v36 = vmul.f32 %v10962_v4, %v12685_v31  ;;  %v2274_v30 = vmul.f32 %v10962_v4, %v12687_v40  ;;  %v2275_v8 = vmul.f32 %v10962_v4, %v12688_v10  ;;  %v10990_v22 = vld [vmem:[%s11963_s1 + $0x4] ss:$0 sm:$0xff]  ;;  %v12689_v24 = vld [vmem:[#allocation297_spill] sm:$0xff] }
 0x4bf   :  { %4296 = vperm.xlu1 %7843, %v3976_v14   ;;  %v10967_v39 = vpop.permute.xlu0 %4211  ;;  %v12686_v14 = vld [vmem:[#allocation233_spill] sm:$0xff]  ;;  %v2332_v5 = vadd.f32 %v2268_v34, %v1812_v59  ;;  %v2788_v47 = vmul.f32 %v10990_v22, %v12689_v24  ;;  %v2790_v59 = vmul.f32 %v10990_v22, %v12691_v23  ;;  %v12692_v34 = vld [vmem:[#allocation300_spill] sm:$0xff]  ;;  %v11004_v31 = vld [vmem:[#allocation4 + $0x42] sm:$0xff]  ;;  %v2334_v40 = vadd.f32 %v2270_v42, %v1814_v57 }
 0x4c0   :  { %v5692_v49 = vld [vmem:[#allocation5 + $0x70] sm:$0xff]  ;;  %v2273_v44 = vmul.f32 %v10962_v4, %v12686_v14  ;;  %v12693_v33 = vld [vmem:[#allocation301_spill] sm:$0xff]  ;;  %v2333_v14 = vadd.f32 %v2269_v11, %v1813_v32  ;;  %v12695_v10 = vld [vmem:[#allocation302_spill] sm:$0xff]  ;;  %v2335_v23 = vadd.f32 %v2271_v1, %v1815_v41  ;;  %v2338_v53 = vadd.f32 %v2274_v30, %v1818_v38 }
 0x4c1   :  { %7806 = vmatprep.mubr.msk.bf16.mxu1 %vm4985_vm2, %v5692_v49  ;;  %v2791_v49 = vmul.f32 %v10990_v22, %v12692_v34  ;;  %v2792_v28 = vmul.f32 %v10990_v22, %v12693_v33  ;;  %v2793_v24 = vmul.f32 %v10990_v22, %v12695_v10  ;;  %v12696_v4 = vld [vmem:[#allocation303_spill] sm:$0xff]  ;;  %4811 = vperm.xlu0 %7842, %v4495_v27  }
 0x4c2   :  { %v10973_v3 = vpop.permute.xlu1 %4216  ;;  %v2336_v34 = vadd.f32 %v2272_v36, %v1816_v13  ;;  %v2337_v58 = vadd.f32 %v2273_v44, %v1817_v12  ;;  %v2795_v33 = vmul.f32 %v10990_v22, %v12697_v52  ;;  %v2339_v32 = vadd.f32 %v2275_v8, %v1819_v17  ;;  %v7959_v36 = vld [vmem:[#allocation4 + $0x40] sm:$0xff]  ;;  %v11040_v44 = vld [vmem:[#allocation4 + $0x52] sm:$0xff] }
 0x4c3   :  { %4806 = vperm.xlu1 %7843, %v10754_v46   ;;  %v2789_v46 = vmul.f32 %v10990_v22, %v12690_v50  ;;  %v11002_v62 = vpop.permute.xlu0 %4221  ;;  %v2794_v50 = vmul.f32 %v10990_v22, %v12696_v4  ;;  %v2852_v57 = vadd.f32 %v2788_v47, %v2332_v5  ;;  %v2854_v10 = vadd.f32 %v2790_v59, %v2334_v40  ;;  %v7960_v5 = vld [vmem:[#allocation4 + $0x62] sm:$0xff] }
 0x4c4   :  { %12694 = vst [vmem:[#allocation338_spill] sm:$0xff] %v11002_v62  ;;  %v5455_v62 = vld [vmem:[#allocation4 + $0x32] sm:$0xff]  ;;  %v2855_v45 = vadd.f32 %v2791_v49, %v2335_v23  ;;  %v2856_v4 = vadd.f32 %v2792_v28, %v2336_v34  ;;  %v2857_v27 = vadd.f32 %v2793_v24, %v2337_v58  ;;  %v3308_v13 = vmul.f32 %v10659_v2, %v10740_v35  ;;  %v12699_v34 = vld [vmem:[#allocation270_spill] sm:$0xff] }
 0x4c5   :  { %v5470_v11 = vpack.c.bf16 %v11004_v31, %v5455_v62  ;;  %v2853_v42 = vadd.f32 %v2789_v46, %v2333_v14  ;;  %v2858_v41 = vadd.f32 %v2794_v50, %v2338_v53  ;;  %v3310_v52 = vmul.f32 %v10659_v2, %v10757_v19 }
 0x4c6   :  { %v11010_v21 = vpop.permute.xlu1 %4226  ;;  %v11024_v38 = vadd.f32 %v2795_v33, %v2339_v32  ;;  %v3309_v17 = vmul.f32 %v10659_v2, %v10742_v15  ;;  %v3311_v1 = vmul.f32 %v10659_v2, %v10761_v26  ;;  %v5308_v35 = vpack.c.bf16 %v5455_v62, %v10759_v37 }
 0x4c7   :  { %4816 = vperm.xlu1 %7843, %v4496_v20   ;;  %v11015_v0 = vpop.permute.xlu0 %4231  ;;  %5487 = vrot.lane.b32.xlu0 %v5470_v11, %s7995_s28  ;;  %v3312_v19 = vmul.f32 %v10659_v2, %v10781_v7  ;;  %v3829_v58 = vmul.f32 %v10711_v9, %v10816_v16  ;;  %v3831_v53 = vmul.f32 %v10711_v9, %v10833_v61 }
 0x4c8   :  { %v5373_v15 = vpack.c.bf16 %v7959_v36, %v10783_v29  ;;  %v3313_v26 = vmul.f32 %v10659_v2, %v10785_v48  ;;  %v3830_v37 = vmul.f32 %v10711_v9, %v10818_v56  ;;  %v3832_v7 = vmul.f32 %v10711_v9, %v10837_v63  ;;  %v12698_v48 = vld [vmem:[#allocation123_spill] sm:$0xff] }
 0x4c9   :  { %v5471_v16 = vpack.c.bf16 %v7960_v5, %v11040_v44  ;;  %v3372_v30 = vadd.f32 %v3308_v13, %v2852_v57  ;;  %v3374_v61 = vadd.f32 %v3310_v52, %v2854_v10  ;;  %v4349_v29 = vmul.f32 %v10682_v54, %v10949_v25  ;;  %v12701_v13 = vld [vmem:[#allocation252_spill] sm:$0xff] }
 0x4ca   :  { %v11021_v12 = vpop.permute.xlu1 %4236  ;;  %v4351_v8 = vmul.f32 %v10682_v54, %v10967_v39  ;;  %v3373_v56 = vadd.f32 %v3309_v17, %v2853_v42  ;;  %v3375_v20 = vadd.f32 %v3311_v1, %v2855_v45  ;;  %v4350_v63 = vmul.f32 %v10682_v54, %v10955_v6  ;;  %v12700_v42 = vld [vmem:[#allocation65_spill] sm:$0xff]  ;;  %v12702_v17 = vld [vmem:[#allocation66_spill] sm:$0xff] }
 0x4cb   :  { %5260 = vrot.lane.b32.xlu1 %v10846_v43, %s7995_s28  ;;  %v4722_v43 = vpop.permute.xlu0 %4721  ;;  %5552 = vrot.lane.b32.xlu0 %v12698_v48, %s7996_s11  ;;  %v4352_v46 = vmul.f32 %v10682_v54, %v10973_v3  ;;  %v3376_v59 = vadd.f32 %v3312_v19, %v2856_v4  ;;  %v3893_v49 = vadd.f32 %v3829_v58, %v3372_v30  ;;  %v12703_v58 = vld [vmem:[#allocation338_spill] sm:$0xff] }
 0x4cc   :  { %v3895_v25 = vadd.f32 %v3831_v53, %v3374_v61  ;;  %v4869_v28 = vmul.f32 %v10697_v18, %v4722_v43  ;;  %v3377_v39 = vadd.f32 %v3313_v26, %v2857_v27  ;;  %v3894_v62 = vadd.f32 %v3830_v37, %v3373_v56 }
 0x4cd   :  { %v3896_v14 = vadd.f32 %v3832_v7, %v3375_v20  ;;  %v3314_v45 = vmul.f32 %v10659_v2, %v10803_v60  ;;  %v4413_v6 = vadd.f32 %v4349_v29, %v3893_v49  ;;  %v3315_v33 = vmul.f32 %v10659_v2, %v10806_v51 }
 0x4ce   :  { %v4727_v47 = vpop.permute.xlu1 %4726  ;;  %v4415_v50 = vadd.f32 %v4351_v8, %v3895_v25  ;;  %v4414_v32 = vadd.f32 %v4350_v63, %v3894_v62  ;;  %v3833_v60 = vmul.f32 %v10711_v9, %v10848_v55  ;;  %v3835_v10 = vmul.f32 %v10711_v9, %v12700_v42  ;;  %v12704_v8 = vld [vmem:[#allocation126_spill] sm:$0xff]  ;;  %v12705_v25 = vld [vmem:[#allocation127_spill] sm:$0xff] }
 0x4cf   :  { %5325 = vrot.lane.b32.xlu1 %v5308_v35, %s7996_s11  ;;  %v4870_v40 = vmul.f32 %v10697_v18, %v4727_v47  ;;  %v4732_v24 = vpop.permute.xlu0 %4731  ;;  %5616 = vrot.lane.b32.xlu0 %v12699_v34, %s7997_s24  ;;  %v4416_v57 = vadd.f32 %v4352_v46, %v3896_v14  ;;  %v4933_v4 = vadd.f32 %v4869_v28, %v4413_v6  ;;  %v12707_v62 = vld [vmem:[#allocation122_spill] sm:$0xff] }
 0x4d0   :  { %v4871_v3 = vmul.f32 %v10697_v18, %v4732_v24  ;;  %v3834_v52 = vmul.f32 %v10711_v9, %v12701_v13  ;;  %v3836_v2 = vmul.f32 %v10711_v9, %v12702_v17  ;;  %v3378_v19 = vadd.f32 %v3314_v45, %v2858_v41  ;;  %v5524_v6 = vld [vmem:[#allocation4 + $0x80] sm:$0xff] }
 0x4d1   :  { %v4934_v51 = vadd.f32 %v4870_v40, %v4414_v32  ;;  %v4353_v53 = vmul.f32 %v10682_v54, %v12703_v58  ;;  %v4355_v55 = vmul.f32 %v10682_v54, %v11015_v0  ;;  %v3379_v26 = vadd.f32 %v3315_v33, %v11024_v38  ;;  %v5298_v32 = vld [vmem:[#allocation4 + $0x72] sm:$0xff]  ;;  %v7961_v58 = vld [vmem:[#allocation4 + $0x81] sm:$0xff] }
 0x4d2   :  { %v4737_v23 = vpop.permute.xlu1 %4736  ;;  %v4935_v27 = vadd.f32 %v4871_v3, %v4415_v50  ;;  %v4354_v37 = vmul.f32 %v10682_v54, %v11010_v21  ;;  %v4356_v9 = vmul.f32 %v10682_v54, %v11021_v12  ;;  %v3897_v41 = vadd.f32 %v3833_v60, %v3376_v59  ;;  %v5525_v50 = vld [vmem:[#allocation4 + $0x90] sm:$0xff] }
 0x4d3   :  { %v4872_v11 = vmul.f32 %v10697_v18, %v4737_v23  ;;  %5390 = vrot.lane.b32.xlu1 %v5373_v15, %s7997_s24  ;;  %v4742_v35 = vpop.permute.xlu0 %4741  ;;  %5489 = vrot.lane.b32.xlu0 %v5471_v16, %s7995_s28  ;;  %v3899_v43 = vadd.f32 %v3835_v10, %v3378_v19  ;;  %v3898_v5 = vadd.f32 %v3834_v52, %v3377_v39  ;;  %v12706_v39 = vld [vmem:[#allocation271_spill] sm:$0xff]  ;;  %v12709_v23 = vld [vmem:[#allocation130_spill] sm:$0xff] }
 0x4d4   :  { %v4975_v36 = vmax.f32 %v4933_v4, %v4935_v27  ;;  %v4873_v0 = vmul.f32 %v10697_v18, %v4742_v35  ;;  %v3900_v16 = vadd.f32 %v3836_v2, %v3379_v26  ;;  %v5309_v54 = vpack.c.bf16 %v11040_v44, %v11004_v31  ;;  %v5297_v4 = vld [vmem:[#allocation4 + $0x62] sm:$0xff]  ;;  %v5589_v2 = vld [vmem:[#allocation4 + $0x91] sm:$0xff] }
 0x4d5   :  { %v4936_v1 = vadd.f32 %v4872_v11, %v4416_v57  ;;  %v4417_v12 = vadd.f32 %v4353_v53, %v3897_v41  ;;  %v4419_v30 = vadd.f32 %v4355_v55, %v3899_v43  ;;  %v4418_v47 = vadd.f32 %v4354_v37, %v3898_v5  ;;  %v12712_v57 = vld [vmem:[#allocation195_spill] sm:$0xff]  ;;  %v5461_v41 = vld [vmem:[#allocation4 + $0xb2] sm:$0xff] }
 0x4d6   :  { %v4747_v15 = vpop.permute.xlu1 %4746  ;;  %5008 = vst.msk [vmem:[#allocation3 + $0xb0] sm:$0xff] %vm4985_vm2, %v4975_v36  ;;  %v4420_v48 = vadd.f32 %v4356_v9, %v3900_v16  ;;  %v12708_v14 = vpack.c.bf16 %v12706_v39, %v12707_v62  ;;  %v5537_v10 = vpack.c.bf16 %v5525_v50, %v5524_v6  ;;  %v5310_v17 = vpack.c.bf16 %v5298_v32, %v5297_v4  ;;  %v5234_v9 = vld [vmem:[#allocation4 + $0xa1] sm:$0xff]  ;;  %v12717_v43 = vld [vmem:[#allocation251_spill] sm:$0xff] }
 0x4d7   :  { %v4976_v7 = vmax.f32 %v4934_v51, %v4936_v1  ;;  %5262 = vrot.lane.b32.xlu1 %v12699_v34, %s7995_s28  ;;  %v4874_v38 = vmul.f32 %v10697_v18, %v4747_v15  ;;  %v4752_v21 = vpop.permute.xlu0 %4751  ;;  %5554 = vrot.lane.b32.xlu0 %v12704_v8, %s7996_s11  ;;  %v4937_v20 = vadd.f32 %v4873_v0, %v4417_v12  ;;  %v12710_v34 = vld [vmem:[#allocation125_spill] sm:$0xff]  ;;  %v7962_v15 = vld [vmem:[#allocation4 + $0x70] sm:$0xff]  ;;  %v5299_v12 = vld [vmem:[#allocation4 + $0xa2] sm:$0xff] }
 0x4d8   :  { %v4875_v61 = vmul.f32 %v10697_v18, %v4752_v21  ;;  %v12711_v33 = vpack.c.bf16 %v12709_v23, %v12710_v34  ;;  %v5601_v53 = vpack.c.bf16 %v5589_v2, %v7961_v58  ;;  %v5375_v26 = vpack.c.bf16 %v5524_v6, %v7962_v15  ;;  %v12723_v6 = vld [vmem:[#allocation253_spill] sm:$0xff]  ;;  %v12724_v23 = vld [vmem:[#allocation52_spill] sm:$0xff]  ;;  %v12725_v34 = vld [vmem:[#allocation259_spill] sm:$0xff] }
 0x4d9   :  { %5009 = vst.msk [vmem:[#allocation3 + $0xb8] sm:$0xff] %vm4985_vm2, %v4976_v7  ;;  %v4938_v46 = vadd.f32 %v4874_v38, %v4418_v47  ;;  %v5473_v0 = vpack.c.bf16 %v12717_v43, %v5461_v41  ;;  %v12718_v38 = vld [vmem:[#allocation249_spill] sm:$0xff]  ;;  %v5311_v47 = vpack.c.bf16 %v5461_v41, %v5299_v12  ;;  %v12731_v58 = vld [vmem:[#allocation55_spill] sm:$0xff]  ;;  %v12734_v41 = vld [vmem:[#allocation56_spill] sm:$0xff] }
 0x4da   :  { %v4757_v29 = vpop.permute.xlu1 %4756  ;;  %v4939_v63 = vadd.f32 %v4875_v61, %v4419_v30  ;;  %v5246_v21 = vpack.c.bf16 %v12718_v38, %v5234_v9  ;;  %v5591_v30 = vld [vmem:[#allocation4 + $0xd1] sm:$0xff]  ;;  %v12726_v32 = vld [vmem:[#allocation53_spill] sm:$0xff]  ;;  %v720_v43 = vmul.f32 %v12725_v34, %v12734_v41  ;;  %v12745_v41 = vld [vmem:[#allocation174_spill] sm:$0xff] }
 0x4db   :  { %v4876_v56 = vmul.f32 %v10697_v18, %v4757_v29  ;;  %5327 = vrot.lane.b32.xlu1 %v5309_v54, %s7996_s11  ;;  %v11102_v49 = vpop.permute.xlu0 %3200  ;;  %5618 = vrot.lane.b32.xlu0 %v12705_v25, %s7997_s24  ;;  %v12736_v38 = vld [vmem:[#allocation112_spill] sm:$0xff]  ;;  %v12737_v12 = vld [vmem:[#allocation113_spill] sm:$0xff] }
 0x4dc   :  { %v4977_v31 = vmax.f32 %v4937_v20, %v4939_v63  ;;  %v12720_v20 = vld [vmem:[#allocation250_spill] sm:$0xff] }
 0x4dd   :  { %v4940_v59 = vadd.f32 %v4876_v56, %v4420_v48  ;;  %v12719_v56 = vld [vmem:[#allocation258_spill] sm:$0xff]  ;;  %v5602_v63 = vpack.c.bf16 %v5591_v30, %v12720_v20 }
 0x4de   :  { %v11104_v44 = vpop.permute.xlu1 %3205  ;;  %5010 = vst.msk [vmem:[#allocation3 + $0xc0] sm:$0xff] %vm4985_vm2, %v4977_v31  ;;  %v12722_v31 = vld [vmem:[#allocation254_spill] sm:$0xff] }
 0x4df   :  { %v4978_v28 = vmax.f32 %v4938_v46, %v4940_v59  ;;  %5392 = vrot.lane.b32.xlu1 %v12708_v14, %s7997_s24  ;;  %v11114_v45 = vpop.permute.xlu0 %3210  ;;  %5491 = vrot.lane.b32.xlu0 %v12711_v33, %s7995_s28  ;;  %v12721_v59 = vld [vmem:[#allocation248_spill] sm:$0xff]  ;;  %v716_v33 = vmul.f32 %v12725_v34, %v12724_v23 }
 0x4e0   :  { %v5040_v18 = vld [vmem:[#allocation3 + $0xb0] ss:$2 sm:$0xff]  ;;  %v5072_v40 = vld [vmem:[#allocation3 + $0xb1] ss:$2 sm:$0xff] }
 0x4e1   :  { %v5092_v24 = vmax.f32 %v5040_v18, %v5072_v40  ;;  %5011 = vst.msk [vmem:[#allocation3 + $0xc8] sm:$0xff] %vm4985_vm2, %v4978_v28  ;;  %v11123_v60 = vpop.f32.mrb[0].mxu1  ;;  %v12742_v23 = vld [vmem:[#allocation172_spill] sm:$0xff] }
 0x4e2   :  { %v11116_v3 = vpop.permute.xlu1 %3215  ;;  %12713 = vst [vmem:[#allocation318_spill] sm:$0xff] %v11123_v60  ;;  %v11127_v42 = vpop.f32.mrb[1].mxu1  ;;  %v12767_v60 = vld [vmem:[#allocation310_spill] sm:$0xff] }
 0x4e3   :  { %v5115_v11 = vadd.f32 %v12712_v57, %v5092_v24  ;;  %5264 = vrot.lane.b32.xlu1 %v12705_v25, %s7995_s28  ;;  %12714 = vst [vmem:[#allocation67_spill] sm:$0xff] %v11127_v42  ;;  %v11129_v13 = vpop.f32.mrb[2].mxu1  ;;  %v11131_v52 = vpop.permute.xlu0 %3220  ;;  %5556 = vrot.lane.b32.xlu0 %v5537_v10, %s7996_s11  ;;  %v5376_v25 = vpack.c.bf16 %v12722_v31, %v12721_v59  ;;  %v12728_v10 = vld [vmem:[#allocation256_spill] sm:$0xff]  ;;  %v12740_v59 = vld [vmem:[#allocation114_spill] sm:$0xff] }
 0x4e4   :  { %12715 = vst [vmem:[#allocation337_spill] sm:$0xff] %v11129_v13  ;;  %v11135_v1 = vpop.f32.mrb[3].mxu1  ;;  %v1242_v31 = vmul.f32 %v12728_v10, %v12740_v59  ;;  %v12766_v13 = vld [vmem:[#allocation309_spill] sm:$0xff] }
 0x4e5   :  { %v5131_v27 = vmax.f32 %v5115_v11, 0.0  ;;  %12716 = vst [vmem:[#allocation339_spill] sm:$0xff] %v11135_v1  ;;  %v12727_v11 = vld [vmem:[#allocation108_spill] sm:$0xff] }
 0x4e6   :  { %v11133_v51 = vpop.permute.xlu1 %3225  ;;  %v1236_v4 = vmul.f32 %v12728_v10, %v12727_v11 }
 0x4e7   :  { %5189 = vst.msk [vmem:[#allocation4 + $0xe1] sm:$0xff] %vm4985_vm2, %v5131_v27  ;;  %5329 = vrot.lane.b32.xlu1 %v5310_v17, %s7996_s11  ;;  %v11140_v36 = vpop.permute.xlu0 %3230  ;;  %5620 = vrot.lane.b32.xlu0 %v5601_v53, %s7997_s24  ;;  %v12729_v27 = vld [vmem:[#allocation109_spill] sm:$0xff]  ;;  %v719_v53 = vmul.f32 %v12725_v34, %v12731_v58 }
 0x4e8   :  { %v5042_v35 = vld [vmem:[#allocation3 + $0xc0] ss:$2 sm:$0xff]  ;;  %v5074_v19 = vld [vmem:[#allocation3 + $0xc1] ss:$2 sm:$0xff]  ;;  %v1237_v17 = vmul.f32 %v12728_v10, %v12729_v27 }
 0x4e9   :  { %v5093_v55 = vmax.f32 %v5042_v35, %v5074_v19  ;;  %v12730_v35 = vld [vmem:[#allocation54_spill] sm:$0xff]  ;;  %v12744_v27 = vld [vmem:[#allocation173_spill] sm:$0xff] }
 0x4ea   :  { %v11142_v37 = vpop.permute.xlu1 %3235  ;;  %v718_v19 = vmul.f32 %v12725_v34, %v12730_v35 }
 0x4eb   :  { %v5116_v7 = vadd.f32 %v12712_v57, %v5093_v55  ;;  %5394 = vrot.lane.b32.xlu1 %v5375_v26, %s7997_s24  ;;  %v11148_v16 = vpop.permute.xlu0 %3721  ;;  %5493 = vrot.lane.b32.xlu0 %v5473_v0, %s7995_s28  ;;  %v717_v57 = vmul.f32 %v12725_v34, %v12726_v32  ;;  %v12732_v55 = vld [vmem:[#allocation110_spill] sm:$0xff]  ;;  %v12733_v26 = vld [vmem:[#allocation111_spill] sm:$0xff]  ;;  %v12735_v0 = vld [vmem:[#allocation57_spill] sm:$0xff] }
 0x4ec   :  { %v1238_v15 = vmul.f32 %v12728_v10, %v12732_v55  ;;  %v1239_v9 = vmul.f32 %v12728_v10, %v12733_v26  ;;  %v12743_v32 = vld [vmem:[#allocation317_spill] sm:$0xff] }
 0x4ed   :  { %v5132_v5 = vmax.f32 %v5116_v7, 0.0  ;;  %v1756_v11 = vmul.f32 %v12743_v32, %v12742_v23 }
 0x4ee   :  { %v11151_v54 = vpop.permute.xlu1 %3726  ;;  %v11154_v61 = vld [vmem:[#allocation4 + $0xe1] sm:$0xff]  ;;  %v1302_v55 = vadd.f32 %v1238_v15, %v718_v19  ;;  %v1303_v26 = vadd.f32 %v1239_v9, %v719_v53 }
 0x4ef   :  { %5190 = vst.msk [vmem:[#allocation4 + $0xf1] sm:$0xff] %vm4985_vm2, %v5132_v5  ;;  %5266 = vrot.lane.b32.xlu1 %v5246_v21, %s7995_s28  ;;  %v5442_v29 = vpack.c.bf16 %v11154_v61, %v5591_v30  ;;  %v11159_v8 = vpop.permute.xlu0 %3731  ;;  %5558 = vrot.lane.b32.xlu0 %v12719_v56, %s7996_s11  ;;  %v5464_v28 = vld [vmem:[#allocation4 + $0xe2] sm:$0xff]  ;;  %v721_v5 = vmul.f32 %v12725_v34, %v12735_v0  ;;  %v12739_v56 = vld [vmem:[#allocation59_spill] sm:$0xff]  ;;  %v12749_v19 = vld [vmem:[#allocation257_spill] sm:$0xff] }
 0x4f0   :  { %v11175_v62 = vld [vmem:[#allocation4 + $0xe0] sm:$0xff]  ;;  %v5474_v50 = vpack.c.bf16 %v5464_v28, %v12723_v6  ;;  %v1240_v21 = vmul.f32 %v12728_v10, %v12736_v38  ;;  %v1241_v30 = vmul.f32 %v12728_v10, %v12737_v12  ;;  %v723_v20 = vmul.f32 %v12725_v34, %v12739_v56  ;;  %v12746_v38 = vld [vmem:[#allocation175_spill] sm:$0xff] }
 0x4f1   :  { %5450 = vst.msk [vmem:[#allocation5 + $0x80] sm:$0xff] %vm4985_vm2, %v5442_v29  ;;  %v12738_v29 = vld [vmem:[#allocation58_spill] sm:$0xff]  ;;  %v1300_v6 = vadd.f32 %v1236_v4, %v716_v33  ;;  %v1758_v0 = vmul.f32 %v12743_v32, %v12745_v41  ;;  %v1759_v12 = vmul.f32 %v12743_v32, %v12746_v38  ;;  %v12748_v56 = vld [vmem:[#allocation177_spill] sm:$0xff]  ;;  %v12752_v41 = vld [vmem:[#allocation255_spill] sm:$0xff] }
 0x4f2   :  { %v11162_v48 = vpop.permute.xlu1 %3736  ;;  %v1305_v4 = vadd.f32 %v1241_v30, %v721_v5  ;;  %v1761_v59 = vmul.f32 %v12743_v32, %v12748_v56  ;;  %v12750_v9 = vld [vmem:[#allocation178_spill] sm:$0xff]  ;;  %v12755_v56 = vld [vmem:[#allocation237_spill] sm:$0xff] }
 0x4f3   :  { %5331 = vrot.lane.b32.xlu1 %v5311_v47, %s7996_s11  ;;  %v11168_v46 = vpop.permute.xlu0 %3741  ;;  %5622 = vrot.lane.b32.xlu0 %v5602_v63, %s7997_s24  ;;  %v722_v47 = vmul.f32 %v12725_v34, %v12738_v29  ;;  %v12754_v38 = vld [vmem:[#allocation334_spill] sm:$0xff] }
 0x4f5   :  { %v1306_v53 = vadd.f32 %v1242_v31, %v722_v47  ;;  %v5377_v47 = vpack.c.bf16 %v11175_v62, %v12752_v41  ;;  %v1823_v31 = vadd.f32 %v1759_v12, %v1303_v26  ;;  %v12758_v26 = vld [vmem:[#allocation240_spill] sm:$0xff]  ;;  %v12759_v12 = vld [vmem:[#allocation241_spill] sm:$0xff] }
 0x4f6   :  { %v11172_v39 = vpop.permute.xlu1 %3746  ;;  %v11177_v14 = vld [vmem:[#allocation4 + $0xf0] sm:$0xff] }
 0x4f7   :  { %v11179_v18 = vld [vmem:[#allocation4 + $0xf2] sm:$0xff]  ;;  %5396 = vrot.lane.b32.xlu1 %v5376_v25, %s7997_s24  ;;  %v5539_v40 = vpack.c.bf16 %v11177_v14, %v11175_v62  ;;  %v11196_v2 = vpop.permute.xlu0 %3751  ;;  %5495 = vrot.lane.b32.xlu0 %v5474_v50, %s7995_s28  ;;  %v12741_v25 = vld [vmem:[#allocation115_spill] sm:$0xff]  ;;  %v1301_v50 = vadd.f32 %v1237_v17, %v717_v57  ;;  %v1304_v57 = vadd.f32 %v1240_v21, %v720_v43 }
 0x4f8   :  { %v11185_v24 = vpack.c.bf16 %v11179_v18, %v5464_v28  ;;  %v1243_v28 = vmul.f32 %v12728_v10, %v12741_v25  ;;  %v11235_v58 = vld [vmem:[#allocation4 + $0xf1] sm:$0xff]  ;;  %v1762_v25 = vmul.f32 %v12743_v32, %v12750_v9  ;;  %v1820_v43 = vadd.f32 %v1756_v11, %v1300_v6 }
 0x4f9   :  { %5224 = vst.msk [vmem:[#allocation5 + $0x90] sm:$0xff] %vm4985_vm2, %v5539_v40  ;;  %v12747_v17 = vld [vmem:[#allocation176_spill] sm:$0xff]  ;;  %v12751_v21 = vld [vmem:[#allocation179_spill] sm:$0xff]  ;;  %v1825_v11 = vadd.f32 %v1761_v59, %v1305_v4  ;;  %v12762_v59 = vld [vmem:[#allocation305_spill] sm:$0xff] }
 0x4fa   :  { %5675 = vst.msk [vmem:[#allocation5 + $0x88] sm:$0xff] %vm4985_vm2, %v11185_v24  ;;  %v11209_v7 = vpop.permute.xlu1 %3756  ;;  %v1760_v29 = vmul.f32 %v12743_v32, %v12747_v17  ;;  %v1307_v15 = vadd.f32 %v1243_v28, %v723_v20  ;;  %v1763_v30 = vmul.f32 %v12743_v32, %v12751_v21  ;;  %v1822_v20 = vadd.f32 %v1758_v0, %v1302_v55  ;;  %v12753_v28 = vld [vmem:[#allocation236_spill] sm:$0xff]  ;;  %v12757_v9 = vld [vmem:[#allocation239_spill] sm:$0xff]  ;;  %v12760_v21 = vld [vmem:[#allocation242_spill] sm:$0xff] }
 0x4fb   :  { %5268 = vrot.lane.b32.xlu1 %v5602_v63, %s7995_s28  ;;  %v1757_v63 = vmul.f32 %v12743_v32, %v12744_v27  ;;  %v11233_v35 = vpop.permute.xlu0 %4241  ;;  %5560 = vrot.lane.b32.xlu0 %v5539_v40, %s7996_s11  ;;  %v5603_v40 = vpack.c.bf16 %v11235_v58, %v11154_v61  ;;  %v2276_v17 = vmul.f32 %v12754_v38, %v12753_v28  ;;  %v12761_v4 = vld [vmem:[#allocation243_spill] sm:$0xff] }
 0x4fc   :  { %v2277_v61 = vmul.f32 %v12754_v38, %v12755_v56  ;;  %v2279_v62 = vmul.f32 %v12754_v38, %v12757_v9  ;;  %v1826_v55 = vadd.f32 %v1762_v25, %v1306_v53  ;;  %v2280_v0 = vmul.f32 %v12754_v38, %v12758_v26  ;;  %v12763_v56 = vld [vmem:[#allocation306_spill] sm:$0xff]  ;;  %v12764_v9 = vld [vmem:[#allocation307_spill] sm:$0xff] }
 0x4fd   :  { %v1821_v5 = vadd.f32 %v1757_v63, %v1301_v50  ;;  %v1824_v50 = vadd.f32 %v1760_v29, %v1304_v57  ;;  %v12756_v63 = vld [vmem:[#allocation238_spill] sm:$0xff]  ;;  %v2282_v41 = vmul.f32 %v12754_v38, %v12760_v21  ;;  %v1827_v57 = vadd.f32 %v1763_v30, %v1307_v15 }
 0x4fe   :  { %v11241_v33 = vpop.permute.xlu1 %4246  ;;  %v2283_v29 = vmul.f32 %v12754_v38, %v12761_v4  ;;  %v2796_v28 = vmul.f32 %v10990_v22, %v12762_v59  ;;  %v2340_v25 = vadd.f32 %v2276_v17, %v1820_v43  ;;  %v2798_v26 = vmul.f32 %v10990_v22, %v12764_v9 }
 0x4ff   :  { %5333 = vrot.lane.b32.xlu1 %v12749_v19, %s7996_s11  ;;  %v11257_v27 = vpop.permute.xlu0 %4251  ;;  %5624 = vrot.lane.b32.xlu0 %v5603_v40, %s7997_s24  ;;  %v2278_v19 = vmul.f32 %v12754_v38, %v12756_v63  ;;  %v2341_v63 = vadd.f32 %v2277_v61, %v1821_v5  ;;  %v2343_v4 = vadd.f32 %v2279_v62, %v1823_v31  ;;  %v12768_v61 = vld [vmem:[#allocation311_spill] sm:$0xff] }
 0x500   :  { %v2800_v59 = vmul.f32 %v10990_v22, %v12766_v13  ;;  %v2344_v43 = vadd.f32 %v2280_v0, %v1824_v50  ;;  %v2346_v17 = vadd.f32 %v2282_v41, %v1826_v55  ;;  %v2802_v9 = vmul.f32 %v10990_v22, %v12768_v61 }
 0x501   :  { %v5695_v23 = vld [vmem:[#allocation5 + $0x88] sm:$0xff]  ;;  %v2342_v30 = vadd.f32 %v2278_v19, %v1822_v20  ;;  %v2347_v1 = vadd.f32 %v2283_v29, %v1827_v57 }
 0x502   :  { %7807 = vmatmul.mubr.msk.bf16.gmra.mrb[8].mxu1 %vm4985_vm2, %v5695_v23  ;;  %v11265_v6 = vpop.permute.xlu1 %4256  ;;  %v2281_v23 = vmul.f32 %v12754_v38, %v12759_v12  ;;  %v12765_v12 = vld [vmem:[#allocation308_spill] sm:$0xff]  ;;  %v2864_v62 = vadd.f32 %v2800_v59, %v2344_v43 }
 0x503   :  { %5398 = vrot.lane.b32.xlu1 %v5377_v47, %s7997_s24  ;;  %v2797_v47 = vmul.f32 %v10990_v22, %v12763_v56  ;;  %v11285_v53 = vpop.permute.xlu0 %4261  ;;  %v2799_v21 = vmul.f32 %v10990_v22, %v12765_v12  ;;  %v2801_v56 = vmul.f32 %v10990_v22, %v12767_v60  ;;  %v2860_v12 = vadd.f32 %v2796_v28, %v2340_v25  ;;  %v12769_v38 = vld [vmem:[#allocation312_spill] sm:$0xff]  ;;  %v11305_v60 = vld [vmem:[%s11963_s1 + $0x5] ss:$0 sm:$0xff] }
 0x504   :  { %v2345_v5 = vadd.f32 %v2281_v23, %v1825_v11  ;;  %v2803_v20 = vmul.f32 %v10990_v22, %v12769_v38  ;;  %v2862_v19 = vadd.f32 %v2798_v26, %v2342_v30  ;;  %v3318_v50 = vmul.f32 %v11305_v60, %v11114_v45 }
 0x505   :  { %v2861_v42 = vadd.f32 %v2797_v47, %v2341_v63  ;;  %v2863_v13 = vadd.f32 %v2799_v21, %v2343_v4  ;;  %v3317_v38 = vmul.f32 %v11305_v60, %v11104_v44  ;;  %v3319_v0 = vmul.f32 %v11305_v60, %v11116_v3  ;;  %v11350_v4 = vld [vmem:[%s11963_s1 + $0x8] ss:$0 sm:$0xff] }
 0x506   :  { %v11291_v15 = vpop.permute.xlu1 %4266  ;;  %v2865_v55 = vadd.f32 %v2801_v56, %v2345_v5  ;;  %v2866_v23 = vadd.f32 %v2802_v9, %v2346_v17  ;;  %v3320_v41 = vmul.f32 %v11305_v60, %v11131_v52  ;;  %v2867_v57 = vadd.f32 %v2803_v20, %v2347_v1 }
 0x507   :  { %5270 = vrot.lane.b32.xlu1 %v5603_v40, %s7995_s28  ;;  %v4272_v31 = vpop.permute.xlu0 %4271  ;;  %v3316_v40 = vmul.f32 %v11305_v60, %v11102_v49  ;;  %v11322_v49 = vld [vmem:[%s11963_s1 + $0x6] ss:$0 sm:$0xff]  ;;  %v3321_v3 = vmul.f32 %v11305_v60, %v11133_v51  ;;  %v3382_v47 = vadd.f32 %v3318_v50, %v2862_v19  ;;  %v3381_v25 = vadd.f32 %v3317_v38, %v2861_v42 }
 0x508   :  { %v3837_v45 = vmul.f32 %v11322_v49, %v11148_v16  ;;  %v3839_v44 = vmul.f32 %v11322_v49, %v11159_v8  ;;  %v3840_v52 = vmul.f32 %v11322_v49, %v11162_v48  ;;  %v11337_v16 = vld [vmem:[%s11963_s1 + $0x7] ss:$0 sm:$0xff]  ;;  %v3384_v26 = vadd.f32 %v3320_v41, %v2864_v62 }
 0x509   :  { %v3380_v28 = vadd.f32 %v3316_v40, %v2860_v12  ;;  %v4357_v1 = vmul.f32 %v11337_v16, %v11233_v35  ;;  %v4359_v51 = vmul.f32 %v11337_v16, %v11257_v27  ;;  %v4358_v48 = vmul.f32 %v11337_v16, %v11241_v33 }
 0x50a   :  { %v4277_v11 = vpop.permute.xlu1 %4276  ;;  %v4360_v63 = vmul.f32 %v11337_v16, %v11265_v6  ;;  %v3903_v30 = vadd.f32 %v3839_v44, %v3382_v47  ;;  %v3385_v27 = vadd.f32 %v3321_v3, %v2865_v55  ;;  %v3322_v33 = vmul.f32 %v11305_v60, %v11140_v36 }
 0x50b   :  { %5335 = vrot.lane.b32.xlu1 %v11185_v24, %s7996_s11  ;;  %v3838_v24 = vmul.f32 %v11322_v49, %v11151_v54  ;;  %v4762_v29 = vpop.permute.xlu0 %4761  ;;  %v3383_v54 = vadd.f32 %v3319_v0, %v2863_v13  ;;  %v3901_v21 = vadd.f32 %v3837_v45, %v3380_v28  ;;  %v3323_v9 = vmul.f32 %v11305_v60, %v11142_v37 }
 0x50c   :  { %v4877_v35 = vmul.f32 %v11350_v4, %v4762_v29  ;;  %v4423_v5 = vadd.f32 %v4359_v51, %v3903_v30  ;;  %v3841_v13 = vmul.f32 %v11322_v49, %v11168_v46  ;;  %v3843_v40 = vmul.f32 %v11322_v49, %v11196_v2 }
 0x50d   :  { %v3902_v59 = vadd.f32 %v3838_v24, %v3381_v25  ;;  %v3904_v42 = vadd.f32 %v3840_v52, %v3383_v54  ;;  %v4421_v6 = vadd.f32 %v4357_v1, %v3901_v21  ;;  %v3842_v62 = vmul.f32 %v11322_v49, %v11172_v39 }
 0x50e   :  { %v4767_v8 = vpop.permute.xlu1 %4766  ;;  %v3844_v55 = vmul.f32 %v11322_v49, %v11209_v7  ;;  %v3386_v41 = vadd.f32 %v3322_v33, %v2866_v23  ;;  %v4361_v45 = vmul.f32 %v11337_v16, %v11285_v53  ;;  %v4363_v46 = vmul.f32 %v11337_v16, %v4272_v31 }
 0x50f   :  { %v4878_v56 = vmul.f32 %v11350_v4, %v4767_v8  ;;  %v4772_v43 = vpop.permute.xlu0 %4771  ;;  %v4422_v12 = vadd.f32 %v4358_v48, %v3902_v59  ;;  %v4424_v20 = vadd.f32 %v4360_v63, %v3904_v42  ;;  %v4941_v50 = vadd.f32 %v4877_v35, %v4421_v6  ;;  %v11393_v6 = vld [vmem:[%s11964_s2] ss:$0 sm:$0xff] }
 0x510   :  { %v4879_v17 = vmul.f32 %v11350_v4, %v4772_v43  ;;  %v3387_v2 = vadd.f32 %v3323_v9, %v2867_v57  ;;  %v4362_v24 = vmul.f32 %v11337_v16, %v11291_v15  ;;  %v4364_v39 = vmul.f32 %v11337_v16, %v4277_v11 }
 0x511   :  { %v4942_v38 = vadd.f32 %v4878_v56, %v4422_v12  ;;  %v3905_v29 = vadd.f32 %v3841_v13, %v3384_v26  ;;  %v3907_v7 = vadd.f32 %v3843_v40, %v3386_v41  ;;  %v3906_v28 = vadd.f32 %v3842_v62, %v3385_v27 }
 0x512   :  { %v4777_v61 = vpop.permute.xlu1 %4776  ;;  %v4943_v36 = vadd.f32 %v4879_v17, %v4423_v5  ;;  %v3908_v47 = vadd.f32 %v3844_v55, %v3387_v2 }
 0x513   :  { %v4880_v19 = vmul.f32 %v11350_v4, %v4777_v61  ;;  %v4782_v0 = vpop.permute.xlu0 %4781  ;;  %v4425_v57 = vadd.f32 %v4361_v45, %v3905_v29  ;;  %v4427_v1 = vadd.f32 %v4363_v46, %v3907_v7  ;;  %v4426_v11 = vadd.f32 %v4362_v24, %v3906_v28  ;;  %v12770_v24 = vld [vmem:[#allocation116_spill] sm:$0xff]  ;;  %v12772_v29 = vld [vmem:[#allocation117_spill] sm:$0xff] }
 0x514   :  { %v4979_v44 = vmax.f32 %v4941_v50, %v4943_v36  ;;  %v4881_v23 = vmul.f32 %v11350_v4, %v4782_v0  ;;  %v4428_v8 = vadd.f32 %v4364_v39, %v3908_v47  ;;  %v12771_v39 = vld [vmem:[#allocation60_spill] sm:$0xff]  ;;  %v1245_v7 = vmul.f32 %v12728_v10, %v12772_v29  ;;  %v12774_v47 = vld [vmem:[#allocation119_spill] sm:$0xff]  ;;  %v12787_v29 = vld [vmem:[#allocation313_spill] sm:$0xff] }
 0x515   :  { %v4944_v37 = vadd.f32 %v4880_v19, %v4424_v20 }
 0x516   :  { %v4787_v3 = vpop.permute.xlu1 %4786  ;;  %5012 = vst.msk [vmem:[#allocation3 + $0xd0] sm:$0xff] %vm4985_vm2, %v4979_v44  ;;  %v4945_v54 = vadd.f32 %v4881_v23, %v4425_v57  ;;  %v12773_v23 = vld [vmem:[#allocation118_spill] sm:$0xff] }
 0x517   :  { %v4980_v52 = vmax.f32 %v4942_v38, %v4944_v37  ;;  %v4882_v53 = vmul.f32 %v11350_v4, %v4787_v3  ;;  %v4792_v31 = vpop.permute.xlu0 %4791  ;;  %v1246_v28 = vmul.f32 %v12728_v10, %v12773_v23  ;;  %v12788_v23 = vld [vmem:[#allocation315_spill] sm:$0xff] }
 0x518   :  { %v4883_v15 = vmul.f32 %v11350_v4, %v4792_v31 }
 0x519   :  { %5013 = vst.msk [vmem:[#allocation3 + $0xd8] sm:$0xff] %vm4985_vm2, %v4980_v52  ;;  %v4946_v63 = vadd.f32 %v4882_v53, %v4426_v11  ;;  %v724_v52 = vmul.f32 %v12725_v34, %v12771_v39  ;;  %v1247_v53 = vmul.f32 %v12728_v10, %v12774_v47  ;;  %v12775_v11 = vld [vmem:[#allocation180_spill] sm:$0xff] }
 0x51a   :  { %v4797_v51 = vpop.permute.xlu1 %4796  ;;  %v4947_v48 = vadd.f32 %v4883_v15, %v4427_v1 }
 0x51b   :  { %v4884_v25 = vmul.f32 %v11350_v4, %v4797_v51  ;;  %v11380_v21 = vpop.permute.xlu0 %3240 }
 0x51c   :  { %v4981_v30 = vmax.f32 %v4945_v54, %v4947_v48 }
 0x51d   :  { %v4948_v26 = vadd.f32 %v4884_v25, %v4428_v8  ;;  %v1764_v8 = vmul.f32 %v12743_v32, %v12775_v11 }
 0x51e   :  { %v11382_v35 = vpop.permute.xlu1 %3245  ;;  %5014 = vst.msk [vmem:[#allocation3 + $0xe0] sm:$0xff] %vm4985_vm2, %v4981_v30  ;;  %v7968_v30 = vld [vmem:[%s11963_s1] ss:$0 sm:$0xff] }
 0x51f   :  { %v4982_v27 = vmax.f32 %v4946_v63, %v4948_v26  ;;  %v11386_v43 = vpop.permute.xlu0 %3250  ;;  %v12776_v63 = vld [vmem:[#allocation61_spill] sm:$0xff] }
 0x520   :  { %v5044_v59 = vld [vmem:[#allocation3 + $0xd0] ss:$2 sm:$0xff]  ;;  %v5076_v42 = vld [vmem:[#allocation3 + $0xd1] ss:$2 sm:$0xff]  ;;  %v725_v26 = vmul.f32 %v12725_v34, %v12776_v63 }
 0x521   :  { %v5094_v56 = vmax.f32 %v5044_v59, %v5076_v42  ;;  %5015 = vst.msk [vmem:[#allocation3 + $0xe8] sm:$0xff] %vm4985_vm2, %v4982_v27  ;;  %v12777_v27 = vld [vmem:[#allocation62_spill] sm:$0xff]  ;;  %v12778_v42 = vld [vmem:[#allocation181_spill] sm:$0xff] }
 0x522   :  { %v11388_v33 = vpop.permute.xlu1 %3255  ;;  %v726_v59 = vmul.f32 %v7968_v30, %v12777_v27  ;;  %v3324_v27 = vmul.f32 %v11305_v60, %v11380_v21 }
 0x523   :  { %v5117_v5 = vadd.f32 %v11393_v6, %v5094_v56  ;;  %v5486_v61 = vpop.permute.xlu0 %5485  ;;  %v1765_v56 = vmul.f32 %v12743_v32, %v12778_v42 }
 0x524   :  { %5509 = vst.msk [vmem:[#allocation5 + $0x8] sm:$0xff] %vm5282_vm4, %v5486_v61  ;;  %v12780_v61 = vld [vmem:[#allocation63_spill] sm:$0xff] }
 0x525   :  { %v5133_v17 = vmax.f32 %v5117_v5, 0.0  ;;  %v12779_v5 = vld [vmem:[#allocation182_spill] sm:$0xff] }
 0x526   :  { %v5259_v9 = vpop.permute.xlu1 %5258 }
 0x527   :  { %5191 = vst.msk [vmem:[#allocation4 + $0x101] sm:$0xff] %vm4985_vm2, %v5133_v17  ;;  %v5551_v13 = vpop.permute.xlu0 %5550  ;;  %v1766_v17 = vmul.f32 %v12743_v32, %v12779_v5 }
 0x528   :  { %5283 = vst.msk [vmem:[#allocation5] sm:$0xff] %vm5282_vm4, %v5259_v9  ;;  %v5046_v12 = vld [vmem:[#allocation3 + $0xe0] ss:$2 sm:$0xff]  ;;  %v5078_v20 = vld [vmem:[#allocation3 + $0xe1] ss:$2 sm:$0xff]  ;;  %v727_v9 = vmul.f32 %v7968_v30, %v12780_v61 }
 0x529   :  { %v5095_v19 = vmax.f32 %v5046_v12, %v5078_v20  ;;  %5574 = vst.msk [vmem:[#allocation5 + $0x8] sm:$0xff] %vm5347_vm5, %v5551_v13  ;;  %v12781_v20 = vld [vmem:[#allocation183_spill] sm:$0xff]  ;;  %v1309_v13 = vadd.f32 %v1245_v7, %v725_v26  ;;  %v2804_v7 = vmul.f32 %v10990_v22, %v12787_v29 }
 0x52a   :  { %v11400_v40 = vpop.permute.xlu1 %3761 }
 0x52b   :  { %v5118_v50 = vadd.f32 %v11393_v6, %v5095_v19  ;;  %v11403_v62 = vpop.permute.xlu0 %3766  ;;  %v1767_v19 = vmul.f32 %v12743_v32, %v12781_v20  ;;  %v1829_v39 = vadd.f32 %v1765_v56, %v1309_v13  ;;  %v3845_v21 = vmul.f32 %v11322_v49, %v11400_v40 }
 0x52d   :  { %v5134_v36 = vmax.f32 %v5118_v50, 0.0  ;;  %v1310_v50 = vadd.f32 %v1246_v28, %v726_v59  ;;  %v2806_v28 = vmul.f32 %v10990_v22, %v12788_v23  ;;  %v3326_v59 = vmul.f32 %v11305_v60, %v11386_v43 }
 0x52e   :  { %v11405_v55 = vpop.permute.xlu1 %3771  ;;  %v5466_v38 = vld [vmem:[#allocation4 + $0x102] sm:$0xff] }
 0x52f   :  { %v5369_v37 = vld [vmem:[#allocation4 + $0x100] sm:$0xff]  ;;  %5192 = vst.msk [vmem:[#allocation4 + $0x111] sm:$0xff] %vm4985_vm2, %v5134_v36  ;;  %v5475_v41 = vpack.c.bf16 %v5466_v38, %v11179_v18  ;;  %v11413_v44 = vpop.permute.xlu0 %3776  ;;  %v1244_v18 = vmul.f32 %v12728_v10, %v12770_v24  ;;  %v12782_v36 = vld [vmem:[#allocation244_spill] sm:$0xff]  ;;  %v3847_v43 = vmul.f32 %v11322_v49, %v11405_v55 }
 0x530   :  { %v5240_v0 = vld [vmem:[#allocation4 + $0x101] sm:$0xff]  ;;  %v5378_v45 = vpack.c.bf16 %v5369_v37, %v11177_v14 }
 0x531   :  { %v5443_v46 = vpack.c.bf16 %v5240_v0, %v11235_v58  ;;  %5497 = vrot.lane.b32.xlu0 %v5475_v41, %s7995_s28  ;;  %v1308_v12 = vadd.f32 %v1244_v18, %v724_v52  ;;  %v12786_v18 = vld [vmem:[#allocation247_spill] sm:$0xff]  ;;  %v1830_v52 = vadd.f32 %v1766_v17, %v1310_v50 }
 0x532   :  { %5400 = vrot.lane.b32.xlu1 %v5378_v45, %s7997_s24  ;;  %v5324_v3 = vpop.permute.xlu1 %5323 }
 0x533   :  { %5451 = vst.msk [vmem:[#allocation5 + $0x98] sm:$0xff] %vm4985_vm2, %v5443_v46  ;;  %v5615_v58 = vpop.permute.xlu0 %5614  ;;  %v1311_v46 = vadd.f32 %v1247_v53, %v727_v9  ;;  %v1828_v32 = vadd.f32 %v1764_v8, %v1308_v12  ;;  %v12790_v53 = vld [vmem:[#allocation316_spill] sm:$0xff] }
 0x534   :  { %5348 = vst.msk [vmem:[#allocation5] sm:$0xff] %vm5347_vm5, %v5324_v3  ;;  %v11417_v2 = vpop.f32.mrb[4].mxu1  ;;  %v12785_v3 = vld [vmem:[#allocation245_spill] sm:$0xff]  ;;  %v2807_v8 = vmul.f32 %v10990_v22, %v12790_v53 }
 0x535   :  { %v11421_v14 = vpop.f32.mrb[5].mxu1  ;;  %5638 = vst.msk [vmem:[#allocation5 + $0x8] sm:$0xff] %vm5412_vm6, %v5615_v58  ;;  %v1831_v47 = vadd.f32 %v1767_v19, %v1311_v46  ;;  %v3846_v19 = vmul.f32 %v11322_v49, %v11403_v62 }
 0x536   :  { %v5389_v31 = vpop.permute.xlu1 %5388  ;;  %v11432_v57 = vpop.f32.mrb[6].mxu1  ;;  %v11434_v1 = vld [vmem:[#allocation4 + $0x110] sm:$0xff] }
 0x537   :  { %v11436_v15 = vld [vmem:[#allocation4 + $0x111] sm:$0xff]  ;;  %5413 = vst.msk [vmem:[#allocation5] sm:$0xff] %vm5412_vm6, %v5389_v31  ;;  %v11443_v25 = vpop.f32.mrb[7].mxu1  ;;  %v5540_v10 = vpack.c.bf16 %v11434_v1, %v5369_v37  ;;  %v4282_v34 = vpop.permute.xlu0 %4281  ;;  %v12789_v31 = vld [vmem:[#allocation314_spill] sm:$0xff] }
 0x538   :  { %v11438_v51 = vld [vmem:[#allocation4 + $0x112] sm:$0xff]  ;;  %v5249_v54 = vpack.c.bf16 %v11436_v15, %v5240_v0  ;;  %v12784_v0 = vld [vmem:[#allocation246_spill] sm:$0xff]  ;;  %v2805_v11 = vmul.f32 %v10990_v22, %v12789_v31  ;;  %v3325_v22 = vmul.f32 %v11305_v60, %v11382_v35  ;;  %v3848_v35 = vmul.f32 %v11322_v49, %v11413_v44 }
 0x539   :  { %v5314_v48 = vpack.c.bf16 %v11438_v51, %v5466_v38  ;;  %5562 = vrot.lane.b32.xlu0 %v5540_v10, %s7996_s11  ;;  %5225 = vst.msk [vmem:[#allocation5 + $0xa8] sm:$0xff] %vm4985_vm2, %v5540_v10  ;;  %v12783_v38 = vld [vmem:[#allocation334_spill] sm:$0xff]  ;;  %v4365_v50 = vmul.f32 %v11337_v16, %v4282_v34 }
 0x53a   :  { %5272 = vrot.lane.b32.xlu1 %v5249_v54, %s7995_s28  ;;  %v2284_v37 = vmul.f32 %v12783_v38, %v12782_v36  ;;  %v2286_v41 = vmul.f32 %v12783_v38, %v12784_v0  ;;  %v4287_v45 = vpop.permute.xlu1 %4286  ;;  %v2285_v24 = vmul.f32 %v12783_v38, %v12785_v3  ;;  %v2287_v58 = vmul.f32 %v12783_v38, %v12786_v18 }
 0x53b   :  { %5676 = vst.msk [vmem:[#allocation5 + $0xa0] sm:$0xff] %vm4985_vm2, %v5314_v48  ;;  %v4292_v10 = vpop.permute.xlu0 %4291 }
 0x53c   :  { %v5679_v63 = vld [vmem:[#allocation5 + $0x8] sm:$0xff]  ;;  %v2348_v26 = vadd.f32 %v2284_v37, %v1828_v32  ;;  %v2350_v30 = vadd.f32 %v2286_v41, %v1830_v52  ;;  %v2349_v5 = vadd.f32 %v2285_v24, %v1829_v39  ;;  %v2351_v17 = vadd.f32 %v2287_v58, %v1831_v47 }
 0x53d   :  { %5626 = vrot.lane.b32.xlu0 %v5249_v54, %s7997_s24  ;;  %5902 = vmatprep.mubr.bf16.mxu0 %v5679_v63  ;;  %v3327_v54 = vmul.f32 %v11305_v60, %v11388_v33  ;;  %v4367_v40 = vmul.f32 %v11337_v16, %v4292_v10  ;;  %v4366_v37 = vmul.f32 %v11337_v16, %v4287_v45 }
 0x53e   :  { %5337 = vrot.lane.b32.xlu1 %v5314_v48, %s7996_s11  ;;  %v4297_v42 = vpop.permute.xlu1 %4296  ;;  %v5678_v56 = vld [vmem:[#allocation5] sm:$0xff]  ;;  %v2868_v48 = vadd.f32 %v2804_v7, %v2348_v26  ;;  %v2870_v61 = vadd.f32 %v2806_v28, %v2350_v30  ;;  %v2869_v12 = vadd.f32 %v2805_v11, %v2349_v5  ;;  %v2871_v20 = vadd.f32 %v2807_v8, %v2351_v17 }
 0x53f   :  { %5903 = vmatmul.mubr.bf16.vlgmr.msra.gmra.mrb[0].mxu0 %v5678_v56  ;;  %v4802_v60 = vpop.permute.xlu0 %4801  ;;  %v4368_v0 = vmul.f32 %v11337_v16, %v4297_v42 }
 0x540   :  { %v3388_v33 = vadd.f32 %v3324_v27, %v2868_v48  ;;  %v3390_v13 = vadd.f32 %v3326_v59, %v2870_v61  ;;  %v3389_v55 = vadd.f32 %v3325_v22, %v2869_v12  ;;  %v3391_v38 = vadd.f32 %v3327_v54, %v2871_v20 }
 0x541   :  { %v4885_v49 = vmul.f32 %v11350_v4, %v4802_v60 }
 0x542   :  { %v5698_v9 = vld [vmem:[#allocation5 + $0xa0] sm:$0xff]  ;;  %v4807_v36 = vpop.permute.xlu1 %4806  ;;  %v3909_v62 = vadd.f32 %v3845_v21, %v3388_v33  ;;  %v3911_v41 = vadd.f32 %v3847_v43, %v3390_v13  ;;  %v3910_v44 = vadd.f32 %v3846_v19, %v3389_v55  ;;  %v3912_v46 = vadd.f32 %v3848_v35, %v3391_v38  ;;  %v5533_v33 = vld [vmem:[#allocation4 + $0x130] sm:$0xff] }
 0x543   :  { %7810 = vmatprep.mubr.msk.bf16.mxu1 %vm4985_vm2, %v5698_v9  ;;  %v4886_v32 = vmul.f32 %v11350_v4, %v4807_v36  ;;  %v4812_v3 = vpop.permute.xlu0 %4811 }
 0x544   :  { %v4429_v24 = vadd.f32 %v4365_v50, %v3909_v62  ;;  %v4431_v34 = vadd.f32 %v4367_v40, %v3911_v41  ;;  %v4887_v18 = vmul.f32 %v11350_v4, %v4812_v3  ;;  %v4430_v39 = vadd.f32 %v4366_v37, %v3910_v44 }
 0x545   :  { %v4432_v52 = vadd.f32 %v4368_v0, %v3912_v46 }
 0x546   :  { %v4817_v58 = vpop.permute.xlu1 %4816  ;;  %v4949_v29 = vadd.f32 %v4885_v49, %v4429_v24  ;;  %v4951_v16 = vadd.f32 %v4887_v18, %v4431_v34  ;;  %v4950_v7 = vadd.f32 %v4886_v32, %v4430_v39 }
 0x547   :  { %v4888_v45 = vmul.f32 %v11350_v4, %v4817_v58  ;;  %v5488_v28 = vpop.permute.xlu0 %5487 }
 0x548   :  { %v4983_v47 = vmax.f32 %v4949_v29, %v4951_v16  ;;  %5510 = vst.msk [vmem:[#allocation5 + $0x20] sm:$0xff] %vm5282_vm4, %v5488_v28 }
 0x549   :  { %v4952_v23 = vadd.f32 %v4888_v45, %v4432_v52 }
 0x54a   :  { %v5261_v31 = vpop.permute.xlu1 %5260  ;;  %5016 = vst.msk [vmem:[#allocation3 + $0xf0] sm:$0xff] %vm4985_vm2, %v4983_v47 }
 0x54b   :  { %v4984_v11 = vmax.f32 %v4950_v7, %v4952_v23  ;;  %5284 = vst.msk [vmem:[#allocation5 + $0x18] sm:$0xff] %vm5282_vm4, %v5261_v31  ;;  %v5553_v53 = vpop.permute.xlu0 %5552 }
 0x54c   :  { %5575 = vst.msk [vmem:[#allocation5 + $0x20] sm:$0xff] %vm5347_vm5, %v5553_v53 }
 0x54d   :  { %5017 = vst.msk [vmem:[#allocation3 + $0xf8] sm:$0xff] %vm4985_vm2, %v4984_v11 }
 0x54e   :  { %v5326_v4 = vpop.permute.xlu1 %5325 }
 0x54f   :  { %5349 = vst.msk [vmem:[#allocation5 + $0x18] sm:$0xff] %vm5347_vm5, %v5326_v4  ;;  %v5617_v8 = vpop.permute.xlu0 %5616 }
 0x550   :  { %5639 = vst.msk [vmem:[#allocation5 + $0x20] sm:$0xff] %vm5412_vm6, %v5617_v8 }
 0x552   :  { %v5391_v10 = vpop.permute.xlu1 %5390 }
 0x553   :  { %5414 = vst.msk [vmem:[#allocation5 + $0x18] sm:$0xff] %vm5412_vm6, %v5391_v10  ;;  %v5490_v27 = vpop.permute.xlu0 %5489 }
 0x554   :  { %v5048_v63 = vld [vmem:[#allocation3 + $0xf0] ss:$2 sm:$0xff]  ;;  %v5080_v26 = vld [vmem:[#allocation3 + $0xf1] ss:$2 sm:$0xff]  ;;  %5511 = vst.msk [vmem:[#allocation5 + $0x38] sm:$0xff] %vm5282_vm4, %v5490_v27 }
 0x555   :  { %v5096_v30 = vmax.f32 %v5048_v63, %v5080_v26 }
 0x556   :  { %v5263_v59 = vpop.permute.xlu1 %5262 }
 0x557   :  { %v5119_v42 = vadd.f32 %v11393_v6, %v5096_v30  ;;  %5285 = vst.msk [vmem:[#allocation5 + $0x30] sm:$0xff] %vm5282_vm4, %v5263_v59  ;;  %v5555_v5 = vpop.permute.xlu0 %5554  ;;  %v5682_v17 = vld [vmem:[#allocation5 + $0x20] sm:$0xff]  ;;  %v5661_v6 = vld [vmem:[#allocation4 + $0x132] sm:$0xff] }
 0x558   :  { %5576 = vst.msk [vmem:[#allocation5 + $0x38] sm:$0xff] %vm5347_vm5, %v5555_v5  ;;  %5910 = vmatprep.mubr.bf16.mxu0 %v5682_v17 }
 0x559   :  { %v5135_v56 = vmax.f32 %v5119_v42, 0.0 }
 0x55a   :  { %v5328_v22 = vpop.permute.xlu1 %5327  ;;  %v5681_v54 = vld [vmem:[#allocation5 + $0x18] sm:$0xff] }
 0x55b   :  { %5193 = vst.msk [vmem:[#allocation4 + $0x121] sm:$0xff] %vm4985_vm2, %v5135_v56  ;;  %5911 = vmatmul.mubr.bf16.gmra.mrb[4].mxu0 %v5681_v54  ;;  %v5619_v48 = vpop.permute.xlu0 %5618 }
 0x55c   :  { %5350 = vst.msk [vmem:[#allocation5 + $0x30] sm:$0xff] %vm5347_vm5, %v5328_v22 }
 0x55d   :  { %5640 = vst.msk [vmem:[#allocation5 + $0x38] sm:$0xff] %vm5412_vm6, %v5619_v48 }
 0x55e   :  { %v5393_v61 = vpop.permute.xlu1 %5392 }
 0x55f   :  { %5415 = vst.msk [vmem:[#allocation5 + $0x30] sm:$0xff] %vm5412_vm6, %v5393_v61  ;;  %v5492_v21 = vpop.permute.xlu0 %5491 }
 0x560   :  { %5512 = vst.msk [vmem:[#allocation5 + $0x50] sm:$0xff] %vm5282_vm4, %v5492_v21 }
 0x562   :  { %v5265_v43 = vpop.permute.xlu1 %5264  ;;  %v5468_v9 = vld [vmem:[#allocation4 + $0x122] sm:$0xff] }
 0x563   :  { %v5371_v12 = vld [vmem:[#allocation4 + $0x120] sm:$0xff]  ;;  %5286 = vst.msk [vmem:[#allocation5 + $0x48] sm:$0xff] %vm5282_vm4, %v5265_v43  ;;  %v5476_v19 = vpack.c.bf16 %v5468_v9, %v11438_v51  ;;  %v5669_v60 = vpack.c.bf16 %v5661_v6, %v5468_v9  ;;  %v5557_v50 = vpop.permute.xlu0 %5556 }
 0x564   :  { %v5596_v20 = vld [vmem:[#allocation4 + $0x121] sm:$0xff]  ;;  %v5379_v35 = vpack.c.bf16 %v5371_v12, %v11434_v1  ;;  %v5685_v40 = vld [vmem:[#allocation5 + $0x38] sm:$0xff]  ;;  %5577 = vst.msk [vmem:[#allocation5 + $0x50] sm:$0xff] %vm5347_vm5, %v5557_v50  ;;  %v5541_v1 = vpack.c.bf16 %v5533_v33, %v5371_v12  ;;  %v12791_v12 = vld [vmem:[#allocation67_spill] sm:$0xff] }
 0x565   :  { %v5444_v13 = vpack.c.bf16 %v5596_v20, %v11436_v15  ;;  %5499 = vrot.lane.b32.xlu0 %v5476_v19, %s7995_s28  ;;  %5677 = vst.msk [vmem:[#allocation5 + $0xb8] sm:$0xff] %vm4985_vm2, %v5669_v60  ;;  %5918 = vmatprep.mubr.bf16.mxu0 %v5685_v40  ;;  %v5597_v15 = vld [vmem:[#allocation4 + $0x131] sm:$0xff] }
 0x566   :  { %5402 = vrot.lane.b32.xlu1 %v5379_v35, %s7997_s24  ;;  %v5330_v36 = vpop.permute.xlu1 %5329  ;;  %v5684_v55 = vld [vmem:[#allocation5 + $0x30] sm:$0xff]  ;;  %v5605_v37 = vpack.c.bf16 %v5597_v15, %v5596_v20 }
 0x567   :  { %5452 = vst.msk [vmem:[#allocation5 + $0xb0] sm:$0xff] %vm4985_vm2, %v5444_v13  ;;  %5919 = vmatmul.mubr.bf16.gmra.mrb[8].mxu0 %v5684_v55  ;;  %v5621_v51 = vpop.permute.xlu0 %5620  ;;  %v12792_v35 = vld [vmem:[#allocation339_spill] sm:$0xff]  ;;  %v11578_v13 = vld [vmem:[%s11966_s4] ss:$0 sm:$0xff] }
 0x568   :  { %5351 = vst.msk [vmem:[#allocation5 + $0x48] sm:$0xff] %vm5347_vm5, %v5330_v36 }
 0x569   :  { %5564 = vrot.lane.b32.xlu0 %v5541_v1, %s7996_s11  ;;  %5641 = vst.msk [vmem:[#allocation5 + $0x50] sm:$0xff] %vm5412_vm6, %v5621_v51 }
 0x56a   :  { %v5395_v38 = vpop.permute.xlu1 %5394 }
 0x56b   :  { %5416 = vst.msk [vmem:[#allocation5 + $0x48] sm:$0xff] %vm5412_vm6, %v5395_v38  ;;  %v5494_v62 = vpop.permute.xlu0 %5493 }
 0x56c   :  { %v5701_v0 = vld [vmem:[#allocation5 + $0xb8] sm:$0xff]  ;;  %5513 = vst.msk [vmem:[#allocation5 + $0x68] sm:$0xff] %vm5282_vm4, %v5494_v62  ;;  %v12793_v62 = vld [vmem:[#allocation318_spill] sm:$0xff] }
 0x56d   :  { %7811 = vmatmul.mubr.msk.bf16.gmra.mrb[12].mxu1 %vm4985_vm2, %v5701_v0  ;;  %5628 = vrot.lane.b32.xlu0 %v5605_v37, %s7997_s24 }
 0x56e   :  { %v5267_v41 = vpop.permute.xlu1 %5266 }
 0x56f   :  { %5287 = vst.msk [vmem:[#allocation5 + $0x60] sm:$0xff] %vm5282_vm4, %v5267_v41  ;;  %v5559_v49 = vpop.permute.xlu0 %5558 }
 0x570   :  { %v5688_v44 = vld [vmem:[#allocation5 + $0x50] sm:$0xff]  ;;  %5578 = vst.msk [vmem:[#allocation5 + $0x68] sm:$0xff] %vm5347_vm5, %v5559_v49 }
 0x571   :  { %5926 = vmatprep.mubr.bf16.mxu0 %v5688_v44  ;;  %v12794_v44 = vld [vmem:[#allocation337_spill] sm:$0xff] }
 0x572   :  { %v5332_v46 = vpop.permute.xlu1 %5331  ;;  %v5687_v32 = vld [vmem:[#allocation5 + $0x48] sm:$0xff] }
 0x573   :  { %5352 = vst.msk [vmem:[#allocation5 + $0x60] sm:$0xff] %vm5347_vm5, %v5332_v46  ;;  %5927 = vmatmul.mubr.bf16.gmra.mrb[12].mxu0 %v5687_v32  ;;  %v5623_v3 = vpop.permute.xlu0 %5622 }
 0x574   :  { %5642 = vst.msk [vmem:[#allocation5 + $0x68] sm:$0xff] %vm5412_vm6, %v5623_v3 }
 0x576   :  { %v5397_v24 = vpop.permute.xlu1 %5396 }
 0x577   :  { %5417 = vst.msk [vmem:[#allocation5 + $0x60] sm:$0xff] %vm5412_vm6, %v5397_v24  ;;  %v5496_v34 = vpop.permute.xlu0 %5495 }
 0x578   :  { %5514 = vst.msk [vmem:[#allocation5 + $0x80] sm:$0xff] %vm5282_vm4, %v5496_v34 }
 0x57a   :  { %v5269_v18 = vpop.permute.xlu1 %5268 }
 0x57b   :  { %5288 = vst.msk [vmem:[#allocation5 + $0x78] sm:$0xff] %vm5282_vm4, %v5269_v18  ;;  %v5561_v58 = vpop.permute.xlu0 %5560  ;;  %v5691_v39 = vld [vmem:[#allocation5 + $0x68] sm:$0xff] }
 0x57c   :  { %5579 = vst.msk [vmem:[#allocation5 + $0x80] sm:$0xff] %vm5347_vm5, %v5561_v58  ;;  %5934 = vmatprep.mubr.bf16.mxu0 %v5691_v39 }
 0x57e   :  { %v5334_v52 = vpop.permute.xlu1 %5333  ;;  %v5690_v45 = vld [vmem:[#allocation5 + $0x60] sm:$0xff] }
 0x57f   :  { %5353 = vst.msk [vmem:[#allocation5 + $0x78] sm:$0xff] %vm5347_vm5, %v5334_v52  ;;  %5935 = vmatmul.mubr.bf16.gmra.mrb[16].mxu0 %v5690_v45  ;;  %v5625_v29 = vpop.permute.xlu0 %5624 }
 0x580   :  { %5643 = vst.msk [vmem:[#allocation5 + $0x80] sm:$0xff] %vm5412_vm6, %v5625_v29 }
 0x582   :  { %v5399_v16 = vpop.permute.xlu1 %5398 }
 0x583   :  { %5418 = vst.msk [vmem:[#allocation5 + $0x78] sm:$0xff] %vm5412_vm6, %v5399_v16 }
 0x586   :  { %v5271_v7 = vpop.permute.xlu1 %5270 }
 0x587   :  { %5289 = vst.msk [vmem:[#allocation5 + $0x90] sm:$0xff] %vm5282_vm4, %v5271_v7  ;;  %v5694_v23 = vld [vmem:[#allocation5 + $0x80] sm:$0xff] }
 0x588   :  { %5942 = vmatprep.mubr.bf16.mxu0 %v5694_v23 }
 0x58a   :  { %v5336_v28 = vpop.permute.xlu1 %5335  ;;  %v5693_v47 = vld [vmem:[#allocation5 + $0x78] sm:$0xff] }
 0x58b   :  { %5354 = vst.msk [vmem:[#allocation5 + $0x90] sm:$0xff] %vm5347_vm5, %v5336_v28  ;;  %5943 = vmatmul.mubr.bf16.gmra.mrb[20].mxu0 %v5693_v47 }
 0x5a3   :  { %v5498_v11 = vpop.permute.xlu0 %5497 }
 0x5a4   :  { %v5401_v31 = vpop.permute.xlu1 %5400  ;;  %5515 = vst.msk [vmem:[#allocation5 + $0x98] sm:$0xff] %vm5282_vm4, %v5498_v11 }
 0x5a5   :  { %5419 = vst.msk [vmem:[#allocation5 + $0x90] sm:$0xff] %vm5412_vm6, %v5401_v31 }
 0x5ab   :  { %v5563_v4 = vpop.permute.xlu0 %5562 }
 0x5ac   :  { %v5273_v53 = vpop.permute.xlu1 %5272  ;;  %5580 = vst.msk [vmem:[#allocation5 + $0x98] sm:$0xff] %vm5347_vm5, %v5563_v4  ;;  %v5696_v26 = vld [vmem:[#allocation5 + $0x90] sm:$0xff] }
 0x5ad   :  { %5290 = vst.msk [vmem:[#allocation5 + $0xa8] sm:$0xff] %vm5282_vm4, %v5273_v53 }
 0x5af   :  { %v5627_v10 = vpop.permute.xlu0 %5626 }
 0x5b0   :  { %v5338_v8 = vpop.permute.xlu1 %5337  ;;  %5644 = vst.msk [vmem:[#allocation5 + $0x98] sm:$0xff] %vm5412_vm6, %v5627_v10 }
 0x5b1   :  { %5355 = vst.msk [vmem:[#allocation5 + $0xa8] sm:$0xff] %vm5347_vm5, %v5338_v8 }
 0x5b7   :  { %v5697_v63 = vld [vmem:[#allocation5 + $0x98] sm:$0xff] }
 0x5b8   :  { %5950 = vmatprep.mubr.bf16.mxu0 %v5697_v63 }
 0x5b9   :  { %5951 = vmatmul.mubr.bf16.gmra.mrb[24].mxu0 %v5696_v26 }
 0x5d5   :  { %v11560_v30 = vpop.f32.mrb[8].mxu1 }
 0x5d6   :  { %v11562_v27 = vpop.f32.mrb[9].mxu1 }
 0x5d7   :  { %v11564_v59 = vpop.f32.mrb[10].mxu1  ;;  %v5500_v5 = vpop.permute.xlu0 %5499 }
 0x5d8   :  { %v11566_v42 = vpop.f32.mrb[11].mxu1  ;;  %v5403_v56 = vpop.permute.xlu1 %5402  ;;  %5516 = vst.msk [vmem:[#allocation5 + $0xb0] sm:$0xff] %vm5282_vm4, %v5500_v5 }
 0x5d9   :  { %5420 = vst.msk [vmem:[#allocation5 + $0xa8] sm:$0xff] %vm5412_vm6, %v5403_v56 }
 0x5db   :  { %v5565_v17 = vpop.permute.xlu0 %5564 }
 0x5dc   :  { %5581 = vst.msk [vmem:[#allocation5 + $0xb0] sm:$0xff] %vm5347_vm5, %v5565_v17 }
 0x5df   :  { %v5629_v22 = vpop.permute.xlu0 %5628 }
 0x5e0   :  { %5645 = vst.msk [vmem:[#allocation5 + $0xb0] sm:$0xff] %vm5412_vm6, %v5629_v22  ;;  %v5699_v48 = vld [vmem:[#allocation5 + $0xa8] sm:$0xff] }
 0x5e7   :  { %v5700_v54 = vld [vmem:[#allocation5 + $0xb0] sm:$0xff] }
 0x5e8   :  { %5958 = vmatprep.mubr.bf16.mxu0 %v5700_v54 }
 0x5e9   :  { %5959 = vmatmul.mubr.bf16.gmra.mrb[28].mxu0 %v5699_v48 }
 0x612   :  { %v7639_v61 = vpop.f32.mrb[0].mxu0 }
 0x613   :  { %v7640_v6 = vpop.f32.mrb[1].mxu0 }
 0x614   :  { %v7641_v21 = vadd.f32 %v7640_v6, %v7639_v61  ;;  %v7642_v43 = vpop.f32.mrb[2].mxu0 }
 0x615   :  { %v7643_v9 = vpop.f32.mrb[3].mxu0 }
 0x616   :  { %v6002_v20 = vadd.f32 %v7641_v21, %v12791_v12  ;;  %v7644_v19 = vadd.f32 %v7643_v9, %v7642_v43 }
 0x618   :  { %v6005_v60 = vadd.f32 %v7644_v19, %v12792_v35 }
 0x61a   :  { %v6064_v33 = vmax.f32 %v6002_v20, %v6005_v60 }
 0x61c   :  { %6073 = vst.msk [vmem:[#allocation6] sm:$0xff] %vm6072_vm7, %v6064_v33 }
 0x623   :  { %v6081_v50 = vld [vmem:[#allocation6] ss:$2 sm:$0xf]  ;;  %v6097_v40 = vld [vmem:[#allocation6 + $0x1] ss:$2 sm:$0xf] }
 0x624   :  { %v6112_v36 = vmax.f32 %v6081_v50, %v6097_v40 }
 0x626   :  { %v6127_v55 = vadd.f32 %v11578_v13, %v6112_v36 }
 0x628   :  { %v6135_v1 = vmax.f32 %v6127_v55, 0.0 }
 0x62a   :  { %6144 = vst.msk [vmem:[#allocation7] sm:$0xf] %vm6143_vm8, %v6135_v1 }
 0x62e   :  { %v7645_v15 = vpop.f32.mrb[4].mxu0 }
 0x62f   :  { %v7646_v51 = vpop.f32.mrb[5].mxu0 }
 0x630   :  { %v7647_v38 = vadd.f32 %v7646_v51, %v7645_v15  ;;  %v7648_v37 = vpop.f32.mrb[6].mxu0 }
 0x631   :  { %v7649_v0 = vpop.f32.mrb[7].mxu0 }
 0x632   :  { %v6010_v41 = vadd.f32 %v12793_v62, %v7647_v38  ;;  %v7650_v49 = vadd.f32 %v7649_v0, %v7648_v37 }
 0x634   :  { %v6013_v46 = vadd.f32 %v12794_v44, %v7650_v49  ;;  %v7862_v49 = vld [vmem:[%s11967_s5 + $0x40] sm:$0xff]  }
 0x635   :  { %v7863_v44 = vld [vmem:[%s11967_s5] sm:$0xff]   ;;  %7697 = vmatprep.subr.bf16.mxu1 %v7862_v49 }
 0x636   :  { %v6065_v32 = vmax.f32 %v6010_v41, %v6013_v46  ;;  %v7864_v46 = vld [vmem:[%s11967_s5 + $0x48] sm:$0xff]   ;;  %7698 = vmatpush3.bf16.msra.mxu1 %v7863_v44 }
 0x637   :  { %7699 = vmatprep.subr.bf16.mxu1 %v7864_v46 }
 0x638   :  { %6074 = vst.msk [vmem:[#allocation6 + $0x8] sm:$0xff] %vm6072_vm7, %v6065_v32 }
 0x63a   :  { %v7651_v3 = vpop.f32.mrb[8].mxu0 }
 0x63b   :  { %v7652_v24 = vpop.f32.mrb[9].mxu0 }
 0x63c   :  { %v7653_v34 = vadd.f32 %v7652_v24, %v7651_v3  ;;  %v7654_v18 = vpop.f32.mrb[10].mxu0  ;;  %v7866_v24 = vld [vmem:[%s11967_s5 + $0x50] sm:$0xff]  }
 0x63d   :  { %v7655_v58 = vpop.f32.mrb[11].mxu0 }
 0x63e   :  { %v6018_v39 = vadd.f32 %v7653_v34, %v11421_v14  ;;  %v7656_v52 = vadd.f32 %v7655_v58, %v7654_v18  ;;  %v7867_v34 = vld [vmem:[%s11967_s5 + $0x10] sm:$0xff]   ;;  %v7868_v18 = vld [vmem:[%s11967_s5 + $0x58] sm:$0xff]  }
 0x63f   :  { %v6083_v45 = vld [vmem:[#allocation6 + $0x8] ss:$2 sm:$0xf]  ;;  %v6099_v29 = vld [vmem:[#allocation6 + $0x9] ss:$2 sm:$0xf] }
 0x640   :  { %v6113_v16 = vmax.f32 %v6083_v45, %v6099_v29  ;;  %v6021_v7 = vadd.f32 %v7656_v52, %v11443_v25  ;;  %v11587_v23 = vpop.f32.mrb[12].mxu1  ;;  %v7869_v58 = vld [vmem:[%s11967_s5 + $0x18] sm:$0xff]   ;;  %v7870_v29 = vld [vmem:[%s11967_s5 + $0x60] sm:$0xff]  }
 0x641   :  { %v11589_v28 = vpop.f32.mrb[13].mxu1 }
 0x642   :  { %v6128_v47 = vadd.f32 %v11578_v13, %v6113_v16  ;;  %v6066_v31 = vmax.f32 %v6018_v39, %v6021_v7  ;;  %v11592_v11 = vpop.f32.mrb[14].mxu1  ;;  %v7523_v16 = vld.sshfl [vmem:[#allocation7 + $0x3] sm:$0x1 pattern:$0x76325410] }
 0x643   :  { %v11594_v53 = vpop.f32.mrb[15].mxu1 }
 0x644   :  { %v6136_v4 = vmax.f32 %v6128_v47, 0.0  ;;  %6075 = vst.msk [vmem:[#allocation6 + $0x10] sm:$0xff] %vm6072_vm7, %v6066_v31 }
 0x646   :  { %6145 = vst.msk [vmem:[#allocation7 + $0x4] sm:$0xf] %vm6143_vm8, %v6136_v4  ;;  %v7657_v14 = vpop.f32.mrb[12].mxu0 }
 0x647   :  { %v7658_v8 = vpop.f32.mrb[13].mxu0  ;;  %v7519_v4 = vld.sshfl [vmem:[#allocation7 + $0x1] sm:$0x1 pattern:$0x76325410] }
 0x648   :  { %v7659_v10 = vadd.f32 %v7658_v8, %v7657_v14  ;;  %v7660_v25 = vpop.f32.mrb[14].mxu0 }
 0x649   :  { %v7661_v63 = vpop.f32.mrb[15].mxu0 }
 0x64a   :  { %v6026_v26 = vadd.f32 %v11417_v2, %v7659_v10  ;;  %v7662_v56 = vadd.f32 %v7661_v63, %v7660_v25  ;;  %v7871_v25 = vld [vmem:[%s11967_s5 + $0x20] sm:$0xff]  }
 0x64b   :  { %v6085_v5 = vld [vmem:[#allocation6 + $0x10] ss:$2 sm:$0xf]  ;;  %v6101_v17 = vld [vmem:[#allocation6 + $0x11] ss:$2 sm:$0xf] }
 0x64c   :  { %v6114_v22 = vmax.f32 %v6085_v5, %v6101_v17  ;;  %v6029_v54 = vadd.f32 %v11432_v57, %v7662_v56 }
 0x64e   :  { %v6129_v48 = vadd.f32 %v11578_v13, %v6114_v22  ;;  %v6067_v61 = vmax.f32 %v6026_v26, %v6029_v54  ;;  %v7521_v54 = vld.sshfl [vmem:[#allocation7 + $0x2] sm:$0x1 pattern:$0x76325410] }
 0x650   :  { %v6137_v6 = vmax.f32 %v6129_v48, 0.0  ;;  %6076 = vst.msk [vmem:[#allocation6 + $0x18] sm:$0xff] %vm6072_vm7, %v6067_v61 }
 0x652   :  { %6146 = vst.msk [vmem:[#allocation7 + $0x8] sm:$0xf] %vm6143_vm8, %v6137_v6  ;;  %v7663_v21 = vpop.f32.mrb[16].mxu0 }
 0x653   :  { %v7664_v43 = vpop.f32.mrb[17].mxu0 }
 0x654   :  { %v7665_v9 = vadd.f32 %v7664_v43, %v7663_v21  ;;  %v7666_v12 = vpop.f32.mrb[18].mxu0  ;;  %v7517_v43 = vld.sshfl [vmem:[#allocation7] sm:$0x1 pattern:$0x76325410] }
 0x655   :  { %v7667_v20 = vpop.f32.mrb[19].mxu0 }
 0x656   :  { %v6034_v2 = vadd.f32 %v7665_v9, %v11562_v27  ;;  %v7668_v19 = vadd.f32 %v7667_v20, %v7666_v12 }
 0x657   :  { %v6087_v35 = vld [vmem:[#allocation6 + $0x18] ss:$2 sm:$0xf]  ;;  %v6103_v60 = vld [vmem:[#allocation6 + $0x19] ss:$2 sm:$0xf] }
 0x658   :  { %v6115_v33 = vmax.f32 %v6087_v35, %v6103_v60  ;;  %v6037_v57 = vadd.f32 %v7668_v19, %v11566_v42 }
 0x65a   :  { %v6130_v50 = vadd.f32 %v11578_v13, %v6115_v33  ;;  %v6068_v40 = vmax.f32 %v6034_v2, %v6037_v57  ;;  %v7872_v33 = vld [vmem:[%s11967_s5 + $0x68] sm:$0xff]  }
 0x65b   :  { %v7873_v57 = vld [vmem:[%s11967_s5 + $0x28] sm:$0xff]  }
 0x65c   :  { %v6138_v36 = vmax.f32 %v6130_v50, 0.0  ;;  %6077 = vst.msk [vmem:[#allocation6 + $0x20] sm:$0xff] %vm6072_vm7, %v6068_v40  ;;  %v7874_v50 = vld [vmem:[%s11967_s5 + $0x70] sm:$0xff]  }
 0x65e   :  { %6147 = vst.msk [vmem:[#allocation7 + $0xc] sm:$0xf] %vm6143_vm8, %v6138_v36  ;;  %v7669_v55 = vpop.f32.mrb[20].mxu0 }
 0x65f   :  { %v7670_v1 = vpop.f32.mrb[21].mxu0 }
 0x660   :  { %v7671_v15 = vadd.f32 %v7670_v1, %v7669_v55  ;;  %v7672_v51 = vpop.f32.mrb[22].mxu0  ;;  %v7875_v1 = vld [vmem:[%s11967_s5 + $0x30] sm:$0xff]  }
 0x661   :  { %v7673_v38 = vpop.f32.mrb[23].mxu0 }
 0x662   :  { %v6042_v27 = vadd.f32 %v11560_v30, %v7671_v15  ;;  %v7674_v37 = vadd.f32 %v7673_v38, %v7672_v51  ;;  %v7876_v15 = vld [vmem:[%s11967_s5 + $0x78] sm:$0xff]   ;;  %v7531_v51 = vld.sshfl [vmem:[#allocation7 + $0x7] sm:$0x1 pattern:$0x76325410] }
 0x663   :  { %v6089_v0 = vld [vmem:[#allocation6 + $0x20] ss:$2 sm:$0xf]  ;;  %v6105_v62 = vld [vmem:[#allocation6 + $0x21] ss:$2 sm:$0xf] }
 0x664   :  { %v6116_v41 = vmax.f32 %v6089_v0, %v6105_v62  ;;  %v6045_v42 = vadd.f32 %v11564_v59, %v7674_v37  ;;  %v7865_v59 = vld [vmem:[%s11967_s5 + $0x8] sm:$0xff]   ;;  %v7527_v37 = vld.sshfl [vmem:[#allocation7 + $0x5] sm:$0x1 pattern:$0x76325410] }
 0x665   :  { %7700 = vmatpush3.bf16.msra.mxu1 %v7865_v59  ;;  %v7529_v59 = vld.sshfl [vmem:[#allocation7 + $0x6] sm:$0x1 pattern:$0x76325410] }
 0x666   :  { %v6131_v30 = vadd.f32 %v11578_v13, %v6116_v41  ;;  %v6069_v32 = vmax.f32 %v6042_v27, %v6045_v42  ;;  %7701 = vmatprep.subr.bf16.mxu1 %v7866_v24  ;;  %v7877_v42 = vld [vmem:[%s11967_s5 + $0x38] sm:$0xff]  }
 0x668   :  { %v6139_v3 = vmax.f32 %v6131_v30, 0.0  ;;  %6078 = vst.msk [vmem:[#allocation6 + $0x28] sm:$0xff] %vm6072_vm7, %v6069_v32 }
 0x669   :  { %7702 = vmatpush3.bf16.msra.mxu1 %v7867_v34 }
 0x66a   :  { %6148 = vst.msk [vmem:[#allocation7 + $0x10] sm:$0xf] %vm6143_vm8, %v6139_v3  ;;  %7703 = vmatprep.subr.bf16.mxu1 %v7868_v18 }
 0x66d   :  { %7704 = vmatpush3.bf16.msra.mxu1 %v7869_v58  ;;  %v7525_v58 = vld.sshfl [vmem:[#allocation7 + $0x4] sm:$0x1 pattern:$0x76325410] }
 0x66e   :  { %7705 = vmatprep.subr.bf16.mxu1 %v7870_v29 }
 0x66f   :  { %v6091_v39 = vld [vmem:[#allocation6 + $0x28] ss:$2 sm:$0xf]  ;;  %v6107_v52 = vld [vmem:[#allocation6 + $0x29] ss:$2 sm:$0xf] }
 0x670   :  { %v6117_v45 = vmax.f32 %v6091_v39, %v6107_v52 }
 0x671   :  { %v7524_v7 = vld.sshfl [vmem:[#allocation7 + $0x13] sm:$0x1 pattern:$0x76325410]  ;;  %7706 = vmatpush3.bf16.msra.mxu1 %v7871_v25 }
 0x672   :  { %v6132_v47 = vadd.f32 %v11578_v13, %v6117_v45  ;;  %v6263_v31 = vrot.slane %v7524_v7, 7  ;;  %v7520_v14 = vld.sshfl [vmem:[#allocation7 + $0x11] sm:$0x1 pattern:$0x76325410]  ;;  %7707 = vmatprep.subr.bf16.mxu1 %v7872_v33 }
 0x673   :  { %v6206_v8 = vrot.slane %v7520_v14, 7  ;;  %v7522_v10 = vld.sshfl [vmem:[#allocation7 + $0x12] sm:$0x1 pattern:$0x76325410] }
 0x674   :  { %v6140_v63 = vmax.f32 %v6132_v47, 0.0  ;;  %v6264_v26 = vsel %vm6175_vm9, %v6263_v31, %v7523_v16  ;;  %v6236_v56 = vrot.slane %v7522_v10, 7  ;;  %v7518_v5 = vld.sshfl [vmem:[#allocation7 + $0x10] sm:$0x1 pattern:$0x76325410] }
 0x675   :  { %v6265_v17 = vsel %vm6177_vm10, %v6263_v31, %v6264_v26  ;;  %v6207_v22 = vsel %vm6175_vm9, %v6206_v8, %v7519_v4  ;;  %v6174_v48 = vrot.slane %v7518_v5, 7  ;;  %7708 = vmatpush3.bf16.msra.mxu1 %v7873_v57  ;;  %v7535_v33 = vld.sshfl [vmem:[#allocation7 + $0x9] sm:$0x1 pattern:$0x76325410] }
 0x676   :  { %6149 = vst.msk [vmem:[#allocation7 + $0x14] sm:$0xf] %vm6143_vm8, %v6140_v63  ;;  %v6266_v61 = vsel %vm6179_vm11, %v6263_v31, %v6265_v17  ;;  %v6208_v6 = vsel %vm6177_vm10, %v6206_v8, %v6207_v22  ;;  %v6237_v21 = vsel %vm6175_vm9, %v6236_v56, %v7521_v54  ;;  %7709 = vmatprep.subr.bf16.mxu1 %v7874_v50  ;;  %v7901_v50 = vld [vmem:[%s11967_s5 + $0x158] sm:$0xff]  }
 0x677   :  { %v6267_v9 = vsel %vm6181_vm12, %v6263_v31, %v6266_v61  ;;  %v6209_v12 = vsel %vm6179_vm11, %v6206_v8, %v6208_v6  ;;  %v6238_v20 = vsel %vm6177_vm10, %v6236_v56, %v6237_v21  ;;  %v6176_v2 = vsel %vm6175_vm9, %v6174_v48, %v7517_v43 }
 0x678   :  { %6268 = vrot.lane.b32.xlu1 %v6267_v9, %s7996_s11  ;;  %v6210_v19 = vsel %vm6181_vm12, %v6206_v8, %v6209_v12  ;;  %v6239_v35 = vsel %vm6179_vm11, %v6236_v56, %v6238_v20  ;;  %v6178_v60 = vsel %vm6177_vm10, %v6174_v48, %v6176_v2  ;;  %v7878_v8 = vld [vmem:[%s11967_s5 + $0xc0] sm:$0xff]   ;;  %v7898_v12 = vld [vmem:[%s11967_s5 + $0x108] sm:$0xff]   ;;  %v7899_v20 = vld [vmem:[%s11967_s5 + $0x150] sm:$0xff]  }
 0x679   :  { %6211 = vrot.lane.b32.xlu0 %v6210_v19, %s7996_s11  ;;  %v6240_v40 = vsel %vm6181_vm12, %v6236_v56, %v6239_v35  ;;  %v6180_v36 = vsel %vm6179_vm11, %v6174_v48, %v6178_v60  ;;  %7710 = vmatpush3.bf16.msra.mxu1 %v7875_v1  ;;  %v7895_v9 = vld [vmem:[%s11967_s5 + $0x140] sm:$0xff]   ;;  %v7539_v2 = vld.sshfl [vmem:[#allocation7 + $0xb] sm:$0x1 pattern:$0x76325410]  ;;  %v7900_v35 = vld [vmem:[%s11967_s5 + $0x110] sm:$0xff]  }
 0x67a   :  { %6242 = vst.msk [vmem:[#allocation8 + $0x2] sm:$0x3] %vm6184_vm13, %v6240_v40  ;;  %v6182_v55 = vsel %vm6181_vm12, %v6174_v48, %v6180_v36  ;;  %7711 = vmatprep.subr.bf16.mxu1 %v7876_v15  ;;  %7741 = vmatprep.subr.bf16.mxu0 %v7895_v9 }
 0x67b   :  { %6185 = vst.msk [vmem:[#allocation8] sm:$0x3] %vm6184_vm13, %v6182_v55 }
 0x67d   :  { %v7532_v38 = vld.sshfl [vmem:[#allocation7 + $0x17] sm:$0x1 pattern:$0x76325410]  ;;  %7712 = vmatpush3.bf16.msra.mxu1 %v7877_v42 }
 0x67e   :  { %v6376_v27 = vrot.slane %v7532_v38, 7  ;;  %v7528_v0 = vld.sshfl [vmem:[#allocation7 + $0x15] sm:$0x1 pattern:$0x76325410]  ;;  %7719 = vmatprep.subr.bf16.mxu1 %v7878_v8 }
 0x67f   :  { %v6320_v62 = vrot.slane %v7528_v0, 7  ;;  %v7530_v41 = vld.sshfl [vmem:[#allocation7 + $0x16] sm:$0x1 pattern:$0x76325410]  ;;  %v7902_v0 = vld [vmem:[%s11967_s5 + $0x118] sm:$0xff]  }
 0x680   :  { %v6377_v49 = vsel %vm6175_vm9, %v6376_v27, %v7531_v51  ;;  %v6349_v44 = vrot.slane %v7530_v41, 7  ;;  %v7526_v46 = vld.sshfl [vmem:[#allocation7 + $0x14] sm:$0x1 pattern:$0x76325410] }
 0x681   :  { %v6378_v30 = vsel %vm6177_vm10, %v6376_v27, %v6377_v49  ;;  %v6321_v32 = vsel %vm6175_vm9, %v6320_v62, %v7527_v37  ;;  %v6293_v3 = vrot.slane %v7526_v46, 7  ;;  %v7533_v49 = vld.sshfl [vmem:[#allocation7 + $0x8] sm:$0x1 pattern:$0x76325410] }
 0x682   :  { %v6379_v24 = vsel %vm6179_vm11, %v6376_v27, %v6378_v30  ;;  %v6322_v34 = vsel %vm6177_vm10, %v6320_v62, %v6321_v32  ;;  %v6350_v18 = vsel %vm6175_vm9, %v6349_v44, %v7529_v59 }
 0x683   :  { %v6380_v39 = vsel %vm6181_vm12, %v6376_v27, %v6379_v24  ;;  %v6323_v52 = vsel %vm6179_vm11, %v6320_v62, %v6322_v34  ;;  %v6351_v45 = vsel %vm6177_vm10, %v6349_v44, %v6350_v18  ;;  %v6294_v29 = vsel %vm6175_vm9, %v6293_v3, %v7525_v58  ;;  %v7537_v27 = vld.sshfl [vmem:[#allocation7 + $0xa] sm:$0x1 pattern:$0x76325410] }
 0x684   :  { %6381 = vrot.lane.b32.xlu1 %v6380_v39, %s7996_s11  ;;  %v6324_v16 = vsel %vm6181_vm12, %v6320_v62, %v6323_v52  ;;  %v6352_v7 = vsel %vm6179_vm11, %v6349_v44, %v6351_v45  ;;  %v6295_v47 = vsel %vm6177_vm10, %v6293_v3, %v6294_v29  ;;  %v7904_v39 = vld [vmem:[%s11967_s5 + $0x120] sm:$0xff]   ;;  %v7908_v45 = vld [vmem:[%s11967_s5 + $0x168] sm:$0xff]  }
 0x685   :  { %6325 = vrot.lane.b32.xlu0 %v6324_v16, %s7996_s11  ;;  %v6353_v31 = vsel %vm6181_vm12, %v6349_v44, %v6352_v7  ;;  %v6296_v4 = vsel %vm6179_vm11, %v6293_v3, %v6295_v47  ;;  %v7903_v44 = vld [vmem:[%s11967_s5 + $0x160] sm:$0xff]   ;;  %v7910_v29 = vld [vmem:[%s11967_s5 + $0x128] sm:$0xff]   ;;  %v7914_v16 = vld [vmem:[%s11967_s5 + $0x170] sm:$0xff]  }
 0x686   :  { %6355 = vst.msk [vmem:[#allocation8 + $0x6] sm:$0x3] %vm6184_vm13, %v6353_v31  ;;  %v6297_v14 = vsel %vm6181_vm12, %v6293_v3, %v6296_v4  ;;  %v7916_v7 = vld [vmem:[%s11967_s5 + $0x130] sm:$0xff]  }
 0x687   :  { %6299 = vst.msk [vmem:[#allocation8 + $0x4] sm:$0x3] %vm6184_vm13, %v6297_v14 }
 0x68c   :  { %v7675_v10 = vpop.f32.mrb[24].mxu0 }
 0x68d   :  { %v7676_v25 = vpop.f32.mrb[25].mxu0 }
 0x68e   :  { %v7677_v63 = vadd.f32 %v7676_v25, %v7675_v10  ;;  %v7678_v26 = vpop.f32.mrb[26].mxu0 }
 0x68f   :  { %v7679_v56 = vpop.f32.mrb[27].mxu0 }
 0x690   :  { %v6050_v5 = vadd.f32 %v7677_v63, %v11589_v28  ;;  %v7680_v17 = vadd.f32 %v7679_v56, %v7678_v26  ;;  %v7896_v28 = vld [vmem:[%s11967_s5 + $0x100] sm:$0xff]  }
 0x691   :  { %7742 = vmatpush3.bf16.msra.mxu0 %v7896_v28 }
 0x692   :  { %v6053_v22 = vadd.f32 %v7680_v17, %v11594_v53  ;;  %v7897_v53 = vld [vmem:[%s11967_s5 + $0x148] sm:$0xff]  }
 0x693   :  { %7743 = vmatprep.subr.bf16.mxu0 %v7897_v53 }
 0x694   :  { %v6070_v54 = vmax.f32 %v6050_v5, %v6053_v22 }
 0x695   :  { %7744 = vmatpush3.bf16.msra.mxu0 %v7898_v12 }
 0x696   :  { %6079 = vst.msk [vmem:[#allocation6 + $0x30] sm:$0xff] %vm6072_vm7, %v6070_v54  ;;  %7745 = vmatprep.subr.bf16.mxu0 %v7899_v20 }
 0x699   :  { %7746 = vmatpush3.bf16.msra.mxu0 %v7900_v35  ;;  %v7545_v35 = vld.sshfl [vmem:[#allocation7 + $0xe] sm:$0x1 pattern:$0x76325410] }
 0x69a   :  { %7747 = vmatprep.subr.bf16.mxu0 %v7901_v50 }
 0x69d   :  { %v6093_v48 = vld [vmem:[#allocation6 + $0x30] ss:$2 sm:$0xf]  ;;  %v6109_v61 = vld [vmem:[#allocation6 + $0x31] ss:$2 sm:$0xf]  ;;  %7748 = vmatpush3.bf16.msra.mxu0 %v7902_v0 }
 0x69e   :  { %v6118_v6 = vmax.f32 %v6093_v48, %v6109_v61  ;;  %7749 = vmatprep.subr.bf16.mxu0 %v7903_v44  ;;  %v7920_v48 = vld [vmem:[%s11967_s5 + $0x178] sm:$0xff]  }
 0x6a0   :  { %v6133_v21 = vadd.f32 %v11578_v13, %v6118_v6  ;;  %v12795_v6 = vmov 0.0  }
 0x6a1   :  { %7750 = vmatpush3.bf16.msra.mxu0 %v7904_v39 }
 0x6a2   :  { %v6141_v43 = vmax.f32 %v6133_v21, 0.0  ;;  %7751 = vmatprep.subr.bf16.mxu0 %v7908_v45 }
 0x6a4   :  { %6150 = vst.msk [vmem:[#allocation7 + $0x18] sm:$0xf] %vm6143_vm8, %v6141_v43  ;;  %v7543_v43 = vld.sshfl [vmem:[#allocation7 + $0xd] sm:$0x1 pattern:$0x76325410] }
 0x6a5   :  { %7752 = vmatpush3.bf16.msra.mxu0 %v7910_v29  ;;  %v7879_v29 = vld [vmem:[%s11967_s5 + $0x80] sm:$0xff]  }
 0x6a6   :  { %7753 = vmatprep.subr.bf16.mxu0 %v7914_v16 }
 0x6a9   :  { %7754 = vmatpush3.bf16.msra.mxu0 %v7916_v7 }
 0x6aa   :  { %7755 = vmatprep.subr.bf16.mxu0 %v7920_v48  ;;  %v7894_v48 = vld [vmem:[%s11967_s5 + $0xb8] sm:$0xff]  }
 0x6ab   :  { %v7540_v19 = vld.sshfl [vmem:[#allocation7 + $0x1b] sm:$0x1 pattern:$0x76325410] }
 0x6ac   :  { %v6489_v60 = vrot.slane %v7540_v19, 7  ;;  %v7536_v57 = vld.sshfl [vmem:[#allocation7 + $0x19] sm:$0x1 pattern:$0x76325410] }
 0x6ad   :  { %v6433_v40 = vrot.slane %v7536_v57, 7  ;;  %v7538_v36 = vld.sshfl [vmem:[#allocation7 + $0x1a] sm:$0x1 pattern:$0x76325410] }
 0x6ae   :  { %v6490_v55 = vsel %vm6175_vm9, %v6489_v60, %v7539_v2  ;;  %v6462_v1 = vrot.slane %v7538_v36, 7  ;;  %v7534_v15 = vld.sshfl [vmem:[#allocation7 + $0x18] sm:$0x1 pattern:$0x76325410] }
 0x6af   :  { %v6491_v51 = vsel %vm6177_vm10, %v6489_v60, %v6490_v55  ;;  %v6434_v38 = vsel %vm6175_vm9, %v6433_v40, %v7535_v33  ;;  %v6406_v37 = vrot.slane %v7534_v15, 7 }
 0x6b0   :  { %v6492_v62 = vsel %vm6179_vm11, %v6489_v60, %v6491_v51  ;;  %v6435_v41 = vsel %vm6177_vm10, %v6433_v40, %v6434_v38  ;;  %v6463_v42 = vsel %vm6175_vm9, %v6462_v1, %v7537_v27 }
 0x6b1   :  { %v6493_v46 = vsel %vm6181_vm12, %v6489_v60, %v6492_v62  ;;  %v6436_v30 = vsel %vm6179_vm11, %v6433_v40, %v6435_v41  ;;  %v6464_v32 = vsel %vm6177_vm10, %v6462_v1, %v6463_v42  ;;  %v6407_v59 = vsel %vm6175_vm9, %v6406_v37, %v7533_v49 }
 0x6b2   :  { %6494 = vrot.lane.b32.xlu1 %v6493_v46, %s7996_s11  ;;  %v6437_v3 = vsel %vm6181_vm12, %v6433_v40, %v6436_v30  ;;  %v6465_v24 = vsel %vm6179_vm11, %v6462_v1, %v6464_v32  ;;  %v6408_v34 = vsel %vm6177_vm10, %v6406_v37, %v6407_v59  ;;  %v7541_v40 = vld.sshfl [vmem:[#allocation7 + $0xc] sm:$0x1 pattern:$0x76325410]  ;;  %v7998_v49 = vmov 1983009808  }
 0x6b3   :  { %6438 = vrot.lane.b32.xlu0 %v6437_v3, %s7996_s11  ;;  %v6466_v18 = vsel %vm6181_vm12, %v6462_v1, %v6465_v24  ;;  %v6409_v58 = vsel %vm6179_vm11, %v6406_v37, %v6408_v34  ;;  %v6617_v44 = vunpack.c.l.s4 %v7998_v49  ;;  %v6619_v46 = vlaneseq  ;;  %v7928_v49 = vld [vmem:[%s11969_s7] sm:$0xff]  }
 0x6b4   :  { %6468 = vst.msk [vmem:[#allocation8 + $0xa] sm:$0x3] %vm6184_vm13, %v6466_v18  ;;  %v6410_v52 = vsel %vm6181_vm12, %v6406_v37, %v6409_v58 }
 0x6b5   :  { %6412 = vst.msk [vmem:[#allocation8 + $0x8] sm:$0x3] %vm6184_vm13, %v6410_v52  ;;  %v6618_v59 = vunpack.c.0.s8 %v6617_v44  ;;  %v6620_v3 = vshrl.u32 %v6619_v46, 7  ;;  %v7929_v44 = vld [vmem:[%s11969_s7 + $0x8] sm:$0xff]   ;;  %v7930_v46 = vld [vmem:[%s11969_s7 + $0x10] sm:$0xff]  }
 0x6b7   :  { %v11809_v24 = vsub.s32 %v6618_v59, %v6620_v3  ;;  %v7933_v59 = vld [vmem:[%s11969_s7 + $0x28] sm:$0xff]   ;;  %v7934_v3 = vld [vmem:[%s11969_s7 + $0x30] sm:$0xff]  }
 0x6bc   :  { %v7681_v47 = vpop.f32.mrb[28].mxu0 }
 0x6bd   :  { %v7682_v31 = vpop.f32.mrb[29].mxu0 }
 0x6be   :  { %v7683_v4 = vadd.f32 %v7682_v31, %v7681_v47  ;;  %v7684_v14 = vpop.f32.mrb[30].mxu0  ;;  %v7881_v47 = vld [vmem:[%s11967_s5 + $0xc8] sm:$0xff]  }
 0x6bf   :  { %v7685_v8 = vpop.f32.mrb[31].mxu0 }
 0x6c0   :  { %v6058_v10 = vadd.f32 %v11587_v23, %v7683_v4  ;;  %v7686_v25 = vadd.f32 %v7685_v8, %v7684_v14  ;;  %v7922_v23 = vld [vmem:[%s11967_s5 + $0x138] sm:$0xff]   ;;  %v7882_v4 = vld [vmem:[%s11967_s5 + $0x88] sm:$0xff]   ;;  %v7883_v14 = vld [vmem:[%s11967_s5 + $0xd0] sm:$0xff]  }
 0x6c1   :  { %7756 = vmatpush3.bf16.msra.mxu0 %v7922_v23  ;;  %v7884_v8 = vld [vmem:[%s11967_s5 + $0x90] sm:$0xff]   ;;  %v7905_v23 = vld [vmem:[%s11967_s5 + $0x1c0] sm:$0xff]  }
 0x6c2   :  { %v6061_v63 = vadd.f32 %v11592_v11, %v7686_v25  ;;  %v7547_v11 = vld.sshfl [vmem:[#allocation7 + $0xf] sm:$0x1 pattern:$0x76325410]  ;;  %7814 = vmatprep.subr.bf16.mxu0 %v12795_v6  ;;  %v7886_v25 = vld [vmem:[%s11967_s5 + $0x98] sm:$0xff]  }
 0x6c4   :  { %v6071_v26 = vmax.f32 %v6058_v10, %v6061_v63  ;;  %v7885_v10 = vld [vmem:[%s11967_s5 + $0xd8] sm:$0xff]   ;;  %v7887_v63 = vld [vmem:[%s11967_s5 + $0xe0] sm:$0xff]  }
 0x6c6   :  { %6080 = vst.msk [vmem:[#allocation6 + $0x38] sm:$0xff] %vm6072_vm7, %v6071_v26  ;;  %v7888_v26 = vld [vmem:[%s11967_s5 + $0xa0] sm:$0xff]  }
 0x6cd   :  { %v6095_v56 = vld [vmem:[#allocation6 + $0x38] ss:$2 sm:$0xf]  ;;  %v6111_v5 = vld [vmem:[#allocation6 + $0x39] ss:$2 sm:$0xf] }
 0x6ce   :  { %v6119_v17 = vmax.f32 %v6095_v56, %v6111_v5  ;;  %v7889_v56 = vld [vmem:[%s11967_s5 + $0xe8] sm:$0xff]  }
 0x6cf   :  { %v7890_v5 = vld [vmem:[%s11967_s5 + $0xa8] sm:$0xff]  }
 0x6d0   :  { %v6134_v22 = vadd.f32 %v11578_v13, %v6119_v17  ;;  %v7891_v17 = vld [vmem:[%s11967_s5 + $0xf0] sm:$0xff]  }
 0x6d2   :  { %v6142_v54 = vmax.f32 %v6134_v22, 0.0  ;;  %v7892_v22 = vld [vmem:[%s11967_s5 + $0xb0] sm:$0xff]  }
 0x6d4   :  { %6151 = vst.msk [vmem:[#allocation7 + $0x1c] sm:$0xf] %vm6143_vm8, %v6142_v54  ;;  %v7893_v54 = vld [vmem:[%s11967_s5 + $0xf8] sm:$0xff]  }
 0x6db   :  { %v7548_v61 = vld.sshfl [vmem:[#allocation7 + $0x1f] sm:$0x1 pattern:$0x76325410] }
 0x6dc   :  { %v6602_v21 = vrot.slane %v7548_v61, 7  ;;  %v7544_v13 = vld.sshfl [vmem:[#allocation7 + $0x1d] sm:$0x1 pattern:$0x76325410]  ;;  %v7906_v61 = vld [vmem:[%s11967_s5 + $0x180] sm:$0xff]  }
 0x6dd   :  { %v6546_v9 = vrot.slane %v7544_v13, 7  ;;  %v7546_v28 = vld.sshfl [vmem:[#allocation7 + $0x1e] sm:$0x1 pattern:$0x76325410]  ;;  %v7907_v13 = vld [vmem:[%s11967_s5 + $0x1c8] sm:$0xff]  }
 0x6de   :  { %v6603_v53 = vsel %vm6175_vm9, %v6602_v21, %v7547_v11  ;;  %v6575_v12 = vrot.slane %v7546_v28, 7  ;;  %v7542_v20 = vld.sshfl [vmem:[#allocation7 + $0x1c] sm:$0x1 pattern:$0x76325410]  ;;  %v7911_v28 = vld [vmem:[%s11967_s5 + $0x1d0] sm:$0xff]  }
 0x6df   :  { %v6604_v2 = vsel %vm6177_vm10, %v6602_v21, %v6603_v53  ;;  %v6547_v19 = vsel %vm6175_vm9, %v6546_v9, %v7543_v43  ;;  %v6519_v60 = vrot.slane %v7542_v20, 7  ;;  %v7912_v53 = vld [vmem:[%s11967_s5 + $0x190] sm:$0xff]   ;;  %v7915_v20 = vld [vmem:[%s11967_s5 + $0x198] sm:$0xff]  }
 0x6e0   :  { %v6605_v33 = vsel %vm6179_vm11, %v6602_v21, %v6604_v2  ;;  %v6548_v57 = vsel %vm6177_vm10, %v6546_v9, %v6547_v19  ;;  %v6576_v50 = vsel %vm6175_vm9, %v6575_v12, %v7545_v35  ;;  %v7917_v2 = vld [vmem:[%s11967_s5 + $0x1e0] sm:$0xff]   ;;  %v7919_v35 = vld [vmem:[%s11967_s5 + $0x1e8] sm:$0xff]  }
 0x6e1   :  { %v6606_v36 = vsel %vm6181_vm12, %v6602_v21, %v6605_v33  ;;  %v6549_v55 = vsel %vm6179_vm11, %v6546_v9, %v6548_v57  ;;  %v6577_v1 = vsel %vm6177_vm10, %v6575_v12, %v6576_v50  ;;  %v6520_v15 = vsel %vm6175_vm9, %v6519_v60, %v7541_v40  ;;  %v7918_v19 = vld [vmem:[%s11967_s5 + $0x1a0] sm:$0xff]   ;;  %v7923_v33 = vld [vmem:[%s11967_s5 + $0x1f0] sm:$0xff]   ;;  %v7925_v50 = vld [vmem:[%s11967_s5 + $0x1f8] sm:$0xff]  }
 0x6e2   :  { %6607 = vrot.lane.b32.xlu1 %v6606_v36, %s7996_s11  ;;  %v6550_v51 = vsel %vm6181_vm12, %v6546_v9, %v6549_v55  ;;  %v6578_v38 = vsel %vm6179_vm11, %v6575_v12, %v6577_v1  ;;  %v6521_v27 = vsel %vm6177_vm10, %v6519_v60, %v6520_v15  ;;  %v7909_v9 = vld [vmem:[%s11967_s5 + $0x188] sm:$0xff]   ;;  %v7924_v57 = vld [vmem:[%s11967_s5 + $0x1b0] sm:$0xff]   ;;  %v7926_v40 = vld [vmem:[%s11967_s5 + $0x1b8] sm:$0xff]  }
 0x6e3   :  { %6551 = vrot.lane.b32.xlu0 %v6550_v51, %s7996_s11  ;;  %v6579_v37 = vsel %vm6181_vm12, %v6575_v12, %v6578_v38  ;;  %v6522_v0 = vsel %vm6179_vm11, %v6519_v60, %v6521_v27  ;;  %v7913_v12 = vld [vmem:[%s11967_s5 + $0x1d8] sm:$0xff]  }
 0x6e4   :  { %6581 = vst.msk [vmem:[#allocation8 + $0xe] sm:$0x3] %vm6184_vm13, %v6579_v37  ;;  %v6523_v62 = vsel %vm6181_vm12, %v6519_v60, %v6522_v0  ;;  %v7921_v60 = vld [vmem:[%s11967_s5 + $0x1a8] sm:$0xff]  }
 0x6e5   :  { %6525 = vst.msk [vmem:[#allocation8 + $0xc] sm:$0x3] %vm6184_vm13, %v6523_v62 }
 0x6ea   :  { %v6269_v41 = vpop.permute.xlu1 %6268 }
 0x6eb   :  { %6271 = vst.msk [vmem:[#allocation8 + $0x2] sm:$0x3] %vm6214_vm14, %v6269_v41  ;;  %v6212_v42 = vpop.permute.xlu0 %6211 }
 0x6ec   :  { %6215 = vst.msk [vmem:[#allocation8] sm:$0x3] %vm6214_vm14, %v6212_v42 }
 0x6f6   :  { %v6382_v30 = vpop.permute.xlu1 %6381 }
 0x6f7   :  { %6384 = vst.msk [vmem:[#allocation8 + $0x6] sm:$0x3] %vm6214_vm14, %v6382_v30  ;;  %v6326_v32 = vpop.permute.xlu0 %6325  ;;  %v7931_v30 = vld [vmem:[%s11969_s7 + $0x18] sm:$0xff]  }
 0x6f8   :  { %6328 = vst.msk [vmem:[#allocation8 + $0x4] sm:$0x3] %vm6214_vm14, %v6326_v32  ;;  %v7932_v32 = vld [vmem:[%s11969_s7 + $0x20] sm:$0xff]  }
 0x6ff   :  { %v6611_v34 = vld [vmem:[#allocation8] sm:$0xff] }
 0x700   :  { %v6622_v18 = vrot.slane %v6611_v34, %v11809_v24  ;;  %v6615_v58 = vcombine.high %v6611_v34, %v6611_v34 }
 0x702   :  { %v6630_v39 = vcombine.high %v6622_v18, %v6622_v18  ;;  %v6629_v52 = vrot.slane %v6615_v58, %v11809_v24  ;;  %v6657_v7 = vpack.c.bf16 %v6622_v18, %v6622_v18 }
 0x704   :  { %v6658_v45 = vpack.c.bf16 %v6630_v39, %v6630_v39  ;;  %v6631_v16 = vcombine.high %v6629_v52, %v6629_v52  ;;  %v6659_v43 = vpack.c.bf16 %v6629_v52, %v6629_v52 }
 0x706   :  { %7216 = vmatprep.mubr.bf16.mxu1 %v6658_v45  ;;  %v6660_v31 = vpack.c.bf16 %v6631_v16, %v6631_v16  ;;  %v7549_v45 = vld [vmem:[%s11968_s6] ss:$0 sm:$0xff] }
 0x707   :  { %7217 = vmatmul.mubr.bf16.vlgmr.msra.gmra.mrb[16].mxu1 %v6657_v7 }
 0x708   :  { %7720 = vmatpush3.bf16.msra.mxu1 %v7879_v29  ;;  %7256 = vmatprep.mubr.bf16.mxu1 %v6660_v31 }
 0x709   :  { %7721 = vmatprep.subr.bf16.mxu1 %v7881_v47 }
 0x70c   :  { %7722 = vmatpush3.bf16.msra.mxu1 %v7882_v4 }
 0x70d   :  { %7723 = vmatprep.subr.bf16.mxu1 %v7883_v14 }
 0x710   :  { %7724 = vmatpush3.bf16.msra.mxu1 %v7884_v8 }
 0x711   :  { %7725 = vmatprep.subr.bf16.mxu1 %v7885_v10 }
 0x714   :  { %7726 = vmatpush3.bf16.msra.mxu1 %v7886_v25 }
 0x715   :  { %7727 = vmatprep.subr.bf16.mxu1 %v7887_v63 }
 0x718   :  { %7728 = vmatpush3.bf16.msra.mxu1 %v7888_v26 }
 0x719   :  { %7729 = vmatprep.subr.bf16.mxu1 %v7889_v56 }
 0x71c   :  { %7730 = vmatpush3.bf16.msra.mxu1 %v7890_v5 }
 0x71d   :  { %7731 = vmatprep.subr.bf16.mxu1 %v7891_v17 }
 0x720   :  { %7732 = vmatpush3.bf16.msra.mxu1 %v7892_v22 }
 0x721   :  { %7733 = vmatprep.subr.bf16.mxu1 %v7893_v54 }
 0x724   :  { %7734 = vmatpush3.bf16.msra.mxu1 %v7894_v48  ;;  %v6495_v11 = vpop.permute.xlu1 %6494 }
 0x725   :  { %6497 = vst.msk [vmem:[#allocation8 + $0xa] sm:$0x3] %vm6214_vm14, %v6495_v11  ;;  %v6439_v21 = vpop.permute.xlu0 %6438  ;;  %7763 = vmatprep.subr.bf16.mxu1 %v7905_v23 }
 0x726   :  { %6441 = vst.msk [vmem:[#allocation8 + $0x8] sm:$0x3] %vm6214_vm14, %v6439_v21 }
 0x727   :  { %7257 = vmatmul.mubr.bf16.vlgmr.msra.gmra.mrb[20].mxu1 %v6659_v43 }
 0x728   :  { %7764 = vmatpush3.bf16.msra.mxu1 %v7906_v61  ;;  %v7614_v61 = vld [vmem:[%s11970_s8] ss:$0 sm:$0xff] }
 0x729   :  { %7765 = vmatprep.subr.bf16.mxu1 %v7907_v13 }
 0x72c   :  { %7766 = vmatpush3.bf16.msra.mxu1 %v7909_v9 }
 0x72d   :  { %7767 = vmatprep.subr.bf16.mxu1 %v7911_v28 }
 0x730   :  { %7768 = vmatpush3.bf16.msra.mxu1 %v7912_v53 }
 0x731   :  { %7769 = vmatprep.subr.bf16.mxu1 %v7913_v12 }
 0x734   :  { %7770 = vmatpush3.bf16.msra.mxu1 %v7915_v20 }
 0x735   :  { %7771 = vmatprep.subr.bf16.mxu1 %v7917_v2 }
 0x738   :  { %7772 = vmatpush3.bf16.msra.mxu1 %v7918_v19 }
 0x739   :  { %7773 = vmatprep.subr.bf16.mxu1 %v7919_v35 }
 0x73c   :  { %7774 = vmatpush3.bf16.msra.mxu1 %v7921_v60 }
 0x73d   :  { %7775 = vmatprep.subr.bf16.mxu1 %v7923_v33 }
 0x740   :  { %7776 = vmatpush3.bf16.msra.mxu1 %v7924_v57 }
 0x741   :  { %7777 = vmatprep.subr.bf16.mxu1 %v7925_v50 }
 0x744   :  { %7778 = vmatpush3.bf16.msra.mxu1 %v7926_v40 }
 0x754   :  { %v6608_v36 = vpop.permute.xlu1 %6607 }
 0x755   :  { %6610 = vst.msk [vmem:[#allocation8 + $0xe] sm:$0x3] %vm6214_vm14, %v6608_v36  ;;  %v6552_v55 = vpop.permute.xlu0 %6551 }
 0x756   :  { %6554 = vst.msk [vmem:[#allocation8 + $0xc] sm:$0x3] %vm6214_vm14, %v6552_v55 }
 0x75d   :  { %v6612_v1 = vld [vmem:[#allocation8 + $0x8] sm:$0xff] }
 0x75e   :  { %v6639_v15 = vrot.slane %v6612_v1, %v11809_v24  ;;  %v6632_v51 = vcombine.high %v6612_v1, %v6612_v1 }
 0x760   :  { %v6647_v38 = vcombine.high %v6639_v15, %v6639_v15  ;;  %v6646_v27 = vrot.slane %v6632_v51, %v11809_v24  ;;  %v6661_v62 = vpack.c.bf16 %v6639_v15, %v6639_v15  ;;  %v7935_v24 = vld [vmem:[%s11969_s7 + $0x38] sm:$0xff]  }
 0x762   :  { %v6662_v37 = vpack.c.bf16 %v6647_v38, %v6647_v38  ;;  %v6648_v0 = vcombine.high %v6646_v27, %v6646_v27  ;;  %v6663_v42 = vpack.c.bf16 %v6646_v27, %v6646_v27 }
 0x764   :  { %7296 = vmatprep.mubr.bf16.mxu0 %v6662_v37  ;;  %v6664_v41 = vpack.c.bf16 %v6648_v0, %v6648_v0 }
 0x765   :  { %7297 = vmatmul.mubr.bf16.vlgmr.msra.gmra.mrb[32].mxu0 %v6661_v62 }
 0x766   :  { %7336 = vmatprep.mubr.bf16.mxu1 %v6664_v41  ;;  %7815 = vmatpush3.bf16.msra.mxu0 %v7928_v49 }
 0x767   :  { %7337 = vmatmul.mubr.bf16.vlgmr.msra.gmra.mrb[24].mxu1 %v6663_v42  ;;  %7816 = vmatprep.subr.bf16.mxu0 %v12795_v6 }
 0x768   :  { %7830 = vmatprep.mubr.msk.bf16.mxu0 %vm7999_vm15, %v12795_v6 }
 0x76a   :  { %7817 = vmatpush3.bf16.msra.mxu0 %v7929_v44 }
 0x76b   :  { %7818 = vmatprep.subr.bf16.mxu0 %v12795_v6 }
 0x76e   :  { %7819 = vmatpush3.bf16.msra.mxu0 %v7930_v46 }
 0x76f   :  { %7820 = vmatprep.subr.bf16.mxu0 %v12795_v6 }
 0x772   :  { %7821 = vmatpush3.bf16.msra.mxu0 %v7931_v30 }
 0x773   :  { %7822 = vmatprep.subr.bf16.mxu0 %v12795_v6 }
 0x776   :  { %7823 = vmatpush3.bf16.msra.mxu0 %v7932_v32 }
 0x777   :  { %7824 = vmatprep.subr.bf16.mxu0 %v12795_v6 }
 0x77a   :  { %7825 = vmatpush3.bf16.msra.mxu0 %v7933_v59 }
 0x77b   :  { %7826 = vmatprep.subr.bf16.mxu0 %v12795_v6 }
 0x77e   :  { %7827 = vmatpush3.bf16.msra.mxu0 %v7934_v3 }
 0x77f   :  { %7828 = vmatprep.subr.bf16.mxu0 %v12795_v6 }
 0x782   :  { %7829 = vmatpush3.bf16.msra.mxu0 %v7935_v24 }
 0x7da   :  { %v7713_v34 = vpop.f32.mrb[16].mxu1 }
 0x7db   :  { %v7714_v18 = vpop.f32.mrb[17].mxu1 }
 0x7dc   :  { %v7715_v58 = vadd.f32 %v7714_v18, %v7713_v34  ;;  %v7716_v39 = vpop.f32.mrb[18].mxu1 }
 0x7dd   :  { %v7717_v52 = vpop.f32.mrb[19].mxu1 }
 0x7de   :  { %v7219_v7 = vadd.f32 %v7715_v58, %v7549_v45 }
 0x7fa   :  { %v7735_v29 = vpop.f32.mrb[20].mxu1 }
 0x7fb   :  { %v7736_v16 = vpop.f32.mrb[21].mxu1 }
 0x7fc   :  { %v7737_v47 = vadd.f32 %v7736_v16, %v7735_v29  ;;  %v7738_v31 = vpop.f32.mrb[22].mxu1 }
 0x7fd   :  { %v7739_v4 = vpop.f32.mrb[23].mxu1 }
 0x7fe   :  { %v7259_v14 = vadd.f32 %v7737_v47, %v7219_v7 }
 0x838   :  { %v7757_v8 = vpop.f32.mrb[32].mxu0 }
 0x839   :  { %v7758_v10 = vpop.f32.mrb[33].mxu0 }
 0x83a   :  { %v7759_v25 = vadd.f32 %v7758_v10, %v7757_v8  ;;  %v7760_v6 = vpop.f32.mrb[34].mxu0  ;;  %v7779_v63 = vpop.f32.mrb[24].mxu1 }
 0x83b   :  { %v7761_v26 = vpop.f32.mrb[35].mxu0  ;;  %v7780_v56 = vpop.f32.mrb[25].mxu1 }
 0x83c   :  { %v7299_v5 = vadd.f32 %v7759_v25, %v7259_v14  ;;  %v7781_v17 = vadd.f32 %v7780_v56, %v7779_v63  ;;  %v7782_v22 = vpop.f32.mrb[26].mxu1 }
 0x83d   :  { %v7783_v54 = vpop.f32.mrb[27].mxu1 }
 0x83e   :  { %v7339_v48 = vadd.f32 %v7781_v17, %v7299_v5 }
 0x840   :  { %v7344_v23 = vmax.f32 %v7339_v48, 0.0 }
 0x842   :  { %v7345_v11 = vpack.c.bf16 %v7344_v23, %v7344_v23 }
 0x844   :  { %7831 = vmatmul.mubr.bf16.vlgmr.msra.gmra.mrb[36].mxu0 %v7345_v11 }
 0x917   :  { %v7451_v21 = vpop.f32.mrb[36].mxu0 }
 0x918   :  { %v7452_v43 = vadd.f32 %v7614_v61, %v7451_v21  ;;  %v7832_v13 = vpop.f32.mrb[37].mxu0 }
 0x919   :  { %v7454_v9 = vpop.f32.mrb[38].mxu0 }
 0x91a   :  { %7457 = vst [vmem:[#allocation9] sm:$0x3] %v7452_v43  ;;  %v7833_v28 = vpop.f32.mrb[39].mxu0 }
 0x91b   :  { %7980 = shalt.err (!%p7977_p4)
}
 0x91c   :  { %s7981_s8 = scalar_lea.hbm %s11971_s9, 32 }
 0x91d   :  { %p7982_p5 = scmp.ne.s32.totalorder %s11971_s9, %s7981_s8  ;;  %p7985_p6 = scmp.lt.u32.totalorder %s7981_s8, %s11971_s9 }
 0x91f   :  { %p7987_p7 = pnand %p7985_p6, %p7982_p5 }
 0x921   :  { %7990 = shalt.err (!%p7987_p7)
}
 0x922   :  { %7467 = dma.vmem_to_hbm [thread:$0]  %s7465_s30, 32, %s11971_s9, [#allocation10]  }
 0x923   :  { %7991 = dma.done.wait [#allocation10], 32  }
 0x924   :  { %7992 = vsyncadd [#allocation10], 4294967264 }
 0x925   :  { %7471 = vsyncpa [#allocation10], 1 }

</bundles_post_ra>
